<compile_context>
chip_gen: v5e
topology: v5e:2x2
jax: 0.10.0
libtpu: 0.0.40
codegen_flags: <defaults>
</compile_context>

<pallas_src>
import jax
import jax.numpy as jnp
from jax.experimental import pallas as pl
from jax.experimental.pallas import tpu as pltpu

EMBEDDING_DIM = 64
HIDDEN_DIM = 120           # logical hidden size (matches the PyTorch module)
HIDDEN_PAD = 128           # lane-aligned padded hidden size
OUTPUT_DIM = 3
OUT_PAD = 128              # lane-dense padded classifier width


def bilstm_kernel(emb_f_ref,    # (TT, BB, E)   time tile t_idx        (compute dtype)
                  emb_b_ref,    # (TT, BB, E)   time tile nt-1-t_idx   (compute dtype)
                  wih_f_ref,    # (E, 4*Hp)
                  wih_b_ref,    # (E, 4*Hp)
                  b_f_ref,      # (1, 4*Hp) f32
                  b_b_ref,      # (1, 4*Hp) f32
                  whh_f_ref,    # (Hp, 4*Hp)
                  whh_b_ref,    # (Hp, 4*Hp)
                  wfc_f_ref,    # (Hp, OUT_PAD)
                  wfc_b_ref,    # (Hp, OUT_PAD)
                  bfc_ref,      # (1, OUT_PAD) f32
                  out_ref,      # (BB, OUT_PAD) f32
                  h_f_ref, c_f_ref, h_b_ref, c_b_ref):   # VMEM scratch (BB, Hp) f32
    TT = emb_f_ref.shape[0]
    Hp = whh_f_ref.shape[0]
    cdt = wih_f_ref.dtype            # MXU operand dtype (bf16 on v6e/v7x, or f32)
    t_idx = pl.program_id(1)

    @pl.when(t_idx == 0)
    def _():
        h_f_ref[...] = jnp.zeros_like(h_f_ref)
        c_f_ref[...] = jnp.zeros_like(c_f_ref)
        h_b_ref[...] = jnp.zeros_like(h_b_ref)
        c_b_ref[...] = jnp.zeros_like(c_b_ref)

    # Hoist weight / bias loads out of the recurrence.
    wih_f = wih_f_ref[...]
    wih_b = wih_b_ref[...]
    whh_f = whh_f_ref[...]
    whh_b = whh_b_ref[...]
    b_f = b_f_ref[...]
    b_b = b_b_ref[...]

    def cell(gx, h, c, whh):
        # gx already holds x_t @ Wih + b (f32); add the recurrent projection.
        gates = gx + jnp.dot(h.astype(cdt), whh, preferred_element_type=jnp.float32)
        # 128-lane-aligned gate blocks, PyTorch order (i, f, g, o).
        # 5 transcendentals/step -> EUP is the saturating unit at large batch;
        # keep the gate math exactly this (no extra exp/div).
        i = jax.nn.sigmoid(gates[:, 0 * Hp:1 * Hp])
        f = jax.nn.sigmoid(gates[:, 1 * Hp:2 * Hp])
        g = jnp.tanh(gates[:, 2 * Hp:3 * Hp])
        o = jax.nn.sigmoid(gates[:, 3 * Hp:4 * Hp])
        c_new = f * c + i * g
        h_new = o * jnp.tanh(c_new)
        return h_new, c_new

    h_f, c_f = h_f_ref[...], c_f_ref[...]
    h_b, c_b = h_b_ref[...], c_b_ref[...]

    # Static unroll over the time tile (TT is small; capped by the wrapper as a
    # function of the batch block).  The emb @ Wih projections have no serial
    # dependence on h, so the scheduler overlaps them with the h @ Whh chain.
    for t in range(TT):
        gx_f = jnp.dot(emb_f_ref[t], wih_f,
                       preferred_element_type=jnp.float32) + b_f
        h_f, c_f = cell(gx_f, h_f, c_f, whh_f)

        # Backward direction: this tile is the (nt-1-t_idx)-th time tile;
        # iterate it in reverse time order.
        gx_b = jnp.dot(emb_b_ref[TT - 1 - t], wih_b,
                       preferred_element_type=jnp.float32) + b_b
        h_b, c_b = cell(gx_b, h_b, c_b, whh_b)

    # Carry the state to the next time tile.
    h_f_ref[...] = h_f
    c_f_ref[...] = c_f
    h_b_ref[...] = h_b
    c_b_ref[...] = c_b

    # Last time tile: fwd ends at step T-1, bwd ends at step 0 -> both final
    # hiddens are ready.  Dropout is identity at inference.  Lane-dense
    # padded (BB, 128) store; padded rows of wfc are zero so pad lanes of h
    # never contaminate the logits.
    @pl.when(t_idx == pl.num_programs(1) - 1)
    def _():
        logits = (jnp.dot(h_f.astype(cdt), wfc_f_ref[...],
                          preferred_element_type=jnp.float32)
                  + jnp.dot(h_b.astype(cdt), wfc_b_ref[...],
                            preferred_element_type=jnp.float32)
                  + bfc_ref[...])
        out_ref[...] = logits


def prepare_kernel_params(params, dtype=jnp.bfloat16,
                          H=HIDDEN_DIM, Hp=HIDDEN_PAD,
                          out_dim=OUTPUT_DIM, out_pad=OUT_PAD):
    """Pad raw parameters into the kernel's layout.

    Each gate block is zero-padded from H=120 to Hp=128 lanes.  Padded lanes
    see zero weights and zero bias, so i=f=o=0.5, g=0 there and (with c0=0)
    their c/h stay exactly zero forever; the classifier's padded rows are also
    zero, so the logits are unaffected.
    """
    f32 = jnp.float32

    def pad_gates(w):            # (rows, 4H) -> (rows, 4*Hp)
        rows = w.shape[0]
        out = jnp.zeros((rows, 4, Hp), f32)
        out = out.at[:, :, :H].set(w.reshape(rows, 4, H))
        return out.reshape(rows, 4 * Hp)

    def pad_whh(w):              # (H, 4H) -> (Hp, 4*Hp)
        out = jnp.zeros((Hp, 4, Hp), f32)
        out = out.at[:H, :, :H].set(w.reshape(H, 4, H))
        return out.reshape(Hp, 4 * Hp)

    def pad_fc(w):               # (H, out_dim) -> (Hp, out_pad)
        out = jnp.zeros((Hp, out_pad), f32)
        return out.at[:H, :out_dim].set(w)

    return {
        "embedding": params["embedding"].astype(f32),
        "wih_f": pad_gates(params["wih_f"]).astype(dtype),
        "wih_b": pad_gates(params["wih_b"]).astype(dtype),
        "b_f": pad_gates(params["b_f"]),                  # f32 (post-accum add)
        "b_b": pad_gates(params["b_b"]),
        "whh_f": pad_whh(params["whh_f"]).astype(dtype),
        "whh_b": pad_whh(params["whh_b"]).astype(dtype),
        "wfc_f": pad_fc(params["wfc_f"]).astype(dtype),
        "wfc_b": pad_fc(params["wfc_b"]).astype(dtype),
        "bfc": jnp.zeros((1, out_pad), f32).at[:, :out_dim].set(params["bfc"]),
    }


def _pick_t_tile(T, max_tile):
    """Largest divisor of T that is <= max_tile (avoids padding the time axis,
    which would corrupt the final hiddens since there is no length masking)."""
    max_tile = max(1, min(T, max_tile))
    for tt in range(max_tile, 0, -1):
        if T % tt == 0:
            return tt
    return 1


def _pick_b_block(B, max_blk=256):
    """Batch block: whole batch if small, else a multiple-of-8 divisor."""
    if B <= max_blk:
        return B
    best = 1
    for bb in range(8, max_blk + 1, 8):
        if B % bb == 0:
            best = bb
    return best if best > 1 else B


def bilstm_classifier_forward(token_ids, kparams, *, t_tile_max=32):
    """token_ids: (B, T) int32 ; returns logits (B, 3) f32."""
    f32 = jnp.float32
    cdt = kparams["wih_f"].dtype
    Hp = kparams["whh_f"].shape[0]
    G4 = kparams["wih_f"].shape[1]           # 4*Hp
    E = kparams["embedding"].shape[1]

    # Embedding lookup (gather) is glue in plain JAX/XLA.
    emb = jnp.take(kparams["embedding"], token_ids, axis=0)       # (B, T, E)
    emb = jnp.transpose(emb, (1, 0, 2)).astype(cdt)               # (T, B, E)
    T, B, _ = emb.shape

    BB = _pick_b_block(B)
    # Cap the per-tile static unroll so TT*BB stays modest (vreg / VMEM /
    # compile-time budget per the review); the grid handles the rest of T.
    TT = _pick_t_tile(T, min(t_tile_max, max(8, 4096 // BB)))
    nb, nt = B // BB, T // TT

    def const(shape):
        return pl.BlockSpec(shape, lambda b, t: (0, 0))

    grid_spec = pltpu.PrefetchScalarGridSpec(
        num_scalar_prefetch=0,
        grid=(nb, nt),                                    # time axis last (serial)
        in_specs=[
            # Forward direction streams time tiles 0..nt-1.
            pl.BlockSpec((TT, BB, E), lambda b, t: (t, b, 0)),
            # Backward direction streams the same emb array in reverse tile
            # order - no reversed/concatenated copy is ever materialized.
            pl.BlockSpec((TT, BB, E), lambda b, t: (nt - 1 - t, b, 0)),
            const((E, G4)), const((E, G4)),               # wih_f, wih_b
            const((1, G4)), const((1, G4)),               # b_f,  b_b
            const((Hp, G4)), const((Hp, G4)),             # whh_f, whh_b
            const((Hp, OUT_PAD)), const((Hp, OUT_PAD)),   # wfc_f, wfc_b
            const((1, OUT_PAD)),                          # bfc
        ],
        out_specs=pl.BlockSpec((BB, OUT_PAD), lambda b, t: (b, 0)),
        scratch_shapes=[pltpu.VMEM((BB, Hp), f32)] * 4,   # h_f, c_f, h_b, c_b
    )

    out = pl.pallas_call(
        bilstm_kernel,
        out_shape=jax.ShapeDtypeStruct((B, OUT_PAD), f32),
        grid_spec=grid_spec,
        # Batch axis parallel (megacore on v7x), serial time axis arbitrary.
        # Tile sizes above stay far below the 32 MiB default scoped VMEM
        # (and v7x's 64 MiB physical), so no vmem_limit_bytes override needed.
        compiler_params=pltpu.CompilerParams(
            dimension_semantics=("parallel", "arbitrary")),
    )(emb, emb,
      kparams["wih_f"], kparams["wih_b"], kparams["b_f"], kparams["b_b"],
      kparams["whh_f"], kparams["whh_b"],
      kparams["wfc_f"], kparams["wfc_b"], kparams["bfc"])
    return out[:, :OUTPUT_DIM]


def init_params(key, vocab_size, E=EMBEDDING_DIM, H=HIDDEN_DIM, out_dim=OUTPUT_DIM):
    keys = jax.random.split(key, 12)

    def u(k, shape, scale):
        return jax.random.uniform(k, shape, jnp.float32, -scale, scale)

    emb = jax.random.normal(keys[0], (vocab_size, E), jnp.float32)
    emb = emb.at[0].set(0.0)                      # padding_idx=0 -> zero row
    s = 1.0 / jnp.sqrt(H)
    s_fc = 1.0 / jnp.sqrt(2 * H)
    return {
        "embedding": emb,
        "wih_f": u(keys[1], (E, 4 * H), s),
        "whh_f": u(keys[2], (H, 4 * H), s),
        # PyTorch LSTM has b_ih + b_hh; sum them once here.
        "b_f": u(keys[3], (1, 4 * H), s) + u(keys[4], (1, 4 * H), s),
        "wih_b": u(keys[5], (E, 4 * H), s),
        "whh_b": u(keys[6], (H, 4 * H), s),
        "b_b": u(keys[7], (1, 4 * H), s) + u(keys[8], (1, 4 * H), s),
        "wfc_f": u(keys[9], (H, out_dim), s_fc),
        "wfc_b": u(keys[10], (H, out_dim), s_fc),
        "bfc": u(keys[11], (1, out_dim), s_fc),
    }


def reference_forward(token_ids, params):
    """Pure-JAX f32 reference of the same forward pass (for sanity checking)."""
    emb = jnp.take(params["embedding"], token_ids, axis=0)   # (B, T, E)
    B, T, _ = emb.shape
    H = HIDDEN_DIM

    def cell(x_t, h, c, wih, whh, b):
        gates = x_t @ wih + h @ whh + b
        i = jax.nn.sigmoid(gates[:, :H])
        f = jax.nn.sigmoid(gates[:, H:2 * H])
        g = jnp.tanh(gates[:, 2 * H:3 * H])
        o = jax.nn.sigmoid(gates[:, 3 * H:])
        c = f * c + i * g
        return o * jnp.tanh(c), c

    h = jnp.zeros((B, H), jnp.float32)
    c = jnp.zeros((B, H), jnp.float32)
    for t in range(T):
        h, c = cell(emb[:, t], h, c, params["wih_f"], params["whh_f"], params["b_f"])
    hf = h
    h = jnp.zeros((B, H), jnp.float32)
    c = jnp.zeros((B, H), jnp.float32)
    for t in reversed(range(T)):
        h, c = cell(emb[:, t], h, c, params["wih_b"], params["whh_b"], params["b_b"])
    hb = h
    return hf @ params["wfc_f"] + hb @ params["wfc_b"] + params["bfc"]


if __name__ == "__main__":
    VOCAB = 50
    B, T = 2, 8

    key = jax.random.PRNGKey(0)
    k_tok, k_par = jax.random.split(key)
    token_ids = jax.random.randint(k_tok, (B, T), 0, VOCAB, dtype=jnp.int32)
    params = init_params(k_par, VOCAB)

    ref = reference_forward(token_ids, params)
    fwd = jax.jit(bilstm_classifier_forward)

    # f32 operand path: tight check of the fused recurrence + classifier.
    kp_f32 = prepare_kernel_params(params, dtype=jnp.float32)
    logits_f32 = jax.block_until_ready(fwd(token_ids, kp_f32))
    assert logits_f32.shape == (B, OUTPUT_DIM)
    assert jnp.allclose(logits_f32, ref, rtol=2e-3, atol=2e-3), (logits_f32, ref)

    # bf16 MXU-operand path (native rate on v6e/v7x); f32 gate/state math.
    kp_bf16 = prepare_kernel_params(params, dtype=jnp.bfloat16)
    logits_bf16 = jax.block_until_ready(fwd(token_ids, kp_bf16))
    assert logits_bf16.shape == (B, OUTPUT_DIM)
    assert jnp.allclose(logits_bf16, ref, rtol=5e-2, atol=5e-2), (logits_bf16, ref)

    print("KERNEL_OK")
</pallas_src>

<mosaic_0001>
module attributes {stable_mosaic.version = 11 : i64} {
  func.func @bilstm_kernel(%arg0: i32, %arg1: i32, %arg2: memref<8x2x64xf32, #tpu.memory_space<vmem>>, %arg3: memref<8x2x64xf32, #tpu.memory_space<vmem>>, %arg4: memref<64x512xf32, #tpu.memory_space<vmem>>, %arg5: memref<64x512xf32, #tpu.memory_space<vmem>>, %arg6: memref<1x512xf32, #tpu.memory_space<vmem>>, %arg7: memref<1x512xf32, #tpu.memory_space<vmem>>, %arg8: memref<128x512xf32, #tpu.memory_space<vmem>>, %arg9: memref<128x512xf32, #tpu.memory_space<vmem>>, %arg10: memref<128x128xf32, #tpu.memory_space<vmem>>, %arg11: memref<128x128xf32, #tpu.memory_space<vmem>>, %arg12: memref<1x128xf32, #tpu.memory_space<vmem>>, %arg13: memref<2x128xf32, #tpu.memory_space<vmem>>, %arg14: memref<2x128xf32, #tpu.memory_space<vmem>>, %arg15: memref<2x128xf32, #tpu.memory_space<vmem>>, %arg16: memref<2x128xf32, #tpu.memory_space<vmem>>, %arg17: memref<2x128xf32, #tpu.memory_space<vmem>>) attributes {dimension_semantics = [#tpu.dimension_semantics<parallel>, #tpu.dimension_semantics<arbitrary>], iteration_bounds = array<i64: 1, 1>, scalar_prefetch = 0 : i64, scratch_operands = 4 : i64, tpu.core_type = #tpu.core_type<tc>, window_params = [{transform_indices = @transform_0, window_bounds = array<i64: 8, 2, 64>}, {transform_indices = @transform_1, window_bounds = array<i64: 8, 2, 64>}, {pipeline_mode = #tpu.pipeline_mode<synchronous>, transform_indices = @transform_2, window_bounds = array<i64: 64, 512>}, {pipeline_mode = #tpu.pipeline_mode<synchronous>, transform_indices = @transform_3, window_bounds = array<i64: 64, 512>}, {pipeline_mode = #tpu.pipeline_mode<synchronous>, transform_indices = @transform_4, window_bounds = array<i64: 1, 512>}, {pipeline_mode = #tpu.pipeline_mode<synchronous>, transform_indices = @transform_5, window_bounds = array<i64: 1, 512>}, {pipeline_mode = #tpu.pipeline_mode<synchronous>, transform_indices = @transform_6, window_bounds = array<i64: 128, 512>}, {pipeline_mode = #tpu.pipeline_mode<synchronous>, transform_indices = @transform_7, window_bounds = array<i64: 128, 512>}, {pipeline_mode = #tpu.pipeline_mode<synchronous>, transform_indices = @transform_8, window_bounds = array<i64: 128, 128>}, {pipeline_mode = #tpu.pipeline_mode<synchronous>, transform_indices = @transform_9, window_bounds = array<i64: 128, 128>}, {pipeline_mode = #tpu.pipeline_mode<synchronous>, transform_indices = @transform_10, window_bounds = array<i64: 1, 128>}, {transform_indices = @transform_11, window_bounds = array<i64: 2, 128>}]} {
    %c0_i32 = arith.constant 0 : i32
    %0 = arith.cmpi eq, %arg1, %c0_i32 : i32
    %1 = arith.extui %0 : i1 to i32
    %c0_i32_0 = arith.constant 0 : i32
    %2 = arith.cmpi ne, %1, %c0_i32_0 : i32
    scf.if %2 {
      %cst_150 = arith.constant 0.000000e+00 : f32
      %532 = vector.broadcast %cst_150 : f32 to vector<2x128xf32>
      %c0_151 = arith.constant 0 : index
      %c0_152 = arith.constant 0 : index
      %533 = vector.load %arg14[%c0_151, %c0_152] : memref<2x128xf32, #tpu.memory_space<vmem>>, vector<2x128xf32>
      tpu.vector_store %arg14[%c0_151, %c0_152], %532 {strides = array<i32>} : memref<2x128xf32, #tpu.memory_space<vmem>>, vector<2x128xf32>,
      %cst_153 = arith.constant 0.000000e+00 : f32
      %534 = vector.broadcast %cst_153 : f32 to vector<2x128xf32>
      %c0_154 = arith.constant 0 : index
      %c0_155 = arith.constant 0 : index
      %535 = vector.load %arg15[%c0_154, %c0_155] : memref<2x128xf32, #tpu.memory_space<vmem>>, vector<2x128xf32>
      tpu.vector_store %arg15[%c0_154, %c0_155], %534 {strides = array<i32>} : memref<2x128xf32, #tpu.memory_space<vmem>>, vector<2x128xf32>,
      %cst_156 = arith.constant 0.000000e+00 : f32
      %536 = vector.broadcast %cst_156 : f32 to vector<2x128xf32>
      %c0_157 = arith.constant 0 : index
      %c0_158 = arith.constant 0 : index
      %537 = vector.load %arg16[%c0_157, %c0_158] : memref<2x128xf32, #tpu.memory_space<vmem>>, vector<2x128xf32>
      tpu.vector_store %arg16[%c0_157, %c0_158], %536 {strides = array<i32>} : memref<2x128xf32, #tpu.memory_space<vmem>>, vector<2x128xf32>,
      %cst_159 = arith.constant 0.000000e+00 : f32
      %538 = vector.broadcast %cst_159 : f32 to vector<2x128xf32>
      %c0_160 = arith.constant 0 : index
      %c0_161 = arith.constant 0 : index
      %539 = vector.load %arg17[%c0_160, %c0_161] : memref<2x128xf32, #tpu.memory_space<vmem>>, vector<2x128xf32>
      tpu.vector_store %arg17[%c0_160, %c0_161], %538 {strides = array<i32>} : memref<2x128xf32, #tpu.memory_space<vmem>>, vector<2x128xf32>,
    } else {
    }
    %c0 = arith.constant 0 : index
    %c0_1 = arith.constant 0 : index
    %3 = vector.load %arg4[%c0, %c0_1] : memref<64x512xf32, #tpu.memory_space<vmem>>, vector<64x512xf32>
    %c0_2 = arith.constant 0 : index
    %c0_3 = arith.constant 0 : index
    %4 = vector.load %arg5[%c0_2, %c0_3] : memref<64x512xf32, #tpu.memory_space<vmem>>, vector<64x512xf32>
    %c0_4 = arith.constant 0 : index
    %c0_5 = arith.constant 0 : index
    %5 = vector.load %arg8[%c0_4, %c0_5] : memref<128x512xf32, #tpu.memory_space<vmem>>, vector<128x512xf32>
    %c0_6 = arith.constant 0 : index
    %c0_7 = arith.constant 0 : index
    %6 = vector.load %arg9[%c0_6, %c0_7] : memref<128x512xf32, #tpu.memory_space<vmem>>, vector<128x512xf32>
    %c0_8 = arith.constant 0 : index
    %c0_9 = arith.constant 0 : index
    %7 = vector.load %arg6[%c0_8, %c0_9] : memref<1x512xf32, #tpu.memory_space<vmem>>, vector<1x512xf32>
    %c0_10 = arith.constant 0 : index
    %c0_11 = arith.constant 0 : index
    %8 = vector.load %arg7[%c0_10, %c0_11] : memref<1x512xf32, #tpu.memory_space<vmem>>, vector<1x512xf32>
    %c0_12 = arith.constant 0 : index
    %c0_13 = arith.constant 0 : index
    %9 = vector.load %arg14[%c0_12, %c0_13] : memref<2x128xf32, #tpu.memory_space<vmem>>, vector<2x128xf32>
    %c0_14 = arith.constant 0 : index
    %c0_15 = arith.constant 0 : index
    %10 = vector.load %arg15[%c0_14, %c0_15] : memref<2x128xf32, #tpu.memory_space<vmem>>, vector<2x128xf32>
    %c0_16 = arith.constant 0 : index
    %c0_17 = arith.constant 0 : index
    %11 = vector.load %arg16[%c0_16, %c0_17] : memref<2x128xf32, #tpu.memory_space<vmem>>, vector<2x128xf32>
    %c0_18 = arith.constant 0 : index
    %c0_19 = arith.constant 0 : index
    %12 = vector.load %arg17[%c0_18, %c0_19] : memref<2x128xf32, #tpu.memory_space<vmem>>, vector<2x128xf32>
    %c0_20 = arith.constant 0 : index
    %c0_21 = arith.constant 0 : index
    %c0_22 = arith.constant 0 : index
    %13 = vector.load %arg2[%c0_20, %c0_21, %c0_22] : memref<8x2x64xf32, #tpu.memory_space<vmem>>, vector<1x2x64xf32>
    %14 = vector.shape_cast %13 : vector<1x2x64xf32> to vector<2x64xf32>
    %cst = arith.constant dense<0.000000e+00> : vector<2x512xf32>
    %15 = tpu.matmul %14, %3, %cst {dimension_numbers = #tpu.dot_dimension_numbers<[1], [0], [0], [1], [0, 0, 1, 1], [], []>} : vector<2x64xf32>, vector<64x512xf32>, vector<2x512xf32> -> vector<2x512xf32>
    %16 = vector.broadcast %7 : vector<1x512xf32> to vector<2x512xf32>
    %17 = arith.addf %15, %16 : vector<2x512xf32>
    %cst_23 = arith.constant dense<0.000000e+00> : vector<2x512xf32>
    %18 = tpu.matmul %9, %5, %cst_23 {dimension_numbers = #tpu.dot_dimension_numbers<[1], [0], [0], [1], [0, 0, 1, 1], [], []>} : vector<2x128xf32>, vector<128x512xf32>, vector<2x512xf32> -> vector<2x512xf32>
    %19 = arith.addf %17, %18 : vector<2x512xf32>
    %20 = vector.extract_strided_slice %19 {offsets = [0, 0], sizes = [2, 128], strides = [1, 1]} : vector<2x512xf32> to vector<2x128xf32>
    %21 = arith.negf %20 : vector<2x128xf32>
    %22 = math.exp %21 : vector<2x128xf32>
    %cst_24 = arith.constant 1.000000e+00 : f32
    %23 = vector.broadcast %cst_24 : f32 to vector<2x128xf32>
    %24 = arith.addf %23, %22 : vector<2x128xf32>
    %25 = arith.divf %23, %24 : vector<2x128xf32>
    %26 = vector.extract_strided_slice %19 {offsets = [0, 128], sizes = [2, 128], strides = [1, 1]} : vector<2x512xf32> to vector<2x128xf32>
    %27 = arith.negf %26 : vector<2x128xf32>
    %28 = math.exp %27 : vector<2x128xf32>
    %cst_25 = arith.constant 1.000000e+00 : f32
    %29 = vector.broadcast %cst_25 : f32 to vector<2x128xf32>
    %30 = arith.addf %29, %28 : vector<2x128xf32>
    %31 = arith.divf %29, %30 : vector<2x128xf32>
    %32 = vector.extract_strided_slice %19 {offsets = [0, 256], sizes = [2, 128], strides = [1, 1]} : vector<2x512xf32> to vector<2x128xf32>
    %33 = math.tanh %32 : vector<2x128xf32>
    %34 = vector.extract_strided_slice %19 {offsets = [0, 384], sizes = [2, 128], strides = [1, 1]} : vector<2x512xf32> to vector<2x128xf32>
    %35 = arith.negf %34 : vector<2x128xf32>
    %36 = math.exp %35 : vector<2x128xf32>
    %cst_26 = arith.constant 1.000000e+00 : f32
    %37 = vector.broadcast %cst_26 : f32 to vector<2x128xf32>
    %38 = arith.addf %37, %36 : vector<2x128xf32>
    %39 = arith.divf %37, %38 : vector<2x128xf32>
    %40 = arith.mulf %31, %10 : vector<2x128xf32>
    %41 = arith.mulf %25, %33 : vector<2x128xf32>
    %42 = arith.addf %40, %41 : vector<2x128xf32>
    %43 = math.tanh %42 : vector<2x128xf32>
    %44 = arith.mulf %39, %43 : vector<2x128xf32>
    %c7 = arith.constant 7 : index
    %c0_27 = arith.constant 0 : index
    %c0_28 = arith.constant 0 : index
    %45 = vector.load %arg3[%c7, %c0_27, %c0_28] : memref<8x2x64xf32, #tpu.memory_space<vmem>>, vector<1x2x64xf32>
    %46 = vector.shape_cast %45 : vector<1x2x64xf32> to vector<2x64xf32>
    %cst_29 = arith.constant dense<0.000000e+00> : vector<2x512xf32>
    %47 = tpu.matmul %46, %4, %cst_29 {dimension_numbers = #tpu.dot_dimension_numbers<[1], [0], [0], [1], [0, 0, 1, 1], [], []>} : vector<2x64xf32>, vector<64x512xf32>, vector<2x512xf32> -> vector<2x512xf32>
    %48 = vector.broadcast %8 : vector<1x512xf32> to vector<2x512xf32>
    %49 = arith.addf %47, %48 : vector<2x512xf32>
    %cst_30 = arith.constant dense<0.000000e+00> : vector<2x512xf32>
    %50 = tpu.matmul %11, %6, %cst_30 {dimension_numbers = #tpu.dot_dimension_numbers<[1], [0], [0], [1], [0, 0, 1, 1], [], []>} : vector<2x128xf32>, vector<128x512xf32>, vector<2x512xf32> -> vector<2x512xf32>
    %51 = arith.addf %49, %50 : vector<2x512xf32>
    %52 = vector.extract_strided_slice %51 {offsets = [0, 0], sizes = [2, 128], strides = [1, 1]} : vector<2x512xf32> to vector<2x128xf32>
    %53 = arith.negf %52 : vector<2x128xf32>
    %54 = math.exp %53 : vector<2x128xf32>
    %cst_31 = arith.constant 1.000000e+00 : f32
    %55 = vector.broadcast %cst_31 : f32 to vector<2x128xf32>
    %56 = arith.addf %55, %54 : vector<2x128xf32>
    %57 = arith.divf %55, %56 : vector<2x128xf32>
    %58 = vector.extract_strided_slice %51 {offsets = [0, 128], sizes = [2, 128], strides = [1, 1]} : vector<2x512xf32> to vector<2x128xf32>
    %59 = arith.negf %58 : vector<2x128xf32>
    %60 = math.exp %59 : vector<2x128xf32>
    %cst_32 = arith.constant 1.000000e+00 : f32
    %61 = vector.broadcast %cst_32 : f32 to vector<2x128xf32>
    %62 = arith.addf %61, %60 : vector<2x128xf32>
    %63 = arith.divf %61, %62 : vector<2x128xf32>
    %64 = vector.extract_strided_slice %51 {offsets = [0, 256], sizes = [2, 128], strides = [1, 1]} : vector<2x512xf32> to vector<2x128xf32>
    %65 = math.tanh %64 : vector<2x128xf32>
    %66 = vector.extract_strided_slice %51 {offsets = [0, 384], sizes = [2, 128], strides = [1, 1]} : vector<2x512xf32> to vector<2x128xf32>
    %67 = arith.negf %66 : vector<2x128xf32>
    %68 = math.exp %67 : vector<2x128xf32>
    %cst_33 = arith.constant 1.000000e+00 : f32
    %69 = vector.broadcast %cst_33 : f32 to vector<2x128xf32>
    %70 = arith.addf %69, %68 : vector<2x128xf32>
    %71 = arith.divf %69, %70 : vector<2x128xf32>
    %72 = arith.mulf %63, %12 : vector<2x128xf32>
    %73 = arith.mulf %57, %65 : vector<2x128xf32>
    %74 = arith.addf %72, %73 : vector<2x128xf32>
    %75 = math.tanh %74 : vector<2x128xf32>
    %76 = arith.mulf %71, %75 : vector<2x128xf32>
    %c1 = arith.constant 1 : index
    %c0_34 = arith.constant 0 : index
    %c0_35 = arith.constant 0 : index
    %77 = vector.load %arg2[%c1, %c0_34, %c0_35] : memref<8x2x64xf32, #tpu.memory_space<vmem>>, vector<1x2x64xf32>
    %78 = vector.shape_cast %77 : vector<1x2x64xf32> to vector<2x64xf32>
    %cst_36 = arith.constant dense<0.000000e+00> : vector<2x512xf32>
    %79 = tpu.matmul %78, %3, %cst_36 {dimension_numbers = #tpu.dot_dimension_numbers<[1], [0], [0], [1], [0, 0, 1, 1], [], []>} : vector<2x64xf32>, vector<64x512xf32>, vector<2x512xf32> -> vector<2x512xf32>
    %80 = vector.broadcast %7 : vector<1x512xf32> to vector<2x512xf32>
    %81 = arith.addf %79, %80 : vector<2x512xf32>
    %cst_37 = arith.constant dense<0.000000e+00> : vector<2x512xf32>
    %82 = tpu.matmul %44, %5, %cst_37 {dimension_numbers = #tpu.dot_dimension_numbers<[1], [0], [0], [1], [0, 0, 1, 1], [], []>} : vector<2x128xf32>, vector<128x512xf32>, vector<2x512xf32> -> vector<2x512xf32>
    %83 = arith.addf %81, %82 : vector<2x512xf32>
    %84 = vector.extract_strided_slice %83 {offsets = [0, 0], sizes = [2, 128], strides = [1, 1]} : vector<2x512xf32> to vector<2x128xf32>
    %85 = arith.negf %84 : vector<2x128xf32>
    %86 = math.exp %85 : vector<2x128xf32>
    %cst_38 = arith.constant 1.000000e+00 : f32
    %87 = vector.broadcast %cst_38 : f32 to vector<2x128xf32>
    %88 = arith.addf %87, %86 : vector<2x128xf32>
    %89 = arith.divf %87, %88 : vector<2x128xf32>
    %90 = vector.extract_strided_slice %83 {offsets = [0, 128], sizes = [2, 128], strides = [1, 1]} : vector<2x512xf32> to vector<2x128xf32>
    %91 = arith.negf %90 : vector<2x128xf32>
    %92 = math.exp %91 : vector<2x128xf32>
    %cst_39 = arith.constant 1.000000e+00 : f32
    %93 = vector.broadcast %cst_39 : f32 to vector<2x128xf32>
    %94 = arith.addf %93, %92 : vector<2x128xf32>
    %95 = arith.divf %93, %94 : vector<2x128xf32>
    %96 = vector.extract_strided_slice %83 {offsets = [0, 256], sizes = [2, 128], strides = [1, 1]} : vector<2x512xf32> to vector<2x128xf32>
    %97 = math.tanh %96 : vector<2x128xf32>
    %98 = vector.extract_strided_slice %83 {offsets = [0, 384], sizes = [2, 128], strides = [1, 1]} : vector<2x512xf32> to vector<2x128xf32>
    %99 = arith.negf %98 : vector<2x128xf32>
    %100 = math.exp %99 : vector<2x128xf32>
    %cst_40 = arith.constant 1.000000e+00 : f32
    %101 = vector.broadcast %cst_40 : f32 to vector<2x128xf32>
    %102 = arith.addf %101, %100 : vector<2x128xf32>
    %103 = arith.divf %101, %102 : vector<2x128xf32>
    %104 = arith.mulf %95, %42 : vector<2x128xf32>
    %105 = arith.mulf %89, %97 : vector<2x128xf32>
    %106 = arith.addf %104, %105 : vector<2x128xf32>
    %107 = math.tanh %106 : vector<2x128xf32>
    %108 = arith.mulf %103, %107 : vector<2x128xf32>
    %c6 = arith.constant 6 : index
    %c0_41 = arith.constant 0 : index
    %c0_42 = arith.constant 0 : index
    %109 = vector.load %arg3[%c6, %c0_41, %c0_42] : memref<8x2x64xf32, #tpu.memory_space<vmem>>, vector<1x2x64xf32>
    %110 = vector.shape_cast %109 : vector<1x2x64xf32> to vector<2x64xf32>
    %cst_43 = arith.constant dense<0.000000e+00> : vector<2x512xf32>
    %111 = tpu.matmul %110, %4, %cst_43 {dimension_numbers = #tpu.dot_dimension_numbers<[1], [0], [0], [1], [0, 0, 1, 1], [], []>} : vector<2x64xf32>, vector<64x512xf32>, vector<2x512xf32> -> vector<2x512xf32>
    %112 = vector.broadcast %8 : vector<1x512xf32> to vector<2x512xf32>
    %113 = arith.addf %111, %112 : vector<2x512xf32>
    %cst_44 = arith.constant dense<0.000000e+00> : vector<2x512xf32>
    %114 = tpu.matmul %76, %6, %cst_44 {dimension_numbers = #tpu.dot_dimension_numbers<[1], [0], [0], [1], [0, 0, 1, 1], [], []>} : vector<2x128xf32>, vector<128x512xf32>, vector<2x512xf32> -> vector<2x512xf32>
    %115 = arith.addf %113, %114 : vector<2x512xf32>
    %116 = vector.extract_strided_slice %115 {offsets = [0, 0], sizes = [2, 128], strides = [1, 1]} : vector<2x512xf32> to vector<2x128xf32>
    %117 = arith.negf %116 : vector<2x128xf32>
    %118 = math.exp %117 : vector<2x128xf32>
    %cst_45 = arith.constant 1.000000e+00 : f32
    %119 = vector.broadcast %cst_45 : f32 to vector<2x128xf32>
    %120 = arith.addf %119, %118 : vector<2x128xf32>
    %121 = arith.divf %119, %120 : vector<2x128xf32>
    %122 = vector.extract_strided_slice %115 {offsets = [0, 128], sizes = [2, 128], strides = [1, 1]} : vector<2x512xf32> to vector<2x128xf32>
    %123 = arith.negf %122 : vector<2x128xf32>
    %124 = math.exp %123 : vector<2x128xf32>
    %cst_46 = arith.constant 1.000000e+00 : f32
    %125 = vector.broadcast %cst_46 : f32 to vector<2x128xf32>
    %126 = arith.addf %125, %124 : vector<2x128xf32>
    %127 = arith.divf %125, %126 : vector<2x128xf32>
    %128 = vector.extract_strided_slice %115 {offsets = [0, 256], sizes = [2, 128], strides = [1, 1]} : vector<2x512xf32> to vector<2x128xf32>
    %129 = math.tanh %128 : vector<2x128xf32>
    %130 = vector.extract_strided_slice %115 {offsets = [0, 384], sizes = [2, 128], strides = [1, 1]} : vector<2x512xf32> to vector<2x128xf32>
    %131 = arith.negf %130 : vector<2x128xf32>
    %132 = math.exp %131 : vector<2x128xf32>
    %cst_47 = arith.constant 1.000000e+00 : f32
    %133 = vector.broadcast %cst_47 : f32 to vector<2x128xf32>
    %134 = arith.addf %133, %132 : vector<2x128xf32>
    %135 = arith.divf %133, %134 : vector<2x128xf32>
    %136 = arith.mulf %127, %74 : vector<2x128xf32>
    %137 = arith.mulf %121, %129 : vector<2x128xf32>
    %138 = arith.addf %136, %137 : vector<2x128xf32>
    %139 = math.tanh %138 : vector<2x128xf32>
    %140 = arith.mulf %135, %139 : vector<2x128xf32>
    %c2 = arith.constant 2 : index
    %c0_48 = arith.constant 0 : index
    %c0_49 = arith.constant 0 : index
    %141 = vector.load %arg2[%c2, %c0_48, %c0_49] : memref<8x2x64xf32, #tpu.memory_space<vmem>>, vector<1x2x64xf32>
    %142 = vector.shape_cast %141 : vector<1x2x64xf32> to vector<2x64xf32>
    %cst_50 = arith.constant dense<0.000000e+00> : vector<2x512xf32>
    %143 = tpu.matmul %142, %3, %cst_50 {dimension_numbers = #tpu.dot_dimension_numbers<[1], [0], [0], [1], [0, 0, 1, 1], [], []>} : vector<2x64xf32>, vector<64x512xf32>, vector<2x512xf32> -> vector<2x512xf32>
    %144 = vector.broadcast %7 : vector<1x512xf32> to vector<2x512xf32>
    %145 = arith.addf %143, %144 : vector<2x512xf32>
    %cst_51 = arith.constant dense<0.000000e+00> : vector<2x512xf32>
    %146 = tpu.matmul %108, %5, %cst_51 {dimension_numbers = #tpu.dot_dimension_numbers<[1], [0], [0], [1], [0, 0, 1, 1], [], []>} : vector<2x128xf32>, vector<128x512xf32>, vector<2x512xf32> -> vector<2x512xf32>
    %147 = arith.addf %145, %146 : vector<2x512xf32>
    %148 = vector.extract_strided_slice %147 {offsets = [0, 0], sizes = [2, 128], strides = [1, 1]} : vector<2x512xf32> to vector<2x128xf32>
    %149 = arith.negf %148 : vector<2x128xf32>
    %150 = math.exp %149 : vector<2x128xf32>
    %cst_52 = arith.constant 1.000000e+00 : f32
    %151 = vector.broadcast %cst_52 : f32 to vector<2x128xf32>
    %152 = arith.addf %151, %150 : vector<2x128xf32>
    %153 = arith.divf %151, %152 : vector<2x128xf32>
    %154 = vector.extract_strided_slice %147 {offsets = [0, 128], sizes = [2, 128], strides = [1, 1]} : vector<2x512xf32> to vector<2x128xf32>
    %155 = arith.negf %154 : vector<2x128xf32>
    %156 = math.exp %155 : vector<2x128xf32>
    %cst_53 = arith.constant 1.000000e+00 : f32
    %157 = vector.broadcast %cst_53 : f32 to vector<2x128xf32>
    %158 = arith.addf %157, %156 : vector<2x128xf32>
    %159 = arith.divf %157, %158 : vector<2x128xf32>
    %160 = vector.extract_strided_slice %147 {offsets = [0, 256], sizes = [2, 128], strides = [1, 1]} : vector<2x512xf32> to vector<2x128xf32>
    %161 = math.tanh %160 : vector<2x128xf32>
    %162 = vector.extract_strided_slice %147 {offsets = [0, 384], sizes = [2, 128], strides = [1, 1]} : vector<2x512xf32> to vector<2x128xf32>
    %163 = arith.negf %162 : vector<2x128xf32>
    %164 = math.exp %163 : vector<2x128xf32>
    %cst_54 = arith.constant 1.000000e+00 : f32
    %165 = vector.broadcast %cst_54 : f32 to vector<2x128xf32>
    %166 = arith.addf %165, %164 : vector<2x128xf32>
    %167 = arith.divf %165, %166 : vector<2x128xf32>
    %168 = arith.mulf %159, %106 : vector<2x128xf32>
    %169 = arith.mulf %153, %161 : vector<2x128xf32>
    %170 = arith.addf %168, %169 : vector<2x128xf32>
    %171 = math.tanh %170 : vector<2x128xf32>
    %172 = arith.mulf %167, %171 : vector<2x128xf32>
    %c5 = arith.constant 5 : index
    %c0_55 = arith.constant 0 : index
    %c0_56 = arith.constant 0 : index
    %173 = vector.load %arg3[%c5, %c0_55, %c0_56] : memref<8x2x64xf32, #tpu.memory_space<vmem>>, vector<1x2x64xf32>
    %174 = vector.shape_cast %173 : vector<1x2x64xf32> to vector<2x64xf32>
    %cst_57 = arith.constant dense<0.000000e+00> : vector<2x512xf32>
    %175 = tpu.matmul %174, %4, %cst_57 {dimension_numbers = #tpu.dot_dimension_numbers<[1], [0], [0], [1], [0, 0, 1, 1], [], []>} : vector<2x64xf32>, vector<64x512xf32>, vector<2x512xf32> -> vector<2x512xf32>
    %176 = vector.broadcast %8 : vector<1x512xf32> to vector<2x512xf32>
    %177 = arith.addf %175, %176 : vector<2x512xf32>
    %cst_58 = arith.constant dense<0.000000e+00> : vector<2x512xf32>
    %178 = tpu.matmul %140, %6, %cst_58 {dimension_numbers = #tpu.dot_dimension_numbers<[1], [0], [0], [1], [0, 0, 1, 1], [], []>} : vector<2x128xf32>, vector<128x512xf32>, vector<2x512xf32> -> vector<2x512xf32>
    %179 = arith.addf %177, %178 : vector<2x512xf32>
    %180 = vector.extract_strided_slice %179 {offsets = [0, 0], sizes = [2, 128], strides = [1, 1]} : vector<2x512xf32> to vector<2x128xf32>
    %181 = arith.negf %180 : vector<2x128xf32>
    %182 = math.exp %181 : vector<2x128xf32>
    %cst_59 = arith.constant 1.000000e+00 : f32
    %183 = vector.broadcast %cst_59 : f32 to vector<2x128xf32>
    %184 = arith.addf %183, %182 : vector<2x128xf32>
    %185 = arith.divf %183, %184 : vector<2x128xf32>
    %186 = vector.extract_strided_slice %179 {offsets = [0, 128], sizes = [2, 128], strides = [1, 1]} : vector<2x512xf32> to vector<2x128xf32>
    %187 = arith.negf %186 : vector<2x128xf32>
    %188 = math.exp %187 : vector<2x128xf32>
    %cst_60 = arith.constant 1.000000e+00 : f32
    %189 = vector.broadcast %cst_60 : f32 to vector<2x128xf32>
    %190 = arith.addf %189, %188 : vector<2x128xf32>
    %191 = arith.divf %189, %190 : vector<2x128xf32>
    %192 = vector.extract_strided_slice %179 {offsets = [0, 256], sizes = [2, 128], strides = [1, 1]} : vector<2x512xf32> to vector<2x128xf32>
    %193 = math.tanh %192 : vector<2x128xf32>
    %194 = vector.extract_strided_slice %179 {offsets = [0, 384], sizes = [2, 128], strides = [1, 1]} : vector<2x512xf32> to vector<2x128xf32>
    %195 = arith.negf %194 : vector<2x128xf32>
    %196 = math.exp %195 : vector<2x128xf32>
    %cst_61 = arith.constant 1.000000e+00 : f32
    %197 = vector.broadcast %cst_61 : f32 to vector<2x128xf32>
    %198 = arith.addf %197, %196 : vector<2x128xf32>
    %199 = arith.divf %197, %198 : vector<2x128xf32>
    %200 = arith.mulf %191, %138 : vector<2x128xf32>
    %201 = arith.mulf %185, %193 : vector<2x128xf32>
    %202 = arith.addf %200, %201 : vector<2x128xf32>
    %203 = math.tanh %202 : vector<2x128xf32>
    %204 = arith.mulf %199, %203 : vector<2x128xf32>
    %c3 = arith.constant 3 : index
    %c0_62 = arith.constant 0 : index
    %c0_63 = arith.constant 0 : index
    %205 = vector.load %arg2[%c3, %c0_62, %c0_63] : memref<8x2x64xf32, #tpu.memory_space<vmem>>, vector<1x2x64xf32>
    %206 = vector.shape_cast %205 : vector<1x2x64xf32> to vector<2x64xf32>
    %cst_64 = arith.constant dense<0.000000e+00> : vector<2x512xf32>
    %207 = tpu.matmul %206, %3, %cst_64 {dimension_numbers = #tpu.dot_dimension_numbers<[1], [0], [0], [1], [0, 0, 1, 1], [], []>} : vector<2x64xf32>, vector<64x512xf32>, vector<2x512xf32> -> vector<2x512xf32>
    %208 = vector.broadcast %7 : vector<1x512xf32> to vector<2x512xf32>
    %209 = arith.addf %207, %208 : vector<2x512xf32>
    %cst_65 = arith.constant dense<0.000000e+00> : vector<2x512xf32>
    %210 = tpu.matmul %172, %5, %cst_65 {dimension_numbers = #tpu.dot_dimension_numbers<[1], [0], [0], [1], [0, 0, 1, 1], [], []>} : vector<2x128xf32>, vector<128x512xf32>, vector<2x512xf32> -> vector<2x512xf32>
    %211 = arith.addf %209, %210 : vector<2x512xf32>
    %212 = vector.extract_strided_slice %211 {offsets = [0, 0], sizes = [2, 128], strides = [1, 1]} : vector<2x512xf32> to vector<2x128xf32>
    %213 = arith.negf %212 : vector<2x128xf32>
    %214 = math.exp %213 : vector<2x128xf32>
    %cst_66 = arith.constant 1.000000e+00 : f32
    %215 = vector.broadcast %cst_66 : f32 to vector<2x128xf32>
    %216 = arith.addf %215, %214 : vector<2x128xf32>
    %217 = arith.divf %215, %216 : vector<2x128xf32>
    %218 = vector.extract_strided_slice %211 {offsets = [0, 128], sizes = [2, 128], strides = [1, 1]} : vector<2x512xf32> to vector<2x128xf32>
    %219 = arith.negf %218 : vector<2x128xf32>
    %220 = math.exp %219 : vector<2x128xf32>
    %cst_67 = arith.constant 1.000000e+00 : f32
    %221 = vector.broadcast %cst_67 : f32 to vector<2x128xf32>
    %222 = arith.addf %221, %220 : vector<2x128xf32>
    %223 = arith.divf %221, %222 : vector<2x128xf32>
    %224 = vector.extract_strided_slice %211 {offsets = [0, 256], sizes = [2, 128], strides = [1, 1]} : vector<2x512xf32> to vector<2x128xf32>
    %225 = math.tanh %224 : vector<2x128xf32>
    %226 = vector.extract_strided_slice %211 {offsets = [0, 384], sizes = [2, 128], strides = [1, 1]} : vector<2x512xf32> to vector<2x128xf32>
    %227 = arith.negf %226 : vector<2x128xf32>
    %228 = math.exp %227 : vector<2x128xf32>
    %cst_68 = arith.constant 1.000000e+00 : f32
    %229 = vector.broadcast %cst_68 : f32 to vector<2x128xf32>
    %230 = arith.addf %229, %228 : vector<2x128xf32>
    %231 = arith.divf %229, %230 : vector<2x128xf32>
    %232 = arith.mulf %223, %170 : vector<2x128xf32>
    %233 = arith.mulf %217, %225 : vector<2x128xf32>
    %234 = arith.addf %232, %233 : vector<2x128xf32>
    %235 = math.tanh %234 : vector<2x128xf32>
    %236 = arith.mulf %231, %235 : vector<2x128xf32>
    %c4 = arith.constant 4 : index
    %c0_69 = arith.constant 0 : index
    %c0_70 = arith.constant 0 : index
    %237 = vector.load %arg3[%c4, %c0_69, %c0_70] : memref<8x2x64xf32, #tpu.memory_space<vmem>>, vector<1x2x64xf32>
    %238 = vector.shape_cast %237 : vector<1x2x64xf32> to vector<2x64xf32>
    %cst_71 = arith.constant dense<0.000000e+00> : vector<2x512xf32>
    %239 = tpu.matmul %238, %4, %cst_71 {dimension_numbers = #tpu.dot_dimension_numbers<[1], [0], [0], [1], [0, 0, 1, 1], [], []>} : vector<2x64xf32>, vector<64x512xf32>, vector<2x512xf32> -> vector<2x512xf32>
    %240 = vector.broadcast %8 : vector<1x512xf32> to vector<2x512xf32>
    %241 = arith.addf %239, %240 : vector<2x512xf32>
    %cst_72 = arith.constant dense<0.000000e+00> : vector<2x512xf32>
    %242 = tpu.matmul %204, %6, %cst_72 {dimension_numbers = #tpu.dot_dimension_numbers<[1], [0], [0], [1], [0, 0, 1, 1], [], []>} : vector<2x128xf32>, vector<128x512xf32>, vector<2x512xf32> -> vector<2x512xf32>
    %243 = arith.addf %241, %242 : vector<2x512xf32>
    %244 = vector.extract_strided_slice %243 {offsets = [0, 0], sizes = [2, 128], strides = [1, 1]} : vector<2x512xf32> to vector<2x128xf32>
    %245 = arith.negf %244 : vector<2x128xf32>
    %246 = math.exp %245 : vector<2x128xf32>
    %cst_73 = arith.constant 1.000000e+00 : f32
    %247 = vector.broadcast %cst_73 : f32 to vector<2x128xf32>
    %248 = arith.addf %247, %246 : vector<2x128xf32>
    %249 = arith.divf %247, %248 : vector<2x128xf32>
    %250 = vector.extract_strided_slice %243 {offsets = [0, 128], sizes = [2, 128], strides = [1, 1]} : vector<2x512xf32> to vector<2x128xf32>
    %251 = arith.negf %250 : vector<2x128xf32>
    %252 = math.exp %251 : vector<2x128xf32>
    %cst_74 = arith.constant 1.000000e+00 : f32
    %253 = vector.broadcast %cst_74 : f32 to vector<2x128xf32>
    %254 = arith.addf %253, %252 : vector<2x128xf32>
    %255 = arith.divf %253, %254 : vector<2x128xf32>
    %256 = vector.extract_strided_slice %243 {offsets = [0, 256], sizes = [2, 128], strides = [1, 1]} : vector<2x512xf32> to vector<2x128xf32>
    %257 = math.tanh %256 : vector<2x128xf32>
    %258 = vector.extract_strided_slice %243 {offsets = [0, 384], sizes = [2, 128], strides = [1, 1]} : vector<2x512xf32> to vector<2x128xf32>
    %259 = arith.negf %258 : vector<2x128xf32>
    %260 = math.exp %259 : vector<2x128xf32>
    %cst_75 = arith.constant 1.000000e+00 : f32
    %261 = vector.broadcast %cst_75 : f32 to vector<2x128xf32>
    %262 = arith.addf %261, %260 : vector<2x128xf32>
    %263 = arith.divf %261, %262 : vector<2x128xf32>
    %264 = arith.mulf %255, %202 : vector<2x128xf32>
    %265 = arith.mulf %249, %257 : vector<2x128xf32>
    %266 = arith.addf %264, %265 : vector<2x128xf32>
    %267 = math.tanh %266 : vector<2x128xf32>
    %268 = arith.mulf %263, %267 : vector<2x128xf32>
    %c4_76 = arith.constant 4 : index
    %c0_77 = arith.constant 0 : index
    %c0_78 = arith.constant 0 : index
    %269 = vector.load %arg2[%c4_76, %c0_77, %c0_78] : memref<8x2x64xf32, #tpu.memory_space<vmem>>, vector<1x2x64xf32>
    %270 = vector.shape_cast %269 : vector<1x2x64xf32> to vector<2x64xf32>
    %cst_79 = arith.constant dense<0.000000e+00> : vector<2x512xf32>
    %271 = tpu.matmul %270, %3, %cst_79 {dimension_numbers = #tpu.dot_dimension_numbers<[1], [0], [0], [1], [0, 0, 1, 1], [], []>} : vector<2x64xf32>, vector<64x512xf32>, vector<2x512xf32> -> vector<2x512xf32>
    %272 = vector.broadcast %7 : vector<1x512xf32> to vector<2x512xf32>
    %273 = arith.addf %271, %272 : vector<2x512xf32>
    %cst_80 = arith.constant dense<0.000000e+00> : vector<2x512xf32>
    %274 = tpu.matmul %236, %5, %cst_80 {dimension_numbers = #tpu.dot_dimension_numbers<[1], [0], [0], [1], [0, 0, 1, 1], [], []>} : vector<2x128xf32>, vector<128x512xf32>, vector<2x512xf32> -> vector<2x512xf32>
    %275 = arith.addf %273, %274 : vector<2x512xf32>
    %276 = vector.extract_strided_slice %275 {offsets = [0, 0], sizes = [2, 128], strides = [1, 1]} : vector<2x512xf32> to vector<2x128xf32>
    %277 = arith.negf %276 : vector<2x128xf32>
    %278 = math.exp %277 : vector<2x128xf32>
    %cst_81 = arith.constant 1.000000e+00 : f32
    %279 = vector.broadcast %cst_81 : f32 to vector<2x128xf32>
    %280 = arith.addf %279, %278 : vector<2x128xf32>
    %281 = arith.divf %279, %280 : vector<2x128xf32>
    %282 = vector.extract_strided_slice %275 {offsets = [0, 128], sizes = [2, 128], strides = [1, 1]} : vector<2x512xf32> to vector<2x128xf32>
    %283 = arith.negf %282 : vector<2x128xf32>
    %284 = math.exp %283 : vector<2x128xf32>
    %cst_82 = arith.constant 1.000000e+00 : f32
    %285 = vector.broadcast %cst_82 : f32 to vector<2x128xf32>
    %286 = arith.addf %285, %284 : vector<2x128xf32>
    %287 = arith.divf %285, %286 : vector<2x128xf32>
    %288 = vector.extract_strided_slice %275 {offsets = [0, 256], sizes = [2, 128], strides = [1, 1]} : vector<2x512xf32> to vector<2x128xf32>
    %289 = math.tanh %288 : vector<2x128xf32>
    %290 = vector.extract_strided_slice %275 {offsets = [0, 384], sizes = [2, 128], strides = [1, 1]} : vector<2x512xf32> to vector<2x128xf32>
    %291 = arith.negf %290 : vector<2x128xf32>
    %292 = math.exp %291 : vector<2x128xf32>
    %cst_83 = arith.constant 1.000000e+00 : f32
    %293 = vector.broadcast %cst_83 : f32 to vector<2x128xf32>
    %294 = arith.addf %293, %292 : vector<2x128xf32>
    %295 = arith.divf %293, %294 : vector<2x128xf32>
    %296 = arith.mulf %287, %234 : vector<2x128xf32>
    %297 = arith.mulf %281, %289 : vector<2x128xf32>
    %298 = arith.addf %296, %297 : vector<2x128xf32>
    %299 = math.tanh %298 : vector<2x128xf32>
    %300 = arith.mulf %295, %299 : vector<2x128xf32>
    %c3_84 = arith.constant 3 : index
    %c0_85 = arith.constant 0 : index
    %c0_86 = arith.constant 0 : index
    %301 = vector.load %arg3[%c3_84, %c0_85, %c0_86] : memref<8x2x64xf32, #tpu.memory_space<vmem>>, vector<1x2x64xf32>
    %302 = vector.shape_cast %301 : vector<1x2x64xf32> to vector<2x64xf32>
    %cst_87 = arith.constant dense<0.000000e+00> : vector<2x512xf32>
    %303 = tpu.matmul %302, %4, %cst_87 {dimension_numbers = #tpu.dot_dimension_numbers<[1], [0], [0], [1], [0, 0, 1, 1], [], []>} : vector<2x64xf32>, vector<64x512xf32>, vector<2x512xf32> -> vector<2x512xf32>
    %304 = vector.broadcast %8 : vector<1x512xf32> to vector<2x512xf32>
    %305 = arith.addf %303, %304 : vector<2x512xf32>
    %cst_88 = arith.constant dense<0.000000e+00> : vector<2x512xf32>
    %306 = tpu.matmul %268, %6, %cst_88 {dimension_numbers = #tpu.dot_dimension_numbers<[1], [0], [0], [1], [0, 0, 1, 1], [], []>} : vector<2x128xf32>, vector<128x512xf32>, vector<2x512xf32> -> vector<2x512xf32>
    %307 = arith.addf %305, %306 : vector<2x512xf32>
    %308 = vector.extract_strided_slice %307 {offsets = [0, 0], sizes = [2, 128], strides = [1, 1]} : vector<2x512xf32> to vector<2x128xf32>
    %309 = arith.negf %308 : vector<2x128xf32>
    %310 = math.exp %309 : vector<2x128xf32>
    %cst_89 = arith.constant 1.000000e+00 : f32
    %311 = vector.broadcast %cst_89 : f32 to vector<2x128xf32>
    %312 = arith.addf %311, %310 : vector<2x128xf32>
    %313 = arith.divf %311, %312 : vector<2x128xf32>
    %314 = vector.extract_strided_slice %307 {offsets = [0, 128], sizes = [2, 128], strides = [1, 1]} : vector<2x512xf32> to vector<2x128xf32>
    %315 = arith.negf %314 : vector<2x128xf32>
    %316 = math.exp %315 : vector<2x128xf32>
    %cst_90 = arith.constant 1.000000e+00 : f32
    %317 = vector.broadcast %cst_90 : f32 to vector<2x128xf32>
    %318 = arith.addf %317, %316 : vector<2x128xf32>
    %319 = arith.divf %317, %318 : vector<2x128xf32>
    %320 = vector.extract_strided_slice %307 {offsets = [0, 256], sizes = [2, 128], strides = [1, 1]} : vector<2x512xf32> to vector<2x128xf32>
    %321 = math.tanh %320 : vector<2x128xf32>
    %322 = vector.extract_strided_slice %307 {offsets = [0, 384], sizes = [2, 128], strides = [1, 1]} : vector<2x512xf32> to vector<2x128xf32>
    %323 = arith.negf %322 : vector<2x128xf32>
    %324 = math.exp %323 : vector<2x128xf32>
    %cst_91 = arith.constant 1.000000e+00 : f32
    %325 = vector.broadcast %cst_91 : f32 to vector<2x128xf32>
    %326 = arith.addf %325, %324 : vector<2x128xf32>
    %327 = arith.divf %325, %326 : vector<2x128xf32>
    %328 = arith.mulf %319, %266 : vector<2x128xf32>
    %329 = arith.mulf %313, %321 : vector<2x128xf32>
    %330 = arith.addf %328, %329 : vector<2x128xf32>
    %331 = math.tanh %330 : vector<2x128xf32>
    %332 = arith.mulf %327, %331 : vector<2x128xf32>
    %c5_92 = arith.constant 5 : index
    %c0_93 = arith.constant 0 : index
    %c0_94 = arith.constant 0 : index
    %333 = vector.load %arg2[%c5_92, %c0_93, %c0_94] : memref<8x2x64xf32, #tpu.memory_space<vmem>>, vector<1x2x64xf32>
    %334 = vector.shape_cast %333 : vector<1x2x64xf32> to vector<2x64xf32>
    %cst_95 = arith.constant dense<0.000000e+00> : vector<2x512xf32>
    %335 = tpu.matmul %334, %3, %cst_95 {dimension_numbers = #tpu.dot_dimension_numbers<[1], [0], [0], [1], [0, 0, 1, 1], [], []>} : vector<2x64xf32>, vector<64x512xf32>, vector<2x512xf32> -> vector<2x512xf32>
    %336 = vector.broadcast %7 : vector<1x512xf32> to vector<2x512xf32>
    %337 = arith.addf %335, %336 : vector<2x512xf32>
    %cst_96 = arith.constant dense<0.000000e+00> : vector<2x512xf32>
    %338 = tpu.matmul %300, %5, %cst_96 {dimension_numbers = #tpu.dot_dimension_numbers<[1], [0], [0], [1], [0, 0, 1, 1], [], []>} : vector<2x128xf32>, vector<128x512xf32>, vector<2x512xf32> -> vector<2x512xf32>
    %339 = arith.addf %337, %338 : vector<2x512xf32>
    %340 = vector.extract_strided_slice %339 {offsets = [0, 0], sizes = [2, 128], strides = [1, 1]} : vector<2x512xf32> to vector<2x128xf32>
    %341 = arith.negf %340 : vector<2x128xf32>
    %342 = math.exp %341 : vector<2x128xf32>
    %cst_97 = arith.constant 1.000000e+00 : f32
    %343 = vector.broadcast %cst_97 : f32 to vector<2x128xf32>
    %344 = arith.addf %343, %342 : vector<2x128xf32>
    %345 = arith.divf %343, %344 : vector<2x128xf32>
    %346 = vector.extract_strided_slice %339 {offsets = [0, 128], sizes = [2, 128], strides = [1, 1]} : vector<2x512xf32> to vector<2x128xf32>
    %347 = arith.negf %346 : vector<2x128xf32>
    %348 = math.exp %347 : vector<2x128xf32>
    %cst_98 = arith.constant 1.000000e+00 : f32
    %349 = vector.broadcast %cst_98 : f32 to vector<2x128xf32>
    %350 = arith.addf %349, %348 : vector<2x128xf32>
    %351 = arith.divf %349, %350 : vector<2x128xf32>
    %352 = vector.extract_strided_slice %339 {offsets = [0, 256], sizes = [2, 128], strides = [1, 1]} : vector<2x512xf32> to vector<2x128xf32>
    %353 = math.tanh %352 : vector<2x128xf32>
    %354 = vector.extract_strided_slice %339 {offsets = [0, 384], sizes = [2, 128], strides = [1, 1]} : vector<2x512xf32> to vector<2x128xf32>
    %355 = arith.negf %354 : vector<2x128xf32>
    %356 = math.exp %355 : vector<2x128xf32>
    %cst_99 = arith.constant 1.000000e+00 : f32
    %357 = vector.broadcast %cst_99 : f32 to vector<2x128xf32>
    %358 = arith.addf %357, %356 : vector<2x128xf32>
    %359 = arith.divf %357, %358 : vector<2x128xf32>
    %360 = arith.mulf %351, %298 : vector<2x128xf32>
    %361 = arith.mulf %345, %353 : vector<2x128xf32>
    %362 = arith.addf %360, %361 : vector<2x128xf32>
    %363 = math.tanh %362 : vector<2x128xf32>
    %364 = arith.mulf %359, %363 : vector<2x128xf32>
    %c2_100 = arith.constant 2 : index
    %c0_101 = arith.constant 0 : index
    %c0_102 = arith.constant 0 : index
    %365 = vector.load %arg3[%c2_100, %c0_101, %c0_102] : memref<8x2x64xf32, #tpu.memory_space<vmem>>, vector<1x2x64xf32>
    %366 = vector.shape_cast %365 : vector<1x2x64xf32> to vector<2x64xf32>
    %cst_103 = arith.constant dense<0.000000e+00> : vector<2x512xf32>
    %367 = tpu.matmul %366, %4, %cst_103 {dimension_numbers = #tpu.dot_dimension_numbers<[1], [0], [0], [1], [0, 0, 1, 1], [], []>} : vector<2x64xf32>, vector<64x512xf32>, vector<2x512xf32> -> vector<2x512xf32>
    %368 = vector.broadcast %8 : vector<1x512xf32> to vector<2x512xf32>
    %369 = arith.addf %367, %368 : vector<2x512xf32>
    %cst_104 = arith.constant dense<0.000000e+00> : vector<2x512xf32>
    %370 = tpu.matmul %332, %6, %cst_104 {dimension_numbers = #tpu.dot_dimension_numbers<[1], [0], [0], [1], [0, 0, 1, 1], [], []>} : vector<2x128xf32>, vector<128x512xf32>, vector<2x512xf32> -> vector<2x512xf32>
    %371 = arith.addf %369, %370 : vector<2x512xf32>
    %372 = vector.extract_strided_slice %371 {offsets = [0, 0], sizes = [2, 128], strides = [1, 1]} : vector<2x512xf32> to vector<2x128xf32>
    %373 = arith.negf %372 : vector<2x128xf32>
    %374 = math.exp %373 : vector<2x128xf32>
    %cst_105 = arith.constant 1.000000e+00 : f32
    %375 = vector.broadcast %cst_105 : f32 to vector<2x128xf32>
    %376 = arith.addf %375, %374 : vector<2x128xf32>
    %377 = arith.divf %375, %376 : vector<2x128xf32>
    %378 = vector.extract_strided_slice %371 {offsets = [0, 128], sizes = [2, 128], strides = [1, 1]} : vector<2x512xf32> to vector<2x128xf32>
    %379 = arith.negf %378 : vector<2x128xf32>
    %380 = math.exp %379 : vector<2x128xf32>
    %cst_106 = arith.constant 1.000000e+00 : f32
    %381 = vector.broadcast %cst_106 : f32 to vector<2x128xf32>
    %382 = arith.addf %381, %380 : vector<2x128xf32>
    %383 = arith.divf %381, %382 : vector<2x128xf32>
    %384 = vector.extract_strided_slice %371 {offsets = [0, 256], sizes = [2, 128], strides = [1, 1]} : vector<2x512xf32> to vector<2x128xf32>
    %385 = math.tanh %384 : vector<2x128xf32>
    %386 = vector.extract_strided_slice %371 {offsets = [0, 384], sizes = [2, 128], strides = [1, 1]} : vector<2x512xf32> to vector<2x128xf32>
    %387 = arith.negf %386 : vector<2x128xf32>
    %388 = math.exp %387 : vector<2x128xf32>
    %cst_107 = arith.constant 1.000000e+00 : f32
    %389 = vector.broadcast %cst_107 : f32 to vector<2x128xf32>
    %390 = arith.addf %389, %388 : vector<2x128xf32>
    %391 = arith.divf %389, %390 : vector<2x128xf32>
    %392 = arith.mulf %383, %330 : vector<2x128xf32>
    %393 = arith.mulf %377, %385 : vector<2x128xf32>
    %394 = arith.addf %392, %393 : vector<2x128xf32>
    %395 = math.tanh %394 : vector<2x128xf32>
    %396 = arith.mulf %391, %395 : vector<2x128xf32>
    %c6_108 = arith.constant 6 : index
    %c0_109 = arith.constant 0 : index
    %c0_110 = arith.constant 0 : index
    %397 = vector.load %arg2[%c6_108, %c0_109, %c0_110] : memref<8x2x64xf32, #tpu.memory_space<vmem>>, vector<1x2x64xf32>
    %398 = vector.shape_cast %397 : vector<1x2x64xf32> to vector<2x64xf32>
    %cst_111 = arith.constant dense<0.000000e+00> : vector<2x512xf32>
    %399 = tpu.matmul %398, %3, %cst_111 {dimension_numbers = #tpu.dot_dimension_numbers<[1], [0], [0], [1], [0, 0, 1, 1], [], []>} : vector<2x64xf32>, vector<64x512xf32>, vector<2x512xf32> -> vector<2x512xf32>
    %400 = vector.broadcast %7 : vector<1x512xf32> to vector<2x512xf32>
    %401 = arith.addf %399, %400 : vector<2x512xf32>
    %cst_112 = arith.constant dense<0.000000e+00> : vector<2x512xf32>
    %402 = tpu.matmul %364, %5, %cst_112 {dimension_numbers = #tpu.dot_dimension_numbers<[1], [0], [0], [1], [0, 0, 1, 1], [], []>} : vector<2x128xf32>, vector<128x512xf32>, vector<2x512xf32> -> vector<2x512xf32>
    %403 = arith.addf %401, %402 : vector<2x512xf32>
    %404 = vector.extract_strided_slice %403 {offsets = [0, 0], sizes = [2, 128], strides = [1, 1]} : vector<2x512xf32> to vector<2x128xf32>
    %405 = arith.negf %404 : vector<2x128xf32>
    %406 = math.exp %405 : vector<2x128xf32>
    %cst_113 = arith.constant 1.000000e+00 : f32
    %407 = vector.broadcast %cst_113 : f32 to vector<2x128xf32>
    %408 = arith.addf %407, %406 : vector<2x128xf32>
    %409 = arith.divf %407, %408 : vector<2x128xf32>
    %410 = vector.extract_strided_slice %403 {offsets = [0, 128], sizes = [2, 128], strides = [1, 1]} : vector<2x512xf32> to vector<2x128xf32>
    %411 = arith.negf %410 : vector<2x128xf32>
    %412 = math.exp %411 : vector<2x128xf32>
    %cst_114 = arith.constant 1.000000e+00 : f32
    %413 = vector.broadcast %cst_114 : f32 to vector<2x128xf32>
    %414 = arith.addf %413, %412 : vector<2x128xf32>
    %415 = arith.divf %413, %414 : vector<2x128xf32>
    %416 = vector.extract_strided_slice %403 {offsets = [0, 256], sizes = [2, 128], strides = [1, 1]} : vector<2x512xf32> to vector<2x128xf32>
    %417 = math.tanh %416 : vector<2x128xf32>
    %418 = vector.extract_strided_slice %403 {offsets = [0, 384], sizes = [2, 128], strides = [1, 1]} : vector<2x512xf32> to vector<2x128xf32>
    %419 = arith.negf %418 : vector<2x128xf32>
    %420 = math.exp %419 : vector<2x128xf32>
    %cst_115 = arith.constant 1.000000e+00 : f32
    %421 = vector.broadcast %cst_115 : f32 to vector<2x128xf32>
    %422 = arith.addf %421, %420 : vector<2x128xf32>
    %423 = arith.divf %421, %422 : vector<2x128xf32>
    %424 = arith.mulf %415, %362 : vector<2x128xf32>
    %425 = arith.mulf %409, %417 : vector<2x128xf32>
    %426 = arith.addf %424, %425 : vector<2x128xf32>
    %427 = math.tanh %426 : vector<2x128xf32>
    %428 = arith.mulf %423, %427 : vector<2x128xf32>
    %c1_116 = arith.constant 1 : index
    %c0_117 = arith.constant 0 : index
    %c0_118 = arith.constant 0 : index
    %429 = vector.load %arg3[%c1_116, %c0_117, %c0_118] : memref<8x2x64xf32, #tpu.memory_space<vmem>>, vector<1x2x64xf32>
    %430 = vector.shape_cast %429 : vector<1x2x64xf32> to vector<2x64xf32>
    %cst_119 = arith.constant dense<0.000000e+00> : vector<2x512xf32>
    %431 = tpu.matmul %430, %4, %cst_119 {dimension_numbers = #tpu.dot_dimension_numbers<[1], [0], [0], [1], [0, 0, 1, 1], [], []>} : vector<2x64xf32>, vector<64x512xf32>, vector<2x512xf32> -> vector<2x512xf32>
    %432 = vector.broadcast %8 : vector<1x512xf32> to vector<2x512xf32>
    %433 = arith.addf %431, %432 : vector<2x512xf32>
    %cst_120 = arith.constant dense<0.000000e+00> : vector<2x512xf32>
    %434 = tpu.matmul %396, %6, %cst_120 {dimension_numbers = #tpu.dot_dimension_numbers<[1], [0], [0], [1], [0, 0, 1, 1], [], []>} : vector<2x128xf32>, vector<128x512xf32>, vector<2x512xf32> -> vector<2x512xf32>
    %435 = arith.addf %433, %434 : vector<2x512xf32>
    %436 = vector.extract_strided_slice %435 {offsets = [0, 0], sizes = [2, 128], strides = [1, 1]} : vector<2x512xf32> to vector<2x128xf32>
    %437 = arith.negf %436 : vector<2x128xf32>
    %438 = math.exp %437 : vector<2x128xf32>
    %cst_121 = arith.constant 1.000000e+00 : f32
    %439 = vector.broadcast %cst_121 : f32 to vector<2x128xf32>
    %440 = arith.addf %439, %438 : vector<2x128xf32>
    %441 = arith.divf %439, %440 : vector<2x128xf32>
    %442 = vector.extract_strided_slice %435 {offsets = [0, 128], sizes = [2, 128], strides = [1, 1]} : vector<2x512xf32> to vector<2x128xf32>
    %443 = arith.negf %442 : vector<2x128xf32>
    %444 = math.exp %443 : vector<2x128xf32>
    %cst_122 = arith.constant 1.000000e+00 : f32
    %445 = vector.broadcast %cst_122 : f32 to vector<2x128xf32>
    %446 = arith.addf %445, %444 : vector<2x128xf32>
    %447 = arith.divf %445, %446 : vector<2x128xf32>
    %448 = vector.extract_strided_slice %435 {offsets = [0, 256], sizes = [2, 128], strides = [1, 1]} : vector<2x512xf32> to vector<2x128xf32>
    %449 = math.tanh %448 : vector<2x128xf32>
    %450 = vector.extract_strided_slice %435 {offsets = [0, 384], sizes = [2, 128], strides = [1, 1]} : vector<2x512xf32> to vector<2x128xf32>
    %451 = arith.negf %450 : vector<2x128xf32>
    %452 = math.exp %451 : vector<2x128xf32>
    %cst_123 = arith.constant 1.000000e+00 : f32
    %453 = vector.broadcast %cst_123 : f32 to vector<2x128xf32>
    %454 = arith.addf %453, %452 : vector<2x128xf32>
    %455 = arith.divf %453, %454 : vector<2x128xf32>
    %456 = arith.mulf %447, %394 : vector<2x128xf32>
    %457 = arith.mulf %441, %449 : vector<2x128xf32>
    %458 = arith.addf %456, %457 : vector<2x128xf32>
    %459 = math.tanh %458 : vector<2x128xf32>
    %460 = arith.mulf %455, %459 : vector<2x128xf32>
    %c7_124 = arith.constant 7 : index
    %c0_125 = arith.constant 0 : index
    %c0_126 = arith.constant 0 : index
    %461 = vector.load %arg2[%c7_124, %c0_125, %c0_126] : memref<8x2x64xf32, #tpu.memory_space<vmem>>, vector<1x2x64xf32>
    %462 = vector.shape_cast %461 : vector<1x2x64xf32> to vector<2x64xf32>
    %cst_127 = arith.constant dense<0.000000e+00> : vector<2x512xf32>
    %463 = tpu.matmul %462, %3, %cst_127 {dimension_numbers = #tpu.dot_dimension_numbers<[1], [0], [0], [1], [0, 0, 1, 1], [], []>} : vector<2x64xf32>, vector<64x512xf32>, vector<2x512xf32> -> vector<2x512xf32>
    %464 = vector.broadcast %7 : vector<1x512xf32> to vector<2x512xf32>
    %465 = arith.addf %463, %464 : vector<2x512xf32>
    %cst_128 = arith.constant dense<0.000000e+00> : vector<2x512xf32>
    %466 = tpu.matmul %428, %5, %cst_128 {dimension_numbers = #tpu.dot_dimension_numbers<[1], [0], [0], [1], [0, 0, 1, 1], [], []>} : vector<2x128xf32>, vector<128x512xf32>, vector<2x512xf32> -> vector<2x512xf32>
    %467 = arith.addf %465, %466 : vector<2x512xf32>
    %468 = vector.extract_strided_slice %467 {offsets = [0, 0], sizes = [2, 128], strides = [1, 1]} : vector<2x512xf32> to vector<2x128xf32>
    %469 = arith.negf %468 : vector<2x128xf32>
    %470 = math.exp %469 : vector<2x128xf32>
    %cst_129 = arith.constant 1.000000e+00 : f32
    %471 = vector.broadcast %cst_129 : f32 to vector<2x128xf32>
    %472 = arith.addf %471, %470 : vector<2x128xf32>
    %473 = arith.divf %471, %472 : vector<2x128xf32>
    %474 = vector.extract_strided_slice %467 {offsets = [0, 128], sizes = [2, 128], strides = [1, 1]} : vector<2x512xf32> to vector<2x128xf32>
    %475 = arith.negf %474 : vector<2x128xf32>
    %476 = math.exp %475 : vector<2x128xf32>
    %cst_130 = arith.constant 1.000000e+00 : f32
    %477 = vector.broadcast %cst_130 : f32 to vector<2x128xf32>
    %478 = arith.addf %477, %476 : vector<2x128xf32>
    %479 = arith.divf %477, %478 : vector<2x128xf32>
    %480 = vector.extract_strided_slice %467 {offsets = [0, 256], sizes = [2, 128], strides = [1, 1]} : vector<2x512xf32> to vector<2x128xf32>
    %481 = math.tanh %480 : vector<2x128xf32>
    %482 = vector.extract_strided_slice %467 {offsets = [0, 384], sizes = [2, 128], strides = [1, 1]} : vector<2x512xf32> to vector<2x128xf32>
    %483 = arith.negf %482 : vector<2x128xf32>
    %484 = math.exp %483 : vector<2x128xf32>
    %cst_131 = arith.constant 1.000000e+00 : f32
    %485 = vector.broadcast %cst_131 : f32 to vector<2x128xf32>
    %486 = arith.addf %485, %484 : vector<2x128xf32>
    %487 = arith.divf %485, %486 : vector<2x128xf32>
    %488 = arith.mulf %479, %426 : vector<2x128xf32>
    %489 = arith.mulf %473, %481 : vector<2x128xf32>
    %490 = arith.addf %488, %489 : vector<2x128xf32>
    %491 = math.tanh %490 : vector<2x128xf32>
    %492 = arith.mulf %487, %491 : vector<2x128xf32>
    %c0_132 = arith.constant 0 : index
    %c0_133 = arith.constant 0 : index
    %c0_134 = arith.constant 0 : index
    %493 = vector.load %arg3[%c0_132, %c0_133, %c0_134] : memref<8x2x64xf32, #tpu.memory_space<vmem>>, vector<1x2x64xf32>
    %494 = vector.shape_cast %493 : vector<1x2x64xf32> to vector<2x64xf32>
    %cst_135 = arith.constant dense<0.000000e+00> : vector<2x512xf32>
    %495 = tpu.matmul %494, %4, %cst_135 {dimension_numbers = #tpu.dot_dimension_numbers<[1], [0], [0], [1], [0, 0, 1, 1], [], []>} : vector<2x64xf32>, vector<64x512xf32>, vector<2x512xf32> -> vector<2x512xf32>
    %496 = vector.broadcast %8 : vector<1x512xf32> to vector<2x512xf32>
    %497 = arith.addf %495, %496 : vector<2x512xf32>
    %cst_136 = arith.constant dense<0.000000e+00> : vector<2x512xf32>
    %498 = tpu.matmul %460, %6, %cst_136 {dimension_numbers = #tpu.dot_dimension_numbers<[1], [0], [0], [1], [0, 0, 1, 1], [], []>} : vector<2x128xf32>, vector<128x512xf32>, vector<2x512xf32> -> vector<2x512xf32>
    %499 = arith.addf %497, %498 : vector<2x512xf32>
    %500 = vector.extract_strided_slice %499 {offsets = [0, 0], sizes = [2, 128], strides = [1, 1]} : vector<2x512xf32> to vector<2x128xf32>
    %501 = arith.negf %500 : vector<2x128xf32>
    %502 = math.exp %501 : vector<2x128xf32>
    %cst_137 = arith.constant 1.000000e+00 : f32
    %503 = vector.broadcast %cst_137 : f32 to vector<2x128xf32>
    %504 = arith.addf %503, %502 : vector<2x128xf32>
    %505 = arith.divf %503, %504 : vector<2x128xf32>
    %506 = vector.extract_strided_slice %499 {offsets = [0, 128], sizes = [2, 128], strides = [1, 1]} : vector<2x512xf32> to vector<2x128xf32>
    %507 = arith.negf %506 : vector<2x128xf32>
    %508 = math.exp %507 : vector<2x128xf32>
    %cst_138 = arith.constant 1.000000e+00 : f32
    %509 = vector.broadcast %cst_138 : f32 to vector<2x128xf32>
    %510 = arith.addf %509, %508 : vector<2x128xf32>
    %511 = arith.divf %509, %510 : vector<2x128xf32>
    %512 = vector.extract_strided_slice %499 {offsets = [0, 256], sizes = [2, 128], strides = [1, 1]} : vector<2x512xf32> to vector<2x128xf32>
    %513 = math.tanh %512 : vector<2x128xf32>
    %514 = vector.extract_strided_slice %499 {offsets = [0, 384], sizes = [2, 128], strides = [1, 1]} : vector<2x512xf32> to vector<2x128xf32>
    %515 = arith.negf %514 : vector<2x128xf32>
    %516 = math.exp %515 : vector<2x128xf32>
    %cst_139 = arith.constant 1.000000e+00 : f32
    %517 = vector.broadcast %cst_139 : f32 to vector<2x128xf32>
    %518 = arith.addf %517, %516 : vector<2x128xf32>
    %519 = arith.divf %517, %518 : vector<2x128xf32>
    %520 = arith.mulf %511, %458 : vector<2x128xf32>
    %521 = arith.mulf %505, %513 : vector<2x128xf32>
    %522 = arith.addf %520, %521 : vector<2x128xf32>
    %523 = math.tanh %522 : vector<2x128xf32>
    %524 = arith.mulf %519, %523 : vector<2x128xf32>
    %c0_140 = arith.constant 0 : index
    %c0_141 = arith.constant 0 : index
    %525 = vector.load %arg14[%c0_140, %c0_141] : memref<2x128xf32, #tpu.memory_space<vmem>>, vector<2x128xf32>
    tpu.vector_store %arg14[%c0_140, %c0_141], %492 {strides = array<i32>} : memref<2x128xf32, #tpu.memory_space<vmem>>, vector<2x128xf32>,
    %c0_142 = arith.constant 0 : index
    %c0_143 = arith.constant 0 : index
    %526 = vector.load %arg15[%c0_142, %c0_143] : memref<2x128xf32, #tpu.memory_space<vmem>>, vector<2x128xf32>
    tpu.vector_store %arg15[%c0_142, %c0_143], %490 {strides = array<i32>} : memref<2x128xf32, #tpu.memory_space<vmem>>, vector<2x128xf32>,
    %c0_144 = arith.constant 0 : index
    %c0_145 = arith.constant 0 : index
    %527 = vector.load %arg16[%c0_144, %c0_145] : memref<2x128xf32, #tpu.memory_space<vmem>>, vector<2x128xf32>
    tpu.vector_store %arg16[%c0_144, %c0_145], %524 {strides = array<i32>} : memref<2x128xf32, #tpu.memory_space<vmem>>, vector<2x128xf32>,
    %c0_146 = arith.constant 0 : index
    %c0_147 = arith.constant 0 : index
    %528 = vector.load %arg17[%c0_146, %c0_147] : memref<2x128xf32, #tpu.memory_space<vmem>>, vector<2x128xf32>
    tpu.vector_store %arg17[%c0_146, %c0_147], %522 {strides = array<i32>} : memref<2x128xf32, #tpu.memory_space<vmem>>, vector<2x128xf32>,
    %c0_i32_148 = arith.constant 0 : i32
    %529 = arith.cmpi eq, %arg1, %c0_i32_148 : i32
    %530 = arith.extui %529 : i1 to i32
    %c0_i32_149 = arith.constant 0 : i32
    %531 = arith.cmpi ne, %530, %c0_i32_149 : i32
    scf.if %531 {
      %c0_150 = arith.constant 0 : index
      %c0_151 = arith.constant 0 : index
      %532 = vector.load %arg10[%c0_150, %c0_151] : memref<128x128xf32, #tpu.memory_space<vmem>>, vector<128x128xf32>
      %cst_152 = arith.constant dense<0.000000e+00> : vector<2x128xf32>
      %533 = tpu.matmul %492, %532, %cst_152 {dimension_numbers = #tpu.dot_dimension_numbers<[1], [0], [0], [1], [0, 0, 1, 1], [], []>} : vector<2x128xf32>, vector<128x128xf32>, vector<2x128xf32> -> vector<2x128xf32>
      %c0_153 = arith.constant 0 : index
      %c0_154 = arith.constant 0 : index
      %534 = vector.load %arg11[%c0_153, %c0_154] : memref<128x128xf32, #tpu.memory_space<vmem>>, vector<128x128xf32>
      %cst_155 = arith.constant dense<0.000000e+00> : vector<2x128xf32>
      %535 = tpu.matmul %524, %534, %cst_155 {dimension_numbers = #tpu.dot_dimension_numbers<[1], [0], [0], [1], [0, 0, 1, 1], [], []>} : vector<2x128xf32>, vector<128x128xf32>, vector<2x128xf32> -> vector<2x128xf32>
      %536 = arith.addf %533, %535 : vector<2x128xf32>
      %c0_156 = arith.constant 0 : index
      %c0_157 = arith.constant 0 : index
      %537 = vector.load %arg12[%c0_156, %c0_157] : memref<1x128xf32, #tpu.memory_space<vmem>>, vector<1x128xf32>
      %538 = vector.broadcast %537 : vector<1x128xf32> to vector<2x128xf32>
      %539 = arith.addf %536, %538 : vector<2x128xf32>
      %c0_158 = arith.constant 0 : index
      %c0_159 = arith.constant 0 : index
      %540 = vector.load %arg13[%c0_158, %c0_159] : memref<2x128xf32, #tpu.memory_space<vmem>>, vector<2x128xf32>
      tpu.vector_store %arg13[%c0_158, %c0_159], %539 {strides = array<i32>} : memref<2x128xf32, #tpu.memory_space<vmem>>, vector<2x128xf32>,
    } else {
    }
    return
  }
  func.func @transform_0(%arg0: i32, %arg1: i32) -> (i32, i32, i32) {
    %c0_i32 = arith.constant 0 : i32
    %c0_i32_0 = arith.constant 0 : i32
    return %arg1, %arg0, %c0_i32 : i32, i32, i32
  }
  func.func @transform_1(%arg0: i32, %arg1: i32) -> (i32, i32, i32) {
    %c0_i32 = arith.constant 0 : i32
    %0 = arith.subi %c0_i32, %arg1 : i32
    %c0_i32_0 = arith.constant 0 : i32
    %c0_i32_1 = arith.constant 0 : i32
    return %0, %arg0, %c0_i32_0 : i32, i32, i32
  }
  func.func @transform_2(%arg0: i32, %arg1: i32) -> (i32, i32) {
    %c0_i32 = arith.constant 0 : i32
    %c0_i32_0 = arith.constant 0 : i32
    %c0_i32_1 = arith.constant 0 : i32
    return %c0_i32, %c0_i32_0 : i32, i32
  }
  func.func @transform_3(%arg0: i32, %arg1: i32) -> (i32, i32) {
    %c0_i32 = arith.constant 0 : i32
    %c0_i32_0 = arith.constant 0 : i32
    %c0_i32_1 = arith.constant 0 : i32
    return %c0_i32, %c0_i32_0 : i32, i32
  }
  func.func @transform_4(%arg0: i32, %arg1: i32) -> (i32, i32) {
    %c0_i32 = arith.constant 0 : i32
    %c0_i32_0 = arith.constant 0 : i32
    %c0_i32_1 = arith.constant 0 : i32
    return %c0_i32, %c0_i32_0 : i32, i32
  }
  func.func @transform_5(%arg0: i32, %arg1: i32) -> (i32, i32) {
    %c0_i32 = arith.constant 0 : i32
    %c0_i32_0 = arith.constant 0 : i32
    %c0_i32_1 = arith.constant 0 : i32
    return %c0_i32, %c0_i32_0 : i32, i32
  }
  func.func @transform_6(%arg0: i32, %arg1: i32) -> (i32, i32) {
    %c0_i32 = arith.constant 0 : i32
    %c0_i32_0 = arith.constant 0 : i32
    %c0_i32_1 = arith.constant 0 : i32
    return %c0_i32, %c0_i32_0 : i32, i32
  }
  func.func @transform_7(%arg0: i32, %arg1: i32) -> (i32, i32) {
    %c0_i32 = arith.constant 0 : i32
    %c0_i32_0 = arith.constant 0 : i32
    %c0_i32_1 = arith.constant 0 : i32
    return %c0_i32, %c0_i32_0 : i32, i32
  }
  func.func @transform_8(%arg0: i32, %arg1: i32) -> (i32, i32) {
    %c0_i32 = arith.constant 0 : i32
    %c0_i32_0 = arith.constant 0 : i32
    %c0_i32_1 = arith.constant 0 : i32
    return %c0_i32, %c0_i32_0 : i32, i32
  }
  func.func @transform_9(%arg0: i32, %arg1: i32) -> (i32, i32) {
    %c0_i32 = arith.constant 0 : i32
    %c0_i32_0 = arith.constant 0 : i32
    %c0_i32_1 = arith.constant 0 : i32
    return %c0_i32, %c0_i32_0 : i32, i32
  }
  func.func @transform_10(%arg0: i32, %arg1: i32) -> (i32, i32) {
    %c0_i32 = arith.constant 0 : i32
    %c0_i32_0 = arith.constant 0 : i32
    %c0_i32_1 = arith.constant 0 : i32
    return %c0_i32, %c0_i32_0 : i32, i32
  }
  func.func @transform_11(%arg0: i32, %arg1: i32) -> (i32, i32) {
    %c0_i32 = arith.constant 0 : i32
    %c0_i32_0 = arith.constant 0 : i32
    return %arg0, %c0_i32 : i32, i32
  }
}

</mosaic_0001>

<bundles_post_ra>
// kernel: bilstm_classifier_forward.1
= control target key start
LH: loop header
LB: loop body
LE: loop exit
PB: predicated region body
PF: predicated region fallthrough
CT: control target
= control target key end

     0   :  { %16 = vsyncpa [#allocation7], 0  ;;  %s9242_s0 = inlined_call_operand.vmem [shape: f32[8,2,64], index: 0, kind: input, shape index: {}, may-alias: {0,1}]   ;;  %s9243_s1 = inlined_call_operand.vmem [shape: f32[8,2,64], index: 1, kind: input, shape index: {}, may-alias: {0,1}]   ;;  %s9244_s2 = inlined_call_operand.hbm [shape: f32[64,512], index: 2, kind: input, shape index: {}]   ;;  %s9245_s3 = inlined_call_operand.hbm [shape: f32[64,512], index: 3, kind: input, shape index: {}]   ;;  %s9246_s4 = inlined_call_operand.vmem [shape: f32[1,512], index: 4, kind: input, shape index: {}]   ;;  %s9247_s5 = inlined_call_operand.vmem [shape: f32[1,512], index: 5, kind: input, shape index: {}]   ;;  %s9248_s6 = inlined_call_operand.hbm [shape: f32[128,512], index: 6, kind: input, shape index: {}]   ;;  %s9249_s7 = inlined_call_operand.hbm [shape: f32[128,512], index: 7, kind: input, shape index: {}]   ;;  %s9250_s8 = inlined_call_operand.vmem [shape: f32[128,128], index: 8, kind: input, shape index: {}]   ;;  %s9251_s9 = inlined_call_operand.hbm [shape: f32[128,128], index: 9, kind: input, shape index: {}]   ;;  %s9252_s10 = inlined_call_operand.vmem [shape: f32[1,128], index: 10, kind: input, shape index: {}]   ;;  %s9253_s11 = inlined_call_operand.hbm [shape: f32[2,128], index: 11, kind: output, shape index: {}]  }
   0x1   :  { %17 = vsyncpa [#allocation10], 0 }
   0x2   :  { %18 = vsyncpa [#allocation13], 0 }
   0x3   :  { %19 = vsyncpa [#allocation8], 0  ;;  %s49_s19 = sshll.u32 %s9245_s3, 4  ;;  %s5306_s20 = smov [#allocation9]   ;;  %s50_s19 = int_to_ptr.hbm [resolvable:$true] %s49_s19 }
   0x4   :  { %s51_s21 = sshll.u32 %s5306_s20, 4  ;;  %s79_s24 = sshll.u32 %s9249_s7, 4  ;;  %s52_s21 = int_to_ptr.vmem [resolvable:$true] %s51_s21  ;;  %s80_s24 = int_to_ptr.hbm [resolvable:$true] %s79_s24 }
   0x5   :  { %s5307_s25 = smov 512   ;;  %s5308_s26 = smov 32  }
   0x6   :  { %57 = dma.hbm_to_vmem [thread:$0]  %s50_s19, 4096, %s52_s21, [#allocation10], %s5307_s25, %s5307_s25, %s5308_s26  }
   0x7   :  { %s5309_s27 = smov [#allocation12]   ;;  %s36_s12 = sshll.u32 %s9244_s2, 4  ;;  %s37_s12 = int_to_ptr.hbm [resolvable:$true] %s36_s12 }
   0x8   :  { %s81_s28 = sshll.u32 %s5309_s27, 4  ;;  %s66_s14 = sshll.u32 %s9248_s6, 4  ;;  %s82_s28 = int_to_ptr.vmem [resolvable:$true] %s81_s28  ;;  %s67_s14 = int_to_ptr.hbm [resolvable:$true] %s66_s14 }
   0x9   :  { %87 = dma.hbm_to_vmem [thread:$0]  %s80_s24, 8192, %s82_s28, [#allocation13], %s5307_s25, %s5307_s25, %s5308_s26  }
   0xa   :  { %s5310_s15 = smov [#allocation6]   ;;  %s5311_s7 = smov [#allocation11]  }
   0xb   :  { %s38_s16 = sshll.u32 %s5310_s15, 4  ;;  %s68_s17 = sshll.u32 %s5311_s7, 4  ;;  %s39_s16 = int_to_ptr.vmem [resolvable:$true] %s38_s16  ;;  %s69_s17 = int_to_ptr.vmem [resolvable:$true] %s68_s17 }
   0xc   :  { %44 = dma.hbm_to_vmem [thread:$0]  %s37_s12, 4096, %s39_s16, [#allocation7], %s5307_s25, %s5307_s25, %s5308_s26  }
   0xd   :  { %s94_s20 = sshll.u32 %s9251_s9, 4  ;;  %s5312_s2 = smov [#allocation14]   ;;  %s95_s20 = int_to_ptr.hbm [resolvable:$true] %s94_s20 }
   0xe   :  { %74 = dma.hbm_to_vmem [thread:$0]  %s67_s14, 8192, %s69_s17, [#allocation10], %s5307_s25, %s5307_s25, %s5308_s26  }
   0xf   :  { %s96_s21 = sshll.u32 %s5312_s2, 4  ;;  %s5313_s22 = smov 128   ;;  %s97_s21 = int_to_ptr.vmem [resolvable:$true] %s96_s21 }
  0x10   :  { %s5314_s23 = smov 8  }
  0x11   :  { %102 = dma.hbm_to_vmem [thread:$0]  %s95_s20, 2048, %s97_s21, [#allocation13], %s5313_s22, %s5313_s22, %s5314_s23  }
  0x12   :  { %5298 = dma.done.wait [#allocation7], 4096  }
  0x13   :  { %5299 = vsyncadd [#allocation7], 4294963200 }
  0x14   :  { %5300 = dma.done.wait [#allocation10], 12288  }
  0x15   :  { %5301 = vsyncadd [#allocation10], 4294955008 }
  0x16   :  { %5302 = dma.done.wait [#allocation13], 10240  }
  0x17   :  { %5303 = vsyncadd [#allocation13], 4294957056  ;;  %v5315_v0 = vmov 0.0   ;;  %v5392_v1 = vld [vmem:[#allocation6 + $0xe0] sm:$0xff]  ;;  %v5394_v2 = vld [vmem:[#allocation6 + $0xe8] sm:$0xff]  ;;  %vm355_vm0 = vcmask 523264  }
  0x18   :  { %143 = vst [vmem:[#allocation2] sm:$0x3] %v5315_v0  ;;  %v5396_v3 = vld [vmem:[#allocation11 + $0x1e8] sm:$0xff]  ;;  %367 = vmatpush.msra.mxu2 %v5392_v1  ;;  %387 = vmatpush.msra.mxu3 %v5394_v2  ;;  %v5400_v4 = vld [vmem:[#allocation6 + $0xc0] sm:$0xff]  ;;  %v5477_v31 = vld [vmem:[#allocation6 + $0xf0] sm:$0xff]  ;;  %s5316_s13 = smov [#allocation15]  }
  0x19   :  { %144 = vst [vmem:[#allocation3] sm:$0x3] %v5315_v0  ;;  %v5402_v5 = vld [vmem:[#allocation6 + $0xc8] sm:$0xff]  ;;  %459 = vmatpush.msra.mxu1 %v5396_v3  ;;  %v5407_v7 = vld [vmem:[#allocation6 + $0xa0] sm:$0xff]  ;;  %v5481_v32 = vld [vmem:[#allocation6 + $0xf8] sm:$0xff]  ;;  %s4164_s14 = sshll.u32 %s5316_s13, 4  ;;  %s4165_s14 = int_to_ptr.vmem [resolvable:$true] %s4164_s14 }
  0x1a   :  { %146 = vst [vmem:[#allocation5] sm:$0x3] %v5315_v0  ;;  %v5404_v6 = vld [vmem:[#allocation11 + $0x1c8] sm:$0xff]  ;;  %v5411_v9 = vld [vmem:[#allocation11 + $0x1e0] sm:$0xff]  ;;  %368 = vmatpush.msra.mxu2 %v5400_v4  ;;  %388 = vmatpush.msra.mxu3 %v5402_v5  ;;  %v5489_v35 = vld [vmem:[#allocation6 + $0xd0] sm:$0xff]  ;;  %s4166_s7 = sshll.u32 %s9253_s11, 4  ;;  %s4167_s7 = int_to_ptr.hbm [resolvable:$true] %s4166_s7 }
  0x1b   :  { %145 = vst [vmem:[#allocation4] sm:$0x3] %v5315_v0  ;;  %v5409_v8 = vld [vmem:[#allocation6 + $0xa8] sm:$0xff]  ;;  %460 = vmatpush.msra.mxu1 %v5404_v6  ;;  %439 = vmatpush.msra.mxu0 %v5411_v9  ;;  %v5419_v11 = vld [vmem:[#allocation6 + $0x80] sm:$0xff]  ;;  %v5493_v36 = vld [vmem:[#allocation6 + $0xd8] sm:$0xff] }
  0x1c   :  { %v5415_v10 = vld [vmem:[#allocation11 + $0x1a8] sm:$0xff]  ;;  %v5423_v13 = vld [vmem:[#allocation11 + $0x1c0] sm:$0xff]  ;;  %369 = vmatpush.msra.mxu2 %v5407_v7  ;;  %389 = vmatpush.msra.mxu3 %v5409_v8  ;;  %v5501_v39 = vld [vmem:[#allocation6 + $0xb0] sm:$0xff] }
  0x1d   :  { %v5421_v12 = vld [vmem:[#allocation6 + $0x88] sm:$0xff]  ;;  %v5429_v15 = vld [vmem:[#allocation11 + $0x1a0] sm:$0xff]  ;;  %461 = vmatpush.msra.mxu1 %v5415_v10  ;;  %440 = vmatpush.msra.mxu0 %v5423_v13  ;;  %v5505_v40 = vld [vmem:[#allocation6 + $0xb8] sm:$0xff] }
  0x1e   :  { %v5427_v14 = vld [vmem:[#allocation11 + $0x188] sm:$0xff]  ;;  %v5433_v16 = vld [vmem:[#allocation6 + $0x60] sm:$0xff]  ;;  %370 = vmatpush.msra.mxu2 %v5419_v11  ;;  %390 = vmatpush.msra.mxu3 %v5421_v12  ;;  %v5513_v43 = vld [vmem:[#allocation6 + $0x90] sm:$0xff] }
  0x1f   :  { %v5435_v17 = vld [vmem:[#allocation6 + $0x68] sm:$0xff]  ;;  %v5441_v19 = vld [vmem:[#allocation11 + $0x180] sm:$0xff]  ;;  %462 = vmatpush.msra.mxu1 %v5427_v14  ;;  %441 = vmatpush.msra.mxu0 %v5429_v15  ;;  %v5517_v44 = vld [vmem:[#allocation6 + $0x98] sm:$0xff] }
  0x20   :  { %v5439_v18 = vld [vmem:[#allocation11 + $0x168] sm:$0xff]  ;;  %v5445_v20 = vld [vmem:[#allocation6 + $0x40] sm:$0xff]  ;;  %371 = vmatpush.msra.mxu2 %v5433_v16  ;;  %391 = vmatpush.msra.mxu3 %v5435_v17  ;;  %v5528_v47 = vld [vmem:[%s9242_s0] sm:$0x3] }
  0x21   :  { %v5447_v21 = vld [vmem:[#allocation6 + $0x48] sm:$0xff]  ;;  %v5453_v23 = vld [vmem:[#allocation11 + $0x160] sm:$0xff]  ;;  %463 = vmatpush.msra.mxu1 %v5439_v18  ;;  %442 = vmatpush.msra.mxu0 %v5441_v19  ;;  %v5532_v48 = vld [vmem:[#allocation6 + $0x70] sm:$0xff] }
  0x22   :  { %v5451_v22 = vld [vmem:[#allocation11 + $0x148] sm:$0xff]  ;;  %v5457_v24 = vld [vmem:[#allocation6 + $0x20] sm:$0xff]  ;;  %372 = vmatpush.msra.mxu2 %v5445_v20  ;;  %392 = vmatpush.msra.mxu3 %v5447_v21  ;;  %v5534_v49 = vld [vmem:[#allocation6 + $0x78] sm:$0xff] }
  0x23   :  { %v5459_v25 = vld [vmem:[#allocation6 + $0x28] sm:$0xff]  ;;  %v5465_v27 = vld [vmem:[#allocation11 + $0x140] sm:$0xff]  ;;  %464 = vmatpush.msra.mxu1 %v5451_v22  ;;  %443 = vmatpush.msra.mxu0 %v5453_v23  ;;  %v5545_v52 = vld [vmem:[#allocation6 + $0x50] sm:$0xff] }
  0x24   :  { %v5463_v26 = vld [vmem:[#allocation11 + $0x128] sm:$0xff]  ;;  %v5469_v28 = vld [vmem:[#allocation6] sm:$0xff]  ;;  %373 = vmatpush.msra.mxu2 %v5457_v24  ;;  %393 = vmatpush.msra.mxu3 %v5459_v25  ;;  %v5547_v53 = vld [vmem:[#allocation6 + $0x58] sm:$0xff] }
  0x25   :  { %v5471_v29 = vld [vmem:[#allocation6 + $0x8] sm:$0xff]  ;;  %465 = vmatpush.msra.mxu1 %v5463_v26  ;;  %444 = vmatpush.msra.mxu0 %v5465_v27  ;;  %v5483_v33 = vld [vmem:[#allocation11 + $0x120] sm:$0xff]  ;;  %v5557_v56 = vld [vmem:[#allocation6 + $0x38] sm:$0xff] }
  0x26   :  { %v5475_v30 = vld [vmem:[#allocation11 + $0x108] sm:$0xff]  ;;  %374 = vmatpush.msra.mxu2 %v5469_v28  ;;  %394 = vmatpush.msra.mxu3 %v5471_v29  ;;  %v5495_v37 = vld [vmem:[#allocation11 + $0x100] sm:$0xff]  ;;  %v5561_v57 = vld [vmem:[#allocation6 + $0x30] sm:$0xff] }
  0x27   :  { %v5487_v34 = vld [vmem:[#allocation11 + $0xe8] sm:$0xff]  ;;  %466 = vmatpush.msra.mxu1 %v5475_v30  ;;  %445 = vmatpush.msra.mxu0 %v5483_v33  ;;  %v5507_v41 = vld [vmem:[#allocation11 + $0xe0] sm:$0xff]  ;;  %v5569_v60 = vld [vmem:[#allocation6 + $0x18] sm:$0xff] }
  0x28   :  { %407 = vmatpush.msrb.mxu2 %v5477_v31  ;;  %427 = vmatpush.msrb.mxu3 %v5481_v32  ;;  %v5499_v38 = vld [vmem:[#allocation11 + $0xc8] sm:$0xff]  ;;  %v5519_v45 = vld [vmem:[#allocation11 + $0xc0] sm:$0xff]  ;;  %v5574_v61 = vld [vmem:[#allocation6 + $0x10] sm:$0xff] }
  0x29   :  { %9834 = vst [vmem:[#allocation20_spill] sm:$0xff] %v5499_v38  ;;  %467 = vmatpush.msra.mxu1 %v5487_v34  ;;  %446 = vmatpush.msra.mxu0 %v5495_v37  ;;  %v5511_v42 = vld [vmem:[#allocation11 + $0xa8] sm:$0xff]  ;;  %v5538_v50 = vld [vmem:[#allocation11 + $0xa0] sm:$0xff]  ;;  %v5582_v0 = vld [vmem:[#allocation11 + $0x1f0] sm:$0xff] }
  0x2a   :  { %408 = vmatpush.msrb.mxu2 %v5489_v35  ;;  %428 = vmatpush.msrb.mxu3 %v5493_v36  ;;  %9835 = vst [vmem:[#allocation21_spill] sm:$0xff] %v5511_v42  ;;  %v5523_v46 = vld [vmem:[#allocation11 + $0x88] sm:$0xff]  ;;  %v5551_v54 = vld [vmem:[#allocation11 + $0x80] sm:$0xff] }
  0x2b   :  { %468 = vmatpush.msra.mxu1 %v5499_v38  ;;  %9836 = vst [vmem:[#allocation22_spill] sm:$0xff] %v5519_v45  ;;  %447 = vmatpush.msra.mxu0 %v5507_v41  ;;  %v5540_v51 = vld [vmem:[#allocation11 + $0x68] sm:$0xff]  ;;  %v5563_v58 = vld [vmem:[#allocation11 + $0x60] sm:$0xff] }
  0x2c   :  { %409 = vmatpush.msrb.mxu2 %v5501_v39  ;;  %429 = vmatpush.msrb.mxu3 %v5505_v40  ;;  %9837 = vst [vmem:[#allocation23_spill] sm:$0xff] %v5523_v46  ;;  %v5553_v55 = vld [vmem:[#allocation11 + $0x48] sm:$0xff]  ;;  %v5576_v62 = vld [vmem:[#allocation11 + $0x40] sm:$0xff] }
  0x2d   :  { %469 = vmatpush.msra.mxu1 %v5511_v42  ;;  %448 = vmatpush.msra.mxu0 %v5519_v45  ;;  %9838 = vst [vmem:[#allocation24_spill] sm:$0xff] %v5538_v50  ;;  %v5567_v59 = vld [vmem:[#allocation11 + $0x28] sm:$0xff]  ;;  %v5604_v42 = vld [vmem:[#allocation11] sm:$0xff]  ;;  %v5620_v45 = vld [vmem:[#allocation11 + $0x198] sm:$0xff] }
  0x2e   :  { %410 = vmatpush.msrb.mxu2 %v5513_v43  ;;  %430 = vmatpush.msrb.mxu3 %v5517_v44  ;;  %9839 = vst [vmem:[#allocation25_spill] sm:$0xff] %v5540_v51  ;;  %v5580_v63 = vld [vmem:[#allocation11 + $0x8] sm:$0xff]  ;;  %v5615_v38 = vld [vmem:[#allocation9 + $0xe0] sm:$0xff] }
  0x2f   :  { %470 = vmatpush.msra.mxu1 %v5523_v46  ;;  %4185 = vmatmul.msk.f32.vlgmr.msra.gmra.mxu3 %vm355_vm0, %v5528_v47  ;;  %9840 = vst [vmem:[#allocation26_spill] sm:$0xff] %v5551_v54  ;;  %v5592_v46 = vld [vmem:[#allocation11 + $0x20] sm:$0xff] }
  0x30   :  { %411 = vmatpush.msrb.mxu2 %v5532_v48  ;;  %431 = vmatpush.msrb.mxu3 %v5534_v49  ;;  %9841 = vst [vmem:[#allocation27_spill] sm:$0xff] %v5553_v55 }
  0x31   :  { %449 = vmatpush.msra.mxu0 %v5538_v50  ;;  %471 = vmatpush.msra.mxu1 %v5540_v51  ;;  %9842 = vst [vmem:[#allocation28_spill] sm:$0xff] %v5563_v58  ;;  %v5588_v51 = vld [vmem:[#allocation2] sm:$0x3]  ;;  %v5606_v50 = vld [vmem:[#allocation11 + $0x1b0] sm:$0xff] }
  0x32   :  { %412 = vmatpush.msrb.mxu2 %v5545_v52  ;;  %432 = vmatpush.msrb.mxu3 %v5547_v53  ;;  %9843 = vst [vmem:[#allocation29_spill] sm:$0xff] %v5567_v59 }
  0x33   :  { %450 = vmatpush.msra.mxu0 %v5551_v54  ;;  %472 = vmatpush.msra.mxu1 %v5553_v55  ;;  %9844 = vst [vmem:[#allocation30_spill] sm:$0xff] %v5576_v62  ;;  %v5586_v55 = vld [vmem:[#allocation11 + $0x1f8] sm:$0xff]  ;;  %v5594_v54 = vld [vmem:[#allocation11 + $0x1d0] sm:$0xff] }
  0x34   :  { %4184 = vmatmul.msk.f32.vlgmr.msra.gmra.mxu2 %vm355_vm0, %v5528_v47  ;;  %433 = vmatpush.msrb.mxu3 %v5557_v56  ;;  %9845 = vst [vmem:[#allocation31_spill] sm:$0xff] %v5580_v63 }
  0x35   :  { %413 = vmatpush.msrb.mxu2 %v5561_v57  ;;  %451 = vmatpush.msra.mxu0 %v5563_v58  ;;  %9846 = vst [vmem:[#allocation32_spill] sm:$0xff] %v5586_v55  ;;  %v5598_v58 = vld [vmem:[#allocation11 + $0x1d8] sm:$0xff] }
  0x36   :  { %473 = vmatpush.msra.mxu1 %v5567_v59  ;;  %434 = vmatpush.msrb.mxu3 %v5569_v60  ;;  %9847 = vst [vmem:[#allocation33_spill] sm:$0xff] %v5592_v46  ;;  %v5600_v59 = vld [vmem:[#allocation9 + $0xe8] sm:$0xff] }
  0x37   :  { %414 = vmatpush.msrb.mxu2 %v5574_v61  ;;  %452 = vmatpush.msra.mxu0 %v5576_v62  ;;  %9848 = vst [vmem:[#allocation34_spill] sm:$0xff] %v5594_v54  ;;  %v5610_v62 = vld [vmem:[#allocation11 + $0x1b8] sm:$0xff] }
  0x38   :  { %474 = vmatpush.msra.mxu1 %v5580_v63  ;;  %9849 = vst [vmem:[#allocation35_spill] sm:$0xff] %v5598_v58  ;;  %499 = vmatpush.msra.mxu3 %v5586_v55  ;;  %v5613_v63 = vld [vmem:[#allocation11 + $0x190] sm:$0xff]  ;;  %v5622_v55 = vld [vmem:[#allocation9 + $0xc8] sm:$0xff] }
  0x39   :  { %479 = vmatpush.msra.mxu2 %v5582_v0  ;;  %9850 = vst [vmem:[#allocation36_spill] sm:$0xff] %v5600_v59  ;;  %475 = vmatmul.f32.vlgmr.msra.gmra.mxu1 %v5588_v51 }
  0x3a   :  { %9851 = vst [vmem:[#allocation37_spill] sm:$0xff] %v5604_v42  ;;  %453 = vmatpush.msra.mxu0 %v5592_v46  ;;  %500 = vmatpush.msra.mxu3 %v5598_v58  ;;  %v5626_v46 = vld [vmem:[#allocation11 + $0x170] sm:$0xff]  ;;  %v5628_v58 = vld [vmem:[#allocation9 + $0xc0] sm:$0xff] }
  0x3b   :  { %9852 = vst [vmem:[#allocation38_spill] sm:$0xff] %v5606_v50  ;;  %480 = vmatpush.msra.mxu2 %v5594_v54  ;;  %628 = vmatpush.msrb.mxu1 %v5600_v59  ;;  %v5632_v59 = vld [vmem:[#allocation11 + $0x178] sm:$0xff] }
  0x3c   :  { %9853 = vst [vmem:[#allocation39_spill] sm:$0xff] %v5610_v62  ;;  %454 = vmatpush.msra.mxu0 %v5604_v42  ;;  %501 = vmatpush.msra.mxu3 %v5610_v62  ;;  %v5634_v42 = vld [vmem:[#allocation9 + $0xa8] sm:$0xff]  ;;  %v5640_v62 = vld [vmem:[#allocation9 + $0xa0] sm:$0xff]  ;;  %v5644_v54 = vld [vmem:[#allocation11 + $0x158] sm:$0xff] }
  0x3d   :  { %9854 = vst [vmem:[#allocation40_spill] sm:$0xff] %v5613_v63  ;;  %481 = vmatpush.msra.mxu2 %v5606_v50  ;;  %455 = vmatmul.f32.vlgmr.msra.gmra.mxu0 %v5588_v51  ;;  %v5638_v50 = vld [vmem:[#allocation11 + $0x150] sm:$0xff] }
  0x3e   :  { %9855 = vst [vmem:[#allocation41_spill] sm:$0xff] %v5615_v38  ;;  %608 = vmatpush.msrb.mxu0 %v5615_v38  ;;  %502 = vmatpush.msra.mxu3 %v5620_v45  ;;  %v5650_v38 = vld [vmem:[#allocation11 + $0x130] sm:$0xff] }
  0x3f   :  { %9856 = vst [vmem:[#allocation42_spill] sm:$0xff] %v5620_v45  ;;  %482 = vmatpush.msra.mxu2 %v5613_v63  ;;  %629 = vmatpush.msrb.mxu1 %v5622_v55  ;;  %v5646_v63 = vld [vmem:[#allocation9 + $0x88] sm:$0xff]  ;;  %v5652_v45 = vld [vmem:[#allocation9 + $0x80] sm:$0xff] }
  0x40   :  { %9857 = vst [vmem:[#allocation43_spill] sm:$0xff] %v5622_v55  ;;  %609 = vmatpush.msrb.mxu0 %v5628_v58  ;;  %503 = vmatpush.msra.mxu3 %v5632_v59  ;;  %v5656_v55 = vld [vmem:[#allocation11 + $0x138] sm:$0xff] }
  0x41   :  { %9858 = vst [vmem:[#allocation44_spill] sm:$0xff] %v5626_v46  ;;  %483 = vmatpush.msra.mxu2 %v5626_v46  ;;  %630 = vmatpush.msrb.mxu1 %v5634_v42  ;;  %v5658_v46 = vld [vmem:[#allocation9 + $0x68] sm:$0xff] }
  0x42   :  { %9859 = vst [vmem:[#allocation45_spill] sm:$0xff] %v5628_v58  ;;  %610 = vmatpush.msrb.mxu0 %v5640_v62  ;;  %504 = vmatpush.msra.mxu3 %v5644_v54  ;;  %v5662_v58 = vld [vmem:[#allocation11 + $0x110] sm:$0xff] }
  0x43   :  { %9860 = vst [vmem:[#allocation46_spill] sm:$0xff] %v5632_v59  ;;  %484 = vmatpush.msra.mxu2 %v5638_v50  ;;  %631 = vmatpush.msrb.mxu1 %v5646_v63  ;;  %v5664_v59 = vld [vmem:[#allocation9 + $0x60] sm:$0xff] }
  0x44   :  { %9861 = vst [vmem:[#allocation47_spill] sm:$0xff] %v5634_v42  ;;  %611 = vmatpush.msrb.mxu0 %v5652_v45  ;;  %v5668_v42 = vld [vmem:[#allocation11 + $0x118] sm:$0xff]  ;;  %505 = vmatpush.msra.mxu3 %v5656_v55 }
  0x45   :  { %9862 = vst [vmem:[#allocation48_spill] sm:$0xff] %v5638_v50  ;;  %485 = vmatpush.msra.mxu2 %v5650_v38  ;;  %v5670_v50 = vld [vmem:[#allocation9 + $0x48] sm:$0xff]  ;;  %632 = vmatpush.msrb.mxu1 %v5658_v46 }
  0x46   :  { %9863 = vst [vmem:[#allocation49_spill] sm:$0xff] %v5640_v62  ;;  %v5674_v62 = vld [vmem:[#allocation11 + $0xf0] sm:$0xff]  ;;  %612 = vmatpush.msrb.mxu0 %v5664_v59  ;;  %506 = vmatpush.msra.mxu3 %v5668_v42 }
  0x47   :  { %9864 = vst [vmem:[#allocation50_spill] sm:$0xff] %v5644_v54  ;;  %v5676_v54 = vld [vmem:[#allocation9 + $0x40] sm:$0xff]  ;;  %486 = vmatpush.msra.mxu2 %v5662_v58  ;;  %633 = vmatpush.msrb.mxu1 %v5670_v50 }
  0x48   :  { %9865 = vst [vmem:[#allocation51_spill] sm:$0xff] %v5646_v63  ;;  %v5680_v63 = vld [vmem:[#allocation11 + $0xf8] sm:$0xff]  ;;  %613 = vmatpush.msrb.mxu0 %v5676_v54  ;;  %4186 = vmatmul.msk.f32.vlgmr.msrb.gmra.mxu2 %vm355_vm0, %v5528_v47 }
  0x49   :  { %9866 = vst [vmem:[#allocation52_spill] sm:$0xff] %v5650_v38  ;;  %v5682_v38 = vld [vmem:[#allocation9 + $0x28] sm:$0xff]  ;;  %487 = vmatpush.msra.mxu2 %v5674_v62  ;;  %507 = vmatpush.msra.mxu3 %v5680_v63 }
  0x4a   :  { %9867 = vst [vmem:[#allocation53_spill] sm:$0xff] %v5652_v45  ;;  %v5686_v45 = vld [vmem:[#allocation11 + $0xd0] sm:$0xff]  ;;  %634 = vmatpush.msrb.mxu1 %v5682_v38  ;;  %4187 = vmatmul.msk.f32.vlgmr.msrb.gmra.mxu3 %vm355_vm0, %v5528_v47  ;;  %v5752_v47 = vld [vmem:[#allocation12 + $0x180] sm:$0xff] }
  0x4b   :  { %9868 = vst [vmem:[#allocation54_spill] sm:$0xff] %v5656_v55  ;;  %v5688_v55 = vld [vmem:[#allocation9 + $0x20] sm:$0xff]  ;;  %488 = vmatpush.msra.mxu2 %v5686_v45 }
  0x4c   :  { %9869 = vst [vmem:[#allocation55_spill] sm:$0xff] %v5658_v46  ;;  %v5692_v46 = vld [vmem:[#allocation11 + $0xd8] sm:$0xff]  ;;  %614 = vmatpush.msrb.mxu0 %v5688_v55 }
  0x4d   :  { %9870 = vst [vmem:[#allocation56_spill] sm:$0xff] %v5662_v58  ;;  %v5694_v58 = vld [vmem:[#allocation9 + $0x8] sm:$0xff]  ;;  %508 = vmatpush.msra.mxu3 %v5692_v46 }
  0x4e   :  { %9871 = vst [vmem:[#allocation57_spill] sm:$0xff] %v5664_v59  ;;  %v5698_v59 = vld [vmem:[#allocation11 + $0xb0] sm:$0xff]  ;;  %635 = vmatpush.msrb.mxu1 %v5694_v58 }
  0x4f   :  { %9872 = vst [vmem:[#allocation58_spill] sm:$0xff] %v5668_v42  ;;  %v5700_v42 = vld [vmem:[#allocation9] sm:$0xff]  ;;  %489 = vmatpush.msra.mxu2 %v5698_v59 }
  0x50   :  { %9873 = vst [vmem:[#allocation59_spill] sm:$0xff] %v5670_v50  ;;  %v5704_v50 = vld [vmem:[#allocation11 + $0xb8] sm:$0xff]  ;;  %615 = vmatpush.msrb.mxu0 %v5700_v42 }
  0x51   :  { %9874 = vst [vmem:[#allocation60_spill] sm:$0xff] %v5674_v62  ;;  %v5706_v62 = vld [vmem:[#allocation12 + $0x1e0] sm:$0xff]  ;;  %509 = vmatpush.msra.mxu3 %v5704_v50 }
  0x52   :  { %9875 = vst [vmem:[#allocation61_spill] sm:$0xff] %v5676_v54  ;;  %v5710_v54 = vld [vmem:[#allocation11 + $0x90] sm:$0xff]  ;;  %680 = vmatpush.msra.mxu0 %v5706_v62 }
  0x53   :  { %9876 = vst [vmem:[#allocation62_spill] sm:$0xff] %v5680_v63  ;;  %v5712_v63 = vld [vmem:[#allocation12 + $0x1e8] sm:$0xff]  ;;  %490 = vmatpush.msra.mxu2 %v5710_v54 }
  0x54   :  { %9877 = vst [vmem:[#allocation63_spill] sm:$0xff] %v5682_v38  ;;  %v5716_v38 = vld [vmem:[#allocation11 + $0x98] sm:$0xff]  ;;  %700 = vmatpush.msra.mxu1 %v5712_v63 }
  0x55   :  { %9878 = vst [vmem:[#allocation64_spill] sm:$0xff] %v5688_v55  ;;  %v5720_v55 = vld [vmem:[#allocation11 + $0x70] sm:$0xff]  ;;  %510 = vmatpush.msra.mxu3 %v5716_v38 }
  0x56   :  { %9879 = vst [vmem:[#allocation65_spill] sm:$0xff] %v5692_v46  ;;  %v5726_v46 = vld [vmem:[#allocation12 + $0x1c0] sm:$0xff]  ;;  %491 = vmatpush.msra.mxu2 %v5720_v55 }
  0x57   :  { %9880 = vst [vmem:[#allocation66_spill] sm:$0xff] %v5694_v58  ;;  %v5724_v58 = vld [vmem:[#allocation11 + $0x78] sm:$0xff]  ;;  %681 = vmatpush.msra.mxu0 %v5726_v46 }
  0x58   :  { %9881 = vst [vmem:[#allocation67_spill] sm:$0xff] %v5698_v59  ;;  %511 = vmatpush.msra.mxu3 %v5724_v58  ;;  %v5750_v59 = vld [vmem:[#allocation11 + $0x38] sm:$0xff] }
  0x59   :  { %9882 = vst [vmem:[#allocation68_spill] sm:$0xff] %v5700_v42  ;;  %v5731_v42 = vld [vmem:[#allocation12 + $0x1c8] sm:$0xff] }
  0x5a   :  { %9883 = vst [vmem:[#allocation69_spill] sm:$0xff] %v5704_v50  ;;  %v5733_v50 = vld [vmem:[#allocation11 + $0x50] sm:$0xff]  ;;  %701 = vmatpush.msra.mxu1 %v5731_v42 }
  0x5b   :  { %9884 = vst [vmem:[#allocation70_spill] sm:$0xff] %v5706_v62  ;;  %v5738_v62 = vld [vmem:[#allocation11 + $0x58] sm:$0xff]  ;;  %492 = vmatpush.msra.mxu2 %v5733_v50 }
  0x5c   :  { %9885 = vst [vmem:[#allocation71_spill] sm:$0xff] %v5710_v54  ;;  %v5746_v54 = vld [vmem:[#allocation11 + $0x30] sm:$0xff]  ;;  %512 = vmatpush.msra.mxu3 %v5738_v62 }
  0x5d   :  { %9886 = vst [vmem:[#allocation72_spill] sm:$0xff] %v5712_v63  ;;  %v5740_v63 = vld [vmem:[#allocation12 + $0x1a0] sm:$0xff]  ;;  %493 = vmatpush.msra.mxu2 %v5746_v54 }
  0x5e   :  { %9887 = vst [vmem:[#allocation73_spill] sm:$0xff] %v5716_v38  ;;  %v5744_v38 = vld [vmem:[#allocation12 + $0x1a8] sm:$0xff]  ;;  %682 = vmatpush.msra.mxu0 %v5740_v63  ;;  %513 = vmatpush.msra.mxu3 %v5750_v59 }
  0x5f   :  { %9888 = vst [vmem:[#allocation74_spill] sm:$0xff] %v5720_v55  ;;  %v5756_v55 = vld [vmem:[#allocation12 + $0x188] sm:$0xff]  ;;  %702 = vmatpush.msra.mxu1 %v5744_v38 }
  0x60   :  { %9889 = vst [vmem:[#allocation75_spill] sm:$0xff] %v5724_v58  ;;  %v5758_v58 = vld [vmem:[#allocation11 + $0x10] sm:$0xff]  ;;  %683 = vmatpush.msra.mxu0 %v5752_v47 }
  0x61   :  { %9890 = vst [vmem:[#allocation76_spill] sm:$0xff] %v5726_v46  ;;  %v5762_v46 = vld [vmem:[#allocation11 + $0x18] sm:$0xff]  ;;  %703 = vmatpush.msra.mxu1 %v5756_v55  ;;  %494 = vmatpush.msra.mxu2 %v5758_v58 }
  0x62   :  { %9891 = vst [vmem:[#allocation77_spill] sm:$0xff] %v5731_v42  ;;  %v5764_v42 = vld [vmem:[#allocation12 + $0x160] sm:$0xff]  ;;  %514 = vmatpush.msra.mxu3 %v5762_v46  ;;  %495 = vmatmul.f32.vlgmr.msra.gmra.mxu2 %v5588_v51 }
  0x63   :  { %9892 = vst [vmem:[#allocation78_spill] sm:$0xff] %v5733_v50  ;;  %v5768_v50 = vld [vmem:[#allocation12 + $0x168] sm:$0xff]  ;;  %684 = vmatpush.msra.mxu0 %v5764_v42  ;;  %515 = vmatmul.f32.vlgmr.msra.gmra.mxu3 %v5588_v51  ;;  %v5802_v51 = vld [vmem:[#allocation12 + $0x100] sm:$0xff] }
  0x64   :  { %9893 = vst [vmem:[#allocation79_spill] sm:$0xff] %v5738_v62  ;;  %704 = vmatpush.msra.mxu1 %v5768_v50  ;;  %v5891_v62 = vld [vmem:[#allocation12 + $0x20] sm:$0xff] }
  0x65   :  { %9894 = vst [vmem:[#allocation80_spill] sm:$0xff] %v5740_v63  ;;  %v5772_v63 = vld [vmem:[#allocation9 + $0xf0] sm:$0xff] }
  0x66   :  { %9895 = vst [vmem:[#allocation81_spill] sm:$0xff] %v5744_v38  ;;  %v5776_v38 = vld [vmem:[#allocation9 + $0xf8] sm:$0xff]  ;;  %648 = vmatpush.msrb.mxu2 %v5772_v63 }
  0x67   :  { %9896 = vst [vmem:[#allocation82_spill] sm:$0xff] %v5746_v54  ;;  %v5778_v54 = vld [vmem:[#allocation12 + $0x140] sm:$0xff]  ;;  %668 = vmatpush.msrb.mxu3 %v5776_v38 }
  0x68   :  { %9897 = vst [vmem:[#allocation83_spill] sm:$0xff] %v5750_v59  ;;  %v5784_v59 = vld [vmem:[#allocation9 + $0xd0] sm:$0xff]  ;;  %685 = vmatpush.msra.mxu0 %v5778_v54 }
  0x69   :  { %9898 = vst [vmem:[#allocation84_spill] sm:$0xff] %v5752_v47  ;;  %v5782_v47 = vld [vmem:[#allocation12 + $0x148] sm:$0xff]  ;;  %649 = vmatpush.msrb.mxu2 %v5784_v59 }
  0x6a   :  { %9899 = vst [vmem:[#allocation85_spill] sm:$0xff] %v5756_v55  ;;  %v5788_v55 = vld [vmem:[#allocation9 + $0xd8] sm:$0xff]  ;;  %705 = vmatpush.msra.mxu1 %v5782_v47 }
  0x6b   :  { %9900 = vst [vmem:[#allocation86_spill] sm:$0xff] %v5758_v58  ;;  %v5800_v58 = vld [vmem:[#allocation9 + $0xb8] sm:$0xff]  ;;  %669 = vmatpush.msrb.mxu3 %v5788_v55 }
  0x6c   :  { %9901 = vst [vmem:[#allocation87_spill] sm:$0xff] %v5762_v46  ;;  %v5790_v46 = vld [vmem:[#allocation12 + $0x120] sm:$0xff] }
  0x6d   :  { %9902 = vst [vmem:[#allocation88_spill] sm:$0xff] %v5764_v42  ;;  %v5794_v42 = vld [vmem:[#allocation12 + $0x128] sm:$0xff]  ;;  %686 = vmatpush.msra.mxu0 %v5790_v46  ;;  %670 = vmatpush.msrb.mxu3 %v5800_v58 }
  0x6e   :  { %9903 = vst [vmem:[#allocation89_spill] sm:$0xff] %v5768_v50  ;;  %v5796_v50 = vld [vmem:[#allocation9 + $0xb0] sm:$0xff]  ;;  %706 = vmatpush.msra.mxu1 %v5794_v42 }
  0x6f   :  { %9904 = vst [vmem:[#allocation90_spill] sm:$0xff] %v5772_v63  ;;  %v5806_v63 = vld [vmem:[#allocation12 + $0x108] sm:$0xff]  ;;  %650 = vmatpush.msrb.mxu2 %v5796_v50  ;;  %687 = vmatpush.msra.mxu0 %v5802_v51 }
  0x70   :  { %9905 = vst [vmem:[#allocation91_spill] sm:$0xff] %v5776_v38  ;;  %v5808_v38 = vld [vmem:[#allocation9 + $0x90] sm:$0xff]  ;;  %707 = vmatpush.msra.mxu1 %v5806_v63 }
  0x71   :  { %9906 = vst [vmem:[#allocation92_spill] sm:$0xff] %v5778_v54  ;;  %v5812_v54 = vld [vmem:[#allocation9 + $0x98] sm:$0xff]  ;;  %651 = vmatpush.msrb.mxu2 %v5808_v38 }
  0x72   :  { %9907 = vst [vmem:[#allocation93_spill] sm:$0xff] %v5782_v47  ;;  %v5814_v47 = vld [vmem:[#allocation12 + $0xe0] sm:$0xff]  ;;  %671 = vmatpush.msrb.mxu3 %v5812_v54 }
  0x73   :  { %9908 = vst [vmem:[#allocation94_spill] sm:$0xff] %v5784_v59  ;;  %v5818_v59 = vld [vmem:[#allocation12 + $0xe8] sm:$0xff]  ;;  %688 = vmatpush.msra.mxu0 %v5814_v47 }
  0x74   :  { %9909 = vst [vmem:[#allocation95_spill] sm:$0xff] %v5788_v55  ;;  %v5820_v55 = vld [vmem:[#allocation9 + $0x70] sm:$0xff]  ;;  %708 = vmatpush.msra.mxu1 %v5818_v59 }
  0x75   :  { %9910 = vst [vmem:[#allocation96_spill] sm:$0xff] %v5790_v46  ;;  %v5824_v46 = vld [vmem:[#allocation9 + $0x78] sm:$0xff]  ;;  %652 = vmatpush.msrb.mxu2 %v5820_v55 }
  0x76   :  { %9911 = vst [vmem:[#allocation97_spill] sm:$0xff] %v5794_v42  ;;  %v5826_v42 = vld [vmem:[#allocation12 + $0xc0] sm:$0xff]  ;;  %672 = vmatpush.msrb.mxu3 %v5824_v46 }
  0x77   :  { %9912 = vst [vmem:[#allocation98_spill] sm:$0xff] %v5796_v50  ;;  %v5830_v50 = vld [vmem:[#allocation12 + $0xc8] sm:$0xff]  ;;  %689 = vmatpush.msra.mxu0 %v5826_v42 }
  0x78   :  { %9913 = vst [vmem:[#allocation99_spill] sm:$0xff] %v5800_v58  ;;  %v5832_v58 = vld [vmem:[#allocation9 + $0x50] sm:$0xff]  ;;  %709 = vmatpush.msra.mxu1 %v5830_v50 }
  0x79   :  { %9914 = vst [vmem:[#allocation100_spill] sm:$0xff] %v5802_v51  ;;  %v5836_v51 = vld [vmem:[#allocation9 + $0x58] sm:$0xff]  ;;  %653 = vmatpush.msrb.mxu2 %v5832_v58 }
  0x7a   :  { %9915 = vst [vmem:[#allocation101_spill] sm:$0xff] %v5806_v63  ;;  %v5838_v63 = vld [vmem:[#allocation12 + $0xa0] sm:$0xff]  ;;  %673 = vmatpush.msrb.mxu3 %v5836_v51 }
  0x7b   :  { %9916 = vst [vmem:[#allocation102_spill] sm:$0xff] %v5808_v38  ;;  %v5842_v38 = vld [vmem:[#allocation12 + $0xa8] sm:$0xff]  ;;  %690 = vmatpush.msra.mxu0 %v5838_v63 }
  0x7c   :  { %9917 = vst [vmem:[#allocation103_spill] sm:$0xff] %v5812_v54  ;;  %v5844_v54 = vld [vmem:[#allocation9 + $0x30] sm:$0xff]  ;;  %710 = vmatpush.msra.mxu1 %v5842_v38 }
  0x7d   :  { %9918 = vst [vmem:[#allocation104_spill] sm:$0xff] %v5814_v47  ;;  %v5848_v47 = vld [vmem:[#allocation9 + $0x38] sm:$0xff]  ;;  %654 = vmatpush.msrb.mxu2 %v5844_v54 }
  0x7e   :  { %9919 = vst [vmem:[#allocation105_spill] sm:$0xff] %v5818_v59  ;;  %v5850_v59 = vld [vmem:[#allocation12 + $0x80] sm:$0xff]  ;;  %674 = vmatpush.msrb.mxu3 %v5848_v47 }
  0x7f   :  { %9920 = vst [vmem:[#allocation106_spill] sm:$0xff] %v5820_v55  ;;  %v5854_v55 = vld [vmem:[#allocation12 + $0x88] sm:$0xff]  ;;  %691 = vmatpush.msra.mxu0 %v5850_v59 }
  0x80   :  { %9921 = vst [vmem:[#allocation107_spill] sm:$0xff] %v5824_v46  ;;  %711 = vmatpush.msra.mxu1 %v5854_v55  ;;  %v5873_v46 = vld [vmem:[#allocation12 + $0x1f0] sm:$0xff] }
  0x81   :  { %9922 = vst [vmem:[#allocation108_spill] sm:$0xff] %v5826_v42  ;;  %v4191_v42 = vld [vmem:[%s9243_s1 + $0xe] sm:$0x3] }
  0x82   :  { %9923 = vst [vmem:[#allocation109_spill] sm:$0xff] %v5830_v50  ;;  %v5861_v50 = vld [vmem:[#allocation9 + $0x10] sm:$0xff]  ;;  %4192 = vmatmul.msk.f32.vlgmr.msrb.gmra.mxu0 %vm355_vm0, %v4191_v42  ;;  %4193 = vmatmul.msk.f32.vlgmr.msrb.gmra.mxu1 %vm355_vm0, %v4191_v42 }
  0x83   :  { %9924 = vst [vmem:[#allocation110_spill] sm:$0xff] %v5832_v58  ;;  %v5865_v58 = vld [vmem:[#allocation9 + $0x18] sm:$0xff]  ;;  %655 = vmatpush.msrb.mxu2 %v5861_v50 }
  0x84   :  { %9925 = vst [vmem:[#allocation111_spill] sm:$0xff] %v5836_v51  ;;  %v5867_v51 = vld [vmem:[#allocation12 + $0x60] sm:$0xff]  ;;  %675 = vmatpush.msrb.mxu3 %v5865_v58  ;;  %4194 = vmatmul.msk.f32.vlgmr.msrb.gmra.mxu2 %vm355_vm0, %v4191_v42 }
  0x85   :  { %9926 = vst [vmem:[#allocation112_spill] sm:$0xff] %v5838_v63  ;;  %v5871_v63 = vld [vmem:[#allocation12 + $0x68] sm:$0xff]  ;;  %692 = vmatpush.msra.mxu0 %v5867_v51  ;;  %720 = vmatpush.msra.mxu2 %v5873_v46 }
  0x86   :  { %9927 = vst [vmem:[#allocation113_spill] sm:$0xff] %v5842_v38  ;;  %v5877_v38 = vld [vmem:[#allocation12 + $0x1f8] sm:$0xff]  ;;  %712 = vmatpush.msra.mxu1 %v5871_v63  ;;  %4195 = vmatmul.msk.f32.vlgmr.msrb.gmra.mxu3 %vm355_vm0, %v4191_v42 }
  0x87   :  { %9928 = vst [vmem:[#allocation114_spill] sm:$0xff] %v5844_v54  ;;  %v5889_v54 = vld [vmem:[#allocation12 + $0x1d8] sm:$0xff]  ;;  %740 = vmatpush.msra.mxu3 %v5877_v38 }
  0x88   :  { %9929 = vst [vmem:[#allocation115_spill] sm:$0xff] %v5848_v47  ;;  %v5879_v47 = vld [vmem:[#allocation12 + $0x40] sm:$0xff]  ;;  %v5954_v42 = vld [vmem:[#allocation12 + $0xf8] sm:$0xff] }
  0x89   :  { %9930 = vst [vmem:[#allocation116_spill] sm:$0xff] %v5850_v59  ;;  %v5883_v59 = vld [vmem:[#allocation12 + $0x48] sm:$0xff]  ;;  %693 = vmatpush.msra.mxu0 %v5879_v47  ;;  %741 = vmatpush.msra.mxu3 %v5889_v54 }
  0x8a   :  { %9931 = vst [vmem:[#allocation117_spill] sm:$0xff] %v5854_v55  ;;  %v5885_v55 = vld [vmem:[#allocation12 + $0x1d0] sm:$0xff]  ;;  %713 = vmatpush.msra.mxu1 %v5883_v59 }
  0x8b   :  { %9932 = vst [vmem:[#allocation118_spill] sm:$0xff] %v5861_v50  ;;  %v5895_v50 = vld [vmem:[#allocation12 + $0x28] sm:$0xff]  ;;  %721 = vmatpush.msra.mxu2 %v5885_v55  ;;  %694 = vmatpush.msra.mxu0 %v5891_v62 }
  0x8c   :  { %9933 = vst [vmem:[#allocation119_spill] sm:$0xff] %v5865_v58  ;;  %v5897_v58 = vld [vmem:[#allocation12 + $0x1b0] sm:$0xff]  ;;  %714 = vmatpush.msra.mxu1 %v5895_v50 }
  0x8d   :  { %9934 = vst [vmem:[#allocation120_spill] sm:$0xff] %v5867_v51  ;;  %v5901_v51 = vld [vmem:[#allocation12 + $0x1b8] sm:$0xff]  ;;  %722 = vmatpush.msra.mxu2 %v5897_v58 }
  0x8e   :  { %9935 = vst [vmem:[#allocation121_spill] sm:$0xff] %v5871_v63  ;;  %v5903_v63 = vld [vmem:[#allocation12] sm:$0xff]  ;;  %742 = vmatpush.msra.mxu3 %v5901_v51 }
  0x8f   :  { %9936 = vst [vmem:[#allocation122_spill] sm:$0xff] %v5873_v46  ;;  %v5907_v46 = vld [vmem:[#allocation12 + $0x8] sm:$0xff]  ;;  %695 = vmatpush.msra.mxu0 %v5903_v63 }
  0x90   :  { %9937 = vst [vmem:[#allocation123_spill] sm:$0xff] %v5877_v38  ;;  %v5909_v38 = vld [vmem:[#allocation12 + $0x190] sm:$0xff]  ;;  %715 = vmatpush.msra.mxu1 %v5907_v46 }
  0x91   :  { %9938 = vst [vmem:[#allocation124_spill] sm:$0xff] %v5879_v47  ;;  %v5913_v47 = vld [vmem:[#allocation12 + $0x198] sm:$0xff]  ;;  %723 = vmatpush.msra.mxu2 %v5909_v38  ;;  %840 = vmatpush.msrb.mxu0 %v5392_v1  ;;  %v5958_v1 = vld [vmem:[#allocation12 + $0xd0] sm:$0xff] }
  0x92   :  { %9939 = vst [vmem:[#allocation125_spill] sm:$0xff] %v5883_v59  ;;  %v5915_v59 = vld [vmem:[#allocation4] sm:$0x3]  ;;  %743 = vmatpush.msra.mxu3 %v5913_v47  ;;  %860 = vmatpush.msrb.mxu1 %v5394_v2 }
  0x93   :  { %9940 = vst [vmem:[#allocation126_spill] sm:$0xff] %v5885_v55  ;;  %v5919_v55 = vld [vmem:[#allocation12 + $0x170] sm:$0xff]  ;;  %696 = vmatmul.f32.vlgmr.msra.gmra.mxu0 %v5915_v59  ;;  %716 = vmatmul.f32.vlgmr.msra.gmra.mxu1 %v5915_v59  ;;  %v5962_v2 = vld [vmem:[#allocation12 + $0xd8] sm:$0xff] }
  0x94   :  { %9941 = vst [vmem:[#allocation127_spill] sm:$0xff] %v5891_v62  ;;  %v5923_v62 = vld [vmem:[#allocation12 + $0x178] sm:$0xff]  ;;  %724 = vmatpush.msra.mxu2 %v5919_v55  ;;  %841 = vmatpush.msrb.mxu0 %v5400_v4  ;;  %v5966_v4 = vld [vmem:[#allocation12 + $0xb0] sm:$0xff] }
  0x95   :  { %9942 = vst [vmem:[#allocation128_spill] sm:$0xff] %v5895_v50  ;;  %v5927_v50 = vld [vmem:[#allocation12 + $0x150] sm:$0xff]  ;;  %744 = vmatpush.msra.mxu3 %v5923_v62  ;;  %861 = vmatpush.msrb.mxu1 %v5402_v5  ;;  %v5970_v5 = vld [vmem:[#allocation12 + $0xb8] sm:$0xff] }
  0x96   :  { %9943 = vst [vmem:[#allocation129_spill] sm:$0xff] %v5901_v51  ;;  %v5931_v51 = vld [vmem:[#allocation12 + $0x158] sm:$0xff]  ;;  %725 = vmatpush.msra.mxu2 %v5927_v50  ;;  %842 = vmatpush.msrb.mxu0 %v5407_v7  ;;  %v5974_v7 = vld [vmem:[#allocation12 + $0x90] sm:$0xff] }
  0x97   :  { %9944 = vst [vmem:[#allocation130_spill] sm:$0xff] %v5903_v63  ;;  %v5934_v63 = vld [vmem:[#allocation12 + $0x130] sm:$0xff]  ;;  %745 = vmatpush.msra.mxu3 %v5931_v51  ;;  %862 = vmatpush.msrb.mxu1 %v5409_v8  ;;  %v5978_v8 = vld [vmem:[#allocation12 + $0x98] sm:$0xff] }
  0x98   :  { %9945 = vst [vmem:[#allocation131_spill] sm:$0xff] %v5907_v46  ;;  %v5938_v46 = vld [vmem:[#allocation12 + $0x138] sm:$0xff]  ;;  %726 = vmatpush.msra.mxu2 %v5934_v63  ;;  %843 = vmatpush.msrb.mxu0 %v5419_v11  ;;  %v5982_v11 = vld [vmem:[#allocation12 + $0x70] sm:$0xff] }
  0x99   :  { %9946 = vst [vmem:[#allocation132_spill] sm:$0xff] %v5913_v47  ;;  %v5942_v47 = vld [vmem:[#allocation12 + $0x110] sm:$0xff]  ;;  %746 = vmatpush.msra.mxu3 %v5938_v46  ;;  %863 = vmatpush.msrb.mxu1 %v5421_v12  ;;  %v5986_v12 = vld [vmem:[#allocation12 + $0x78] sm:$0xff] }
  0x9a   :  { %9947 = vst [vmem:[#allocation133_spill] sm:$0xff] %v5919_v55  ;;  %v5946_v55 = vld [vmem:[#allocation12 + $0x118] sm:$0xff]  ;;  %727 = vmatpush.msra.mxu2 %v5942_v47  ;;  %844 = vmatpush.msrb.mxu0 %v5433_v16  ;;  %v5990_v16 = vld [vmem:[#allocation12 + $0x50] sm:$0xff] }
  0x9b   :  { %9948 = vst [vmem:[#allocation134_spill] sm:$0xff] %v5923_v62  ;;  %v5950_v62 = vld [vmem:[#allocation12 + $0xf0] sm:$0xff]  ;;  %747 = vmatpush.msra.mxu3 %v5946_v55  ;;  %864 = vmatpush.msrb.mxu1 %v5435_v17  ;;  %v5994_v17 = vld [vmem:[#allocation12 + $0x58] sm:$0xff] }
  0x9c   :  { %728 = vmatpush.msra.mxu2 %v5950_v62  ;;  %845 = vmatpush.msrb.mxu0 %v5445_v20  ;;  %v5998_v20 = vld [vmem:[#allocation12 + $0x30] sm:$0xff] }
  0x9d   :  { %748 = vmatpush.msra.mxu3 %v5954_v42  ;;  %865 = vmatpush.msrb.mxu1 %v5447_v21  ;;  %v6002_v21 = vld [vmem:[#allocation12 + $0x38] sm:$0xff] }
  0x9e   :  { %729 = vmatpush.msra.mxu2 %v5958_v1  ;;  %846 = vmatpush.msrb.mxu0 %v5457_v24  ;;  %v6006_v24 = vld [vmem:[#allocation12 + $0x10] sm:$0xff] }
  0x9f   :  { %749 = vmatpush.msra.mxu3 %v5962_v2  ;;  %866 = vmatpush.msrb.mxu1 %v5459_v25  ;;  %v6010_v25 = vld [vmem:[#allocation12 + $0x18] sm:$0xff] }
  0xa0   :  { %730 = vmatpush.msra.mxu2 %v5966_v4  ;;  %847 = vmatpush.msrb.mxu0 %v5469_v28  ;;  %v9962_v28 = vld [vmem:[#allocation28_spill] sm:$0xff] }
  0xa1   :  { %750 = vmatpush.msra.mxu3 %v5970_v5  ;;  %867 = vmatpush.msrb.mxu1 %v5471_v29  ;;  %v9963_v29 = vld [vmem:[#allocation44_spill] sm:$0xff] }
  0xa2   :  { %731 = vmatpush.msra.mxu2 %v5974_v7  ;;  %912 = vmatpush.msra.mxu0 %v5411_v9  ;;  %v9951_v9 = vld [vmem:[#allocation34_spill] sm:$0xff] }
  0xa3   :  { %751 = vmatpush.msra.mxu3 %v5978_v8  ;;  %932 = vmatpush.msra.mxu1 %v5396_v3  ;;  %v9949_v3 = vld [vmem:[#allocation32_spill] sm:$0xff] }
  0xa4   :  { %732 = vmatpush.msra.mxu2 %v5982_v11  ;;  %913 = vmatpush.msra.mxu0 %v5423_v13  ;;  %v9953_v13 = vld [vmem:[#allocation35_spill] sm:$0xff] }
  0xa5   :  { %752 = vmatpush.msra.mxu3 %v5986_v12  ;;  %933 = vmatpush.msra.mxu1 %v5404_v6  ;;  %v9950_v6 = vld [vmem:[#allocation22_spill] sm:$0xff] }
  0xa6   :  { %733 = vmatpush.msra.mxu2 %v5990_v16  ;;  %914 = vmatpush.msra.mxu0 %v5429_v15  ;;  %v9955_v15 = vld [vmem:[#allocation38_spill] sm:$0xff] }
  0xa7   :  { %753 = vmatpush.msra.mxu3 %v5994_v17  ;;  %934 = vmatpush.msra.mxu1 %v5415_v10  ;;  %v9952_v10 = vld [vmem:[#allocation20_spill] sm:$0xff] }
  0xa8   :  { %734 = vmatpush.msra.mxu2 %v5998_v20  ;;  %915 = vmatpush.msra.mxu0 %v5441_v19  ;;  %v9957_v19 = vld [vmem:[#allocation39_spill] sm:$0xff] }
  0xa9   :  { %754 = vmatpush.msra.mxu3 %v6002_v21  ;;  %935 = vmatpush.msra.mxu1 %v5427_v14  ;;  %v9954_v14 = vld [vmem:[#allocation24_spill] sm:$0xff] }
  0xaa   :  { %735 = vmatpush.msra.mxu2 %v6006_v24  ;;  %916 = vmatpush.msra.mxu0 %v5453_v23  ;;  %v9959_v23 = vld [vmem:[#allocation40_spill] sm:$0xff] }
  0xab   :  { %755 = vmatpush.msra.mxu3 %v6010_v25  ;;  %736 = vmatmul.f32.vlgmr.msra.gmra.mxu2 %v5915_v59 }
  0xac   :  { %756 = vmatmul.f32.vlgmr.msra.gmra.mxu3 %v5915_v59  ;;  %880 = vmatpush.msrb.mxu2 %v5477_v31  ;;  %v9965_v31 = vld [vmem:[#allocation46_spill] sm:$0xff]  ;;  %v9982_v59 = vld [vmem:[#allocation69_spill] sm:$0xff] }
  0xad   :  { %900 = vmatpush.msrb.mxu3 %v5481_v32  ;;  %936 = vmatpush.msra.mxu1 %v5439_v18  ;;  %v9956_v18 = vld [vmem:[#allocation21_spill] sm:$0xff]  ;;  %v9966_v32 = vld [vmem:[#allocation30_spill] sm:$0xff] }
  0xae   :  { %881 = vmatpush.msrb.mxu2 %v5489_v35  ;;  %917 = vmatpush.msra.mxu0 %v5465_v27  ;;  %v9961_v27 = vld [vmem:[#allocation42_spill] sm:$0xff] }
  0xaf   :  { %901 = vmatpush.msrb.mxu3 %v5493_v36  ;;  %937 = vmatpush.msra.mxu1 %v5451_v22  ;;  %v9958_v22 = vld [vmem:[#allocation26_spill] sm:$0xff]  ;;  %v9970_v36 = vld [vmem:[#allocation33_spill] sm:$0xff] }
  0xb0   :  { %882 = vmatpush.msrb.mxu2 %v5501_v39  ;;  %918 = vmatpush.msra.mxu0 %v5483_v33  ;;  %v9967_v33 = vld [vmem:[#allocation48_spill] sm:$0xff]  ;;  %v9969_v35 = vld [vmem:[#allocation50_spill] sm:$0xff]  ;;  %v9972_v39 = vld [vmem:[#allocation29_spill] sm:$0xff] }
  0xb1   :  { %902 = vmatpush.msrb.mxu3 %v5505_v40  ;;  %938 = vmatpush.msra.mxu1 %v5463_v26  ;;  %v9960_v26 = vld [vmem:[#allocation23_spill] sm:$0xff]  ;;  %v9973_v40 = vld [vmem:[#allocation54_spill] sm:$0xff] }
  0xb2   :  { %883 = vmatpush.msrb.mxu2 %v5513_v43  ;;  %919 = vmatpush.msra.mxu0 %v5495_v37  ;;  %v9971_v37 = vld [vmem:[#allocation52_spill] sm:$0xff] }
  0xb3   :  { %903 = vmatpush.msrb.mxu3 %v5517_v44  ;;  %939 = vmatpush.msra.mxu1 %v5475_v30  ;;  %v9964_v30 = vld [vmem:[#allocation25_spill] sm:$0xff]  ;;  %v9975_v43 = vld [vmem:[#allocation56_spill] sm:$0xff]  ;;  %v9976_v44 = vld [vmem:[#allocation31_spill] sm:$0xff] }
  0xb4   :  { %884 = vmatpush.msrb.mxu2 %v5532_v48  ;;  %920 = vmatpush.msra.mxu0 %v5507_v41  ;;  %v9974_v41 = vld [vmem:[#allocation37_spill] sm:$0xff]  ;;  %v9977_v48 = vld [vmem:[#allocation58_spill] sm:$0xff] }
  0xb5   :  { %904 = vmatpush.msrb.mxu3 %v5534_v49  ;;  %940 = vmatpush.msra.mxu1 %v5487_v34  ;;  %v9968_v34 = vld [vmem:[#allocation27_spill] sm:$0xff]  ;;  %v9978_v49 = vld [vmem:[#allocation60_spill] sm:$0xff] }
  0xb6   :  { %885 = vmatpush.msrb.mxu2 %v5545_v52  ;;  %921 = vmatpush.msra.mxu0 %v9950_v6  ;;  %v9979_v52 = vld [vmem:[#allocation62_spill] sm:$0xff]  ;;  %v396_v6 = vpop.f32.mrf.mxu3 }
  0xb7   :  { %905 = vmatpush.msrb.mxu3 %v5547_v53  ;;  %941 = vmatpush.msra.mxu1 %v9952_v10  ;;  %v339_v53 = vld [vmem:[%s9246_s4] sm:$0xf] }
  0xb8   :  { %886 = vmatpush.msrb.mxu2 %v5561_v57  ;;  %922 = vmatpush.msra.mxu0 %v9954_v14  ;;  %v9981_v57 = vld [vmem:[#allocation67_spill] sm:$0xff]  ;;  %v9988_v10 = vld [vmem:[#allocation78_spill] sm:$0xff] }
  0xb9   :  { %906 = vmatpush.msrb.mxu3 %v5557_v56  ;;  %942 = vmatpush.msra.mxu1 %v9956_v18  ;;  %v9980_v56 = vld [vmem:[#allocation65_spill] sm:$0xff]  ;;  %v9990_v14 = vld [vmem:[#allocation79_spill] sm:$0xff]  ;;  %v476_v18 = vpop.f32.mrf.mxu1 }
  0xba   :  { %887 = vmatpush.msrb.mxu2 %v5574_v61  ;;  %923 = vmatpush.msra.mxu0 %v9958_v22  ;;  %v9984_v61 = vld [vmem:[#allocation71_spill] sm:$0xff] }
  0xbb   :  { %907 = vmatpush.msrb.mxu3 %v5569_v60  ;;  %943 = vmatpush.msra.mxu1 %v9960_v26  ;;  %v6089_v60 = vperm.slane %v339_v53, 1  ;;  %v9993_v26 = vld [vmem:[#allocation86_spill] sm:$0xff] }
  0xbc   :  { %952 = vmatpush.msra.mxu2 %v5582_v0  ;;  %924 = vmatpush.msra.mxu0 %v9962_v28  ;;  %v9985_v0 = vld [vmem:[#allocation73_spill] sm:$0xff]  ;;  %v9994_v28 = vld [vmem:[#allocation87_spill] sm:$0xff] }
  0xbd   :  { %972 = vmatpush.msra.mxu3 %v9949_v3  ;;  %944 = vmatpush.msra.mxu1 %v9964_v30  ;;  %9983 = vst [vmem:[#allocation32_spill] sm:$0xff] %v6089_v60  ;;  %v9986_v3 = vld [vmem:[#allocation74_spill] sm:$0xff] }
  0xbe   :  { %953 = vmatpush.msra.mxu2 %v9951_v9  ;;  %925 = vmatpush.msra.mxu0 %v9966_v32  ;;  %v397_v9 = vadd.f32 %v396_v6, %v6089_v60  ;;  %v9999_v6 = vld [vmem:[#allocation90_spill] sm:$0xff] }
  0xbf   :  { %973 = vmatpush.msra.mxu3 %v9953_v13  ;;  %945 = vmatpush.msra.mxu1 %v9968_v34  ;;  %v6097_v13 = vperm.slane %v339_v53, 0 }
  0xc0   :  { %954 = vmatpush.msra.mxu2 %v9955_v15  ;;  %926 = vmatpush.msra.mxu0 %v9970_v36  ;;  %v9991_v15 = vld [vmem:[#allocation82_spill] sm:$0xff]  ;;  %v520_v22 = vadd.f32 %v476_v18, %v397_v9 }
  0xc1   :  { %974 = vmatpush.msra.mxu3 %v9957_v19  ;;  %946 = vmatpush.msra.mxu1 %v9972_v39  ;;  %9989 = vst [vmem:[#allocation22_spill] sm:$0xff] %v6097_v13  ;;  %v9992_v19 = vld [vmem:[#allocation83_spill] sm:$0xff] }
  0xc2   :  { %955 = vmatpush.msra.mxu2 %v9959_v23  ;;  %927 = vmatpush.msra.mxu0 %v9974_v41  ;;  %v376_v23 = vpop.f32.mrf.mxu2  ;;  %v4189_v30 = vmul.f32 -1.442695, %v520_v22  ;;  %v10004_v22 = vld [vmem:[#allocation95_spill] sm:$0xff] }
  0xc3   :  { %975 = vmatpush.msra.mxu3 %v9961_v27  ;;  %947 = vmatpush.msra.mxu1 %v9976_v44  ;;  %v377_v27 = vadd.f32 %v376_v23, %v6097_v13  ;;  %v6117_v44 = vperm.slane %v339_v53, 3 }
  0xc4   :  { %956 = vmatpush.msra.mxu2 %v9963_v29  ;;  %v456_v29 = vpop.f32.mrf.mxu0  ;;  %4322 = vpow2.f32 %v4189_v30  ;;  %v10007_v30 = vld [vmem:[#allocation98_spill] sm:$0xff] }
  0xc5   :  { %976 = vmatpush.msra.mxu3 %v9965_v31  ;;  %v519_v31 = vadd.f32 %v456_v29, %v377_v27  ;;  %9996 = vst [vmem:[#allocation20_spill] sm:$0xff] %v6117_v44  ;;  %v10005_v27 = vld [vmem:[#allocation49_spill] sm:$0xff] }
  0xc6   :  { %957 = vmatpush.msra.mxu2 %v9967_v33 }
  0xc7   :  { %977 = vmatpush.msra.mxu3 %v9969_v35  ;;  %v4188_v32 = vmul.f32 -1.442695, %v519_v31  ;;  %v10008_v31 = vld [vmem:[#allocation99_spill] sm:$0xff] }
  0xc8   :  { %958 = vmatpush.msra.mxu2 %v9971_v37 }
  0xc9   :  { %978 = vmatpush.msra.mxu3 %v9973_v40  ;;  %4324 = vpow2.f32 %v4188_v32  ;;  %v10009_v32 = vld [vmem:[#allocation53_spill] sm:$0xff] }
  0xca   :  { %959 = vmatpush.msra.mxu2 %v9975_v43  ;;  %v4323_v33 = vpop.eup %4322  ;;  %v6115_v43 = vperm.slane %v339_v53, 2 }
  0xcb   :  { %979 = vmatpush.msra.mxu3 %v9977_v48  ;;  %v6105_v35 = vadd.f32 1.0, %v4323_v33  ;;  %v416_v39 = vpop.f32.mrf.mxu2  ;;  %v10010_v33 = vld [vmem:[#allocation51_spill] sm:$0xff] }
  0xcc   :  { %960 = vmatpush.msra.mxu2 %v9978_v49  ;;  %9995 = vst [vmem:[#allocation34_spill] sm:$0xff] %v6115_v43 }
  0xcd   :  { %980 = vmatpush.msra.mxu3 %v9979_v52  ;;  %4326 = vrcp.f32 %v6105_v35  ;;  %v436_v41 = vpop.f32.mrf.mxu3  ;;  %v4199_v52 = vld [vmem:[%s9242_s0 + $0x2] sm:$0x3]  ;;  %vm551_vm3 = vweird.f32 %v6105_v35 }
  0xce   :  { %961 = vmatpush.msra.mxu2 %v5686_v45  ;;  %v9987_v45 = vld [vmem:[#allocation75_spill] sm:$0xff]  ;;  %4200 = vmatmul.msk.f32.vlgmr.msrb.gmra.mxu0 %vm355_vm0, %v4199_v52 }
  0xcf   :  { %981 = vmatpush.msra.mxu3 %v9980_v56  ;;  %v4325_v34 = vpop.eup %4324  ;;  %v417_v56 = vadd.f32 %v416_v39, %v6115_v43  ;;  %4201 = vmatmul.msk.f32.vlgmr.msrb.gmra.mxu1 %vm355_vm0, %v4199_v52  ;;  %v10011_v39 = vld [vmem:[#allocation102_spill] sm:$0xff] }
  0xd0   :  { %962 = vmatpush.msra.mxu2 %v9981_v57  ;;  %v6107_v36 = vadd.f32 1.0, %v4325_v34  ;;  %v437_v57 = vadd.f32 %v436_v41, %v6117_v44  ;;  %4203 = vmatmul.msk.f32.vlgmr.msrb.gmra.mxu3 %vm355_vm0, %v4199_v52  ;;  %v10012_v41 = vld [vmem:[#allocation103_spill] sm:$0xff] }
  0xd1   :  { %982 = vmatpush.msra.mxu3 %v9982_v59  ;;  %4202 = vmatmul.msk.f32.vlgmr.msrb.gmra.mxu2 %vm355_vm0, %v4199_v52 }
  0xd2   :  { %963 = vmatpush.msra.mxu2 %v9984_v61  ;;  %4328 = vrcp.f32 %v6107_v36  ;;  %v9997_v61 = vld [vmem:[#allocation41_spill] sm:$0xff]  ;;  %vm532_vm1 = vweird.f32 %v6107_v36  ;;  %v538_v34 = vand.u32 2147483648, %v6107_v36 }
  0xd3   :  { %983 = vmatpush.msra.mxu3 %v9985_v0  ;;  %v6111_v37 = vpop.eup %4326  ;;  %1072 = vmatpush.msrb.mxu0 %v9997_v61  ;;  %v9998_v0 = vld [vmem:[#allocation36_spill] sm:$0xff]  ;;  %v10017_v61 = vld [vmem:[#allocation106_spill] sm:$0xff] }
  0xd4   :  { %964 = vmatpush.msra.mxu2 %v9986_v3  ;;  %v547_v48 = vmul.f32 %v6111_v37, %v6105_v35  ;;  %1092 = vmatpush.msrb.mxu1 %v9998_v0  ;;  %vm552_vm4 = vweird.f32 %v6111_v37  ;;  %v10018_v0 = vld [vmem:[#allocation107_spill] sm:$0xff] }
  0xd5   :  { %984 = vmatpush.msra.mxu3 %v9987_v45  ;;  %v10000_v45 = vld [vmem:[#allocation91_spill] sm:$0xff]  ;;  %vm6183_vm6 = vmor %vm551_vm3, %vm552_vm4 }
  0xd6   :  { %965 = vmatpush.msra.mxu2 %v9988_v10  ;;  %v548_v53 = vsub.f32 1.0, %v547_v48 }
  0xd7   :  { %985 = vmatpush.msra.mxu3 %v9990_v14  ;;  %v10001_v14 = vld [vmem:[#allocation45_spill] sm:$0xff] }
  0xd8   :  { %966 = vmatpush.msra.mxu2 %v9991_v15  ;;  %v6113_v40 = vpop.eup %4328  ;;  %1073 = vmatpush.msrb.mxu0 %v10001_v14  ;;  %v10002_v15 = vld [vmem:[#allocation43_spill] sm:$0xff]  ;;  %v549_v23 = vmul.f32 %v6111_v37, %v548_v53  ;;  %v557_v53 = vand.u32 2147483648, %v6105_v35  ;;  %v539_v14 = vor.u32 1.1754944e-38, %v538_v34  ;;  %v10029_v34 = vld [vmem:[#allocation68_spill] sm:$0xff] }
  0xd9   :  { %986 = vmatpush.msra.mxu3 %v9992_v19  ;;  %v528_v49 = vmul.f32 %v6113_v40, %v6107_v36  ;;  %1093 = vmatpush.msrb.mxu1 %v10002_v15  ;;  %v10003_v19 = vld [vmem:[#allocation94_spill] sm:$0xff]  ;;  %vm533_vm2 = vweird.f32 %v6113_v40 }
  0xda   :  { %967 = vmatpush.msra.mxu2 %v9993_v26  ;;  %1074 = vmatpush.msrb.mxu0 %v10005_v27  ;;  %v550_v52 = vadd.f32 %v6111_v37, %v549_v23  ;;  %vm6165_vm5 = vmor %vm532_vm1, %vm533_vm2  ;;  %v10026_v27 = vld [vmem:[#allocation63_spill] sm:$0xff] }
  0xdb   :  { %987 = vmatpush.msra.mxu3 %v9994_v28  ;;  %v529_v59 = vsub.f32 1.0, %v528_v49  ;;  %v10006_v28 = vld [vmem:[#allocation47_spill] sm:$0xff]  ;;  %v536_v49 = vand.u32 2147483647, %v6107_v36 }
  0xdc   :  { %1112 = vmatpush.msrb.mxu2 %v9999_v6  ;;  %1094 = vmatpush.msrb.mxu1 %v10006_v28  ;;  %v6175_v6 = vld [vmem:[%s9247_s5] sm:$0xf] }
  0xdd   :  { %1132 = vmatpush.msrb.mxu3 %v10000_v45  ;;  %v530_v26 = vmul.f32 %v6113_v40, %v529_v59  ;;  %1075 = vmatpush.msrb.mxu0 %v10009_v32  ;;  %vm537_vm7 = vcmp.eq.f32.partialorder %v536_v49, 8.507059e+37  ;;  %v10028_v32 = vld [vmem:[#allocation115_spill] sm:$0xff]  ;;  %v10031_v49 = vld [vmem:[#allocation118_spill] sm:$0xff] }
  0xde   :  { %1113 = vmatpush.msrb.mxu2 %v10003_v19  ;;  %1095 = vmatpush.msrb.mxu1 %v10010_v33  ;;  %v10024_v19 = vld [vmem:[#allocation111_spill] sm:$0xff]  ;;  %v6203_v33 = vperm.slane %v6175_v6, 1 }
  0xdf   :  { %1133 = vmatpush.msrb.mxu3 %v10004_v22  ;;  %v531_v48 = vadd.f32 %v6113_v40, %v530_v26  ;;  %v10025_v26 = vld [vmem:[#allocation64_spill] sm:$0xff] }
  0xe0   :  { %1114 = vmatpush.msrb.mxu2 %v10007_v30  ;;  %v6198_v30 = vperm.slane %v6175_v6, 0 }
  0xe1   :  { %1134 = vmatpush.msrb.mxu3 %v10008_v31  ;;  %v535_v23 = vsel %vm6165_vm5, %v6113_v40, %v531_v48  ;;  %v10027_v31 = vld [vmem:[#allocation114_spill] sm:$0xff] }
  0xe2   :  { %1115 = vmatpush.msrb.mxu2 %v10011_v39  ;;  %v342_v39 = vld [vmem:[#allocation3] sm:$0x3] }
  0xe3   :  { %1135 = vmatpush.msrb.mxu3 %v10012_v41  ;;  %v540_v41 = vsel %vm537_vm7, %v539_v14, %v535_v23 }
  0xe4   :  { %1116 = vmatpush.msrb.mxu2 %v10017_v61 }
  0xe5   :  { %v496_v3 = vpop.f32.mrf.mxu2  ;;  %1136 = vmatpush.msrb.mxu3 %v10018_v0 }
  0xe6   :  { %v521_v9 = vadd.f32 %v496_v3, %v417_v56  ;;  %v516_v10 = vpop.f32.mrf.mxu3  ;;  %v10013_v56 = vld [vmem:[#allocation57_spill] sm:$0xff]  ;;  %v555_v3 = vand.u32 2147483647, %v6105_v35  ;;  %v554_v35 = vsel %vm6183_vm6, %v6111_v37, %v550_v52  ;;  %v10030_v37 = vld [vmem:[#allocation66_spill] sm:$0xff]  ;;  %v10032_v52 = vld [vmem:[#allocation119_spill] sm:$0xff] }
  0xe7   :  { %v522_v18 = vadd.f32 %v516_v10, %v437_v57  ;;  %1076 = vmatpush.msrb.mxu0 %v10013_v56  ;;  %v10014_v57 = vld [vmem:[#allocation55_spill] sm:$0xff]  ;;  %1137 = vmatpush.msrb.mxu3 %v10024_v19 }
  0xe8   :  { %4330 = vtanh.f32 %v521_v9  ;;  %1096 = vmatpush.msrb.mxu1 %v10014_v57  ;;  %v10019_v9 = vld [vmem:[#allocation61_spill] sm:$0xff]  ;;  %v10020_v10 = vld [vmem:[#allocation59_spill] sm:$0xff]  ;;  %vm556_vm8 = vcmp.eq.f32.partialorder %v555_v3, 8.507059e+37 }
  0xe9   :  { %v4190_v29 = vmul.f32 -1.442695, %v522_v18  ;;  %1077 = vmatpush.msrb.mxu0 %v10019_v9  ;;  %v10023_v18 = vld [vmem:[#allocation110_spill] sm:$0xff]  ;;  %1138 = vmatpush.msrb.mxu3 %v10028_v32 }
  0xea   :  { %1097 = vmatpush.msrb.mxu1 %v10020_v10  ;;  %1117 = vmatpush.msrb.mxu2 %v10023_v18 }
  0xeb   :  { %4332 = vpow2.f32 %v4190_v29  ;;  %1078 = vmatpush.msrb.mxu0 %v10025_v26  ;;  %v558_v29 = vor.u32 1.1754944e-38, %v557_v53  ;;  %1139 = vmatpush.msrb.mxu3 %v10032_v52  ;;  %v10037_v52 = vld [vmem:[#allocation76_spill] sm:$0xff] }
  0xec   :  { %1098 = vmatpush.msrb.mxu1 %v10026_v27  ;;  %1118 = vmatpush.msrb.mxu2 %v10027_v31 }
  0xed   :  { %1079 = vmatpush.msrb.mxu0 %v10029_v34  ;;  %v559_v48 = vsel %vm556_vm8, %v558_v29, %v554_v35 }
  0xee   :  { %v4331_v22 = vpop.eup %4330  ;;  %1099 = vmatpush.msrb.mxu1 %v10030_v37  ;;  %1119 = vmatpush.msrb.mxu2 %v10031_v49  ;;  %v581_v53 = vmul.f32 %v559_v48, %v342_v39  ;;  %v10035_v48 = vld [vmem:[#allocation122_spill] sm:$0xff]  ;;  %v10036_v49 = vld [vmem:[#allocation123_spill] sm:$0xff] }
  0xef   :  { %v582_v56 = vmul.f32 %v4331_v22, %v540_v41  ;;  %v10034_v41 = vld [vmem:[#allocation72_spill] sm:$0xff] }
  0xf1   :  { %v4333_v28 = vpop.eup %4332  ;;  %v6211_v61 = vadd.f32 %v582_v56, %v581_v53  ;;  %v10038_v56 = vld [vmem:[#allocation77_spill] sm:$0xff] }
  0xf2   :  { %v565_v40 = vadd.f32 1.0, %v4333_v28 }
  0xf4   :  { %4334 = vrcp.f32 %v565_v40  ;;  %v577_v22 = vand.u32 2147483648, %v565_v40  ;;  %v575_v35 = vand.u32 2147483647, %v565_v40  ;;  %vm571_vm10 = vweird.f32 %v565_v40 }
  0xf5   :  { %4336 = vtanh.f32 %v6211_v61 }
  0xf6   :  { %v578_v27 = vor.u32 1.1754944e-38, %v577_v22  ;;  %vm576_vm12 = vcmp.eq.f32.partialorder %v575_v35, 8.507059e+37  ;;  %v6246_v22 = vperm.slane %v6175_v6, 3  ;;  %v10051_v35 = vld [vmem:[#allocation134_spill] sm:$0xff] }
  0xf8   :  { %10049 = vst [vmem:[#allocation24_spill] sm:$0xff] %v6246_v22 }
  0xfa   :  { %v4335_v10 = vpop.eup %4334 }
  0xfb   :  { %v567_v14 = vmul.f32 %v4335_v10, %v565_v40  ;;  %vm572_vm9 = vweird.f32 %v4335_v10  ;;  %v4337_v26 = vpop.eup %4336  ;;  %v10033_v40 = vld [vmem:[#allocation70_spill] sm:$0xff] }
  0xfc   :  { %vm573_vm11 = vmor %vm571_vm10, %vm572_vm9 }
  0xfd   :  { %v568_v23 = vsub.f32 1.0, %v567_v14  ;;  %v10044_v14 = vld [vmem:[#allocation85_spill] sm:$0xff] }
  0xff   :  { %v617_v45 = vpop.f32.mrf.mxu0  ;;  %v637_v15 = vpop.f32.mrf.mxu1 }
 0x100   :  { %v618_v57 = vadd.f32 %v617_v45, %v6198_v30  ;;  %v638_v59 = vadd.f32 %v637_v15, %v6203_v33  ;;  %v569_v45 = vmul.f32 %v4335_v10, %v568_v23  ;;  %v10047_v23 = vld [vmem:[#allocation89_spill] sm:$0xff] }
 0x102   :  { %v570_v15 = vadd.f32 %v4335_v10, %v569_v45  ;;  %v10050_v45 = vld [vmem:[#allocation133_spill] sm:$0xff] }
 0x104   :  { %v574_v29 = vsel %vm573_vm11, %v4335_v10, %v570_v15 }
 0x105   :  { %v579_v32 = vsel %vm576_vm12, %v578_v27, %v574_v29  ;;  %v10053_v27 = vld [vmem:[#allocation93_spill] sm:$0xff] }
 0x106   :  { %v585_v37 = vmul.f32 %v4337_v26, %v579_v32  ;;  %v10052_v26 = vld [vmem:[#allocation92_spill] sm:$0xff] }
 0x107   :  { %v657_v53 = vpop.f32.mrf.mxu2 }
 0x108   :  { %928 = vmatmul.f32.vlgmr.msra.gmra.mxu0 %v585_v37  ;;  %948 = vmatmul.f32.vlgmr.msra.gmra.mxu1 %v585_v37 }
 0x109   :  { %968 = vmatmul.f32.vlgmr.msra.gmra.mxu2 %v585_v37  ;;  %988 = vmatmul.f32.vlgmr.msra.gmra.mxu3 %v585_v37 }
 0x10a   :  { %1144 = vmatpush.msra.mxu0 %v10033_v40  ;;  %1164 = vmatpush.msra.mxu1 %v10034_v41 }
 0x10b   :  { %1184 = vmatpush.msra.mxu2 %v10035_v48  ;;  %1204 = vmatpush.msra.mxu3 %v10036_v49  ;;  %v10056_v48 = vld [vmem:[#allocation100_spill] sm:$0xff] }
 0x10c   :  { %1145 = vmatpush.msra.mxu0 %v10037_v52  ;;  %1165 = vmatpush.msra.mxu1 %v10038_v56  ;;  %v10058_v49 = vld [vmem:[#allocation104_spill] sm:$0xff]  ;;  %v10059_v52 = vld [vmem:[#allocation105_spill] sm:$0xff] }
 0x10d   :  { %1205 = vmatpush.msra.mxu3 %v5889_v54  ;;  %v10045_v54 = vld [vmem:[#allocation132_spill] sm:$0xff] }
 0x110   :  { %v697_v0 = vpop.f32.mrf.mxu0  ;;  %v717_v9 = vpop.f32.mrf.mxu1 }
 0x111   :  { %v760_v3 = vadd.f32 %v697_v0, %v618_v57  ;;  %v761_v36 = vadd.f32 %v717_v9, %v638_v59  ;;  %v10039_v57 = vld [vmem:[#allocation126_spill] sm:$0xff]  ;;  %v677_v59 = vpop.f32.mrf.mxu3  ;;  %v10040_v0 = vld [vmem:[#allocation80_spill] sm:$0xff]  ;;  %v10042_v9 = vld [vmem:[#allocation129_spill] sm:$0xff] }
 0x112   :  { %1185 = vmatpush.msra.mxu2 %v10039_v57  ;;  %1146 = vmatpush.msra.mxu0 %v10040_v0 }
 0x113   :  { %v4196_v18 = vmul.f32 -1.442695, %v760_v3  ;;  %v4197_v19 = vmul.f32 -1.442695, %v761_v36  ;;  %v10041_v3 = vld [vmem:[#allocation81_spill] sm:$0xff]  ;;  %1206 = vmatpush.msra.mxu3 %v10042_v9  ;;  %v10043_v36 = vld [vmem:[#allocation84_spill] sm:$0xff] }
 0x114   :  { %1166 = vmatpush.msra.mxu1 %v10041_v3  ;;  %1186 = vmatpush.msra.mxu2 %v5897_v58  ;;  %v6243_v58 = vperm.slane %v6175_v6, 2  ;;  %v10054_v6 = vld [vmem:[#allocation96_spill] sm:$0xff]  ;;  %v6412_v3 = vld [vmem:[#allocation6 + $0x70] sm:$0xff] }
 0x115   :  { %4338 = vpow2.f32 %v4196_v18  ;;  %1147 = vmatpush.msra.mxu0 %v10043_v36  ;;  %1207 = vmatpush.msra.mxu3 %v10045_v54  ;;  %v10066_v36 = vld [vmem:[#allocation116_spill] sm:$0xff] }
 0x116   :  { %4340 = vpow2.f32 %v4197_v19  ;;  %1167 = vmatpush.msra.mxu1 %v10044_v14  ;;  %1187 = vmatpush.msra.mxu2 %v5909_v38  ;;  %v10046_v19 = vld [vmem:[#allocation88_spill] sm:$0xff]  ;;  %10048 = vst [vmem:[#allocation35_spill] sm:$0xff] %v6243_v58  ;;  %v658_v29 = vadd.f32 %v657_v53, %v6243_v58 }
 0x117   :  { %1148 = vmatpush.msra.mxu0 %v10046_v19  ;;  %1208 = vmatpush.msra.mxu3 %v10051_v35  ;;  %v10060_v53 = vld [vmem:[#allocation108_spill] sm:$0xff]  ;;  %v10073_v35 = vld [vmem:[#allocation121_spill] sm:$0xff]  ;;  %v6427_v19 = vld [vmem:[#allocation6 + $0x58] sm:$0xff] }
 0x118   :  { %1168 = vmatpush.msra.mxu1 %v10047_v23  ;;  %1188 = vmatpush.msra.mxu2 %v10050_v45  ;;  %v10072_v45 = vld [vmem:[#allocation120_spill] sm:$0xff] }
 0x119   :  { %1149 = vmatpush.msra.mxu0 %v10052_v26  ;;  %1209 = vmatpush.msra.mxu3 %v5931_v51  ;;  %v344_v26 = vld [vmem:[#allocation5] sm:$0x3]  ;;  %v6421_v14 = vld [vmem:[#allocation6 + $0x48] sm:$0xff] }
 0x11a   :  { %1169 = vmatpush.msra.mxu1 %v10053_v27  ;;  %1189 = vmatpush.msra.mxu2 %v5927_v50  ;;  %v10057_v50 = vld [vmem:[#allocation101_spill] sm:$0xff] }
 0x11b   :  { %v4339_v28 = vpop.eup %4338  ;;  %1150 = vmatpush.msra.mxu0 %v10054_v6  ;;  %1210 = vmatpush.msra.mxu3 %v5938_v46 }
 0x11c   :  { %v4341_v31 = vpop.eup %4340  ;;  %v6214_v34 = vadd.f32 1.0, %v4339_v28  ;;  %v10055_v28 = vld [vmem:[#allocation97_spill] sm:$0xff]  ;;  %1190 = vmatpush.msra.mxu2 %v5934_v63 }
 0x11d   :  { %v6216_v39 = vadd.f32 1.0, %v4341_v31  ;;  %1170 = vmatpush.msra.mxu1 %v10055_v28  ;;  %v678_v31 = vadd.f32 %v677_v59, %v6246_v22  ;;  %1151 = vmatpush.msra.mxu0 %v10056_v48  ;;  %v10061_v59 = vld [vmem:[#allocation109_spill] sm:$0xff]  ;;  %v10076_v28 = vld [vmem:[#allocation127_spill] sm:$0xff] }
 0x11e   :  { %4342 = vrcp.f32 %v6214_v34  ;;  %1191 = vmatpush.msra.mxu2 %v5942_v47  ;;  %1211 = vmatpush.msra.mxu3 %v5946_v55  ;;  %vm773_vm13 = vweird.f32 %v6214_v34  ;;  %v10062_v55 = vld [vmem:[#allocation112_spill] sm:$0xff]  ;;  %v779_v0 = vand.u32 2147483648, %v6214_v34  ;;  %v6371_v48 = vld [vmem:[#allocation6 + $0xd0] sm:$0xff] }
 0x11f   :  { %4344 = vrcp.f32 %v6216_v39  ;;  %1171 = vmatpush.msra.mxu1 %v10057_v50  ;;  %1152 = vmatpush.msra.mxu0 %v10058_v49  ;;  %vm792_vm15 = vweird.f32 %v6216_v39  ;;  %v798_v47 = vand.u32 2147483648, %v6216_v39  ;;  %v6374_v50 = vld [vmem:[#allocation6 + $0xd8] sm:$0xff]  ;;  %v6379_v49 = vld [vmem:[#allocation6 + $0xa0] sm:$0xff] }
 0x120   :  { %1192 = vmatpush.msra.mxu2 %v5950_v62  ;;  %1212 = vmatpush.msra.mxu3 %v5954_v42  ;;  %v10063_v62 = vld [vmem:[#allocation113_spill] sm:$0xff]  ;;  %v777_v42 = vand.u32 2147483647, %v6214_v34  ;;  %v780_v23 = vor.u32 1.1754944e-38, %v779_v0  ;;  %v6406_v0 = vld [vmem:[#allocation6 + $0x60] sm:$0xff] }
 0x121   :  { %1172 = vmatpush.msra.mxu1 %v10059_v52  ;;  %1153 = vmatpush.msra.mxu0 %v10060_v53  ;;  %v799_v54 = vor.u32 1.1754944e-38, %v798_v47  ;;  %v6382_v52 = vld [vmem:[#allocation6 + $0xa8] sm:$0xff]  ;;  %v6392_v53 = vld [vmem:[#allocation6 + $0x80] sm:$0xff]  ;;  %v6402_v47 = vld [vmem:[#allocation6 + $0x98] sm:$0xff] }
 0x122   :  { %1193 = vmatpush.msra.mxu2 %v5958_v1  ;;  %1213 = vmatpush.msra.mxu3 %v5962_v2  ;;  %v4207_v1 = vld [vmem:[%s9243_s1 + $0xc] sm:$0x3]  ;;  %vm6317_vm4 = vcmp.eq.f32.partialorder %v777_v42, 8.507059e+37 }
 0x123   :  { %1173 = vmatpush.msra.mxu1 %v10061_v59  ;;  %1154 = vmatpush.msra.mxu0 %v10062_v55  ;;  %v6395_v59 = vld [vmem:[#allocation6 + $0x88] sm:$0xff] }
 0x124   :  { %v6232_v10 = vpop.eup %4342  ;;  %1194 = vmatpush.msra.mxu2 %v5966_v4  ;;  %1214 = vmatpush.msra.mxu3 %v5970_v5  ;;  %v796_v4 = vand.u32 2147483647, %v6216_v39  ;;  %v10067_v5 = vld [vmem:[#allocation117_spill] sm:$0xff] }
 0x125   :  { %v6236_v18 = vpop.eup %4344  ;;  %v769_v15 = vmul.f32 %v6232_v10, %v6214_v34  ;;  %vm774_vm14 = vweird.f32 %v6232_v10  ;;  %1174 = vmatpush.msra.mxu1 %v10063_v62  ;;  %1155 = vmatpush.msra.mxu0 %v10066_v36  ;;  %v6399_v62 = vld [vmem:[#allocation6 + $0x90] sm:$0xff] }
 0x126   :  { %v788_v38 = vmul.f32 %v6236_v18, %v6216_v39  ;;  %vm793_vm1 = vweird.f32 %v6236_v18  ;;  %vm6297_vm2 = vmor %vm773_vm13, %vm774_vm14  ;;  %1195 = vmatpush.msra.mxu2 %v5974_v7  ;;  %1215 = vmatpush.msra.mxu3 %v5978_v8  ;;  %vm797_vm5 = vcmp.eq.f32.partialorder %v796_v4, 8.507059e+37 }
 0x127   :  { %v770_v32 = vsub.f32 1.0, %v769_v15  ;;  %1175 = vmatpush.msra.mxu1 %v10067_v5  ;;  %vm6309_vm3 = vmor %vm792_vm15, %vm793_vm1  ;;  %4208 = vmatmul.msk.f32.vlgmr.msrb.gmra.mxu0 %vm355_vm0, %v4207_v1  ;;  %v6418_v5 = vld [vmem:[#allocation6 + $0x40] sm:$0xff] }
 0x128   :  { %v789_v37 = vsub.f32 1.0, %v788_v38  ;;  %4209 = vmatmul.msk.f32.vlgmr.msrb.gmra.mxu1 %vm355_vm0, %v4207_v1  ;;  %4210 = vmatmul.msk.f32.vlgmr.msrb.gmra.mxu2 %vm355_vm0, %v4207_v1  ;;  %v10074_v38 = vld [vmem:[#allocation124_spill] sm:$0xff] }
 0x129   :  { %v771_v57 = vmul.f32 %v6232_v10, %v770_v32  ;;  %4211 = vmatmul.msk.f32.vlgmr.msrb.gmra.mxu3 %vm355_vm0, %v4207_v1  ;;  %1156 = vmatpush.msra.mxu0 %v10072_v45  ;;  %v6352_v32 = vld [vmem:[#allocation6 + $0xe0] sm:$0xff]  ;;  %v6409_v1 = vld [vmem:[#allocation6 + $0x68] sm:$0xff] }
 0x12a   :  { %v790_v46 = vmul.f32 %v6236_v18, %v789_v37  ;;  %1176 = vmatpush.msra.mxu1 %v10073_v35  ;;  %1196 = vmatpush.msra.mxu2 %v5982_v11  ;;  %v10077_v11 = vld [vmem:[#allocation128_spill] sm:$0xff] }
 0x12b   :  { %v772_v2 = vadd.f32 %v6232_v10, %v771_v57  ;;  %1216 = vmatpush.msra.mxu3 %v5986_v12  ;;  %1157 = vmatpush.msra.mxu0 %v10074_v38  ;;  %v6355_v37 = vld [vmem:[#allocation6 + $0xe8] sm:$0xff]  ;;  %v6389_v57 = vld [vmem:[#allocation6 + $0xb8] sm:$0xff]  ;;  %v6442_v45 = vld [vmem:[#allocation6] sm:$0xff] }
 0x12c   :  { %v791_v9 = vadd.f32 %v6236_v18, %v790_v46  ;;  %1197 = vmatpush.msra.mxu2 %v5990_v16  ;;  %v6386_v46 = vld [vmem:[#allocation6 + $0xb0] sm:$0xff]  ;;  %v6445_v35 = vld [vmem:[#allocation6 + $0x8] sm:$0xff]  ;;  %v6451_v38 = vld [vmem:[#allocation6 + $0x18] sm:$0xff] }
 0x12d   :  { %v776_v7 = vsel %vm6297_vm2, %v6232_v10, %v772_v2  ;;  %v10075_v10 = vld [vmem:[#allocation125_spill] sm:$0xff]  ;;  %1217 = vmatpush.msra.mxu3 %v5994_v17  ;;  %1158 = vmatpush.msra.mxu0 %v10076_v28 }
 0x12e   :  { %v737_v40 = vpop.f32.mrf.mxu2  ;;  %v795_v8 = vsel %vm6309_vm3, %v6236_v18, %v791_v9  ;;  %1177 = vmatpush.msra.mxu1 %v10075_v10  ;;  %v781_v18 = vsel %vm6317_vm4, %v780_v23, %v776_v7  ;;  %1198 = vmatpush.msra.mxu2 %v5998_v20  ;;  %v6415_v9 = vld [vmem:[#allocation6 + $0x78] sm:$0xff]  ;;  %v6430_v23 = vld [vmem:[#allocation6 + $0x20] sm:$0xff]  ;;  %v6433_v7 = vld [vmem:[#allocation6 + $0x28] sm:$0xff] }
 0x12f   :  { %v757_v41 = vpop.f32.mrf.mxu3  ;;  %v762_v63 = vadd.f32 %v737_v40, %v658_v29  ;;  %v800_v27 = vsel %vm797_vm5, %v799_v54, %v795_v8  ;;  %1218 = vmatpush.msra.mxu3 %v6002_v21  ;;  %v10078_v29 = vld [vmem:[#allocation130_spill] sm:$0xff]  ;;  %v6368_v40 = vld [vmem:[#allocation6 + $0xc8] sm:$0xff]  ;;  %v6454_v10 = vld [vmem:[#allocation11 + $0x1e0] sm:$0xff] }
 0x130   :  { %v763_v51 = vadd.f32 %v757_v41, %v678_v31  ;;  %1178 = vmatpush.msra.mxu1 %v10077_v11  ;;  %v822_v12 = vmul.f32 %v800_v27, %v344_v26  ;;  %1159 = vmatpush.msra.mxu0 %v10078_v29  ;;  %v10079_v31 = vld [vmem:[#allocation131_spill] sm:$0xff]  ;;  %v6359_v21 = vld [vmem:[#allocation6 + $0xf0] sm:$0xff]  ;;  %v6457_v26 = vld [vmem:[#allocation11 + $0x1e8] sm:$0xff] }
 0x131   :  { %1199 = vmatpush.msra.mxu2 %v6006_v24  ;;  %1219 = vmatpush.msra.mxu3 %v6010_v25  ;;  %v6362_v24 = vld [vmem:[#allocation6 + $0xf8] sm:$0xff]  ;;  %v6365_v25 = vld [vmem:[#allocation6 + $0xc0] sm:$0xff]  ;;  %v6424_v54 = vld [vmem:[#allocation6 + $0x50] sm:$0xff] }
 0x132   :  { %v4198_v56 = vmul.f32 -1.442695, %v763_v51  ;;  %1179 = vmatpush.msra.mxu1 %v10079_v31  ;;  %1304 = vmatpush.msrb.mxu0 %v6352_v32  ;;  %v6436_v8 = vld [vmem:[#allocation6 + $0x30] sm:$0xff]  ;;  %v6463_v27 = vld [vmem:[#allocation11 + $0x1f8] sm:$0xff]  ;;  %v6469_v28 = vld [vmem:[#allocation11 + $0x1c8] sm:$0xff] }
 0x133   :  { %1344 = vmatpush.msrb.mxu2 %v6359_v21  ;;  %1364 = vmatpush.msrb.mxu3 %v6362_v24  ;;  %10081 = vst [vmem:[#allocation21_spill] sm:$0xff] %v6463_v27  ;;  %v6472_v11 = vld [vmem:[#allocation11 + $0x1d0] sm:$0xff]  ;;  %v6478_v29 = vld [vmem:[#allocation11 + $0x1a0] sm:$0xff]  ;;  %v6481_v31 = vld [vmem:[#allocation11 + $0x1a8] sm:$0xff] }
 0x134   :  { %4346 = vpow2.f32 %v4198_v56  ;;  %1324 = vmatpush.msrb.mxu1 %v6355_v37  ;;  %1305 = vmatpush.msrb.mxu0 %v6365_v25  ;;  %10083 = vst [vmem:[#allocation26_spill] sm:$0xff] %v6469_v28 }
 0x135   :  { %4348 = vtanh.f32 %v762_v63  ;;  %1345 = vmatpush.msrb.mxu2 %v6371_v48  ;;  %1365 = vmatpush.msrb.mxu3 %v6374_v50  ;;  %10084 = vst [vmem:[#allocation40_spill] sm:$0xff] %v6472_v11 }
 0x136   :  { %1325 = vmatpush.msrb.mxu1 %v6368_v40  ;;  %1306 = vmatpush.msrb.mxu0 %v6379_v49  ;;  %10086 = vst [vmem:[#allocation42_spill] sm:$0xff] %v6478_v29 }
 0x137   :  { %1346 = vmatpush.msrb.mxu2 %v6386_v46  ;;  %1366 = vmatpush.msrb.mxu3 %v6389_v57  ;;  %10087 = vst [vmem:[#allocation28_spill] sm:$0xff] %v6481_v31 }
 0x138   :  { %1326 = vmatpush.msrb.mxu1 %v6382_v52  ;;  %1307 = vmatpush.msrb.mxu0 %v6392_v53 }
 0x139   :  { %1347 = vmatpush.msrb.mxu2 %v6399_v62  ;;  %1367 = vmatpush.msrb.mxu3 %v6402_v47 }
 0x13a   :  { %v4347_v34 = vpop.eup %4346  ;;  %1327 = vmatpush.msrb.mxu1 %v6395_v59  ;;  %1308 = vmatpush.msrb.mxu0 %v6406_v0 }
 0x13b   :  { %v6329_v39 = vadd.f32 1.0, %v4347_v34  ;;  %v4349_v15 = vpop.eup %4348  ;;  %1348 = vmatpush.msrb.mxu2 %v6412_v3  ;;  %1368 = vmatpush.msrb.mxu3 %v6415_v9 }
 0x13c   :  { %v823_v6 = vmul.f32 %v4349_v15, %v781_v18  ;;  %1328 = vmatpush.msrb.mxu1 %v6409_v1  ;;  %1309 = vmatpush.msrb.mxu0 %v6418_v5  ;;  %v6448_v15 = vld [vmem:[#allocation6 + $0x10] sm:$0xff] }
 0x13d   :  { %4350 = vrcp.f32 %v6329_v39  ;;  %v818_v51 = vand.u32 2147483648, %v6329_v39  ;;  %v816_v56 = vand.u32 2147483647, %v6329_v39  ;;  %vm812_vm7 = vweird.f32 %v6329_v39  ;;  %1349 = vmatpush.msrb.mxu2 %v6424_v54  ;;  %1369 = vmatpush.msrb.mxu3 %v6427_v19  ;;  %v6460_v18 = vld [vmem:[#allocation11 + $0x1f0] sm:$0xff] }
 0x13e   :  { %v6350_v17 = vadd.f32 %v823_v6, %v822_v12  ;;  %1329 = vmatpush.msrb.mxu1 %v6421_v14  ;;  %1310 = vmatpush.msrb.mxu0 %v6430_v23  ;;  %10080 = vst [vmem:[#allocation38_spill] sm:$0xff] %v6460_v18  ;;  %v6466_v6 = vld [vmem:[#allocation11 + $0x1c0] sm:$0xff]  ;;  %v6475_v12 = vld [vmem:[#allocation11 + $0x1d8] sm:$0xff] }
 0x13f   :  { %v819_v42 = vor.u32 1.1754944e-38, %v818_v51  ;;  %vm817_vm9 = vcmp.eq.f32.partialorder %v816_v56, 8.507059e+37  ;;  %1350 = vmatpush.msrb.mxu2 %v6436_v8  ;;  %10082 = vst [vmem:[#allocation39_spill] sm:$0xff] %v6466_v6  ;;  %v6493_v51 = vld [vmem:[#allocation11 + $0x188] sm:$0xff]  ;;  %v6499_v56 = vld [vmem:[#allocation11 + $0x198] sm:$0xff] }
 0x140   :  { %4352 = vtanh.f32 %v6350_v17  ;;  %1330 = vmatpush.msrb.mxu1 %v6433_v7  ;;  %1311 = vmatpush.msrb.mxu0 %v6442_v45  ;;  %10085 = vst [vmem:[#allocation23_spill] sm:$0xff] %v6475_v12 }
 0x141   :  { %1351 = vmatpush.msrb.mxu2 %v6448_v15  ;;  %10091 = vst [vmem:[#allocation30_spill] sm:$0xff] %v6493_v51 }
 0x142   :  { %1331 = vmatpush.msrb.mxu1 %v6445_v35  ;;  %10093 = vst [vmem:[#allocation27_spill] sm:$0xff] %v6499_v56 }
 0x143   :  { %v4351_v16 = vpop.eup %4350 }
 0x144   :  { %v808_v20 = vmul.f32 %v4351_v16, %v6329_v39  ;;  %vm813_vm6 = vweird.f32 %v4351_v16  ;;  %v6439_v39 = vld [vmem:[#allocation6 + $0x38] sm:$0xff] }
 0x145   :  { %vm814_vm8 = vmor %vm812_vm7, %vm813_vm6  ;;  %1370 = vmatpush.msrb.mxu3 %v6439_v39 }
 0x146   :  { %v809_v41 = vsub.f32 1.0, %v808_v20  ;;  %v4353_v4 = vpop.eup %4352  ;;  %v6487_v20 = vld [vmem:[#allocation11 + $0x1b8] sm:$0xff] }
 0x147   :  { %1371 = vmatpush.msrb.mxu3 %v6451_v38  ;;  %10089 = vst [vmem:[#allocation25_spill] sm:$0xff] %v6487_v20 }
 0x148   :  { %v810_v63 = vmul.f32 %v4351_v16, %v809_v41  ;;  %v6490_v41 = vld [vmem:[#allocation11 + $0x180] sm:$0xff] }
 0x149   :  { %10090 = vst [vmem:[#allocation46_spill] sm:$0xff] %v6490_v41 }
 0x14a   :  { %v811_v55 = vadd.f32 %v4351_v16, %v810_v63  ;;  %v6496_v63 = vld [vmem:[#allocation11 + $0x190] sm:$0xff] }
 0x14b   :  { %10092 = vst [vmem:[#allocation48_spill] sm:$0xff] %v6496_v63 }
 0x14c   :  { %v815_v2 = vsel %vm814_vm8, %v4351_v16, %v811_v55  ;;  %v6484_v16 = vld [vmem:[#allocation11 + $0x1b0] sm:$0xff]  ;;  %v6502_v55 = vld [vmem:[#allocation11 + $0x160] sm:$0xff] }
 0x14d   :  { %v820_v36 = vsel %vm817_vm9, %v819_v42, %v815_v2  ;;  %10088 = vst [vmem:[#allocation44_spill] sm:$0xff] %v6484_v16  ;;  %v6505_v42 = vld [vmem:[#allocation11 + $0x168] sm:$0xff]  ;;  %v6508_v2 = vld [vmem:[#allocation11 + $0x170] sm:$0xff] }
 0x14e   :  { %v826_v34 = vmul.f32 %v4353_v4, %v820_v36  ;;  %10094 = vst [vmem:[#allocation50_spill] sm:$0xff] %v6502_v55  ;;  %v6511_v4 = vld [vmem:[#allocation11 + $0x178] sm:$0xff]  ;;  %v6514_v36 = vld [vmem:[#allocation11 + $0x140] sm:$0xff] }
 0x14f   :  { %10095 = vst [vmem:[#allocation33_spill] sm:$0xff] %v6505_v42 }
 0x150   :  { %1160 = vmatmul.f32.vlgmr.msra.gmra.mxu0 %v826_v34  ;;  %1180 = vmatmul.f32.vlgmr.msra.gmra.mxu1 %v826_v34  ;;  %10096 = vst [vmem:[#allocation52_spill] sm:$0xff] %v6508_v2 }
 0x151   :  { %1200 = vmatmul.f32.vlgmr.msra.gmra.mxu2 %v826_v34  ;;  %1220 = vmatmul.f32.vlgmr.msra.gmra.mxu3 %v826_v34  ;;  %10097 = vst [vmem:[#allocation29_spill] sm:$0xff] %v6511_v4  ;;  %v6517_v34 = vld [vmem:[#allocation11 + $0x148] sm:$0xff] }
 0x152   :  { %1376 = vmatpush.msra.mxu0 %v6454_v10  ;;  %1396 = vmatpush.msra.mxu1 %v6457_v26  ;;  %10098 = vst [vmem:[#allocation54_spill] sm:$0xff] %v6514_v36 }
 0x153   :  { %1416 = vmatpush.msra.mxu2 %v6460_v18  ;;  %1436 = vmatpush.msra.mxu3 %v6463_v27  ;;  %10099 = vst [vmem:[#allocation37_spill] sm:$0xff] %v6517_v34 }
 0x154   :  { %1377 = vmatpush.msra.mxu0 %v6466_v6  ;;  %1397 = vmatpush.msra.mxu1 %v6469_v28 }
 0x155   :  { %1417 = vmatpush.msra.mxu2 %v6472_v11  ;;  %1437 = vmatpush.msra.mxu3 %v6475_v12 }
 0x156   :  { %1378 = vmatpush.msra.mxu0 %v6478_v29  ;;  %1398 = vmatpush.msra.mxu1 %v6481_v31 }
 0x157   :  { %1418 = vmatpush.msra.mxu2 %v6484_v16  ;;  %1438 = vmatpush.msra.mxu3 %v6487_v20 }
 0x158   :  { %1379 = vmatpush.msra.mxu0 %v6490_v41  ;;  %1399 = vmatpush.msra.mxu1 %v6493_v51  ;;  %v909_v51 = vpop.f32.mrf.mxu3 }
 0x159   :  { %1419 = vmatpush.msra.mxu2 %v6496_v63  ;;  %1439 = vmatpush.msra.mxu3 %v6499_v56  ;;  %v869_v56 = vpop.f32.mrf.mxu1  ;;  %v910_v29 = vadd.f32 %v909_v51, %v6117_v44 }
 0x15a   :  { %1380 = vmatpush.msra.mxu0 %v6502_v55  ;;  %1400 = vmatpush.msra.mxu1 %v6505_v42  ;;  %v6520_v55 = vld [vmem:[#allocation11 + $0x150] sm:$0xff]  ;;  %v6523_v42 = vld [vmem:[#allocation11 + $0x158] sm:$0xff]  ;;  %v870_v63 = vadd.f32 %v869_v56, %v6089_v60  ;;  %v889_v56 = vpop.f32.mrf.mxu2 }
 0x15b   :  { %1420 = vmatpush.msra.mxu2 %v6508_v2  ;;  %1440 = vmatpush.msra.mxu3 %v6511_v4  ;;  %10100 = vst [vmem:[#allocation56_spill] sm:$0xff] %v6520_v55  ;;  %v6526_v2 = vld [vmem:[#allocation11 + $0x120] sm:$0xff]  ;;  %v6529_v4 = vld [vmem:[#allocation11 + $0x128] sm:$0xff] }
 0x15c   :  { %1381 = vmatpush.msra.mxu0 %v6514_v36  ;;  %1401 = vmatpush.msra.mxu1 %v6517_v34  ;;  %10101 = vst [vmem:[#allocation31_spill] sm:$0xff] %v6523_v42  ;;  %v6532_v36 = vld [vmem:[#allocation11 + $0x130] sm:$0xff]  ;;  %v6535_v34 = vld [vmem:[#allocation11 + $0x138] sm:$0xff] }
 0x15d   :  { %1421 = vmatpush.msra.mxu2 %v6520_v55  ;;  %1441 = vmatpush.msra.mxu3 %v6523_v42  ;;  %10102 = vst [vmem:[#allocation58_spill] sm:$0xff] %v6526_v2  ;;  %v6538_v55 = vld [vmem:[#allocation11 + $0x100] sm:$0xff]  ;;  %v6541_v42 = vld [vmem:[#allocation11 + $0x108] sm:$0xff] }
 0x15e   :  { %1382 = vmatpush.msra.mxu0 %v6526_v2  ;;  %10103 = vst [vmem:[#allocation60_spill] sm:$0xff] %v6529_v4  ;;  %1402 = vmatpush.msra.mxu1 %v6529_v4  ;;  %v6544_v2 = vld [vmem:[#allocation11 + $0x110] sm:$0xff]  ;;  %v6547_v4 = vld [vmem:[#allocation11 + $0x118] sm:$0xff] }
 0x15f   :  { %10104 = vst [vmem:[#allocation62_spill] sm:$0xff] %v6532_v36  ;;  %1422 = vmatpush.msra.mxu2 %v6532_v36  ;;  %1442 = vmatpush.msra.mxu3 %v6535_v34  ;;  %v6550_v36 = vld [vmem:[#allocation11 + $0xe0] sm:$0xff] }
 0x160   :  { %10105 = vst [vmem:[#allocation65_spill] sm:$0xff] %v6535_v34  ;;  %1383 = vmatpush.msra.mxu0 %v6538_v55  ;;  %1403 = vmatpush.msra.mxu1 %v6541_v42  ;;  %v6553_v34 = vld [vmem:[#allocation11 + $0xe8] sm:$0xff] }
 0x161   :  { %10106 = vst [vmem:[#allocation67_spill] sm:$0xff] %v6538_v55  ;;  %1423 = vmatpush.msra.mxu2 %v6544_v2  ;;  %1443 = vmatpush.msra.mxu3 %v6547_v4  ;;  %v6556_v55 = vld [vmem:[#allocation11 + $0xf0] sm:$0xff] }
 0x162   :  { %10107 = vst [vmem:[#allocation69_spill] sm:$0xff] %v6541_v42  ;;  %1384 = vmatpush.msra.mxu0 %v6550_v36  ;;  %1404 = vmatpush.msra.mxu1 %v6553_v34  ;;  %v6559_v42 = vld [vmem:[#allocation11 + $0xf8] sm:$0xff] }
 0x163   :  { %10108 = vst [vmem:[#allocation71_spill] sm:$0xff] %v6544_v2  ;;  %1424 = vmatpush.msra.mxu2 %v6556_v55  ;;  %1444 = vmatpush.msra.mxu3 %v6559_v42  ;;  %v6562_v2 = vld [vmem:[#allocation11 + $0xc0] sm:$0xff] }
 0x164   :  { %10109 = vst [vmem:[#allocation73_spill] sm:$0xff] %v6547_v4  ;;  %1385 = vmatpush.msra.mxu0 %v6562_v2  ;;  %v6565_v4 = vld [vmem:[#allocation11 + $0xc8] sm:$0xff] }
 0x165   :  { %10110 = vst [vmem:[#allocation74_spill] sm:$0xff] %v6550_v36  ;;  %1405 = vmatpush.msra.mxu1 %v6565_v4  ;;  %v6568_v36 = vld [vmem:[#allocation11 + $0xd0] sm:$0xff] }
 0x166   :  { %10111 = vst [vmem:[#allocation75_spill] sm:$0xff] %v6553_v34  ;;  %1425 = vmatpush.msra.mxu2 %v6568_v36  ;;  %v6571_v34 = vld [vmem:[#allocation11 + $0xd8] sm:$0xff] }
 0x167   :  { %10112 = vst [vmem:[#allocation78_spill] sm:$0xff] %v6556_v55  ;;  %1445 = vmatpush.msra.mxu3 %v6571_v34  ;;  %v6574_v55 = vld [vmem:[#allocation11 + $0xa0] sm:$0xff] }
 0x168   :  { %10113 = vst [vmem:[#allocation79_spill] sm:$0xff] %v6559_v42  ;;  %1386 = vmatpush.msra.mxu0 %v6574_v55  ;;  %v6577_v42 = vld [vmem:[#allocation11 + $0xa8] sm:$0xff] }
 0x169   :  { %10114 = vst [vmem:[#allocation82_spill] sm:$0xff] %v6562_v2  ;;  %1406 = vmatpush.msra.mxu1 %v6577_v42  ;;  %v6580_v2 = vld [vmem:[#allocation11 + $0xb0] sm:$0xff] }
 0x16a   :  { %10115 = vst [vmem:[#allocation83_spill] sm:$0xff] %v6565_v4  ;;  %1426 = vmatpush.msra.mxu2 %v6580_v2  ;;  %v6583_v4 = vld [vmem:[#allocation11 + $0xb8] sm:$0xff] }
 0x16b   :  { %10116 = vst [vmem:[#allocation86_spill] sm:$0xff] %v6568_v36  ;;  %1446 = vmatpush.msra.mxu3 %v6583_v4  ;;  %v6586_v36 = vld [vmem:[#allocation11 + $0x80] sm:$0xff] }
 0x16c   :  { %10117 = vst [vmem:[#allocation87_spill] sm:$0xff] %v6571_v34  ;;  %1387 = vmatpush.msra.mxu0 %v6586_v36  ;;  %v6589_v34 = vld [vmem:[#allocation11 + $0x88] sm:$0xff] }
 0x16d   :  { %10118 = vst [vmem:[#allocation41_spill] sm:$0xff] %v6574_v55  ;;  %1407 = vmatpush.msra.mxu1 %v6589_v34  ;;  %v6592_v55 = vld [vmem:[#allocation11 + $0x90] sm:$0xff] }
 0x16e   :  { %10119 = vst [vmem:[#allocation36_spill] sm:$0xff] %v6577_v42  ;;  %1427 = vmatpush.msra.mxu2 %v6592_v55  ;;  %v6595_v42 = vld [vmem:[#allocation11 + $0x98] sm:$0xff] }
 0x16f   :  { %10120 = vst [vmem:[#allocation90_spill] sm:$0xff] %v6580_v2  ;;  %1447 = vmatpush.msra.mxu3 %v6595_v42  ;;  %v6598_v2 = vld [vmem:[#allocation11 + $0x60] sm:$0xff] }
 0x170   :  { %10121 = vst [vmem:[#allocation91_spill] sm:$0xff] %v6583_v4  ;;  %1388 = vmatpush.msra.mxu0 %v6598_v2  ;;  %v6601_v4 = vld [vmem:[#allocation11 + $0x68] sm:$0xff] }
 0x171   :  { %10122 = vst [vmem:[#allocation45_spill] sm:$0xff] %v6586_v36  ;;  %1408 = vmatpush.msra.mxu1 %v6601_v4  ;;  %v6604_v36 = vld [vmem:[#allocation11 + $0x70] sm:$0xff] }
 0x172   :  { %10123 = vst [vmem:[#allocation43_spill] sm:$0xff] %v6589_v34  ;;  %1428 = vmatpush.msra.mxu2 %v6604_v36  ;;  %v6607_v34 = vld [vmem:[#allocation11 + $0x78] sm:$0xff] }
 0x173   :  { %10124 = vst [vmem:[#allocation94_spill] sm:$0xff] %v6592_v55  ;;  %1448 = vmatpush.msra.mxu3 %v6607_v34  ;;  %v6610_v55 = vld [vmem:[#allocation11 + $0x40] sm:$0xff] }
 0x174   :  { %10125 = vst [vmem:[#allocation95_spill] sm:$0xff] %v6595_v42  ;;  %1389 = vmatpush.msra.mxu0 %v6610_v55  ;;  %v6613_v42 = vld [vmem:[#allocation11 + $0x48] sm:$0xff] }
 0x175   :  { %10126 = vst [vmem:[#allocation49_spill] sm:$0xff] %v6598_v2  ;;  %1409 = vmatpush.msra.mxu1 %v6613_v42  ;;  %v6616_v2 = vld [vmem:[#allocation11 + $0x50] sm:$0xff] }
 0x176   :  { %10127 = vst [vmem:[#allocation47_spill] sm:$0xff] %v6601_v4  ;;  %1429 = vmatpush.msra.mxu2 %v6616_v2  ;;  %v6619_v4 = vld [vmem:[#allocation11 + $0x58] sm:$0xff] }
 0x177   :  { %10128 = vst [vmem:[#allocation98_spill] sm:$0xff] %v6604_v36  ;;  %1449 = vmatpush.msra.mxu3 %v6619_v4  ;;  %v6622_v36 = vld [vmem:[#allocation11 + $0x20] sm:$0xff] }
 0x178   :  { %10129 = vst [vmem:[#allocation99_spill] sm:$0xff] %v6607_v34  ;;  %1390 = vmatpush.msra.mxu0 %v6622_v36  ;;  %v6625_v34 = vld [vmem:[#allocation11 + $0x28] sm:$0xff] }
 0x179   :  { %10130 = vst [vmem:[#allocation53_spill] sm:$0xff] %v6610_v55  ;;  %1410 = vmatpush.msra.mxu1 %v6625_v34  ;;  %v6628_v55 = vld [vmem:[#allocation11 + $0x30] sm:$0xff] }
 0x17a   :  { %10131 = vst [vmem:[#allocation51_spill] sm:$0xff] %v6613_v42  ;;  %1430 = vmatpush.msra.mxu2 %v6628_v55  ;;  %v6631_v42 = vld [vmem:[#allocation11 + $0x38] sm:$0xff] }
 0x17b   :  { %10132 = vst [vmem:[#allocation102_spill] sm:$0xff] %v6616_v2  ;;  %1450 = vmatpush.msra.mxu3 %v6631_v42  ;;  %v6634_v2 = vld [vmem:[#allocation11] sm:$0xff] }
 0x17c   :  { %10133 = vst [vmem:[#allocation103_spill] sm:$0xff] %v6619_v4  ;;  %1391 = vmatpush.msra.mxu0 %v6634_v2  ;;  %v6637_v4 = vld [vmem:[#allocation11 + $0x8] sm:$0xff] }
 0x17d   :  { %10134 = vst [vmem:[#allocation57_spill] sm:$0xff] %v6622_v36  ;;  %1411 = vmatpush.msra.mxu1 %v6637_v4  ;;  %v6640_v36 = vld [vmem:[#allocation11 + $0x10] sm:$0xff] }
 0x17e   :  { %10135 = vst [vmem:[#allocation55_spill] sm:$0xff] %v6625_v34  ;;  %1431 = vmatpush.msra.mxu2 %v6640_v36  ;;  %v6643_v34 = vld [vmem:[#allocation11 + $0x18] sm:$0xff] }
 0x17f   :  { %10136 = vst [vmem:[#allocation106_spill] sm:$0xff] %v6628_v55  ;;  %1451 = vmatpush.msra.mxu3 %v6643_v34  ;;  %v849_v55 = vpop.f32.mrf.mxu0 }
 0x180   :  { %10137 = vst [vmem:[#allocation107_spill] sm:$0xff] %v6631_v42  ;;  %v850_v42 = vadd.f32 %v849_v55, %v6097_v13  ;;  %v6668_v55 = vld [vmem:[#allocation9 + $0xc0] sm:$0xff] }
 0x181   :  { %10138 = vst [vmem:[#allocation61_spill] sm:$0xff] %v6634_v2 }
 0x182   :  { %10139 = vst [vmem:[#allocation59_spill] sm:$0xff] %v6637_v4 }
 0x183   :  { %10140 = vst [vmem:[#allocation110_spill] sm:$0xff] %v6640_v36  ;;  %v4215_v36 = vld [vmem:[%s9242_s0 + $0x4] sm:$0x3] }
 0x184   :  { %10141 = vst [vmem:[#allocation111_spill] sm:$0xff] %v6643_v34  ;;  %4216 = vmatmul.msk.f32.vlgmr.msrb.gmra.mxu0 %vm355_vm0, %v4215_v36  ;;  %4217 = vmatmul.msk.f32.vlgmr.msrb.gmra.mxu1 %vm355_vm0, %v4215_v36 }
 0x185   :  { %v949_v41 = vpop.f32.mrf.mxu1  ;;  %4218 = vmatmul.msk.f32.vlgmr.msrb.gmra.mxu2 %vm355_vm0, %v4215_v36  ;;  %4219 = vmatmul.msk.f32.vlgmr.msrb.gmra.mxu3 %vm355_vm0, %v4215_v36  ;;  %10146 = vst [vmem:[#allocation68_spill] sm:$0xff] %v6668_v55 }
 0x186   :  { %v993_v16 = vadd.f32 %v949_v41, %v870_v63  ;;  %v6662_v63 = vld [vmem:[#allocation9 + $0xf0] sm:$0xff] }
 0x187   :  { %v929_v2 = vpop.f32.mrf.mxu0  ;;  %10144 = vst [vmem:[#allocation114_spill] sm:$0xff] %v6662_v63  ;;  %1576 = vmatpush.msrb.mxu2 %v6662_v63  ;;  %v6696_v63 = vld [vmem:[#allocation9 + $0x80] sm:$0xff] }
 0x188   :  { %v992_v20 = vadd.f32 %v929_v2, %v850_v42  ;;  %v4205_v31 = vmul.f32 -1.442695, %v993_v16  ;;  %v6659_v16 = vld [vmem:[#allocation9 + $0xe8] sm:$0xff]  ;;  %10154 = vst [vmem:[#allocation76_spill] sm:$0xff] %v6696_v63 }
 0x189   :  { %10143 = vst [vmem:[#allocation63_spill] sm:$0xff] %v6659_v16  ;;  %1556 = vmatpush.msrb.mxu1 %v6659_v16  ;;  %v6671_v42 = vld [vmem:[#allocation9 + $0xc8] sm:$0xff]  ;;  %v6743_v16 = vld [vmem:[#allocation9 + $0x30] sm:$0xff] }
 0x18a   :  { %v4204_v4 = vmul.f32 -1.442695, %v992_v20  ;;  %v6656_v20 = vld [vmem:[#allocation9 + $0xe0] sm:$0xff]  ;;  %10147 = vst [vmem:[#allocation66_spill] sm:$0xff] %v6671_v42 }
 0x18b   :  { %10142 = vst [vmem:[#allocation64_spill] sm:$0xff] %v6656_v20  ;;  %1536 = vmatpush.msrb.mxu0 %v6656_v20  ;;  %1557 = vmatpush.msrb.mxu1 %v6671_v42 }
 0x18c   :  { %4354 = vpow2.f32 %v4204_v4  ;;  %v989_v41 = vpop.f32.mrf.mxu3  ;;  %v6674_v4 = vld [vmem:[#allocation9 + $0xd0] sm:$0xff]  ;;  %10168 = vst [vmem:[#allocation93_spill] sm:$0xff] %v6743_v16 }
 0x18d   :  { %4356 = vpow2.f32 %v4205_v31  ;;  %v995_v51 = vadd.f32 %v989_v41, %v910_v29  ;;  %v6665_v31 = vld [vmem:[#allocation9 + $0xf8] sm:$0xff]  ;;  %1537 = vmatpush.msrb.mxu0 %v6668_v55  ;;  %10148 = vst [vmem:[#allocation118_spill] sm:$0xff] %v6674_v4  ;;  %1577 = vmatpush.msrb.mxu2 %v6674_v4  ;;  %v6680_v41 = vld [vmem:[#allocation9 + $0xa0] sm:$0xff] }
 0x18e   :  { %10145 = vst [vmem:[#allocation115_spill] sm:$0xff] %v6665_v31  ;;  %1596 = vmatpush.msrb.mxu3 %v6665_v31  ;;  %v6677_v29 = vld [vmem:[#allocation9 + $0xd8] sm:$0xff]  ;;  %v6683_v31 = vld [vmem:[#allocation9 + $0xa8] sm:$0xff] }
 0x18f   :  { %v4206_v2 = vmul.f32 -1.442695, %v995_v51  ;;  %10149 = vst [vmem:[#allocation119_spill] sm:$0xff] %v6677_v29  ;;  %1538 = vmatpush.msrb.mxu0 %v6680_v41  ;;  %1558 = vmatpush.msrb.mxu1 %v6683_v31  ;;  %v6688_v51 = vld [vmem:[#allocation9 + $0xb0] sm:$0xff]  ;;  %v6691_v4 = vld [vmem:[#allocation9 + $0xb8] sm:$0xff] }
 0x190   :  { %1597 = vmatpush.msrb.mxu3 %v6677_v29  ;;  %10150 = vst [vmem:[#allocation70_spill] sm:$0xff] %v6680_v41  ;;  %1578 = vmatpush.msrb.mxu2 %v6688_v51  ;;  %v6699_v41 = vld [vmem:[#allocation9 + $0x88] sm:$0xff] }
 0x191   :  { %10151 = vst [vmem:[#allocation72_spill] sm:$0xff] %v6683_v31  ;;  %4358 = vpow2.f32 %v4206_v2  ;;  %1539 = vmatpush.msrb.mxu0 %v6696_v63  ;;  %1559 = vmatpush.msrb.mxu1 %v6699_v41  ;;  %v6703_v2 = vld [vmem:[#allocation9 + $0x90] sm:$0xff]  ;;  %v6713_v63 = vld [vmem:[#allocation9 + $0x68] sm:$0xff] }
 0x192   :  { %v4355_v36 = vpop.eup %4354  ;;  %10152 = vst [vmem:[#allocation122_spill] sm:$0xff] %v6688_v51  ;;  %1598 = vmatpush.msrb.mxu3 %v6691_v4  ;;  %1579 = vmatpush.msrb.mxu2 %v6703_v2  ;;  %v6723_v51 = vld [vmem:[#allocation9 + $0x40] sm:$0xff]  ;;  %v6729_v31 = vld [vmem:[#allocation9 + $0x50] sm:$0xff] }
 0x193   :  { %v4357_v55 = vpop.eup %4356  ;;  %v6686_v42 = vadd.f32 1.0, %v4355_v36  ;;  %10153 = vst [vmem:[#allocation123_spill] sm:$0xff] %v6691_v4  ;;  %v6706_v36 = vld [vmem:[#allocation9 + $0x98] sm:$0xff]  ;;  %1560 = vmatpush.msrb.mxu1 %v6713_v63  ;;  %v6717_v4 = vld [vmem:[#allocation9 + $0x70] sm:$0xff] }
 0x194   :  { %v6694_v29 = vadd.f32 1.0, %v4357_v55  ;;  %10155 = vst [vmem:[#allocation77_spill] sm:$0xff] %v6699_v41  ;;  %1599 = vmatpush.msrb.mxu3 %v6706_v36  ;;  %v6710_v55 = vld [vmem:[#allocation9 + $0x60] sm:$0xff]  ;;  %v890_v41 = vadd.f32 %v889_v56, %v6115_v43  ;;  %1580 = vmatpush.msrb.mxu2 %v6717_v4  ;;  %v6732_v56 = vld [vmem:[#allocation9 + $0x58] sm:$0xff] }
 0x195   :  { %4360 = vrcp.f32 %v6686_v42  ;;  %10156 = vst [vmem:[#allocation126_spill] sm:$0xff] %v6703_v2  ;;  %1540 = vmatpush.msrb.mxu0 %v6710_v55  ;;  %v6720_v2 = vld [vmem:[#allocation9 + $0x78] sm:$0xff]  ;;  %v1011_v44 = vand.u32 2147483648, %v6686_v42  ;;  %vm1005_vm12 = vweird.f32 %v6686_v42 }
 0x196   :  { %10157 = vst [vmem:[#allocation80_spill] sm:$0xff] %v6706_v36  ;;  %4362 = vrcp.f32 %v6694_v29  ;;  %1600 = vmatpush.msrb.mxu3 %v6720_v2  ;;  %v969_v36 = vpop.f32.mrf.mxu2  ;;  %1581 = vmatpush.msrb.mxu2 %v6729_v31  ;;  %v1028_v34 = vand.u32 2147483647, %v6694_v29  ;;  %vm1024_vm13 = vweird.f32 %v6694_v29 }
 0x197   :  { %10158 = vst [vmem:[#allocation81_spill] sm:$0xff] %v6710_v55  ;;  %1541 = vmatpush.msrb.mxu0 %v6723_v51  ;;  %v6726_v55 = vld [vmem:[#allocation9 + $0x48] sm:$0xff]  ;;  %v994_v43 = vadd.f32 %v969_v36, %v890_v41  ;;  %v6758_v36 = vld [vmem:[#allocation9 + $0x10] sm:$0xff] }
 0x198   :  { %10159 = vst [vmem:[#allocation129_spill] sm:$0xff] %v6713_v63  ;;  %1561 = vmatpush.msrb.mxu1 %v6726_v55  ;;  %v4359_v63 = vpop.eup %4358  ;;  %1601 = vmatpush.msrb.mxu3 %v6732_v56  ;;  %vm1029_vm2 = vcmp.eq.f32.partialorder %v1028_v34, 8.507059e+37 }
 0x199   :  { %10160 = vst [vmem:[#allocation84_spill] sm:$0xff] %v6717_v4  ;;  %v6735_v4 = vadd.f32 1.0, %v4359_v63  ;;  %1582 = vmatpush.msrb.mxu2 %v6743_v16 }
 0x19a   :  { %10161 = vst [vmem:[#allocation85_spill] sm:$0xff] %v6720_v2  ;;  %v6737_v2 = vld [vmem:[#allocation9 + $0x20] sm:$0xff] }
 0x19b   :  { %10162 = vst [vmem:[#allocation132_spill] sm:$0xff] %v6723_v51  ;;  %1542 = vmatpush.msrb.mxu0 %v6737_v2  ;;  %v6740_v51 = vld [vmem:[#allocation9 + $0x28] sm:$0xff]  ;;  %4364 = vrcp.f32 %v6735_v4  ;;  %1583 = vmatpush.msrb.mxu2 %v6758_v36  ;;  %vm1044_vm4 = vweird.f32 %v6735_v4 }
 0x19c   :  { %10163 = vst [vmem:[#allocation88_spill] sm:$0xff] %v6726_v55  ;;  %1562 = vmatpush.msrb.mxu1 %v6740_v51  ;;  %v4361_v55 = vpop.eup %4360  ;;  %4366 = vtanh.f32 %v994_v43 }
 0x19d   :  { %10164 = vst [vmem:[#allocation89_spill] sm:$0xff] %v6729_v31  ;;  %v6746_v31 = vld [vmem:[#allocation9 + $0x38] sm:$0xff]  ;;  %v4363_v63 = vpop.eup %4362  ;;  %vm1006_vm10 = vweird.f32 %v4361_v55 }
 0x19e   :  { %10165 = vst [vmem:[#allocation133_spill] sm:$0xff] %v6732_v56  ;;  %1602 = vmatpush.msrb.mxu3 %v6746_v31  ;;  %v1001_v56 = vmul.f32 %v4361_v55, %v6686_v42  ;;  %v1020_v41 = vmul.f32 %v4363_v63, %v6694_v29  ;;  %vm1025_vm11 = vweird.f32 %v4363_v63  ;;  %vm1007_vm14 = vmor %vm1005_vm12, %vm1006_vm10 }
 0x19f   :  { %10166 = vst [vmem:[#allocation134_spill] sm:$0xff] %v6737_v2  ;;  %v6751_v2 = vld [vmem:[#allocation9] sm:$0xff]  ;;  %vm1026_vm15 = vmor %vm1024_vm13, %vm1025_vm11 }
 0x1a0   :  { %10167 = vst [vmem:[#allocation92_spill] sm:$0xff] %v6740_v51  ;;  %1543 = vmatpush.msrb.mxu0 %v6751_v2  ;;  %v6754_v51 = vld [vmem:[#allocation9 + $0x8] sm:$0xff]  ;;  %v1002_v16 = vsub.f32 1.0, %v1001_v56  ;;  %v1021_v20 = vsub.f32 1.0, %v1020_v41  ;;  %v1012_v56 = vor.u32 1.1754944e-38, %v1011_v44 }
 0x1a1   :  { %10169 = vst [vmem:[#allocation96_spill] sm:$0xff] %v6746_v31  ;;  %1563 = vmatpush.msrb.mxu1 %v6754_v51  ;;  %v6761_v31 = vld [vmem:[#allocation9 + $0x18] sm:$0xff] }
 0x1a2   :  { %10170 = vst [vmem:[#allocation97_spill] sm:$0xff] %v6751_v2  ;;  %1603 = vmatpush.msrb.mxu3 %v6761_v31  ;;  %v1030_v2 = vand.u32 2147483648, %v6694_v29  ;;  %v1003_v60 = vmul.f32 %v4361_v55, %v1002_v16  ;;  %v1022_v13 = vmul.f32 %v4363_v63, %v1021_v20 }
 0x1a3   :  { %10171 = vst [vmem:[#allocation100_spill] sm:$0xff] %v6754_v51  ;;  %v1009_v51 = vand.u32 2147483647, %v6686_v42 }
 0x1a4   :  { %10172 = vst [vmem:[#allocation101_spill] sm:$0xff] %v6758_v36  ;;  %v4365_v36 = vpop.eup %4364  ;;  %v1004_v12 = vadd.f32 %v4361_v55, %v1003_v60  ;;  %v1023_v41 = vadd.f32 %v4363_v63, %v1022_v13  ;;  %v1031_v16 = vor.u32 1.1754944e-38, %v1030_v2  ;;  %v1050_v13 = vand.u32 2147483648, %v6735_v4  ;;  %v1081_v34 = vpop.f32.mrf.mxu0  ;;  %v6781_v2 = vld [vmem:[#allocation12 + $0x1e8] sm:$0xff] }
 0x1a5   :  { %10173 = vst [vmem:[#allocation104_spill] sm:$0xff] %v6761_v31  ;;  %v1040_v43 = vmul.f32 %v4365_v36, %v6735_v4  ;;  %vm1010_vm1 = vcmp.eq.f32.partialorder %v1009_v51, 8.507059e+37  ;;  %v4367_v11 = vpop.eup %4366  ;;  %vm1045_vm3 = vweird.f32 %v4365_v36  ;;  %v6778_v51 = vld [vmem:[#allocation12 + $0x1e0] sm:$0xff] }
 0x1a6   :  { %v1008_v31 = vsel %vm1007_vm14, %v4361_v55, %v1004_v12  ;;  %v1027_v28 = vsel %vm1026_vm15, %v4363_v63, %v1023_v41  ;;  %v1048_v12 = vand.u32 2147483647, %v6735_v4  ;;  %vm1046_vm5 = vmor %vm1044_vm4, %vm1045_vm3  ;;  %v1082_v4 = vadd.f32 %v1081_v34, %v6198_v30  ;;  %v6786_v63 = vld [vmem:[#allocation12 + $0x1f0] sm:$0xff] }
 0x1a7   :  { %v1013_v20 = vsel %vm1010_vm1, %v1012_v56, %v1008_v31  ;;  %v1041_v6 = vsub.f32 1.0, %v1040_v43  ;;  %v1032_v27 = vsel %vm1029_vm2, %v1031_v16, %v1027_v28  ;;  %v1101_v31 = vpop.f32.mrf.mxu1  ;;  %v6792_v43 = vld [vmem:[#allocation12 + $0x1c0] sm:$0xff]  ;;  %v6795_v16 = vld [vmem:[#allocation12 + $0x1c8] sm:$0xff] }
 0x1a8   :  { %v1055_v60 = vmul.f32 %v4367_v11, %v1013_v20  ;;  %v1054_v42 = vmul.f32 %v1032_v27, %v6211_v61  ;;  %v1051_v11 = vor.u32 1.1754944e-38, %v1050_v13  ;;  %vm1049_vm6 = vcmp.eq.f32.partialorder %v1048_v12, 8.507059e+37  ;;  %10174 = vst [vmem:[#allocation105_spill] sm:$0xff] %v6795_v16  ;;  %v6804_v13 = vld [vmem:[#allocation12 + $0x1a0] sm:$0xff]  ;;  %v6807_v12 = vld [vmem:[#allocation12 + $0x1a8] sm:$0xff] }
 0x1a9   :  { %v1042_v18 = vmul.f32 %v4365_v36, %v1041_v6  ;;  %v1102_v55 = vadd.f32 %v1101_v31, %v6203_v33  ;;  %10177 = vst [vmem:[#allocation112_spill] sm:$0xff] %v6804_v13 }
 0x1aa   :  { %v6772_v29 = vadd.f32 %v1055_v60, %v1054_v42  ;;  %v6798_v42 = vld [vmem:[#allocation12 + $0x1d0] sm:$0xff]  ;;  %10178 = vst [vmem:[#allocation113_spill] sm:$0xff] %v6807_v12 }
 0x1ab   :  { %v1043_v44 = vadd.f32 %v4365_v36, %v1042_v18  ;;  %10175 = vst [vmem:[#allocation108_spill] sm:$0xff] %v6798_v42 }
 0x1ac   :  { %4368 = vtanh.f32 %v6772_v29  ;;  %v1141_v18 = vpop.f32.mrf.mxu3 }
 0x1ad   :  { %v1047_v28 = vsel %vm1046_vm5, %v4365_v36, %v1043_v44  ;;  %v6789_v36 = vld [vmem:[#allocation12 + $0x1f8] sm:$0xff] }
 0x1ae   :  { %v1052_v27 = vsel %vm1049_vm6, %v1051_v11, %v1047_v28  ;;  %v6801_v44 = vld [vmem:[#allocation12 + $0x1d8] sm:$0xff]  ;;  %v6810_v28 = vld [vmem:[#allocation12 + $0x1b0] sm:$0xff] }
 0x1af   :  { %10176 = vst [vmem:[#allocation109_spill] sm:$0xff] %v6801_v44  ;;  %v6813_v11 = vld [vmem:[#allocation12 + $0x1b8] sm:$0xff] }
 0x1b0   :  { %10179 = vst [vmem:[#allocation116_spill] sm:$0xff] %v6810_v28 }
 0x1b1   :  { %10180 = vst [vmem:[#allocation117_spill] sm:$0xff] %v6813_v11 }
 0x1b2   :  { %v4369_v61 = vpop.eup %4368 }
 0x1b3   :  { %v1058_v6 = vmul.f32 %v4369_v61, %v1052_v27  ;;  %v1142_v61 = vadd.f32 %v1141_v18, %v6246_v22  ;;  %v6817_v27 = vld [vmem:[#allocation12 + $0x180] sm:$0xff]  ;;  %v6832_v18 = vld [vmem:[#allocation12 + $0x168] sm:$0xff] }
 0x1b4   :  { %10181 = vst [vmem:[#allocation120_spill] sm:$0xff] %v6817_v27 }
 0x1b5   :  { %1392 = vmatmul.f32.vlgmr.msra.gmra.mxu0 %v1058_v6  ;;  %1412 = vmatmul.f32.vlgmr.msra.gmra.mxu1 %v1058_v6  ;;  %10186 = vst [vmem:[#allocation128_spill] sm:$0xff] %v6832_v18 }
 0x1b6   :  { %1432 = vmatmul.f32.vlgmr.msra.gmra.mxu2 %v1058_v6  ;;  %1452 = vmatmul.f32.vlgmr.msra.gmra.mxu3 %v1058_v6  ;;  %v6820_v6 = vld [vmem:[#allocation12 + $0x188] sm:$0xff] }
 0x1b7   :  { %1608 = vmatpush.msra.mxu0 %v6778_v51  ;;  %1628 = vmatpush.msra.mxu1 %v6781_v2  ;;  %10182 = vst [vmem:[#allocation121_spill] sm:$0xff] %v6820_v6 }
 0x1b8   :  { %1648 = vmatpush.msra.mxu2 %v6786_v63  ;;  %1668 = vmatpush.msra.mxu3 %v6789_v36 }
 0x1b9   :  { %1609 = vmatpush.msra.mxu0 %v6792_v43  ;;  %1629 = vmatpush.msra.mxu1 %v6795_v16  ;;  %v7020_v16 = vld [vmem:[#allocation12] sm:$0xff] }
 0x1ba   :  { %1649 = vmatpush.msra.mxu2 %v6798_v42  ;;  %1669 = vmatpush.msra.mxu3 %v6801_v44 }
 0x1bb   :  { %1610 = vmatpush.msra.mxu0 %v6804_v13  ;;  %1630 = vmatpush.msra.mxu1 %v6807_v12  ;;  %v6996_v13 = vld [vmem:[#allocation12 + $0x20] sm:$0xff] }
 0x1bc   :  { %1650 = vmatpush.msra.mxu2 %v6810_v28  ;;  %1670 = vmatpush.msra.mxu3 %v6813_v11  ;;  %v6970_v28 = vld [vmem:[#allocation12 + $0x40] sm:$0xff]  ;;  %10227 = vst [vmem:[#allocation171_spill] sm:$0xff] %v6996_v13 }
 0x1bd   :  { %1611 = vmatpush.msra.mxu0 %v6817_v27  ;;  %1631 = vmatpush.msra.mxu1 %v6820_v6  ;;  %v6853_v6 = vld [vmem:[#allocation12 + $0x120] sm:$0xff]  ;;  %10221 = vst [vmem:[#allocation167_spill] sm:$0xff] %v6970_v28 }
 0x1be   :  { %10193 = vst [vmem:[#allocation139_spill] sm:$0xff] %v6853_v6  ;;  %v6927_v27 = vld [vmem:[#allocation12 + $0x80] sm:$0xff] }
 0x1bf   :  { %1632 = vmatpush.msra.mxu1 %v6832_v18  ;;  %v6847_v18 = vld [vmem:[#allocation12 + $0x150] sm:$0xff]  ;;  %10213 = vst [vmem:[#allocation159_spill] sm:$0xff] %v6927_v27 }
 0x1c0   :  { %10191 = vst [vmem:[#allocation137_spill] sm:$0xff] %v6847_v18 }
 0x1cd   :  { %v1161_v56 = vpop.f32.mrf.mxu0  ;;  %v1181_v41 = vpop.f32.mrf.mxu1 }
 0x1ce   :  { %v1224_v20 = vadd.f32 %v1161_v56, %v1082_v4  ;;  %v1225_v60 = vadd.f32 %v1181_v41, %v1102_v55  ;;  %v6823_v4 = vld [vmem:[#allocation12 + $0x190] sm:$0xff]  ;;  %v6826_v55 = vld [vmem:[#allocation12 + $0x198] sm:$0xff]  ;;  %v6829_v56 = vld [vmem:[#allocation12 + $0x160] sm:$0xff]  ;;  %v1121_v41 = vpop.f32.mrf.mxu2 }
 0x1cf   :  { %10183 = vst [vmem:[#allocation124_spill] sm:$0xff] %v6823_v4  ;;  %1651 = vmatpush.msra.mxu2 %v6823_v4  ;;  %1671 = vmatpush.msra.mxu3 %v6826_v55  ;;  %v6850_v4 = vld [vmem:[#allocation12 + $0x158] sm:$0xff] }
 0x1d0   :  { %v4212_v34 = vmul.f32 -1.442695, %v1224_v20  ;;  %v4213_v31 = vmul.f32 -1.442695, %v1225_v60  ;;  %10184 = vst [vmem:[#allocation125_spill] sm:$0xff] %v6826_v55  ;;  %1612 = vmatpush.msra.mxu0 %v6829_v56  ;;  %v6835_v60 = vld [vmem:[#allocation12 + $0x170] sm:$0xff] }
 0x1d1   :  { %10185 = vst [vmem:[#allocation127_spill] sm:$0xff] %v6829_v56  ;;  %1652 = vmatpush.msra.mxu2 %v6835_v60  ;;  %v6844_v56 = vld [vmem:[#allocation12 + $0x148] sm:$0xff] }
 0x1d2   :  { %4370 = vpow2.f32 %v4212_v34  ;;  %10187 = vst [vmem:[#allocation130_spill] sm:$0xff] %v6835_v60  ;;  %v6838_v34 = vld [vmem:[#allocation12 + $0x178] sm:$0xff]  ;;  %1633 = vmatpush.msra.mxu1 %v6844_v56 }
 0x1d3   :  { %4372 = vpow2.f32 %v4213_v31  ;;  %10188 = vst [vmem:[#allocation131_spill] sm:$0xff] %v6838_v34  ;;  %1672 = vmatpush.msra.mxu3 %v6838_v34  ;;  %v6841_v31 = vld [vmem:[#allocation12 + $0x140] sm:$0xff]  ;;  %1653 = vmatpush.msra.mxu2 %v6847_v18  ;;  %v6875_v34 = vld [vmem:[#allocation12 + $0x110] sm:$0xff] }
 0x1d4   :  { %v1221_v20 = vpop.f32.mrf.mxu3  ;;  %10189 = vst [vmem:[#allocation135_spill] sm:$0xff] %v6841_v31  ;;  %1613 = vmatpush.msra.mxu0 %v6841_v31  ;;  %v6859_v31 = vld [vmem:[#allocation12 + $0x130] sm:$0xff] }
 0x1d5   :  { %v1227_v55 = vadd.f32 %v1221_v20, %v1142_v61  ;;  %10190 = vst [vmem:[#allocation136_spill] sm:$0xff] %v6844_v56  ;;  %1673 = vmatpush.msra.mxu3 %v6850_v4  ;;  %v6856_v61 = vld [vmem:[#allocation12 + $0x128] sm:$0xff]  ;;  %1654 = vmatpush.msra.mxu2 %v6859_v31  ;;  %v6862_v56 = vld [vmem:[#allocation12 + $0x138] sm:$0xff] }
 0x1d6   :  { %10192 = vst [vmem:[#allocation138_spill] sm:$0xff] %v6850_v4  ;;  %1614 = vmatpush.msra.mxu0 %v6853_v6  ;;  %1634 = vmatpush.msra.mxu1 %v6856_v61  ;;  %v6870_v6 = vld [vmem:[#allocation12 + $0x108] sm:$0xff] }
 0x1d7   :  { %v4214_v60 = vmul.f32 -1.442695, %v1227_v55  ;;  %10194 = vst [vmem:[#allocation140_spill] sm:$0xff] %v6856_v61  ;;  %1674 = vmatpush.msra.mxu3 %v6862_v56  ;;  %v6867_v55 = vld [vmem:[#allocation12 + $0x100] sm:$0xff]  ;;  %1655 = vmatpush.msra.mxu2 %v6875_v34 }
 0x1d8   :  { %v4371_v20 = vpop.eup %4370  ;;  %10195 = vst [vmem:[#allocation141_spill] sm:$0xff] %v6859_v31  ;;  %1615 = vmatpush.msra.mxu0 %v6867_v55  ;;  %1635 = vmatpush.msra.mxu1 %v6870_v6  ;;  %v6878_v31 = vld [vmem:[#allocation12 + $0x118] sm:$0xff] }
 0x1d9   :  { %10196 = vst [vmem:[#allocation142_spill] sm:$0xff] %v6862_v56  ;;  %v4373_v18 = vpop.eup %4372  ;;  %v6865_v4 = vadd.f32 1.0, %v4371_v20  ;;  %4374 = vpow2.f32 %v4214_v60  ;;  %1675 = vmatpush.msra.mxu3 %v6878_v31  ;;  %v6882_v60 = vld [vmem:[#allocation12 + $0xe0] sm:$0xff]  ;;  %v6885_v20 = vld [vmem:[#allocation12 + $0xe8] sm:$0xff] }
 0x1da   :  { %10197 = vst [vmem:[#allocation143_spill] sm:$0xff] %v6867_v55  ;;  %v6873_v61 = vadd.f32 1.0, %v4373_v18  ;;  %1616 = vmatpush.msra.mxu0 %v6882_v60  ;;  %1636 = vmatpush.msra.mxu1 %v6885_v20  ;;  %v6889_v18 = vld [vmem:[#allocation12 + $0xf0] sm:$0xff]  ;;  %v6908_v56 = vld [vmem:[#allocation12 + $0xa0] sm:$0xff] }
 0x1db   :  { %10198 = vst [vmem:[#allocation144_spill] sm:$0xff] %v6870_v6  ;;  %4376 = vrcp.f32 %v6865_v4  ;;  %1656 = vmatpush.msra.mxu2 %v6889_v18  ;;  %v6896_v6 = vld [vmem:[#allocation12 + $0xc0] sm:$0xff]  ;;  %v6902_v55 = vld [vmem:[#allocation12 + $0xd0] sm:$0xff]  ;;  %v1243_v22 = vand.u32 2147483648, %v6865_v4  ;;  %vm1237_vm9 = vweird.f32 %v6865_v4 }
 0x1dc   :  { %10199 = vst [vmem:[#allocation145_spill] sm:$0xff] %v6875_v34  ;;  %4378 = vrcp.f32 %v6873_v61  ;;  %v6892_v34 = vld [vmem:[#allocation12 + $0xf8] sm:$0xff]  ;;  %1617 = vmatpush.msra.mxu0 %v6896_v6  ;;  %v1262_v11 = vand.u32 2147483648, %v6873_v61  ;;  %vm1256_vm10 = vweird.f32 %v6873_v61 }
 0x1dd   :  { %10200 = vst [vmem:[#allocation146_spill] sm:$0xff] %v6878_v31  ;;  %1676 = vmatpush.msra.mxu3 %v6892_v34  ;;  %v1122_v31 = vadd.f32 %v1121_v41, %v6243_v58  ;;  %1657 = vmatpush.msra.mxu2 %v6902_v55  ;;  %v6911_v41 = vld [vmem:[#allocation12 + $0xa8] sm:$0xff] }
 0x1de   :  { %10201 = vst [vmem:[#allocation147_spill] sm:$0xff] %v6882_v60  ;;  %v6899_v60 = vld [vmem:[#allocation12 + $0xc8] sm:$0xff]  ;;  %1618 = vmatpush.msra.mxu0 %v6908_v56 }
 0x1df   :  { %10202 = vst [vmem:[#allocation148_spill] sm:$0xff] %v6885_v20  ;;  %1637 = vmatpush.msra.mxu1 %v6899_v60  ;;  %v1201_v20 = vpop.f32.mrf.mxu2 }
 0x1e0   :  { %10203 = vst [vmem:[#allocation149_spill] sm:$0xff] %v6889_v18  ;;  %v6905_v18 = vld [vmem:[#allocation12 + $0xd8] sm:$0xff]  ;;  %1619 = vmatpush.msra.mxu0 %v6927_v27 }
 0x1e1   :  { %10204 = vst [vmem:[#allocation150_spill] sm:$0xff] %v6892_v34  ;;  %1677 = vmatpush.msra.mxu3 %v6905_v18  ;;  %v4375_v34 = vpop.eup %4374  ;;  %1638 = vmatpush.msra.mxu1 %v6911_v41 }
 0x1e2   :  { %10205 = vst [vmem:[#allocation151_spill] sm:$0xff] %v6896_v6  ;;  %v6914_v6 = vadd.f32 1.0, %v4375_v34  ;;  %v6925_v58 = vpop.eup %4376  ;;  %v6930_v34 = vld [vmem:[#allocation12 + $0x88] sm:$0xff] }
 0x1e3   :  { %10206 = vst [vmem:[#allocation152_spill] sm:$0xff] %v6899_v60  ;;  %v6916_v60 = vld [vmem:[#allocation12 + $0xb0] sm:$0xff]  ;;  %1639 = vmatpush.msra.mxu1 %v6930_v34  ;;  %vm1238_vm7 = vweird.f32 %v6925_v58 }
 0x1e4   :  { %10207 = vst [vmem:[#allocation153_spill] sm:$0xff] %v6902_v55  ;;  %1658 = vmatpush.msra.mxu2 %v6916_v60  ;;  %v6919_v55 = vld [vmem:[#allocation12 + $0xb8] sm:$0xff]  ;;  %4380 = vrcp.f32 %v6914_v6  ;;  %vm6989_vm11 = vmor %vm1237_vm9, %vm1238_vm7  ;;  %vm1276_vm1 = vweird.f32 %v6914_v6 }
 0x1e5   :  { %10208 = vst [vmem:[#allocation154_spill] sm:$0xff] %v6905_v18  ;;  %1678 = vmatpush.msra.mxu3 %v6919_v55  ;;  %v4223_v18 = vld [vmem:[%s9243_s1 + $0xa] sm:$0x3] }
 0x1e6   :  { %10209 = vst [vmem:[#allocation155_spill] sm:$0xff] %v6908_v56  ;;  %v1226_v56 = vadd.f32 %v1201_v20, %v1122_v31  ;;  %v6941_v31 = vld [vmem:[#allocation12 + $0x98] sm:$0xff]  ;;  %4224 = vmatmul.msk.f32.vlgmr.msrb.gmra.mxu0 %vm355_vm0, %v4223_v18  ;;  %4225 = vmatmul.msk.f32.vlgmr.msrb.gmra.mxu1 %vm355_vm0, %v4223_v18 }
 0x1e7   :  { %10210 = vst [vmem:[#allocation156_spill] sm:$0xff] %v6911_v41  ;;  %v6938_v41 = vld [vmem:[#allocation12 + $0x90] sm:$0xff]  ;;  %1679 = vmatpush.msra.mxu3 %v6941_v31  ;;  %4226 = vmatmul.msk.f32.vlgmr.msrb.gmra.mxu2 %vm355_vm0, %v4223_v18 }
 0x1e8   :  { %10211 = vst [vmem:[#allocation157_spill] sm:$0xff] %v6916_v60  ;;  %v6933_v60 = vpop.eup %4378  ;;  %1659 = vmatpush.msra.mxu2 %v6938_v41  ;;  %4227 = vmatmul.msk.f32.vlgmr.msrb.gmra.mxu3 %vm355_vm0, %v4223_v18  ;;  %4382 = vtanh.f32 %v1226_v56  ;;  %v1241_v18 = vand.u32 2147483647, %v6865_v4  ;;  %v6964_v56 = vld [vmem:[#allocation12 + $0x78] sm:$0xff] }
 0x1e9   :  { %10212 = vst [vmem:[#allocation158_spill] sm:$0xff] %v6919_v55  ;;  %v1233_v55 = vmul.f32 %v6925_v58, %v6865_v4  ;;  %v1252_v20 = vmul.f32 %v6933_v60, %v6873_v61  ;;  %1680 = vmatpush.msra.mxu3 %v6964_v56  ;;  %vm1257_vm8 = vweird.f32 %v6933_v60 }
 0x1ea   :  { %10214 = vst [vmem:[#allocation160_spill] sm:$0xff] %v6930_v34  ;;  %v6976_v12 = vpop.eup %4380  ;;  %vm7004_vm12 = vmor %vm1256_vm10, %vm1257_vm8  ;;  %vm1242_vm13 = vcmp.eq.f32.partialorder %v1241_v18, 8.507059e+37 }
 0x1eb   :  { %10215 = vst [vmem:[#allocation161_spill] sm:$0xff] %v6938_v41  ;;  %v1234_v34 = vsub.f32 1.0, %v1233_v55  ;;  %v1253_v27 = vsub.f32 1.0, %v1252_v20  ;;  %v6951_v41 = vld [vmem:[#allocation12 + $0x60] sm:$0xff]  ;;  %v6961_v20 = vld [vmem:[#allocation12 + $0x70] sm:$0xff]  ;;  %v1272_v4 = vmul.f32 %v6976_v12, %v6914_v6  ;;  %vm1277_vm15 = vweird.f32 %v6976_v12 }
 0x1ec   :  { %10216 = vst [vmem:[#allocation162_spill] sm:$0xff] %v6941_v31  ;;  %1620 = vmatpush.msra.mxu0 %v6951_v41  ;;  %v6954_v31 = vld [vmem:[#allocation12 + $0x68] sm:$0xff]  ;;  %1660 = vmatpush.msra.mxu2 %v6961_v20  ;;  %vm1278_vm2 = vmor %vm1276_vm1, %vm1277_vm15 }
 0x1ed   :  { %10217 = vst [vmem:[#allocation163_spill] sm:$0xff] %v6951_v41  ;;  %1640 = vmatpush.msra.mxu1 %v6954_v31  ;;  %v1235_v55 = vmul.f32 %v6925_v58, %v1234_v34  ;;  %v1254_v41 = vmul.f32 %v6933_v60, %v1253_v27  ;;  %v6973_v34 = vld [vmem:[#allocation12 + $0x48] sm:$0xff]  ;;  %v6983_v27 = vld [vmem:[#allocation12 + $0x58] sm:$0xff] }
 0x1ee   :  { %10218 = vst [vmem:[#allocation164_spill] sm:$0xff] %v6954_v31  ;;  %v1260_v31 = vand.u32 2147483647, %v6873_v61  ;;  %1621 = vmatpush.msra.mxu0 %v6970_v28  ;;  %1681 = vmatpush.msra.mxu3 %v6983_v27  ;;  %v1244_v28 = vor.u32 1.1754944e-38, %v1243_v22  ;;  %v1263_v22 = vor.u32 1.1754944e-38, %v1262_v11  ;;  %v1273_v11 = vsub.f32 1.0, %v1272_v4 }
 0x1ef   :  { %10219 = vst [vmem:[#allocation165_spill] sm:$0xff] %v6961_v20  ;;  %1641 = vmatpush.msra.mxu1 %v6973_v34  ;;  %v1236_v20 = vadd.f32 %v6925_v58, %v1235_v55  ;;  %v1255_v55 = vadd.f32 %v6933_v60, %v1254_v41  ;;  %v10263_v4 = vld [vmem:[#allocation78_spill] sm:$0xff]  ;;  %v10264_v61 = vld [vmem:[#allocation79_spill] sm:$0xff] }
 0x1f0   :  { %10220 = vst [vmem:[#allocation166_spill] sm:$0xff] %v6964_v56  ;;  %v6980_v56 = vld [vmem:[#allocation12 + $0x50] sm:$0xff]  ;;  %1622 = vmatpush.msra.mxu0 %v6996_v13  ;;  %v7014_v13 = vld [vmem:[#allocation12 + $0x38] sm:$0xff]  ;;  %vm1261_vm14 = vcmp.eq.f32.partialorder %v1260_v31, 8.507059e+37  ;;  %v1274_v31 = vmul.f32 %v6976_v12, %v1273_v11 }
 0x1f1   :  { %10222 = vst [vmem:[#allocation168_spill] sm:$0xff] %v6973_v34  ;;  %1661 = vmatpush.msra.mxu2 %v6980_v56  ;;  %v1240_v41 = vsel %vm6989_vm11, %v6925_v58, %v1236_v20  ;;  %1682 = vmatpush.msra.mxu3 %v7014_v13  ;;  %v1259_v42 = vsel %vm7004_vm12, %v6933_v60, %v1255_v55  ;;  %v7023_v58 = vld [vmem:[#allocation12 + $0x8] sm:$0xff]  ;;  %v7026_v34 = vld [vmem:[#allocation12 + $0x10] sm:$0xff]  ;;  %v10262_v55 = vld [vmem:[#allocation75_spill] sm:$0xff] }
 0x1f2   :  { %10223 = vst [vmem:[#allocation169_spill] sm:$0xff] %v6980_v56  ;;  %v6999_v56 = vld [vmem:[#allocation12 + $0x28] sm:$0xff]  ;;  %v1245_v44 = vsel %vm1242_vm13, %v1244_v28, %v1240_v41  ;;  %1623 = vmatpush.msra.mxu0 %v7020_v16  ;;  %v1264_v18 = vsel %vm1261_vm14, %v1263_v22, %v1259_v42  ;;  %v7029_v28 = vld [vmem:[#allocation12 + $0x18] sm:$0xff] }
 0x1f3   :  { %10224 = vst [vmem:[#allocation170_spill] sm:$0xff] %v6983_v27  ;;  %1642 = vmatpush.msra.mxu1 %v6999_v56  ;;  %v7011_v27 = vld [vmem:[#allocation12 + $0x30] sm:$0xff]  ;;  %1683 = vmatpush.msra.mxu3 %v7029_v28  ;;  %v1286_v60 = vmul.f32 %v1264_v18, %v6350_v17  ;;  %v1282_v17 = vand.u32 2147483648, %v6914_v6  ;;  %v10266_v41 = vld [vmem:[#allocation83_spill] sm:$0xff] }
 0x1f4   :  { %10228 = vst [vmem:[#allocation172_spill] sm:$0xff] %v6999_v56  ;;  %1662 = vmatpush.msra.mxu2 %v7011_v27  ;;  %v4383_v56 = vpop.eup %4382  ;;  %1768 = vmatpush.msrb.mxu0 %v6352_v32  ;;  %v1280_v32 = vand.u32 2147483647, %v6914_v6  ;;  %v10260_v6 = vld [vmem:[#allocation73_spill] sm:$0xff]  ;;  %v10265_v22 = vld [vmem:[#allocation82_spill] sm:$0xff]  ;;  %v10268_v18 = vld [vmem:[#allocation87_spill] sm:$0xff] }
 0x1f5   :  { %1643 = vmatpush.msra.mxu1 %v7023_v58  ;;  %v1287_v20 = vmul.f32 %v4383_v56, %v1245_v44  ;;  %1828 = vmatpush.msrb.mxu3 %v6362_v24  ;;  %v1275_v44 = vadd.f32 %v6976_v12, %v1274_v31  ;;  %v10261_v56 = vld [vmem:[#allocation74_spill] sm:$0xff] }
 0x1f6   :  { %1663 = vmatpush.msra.mxu2 %v7026_v34  ;;  %1769 = vmatpush.msrb.mxu0 %v6365_v25  ;;  %vm1281_vm3 = vcmp.eq.f32.partialorder %v1280_v32, 8.507059e+37  ;;  %v10267_v11 = vld [vmem:[#allocation86_spill] sm:$0xff]  ;;  %v10274_v32 = vld [vmem:[#allocation43_spill] sm:$0xff] }
 0x1f7   :  { %1788 = vmatpush.msrb.mxu1 %v6355_v37  ;;  %v7038_v42 = vadd.f32 %v1287_v20, %v1286_v60  ;;  %1829 = vmatpush.msrb.mxu3 %v6374_v50  ;;  %v1279_v37 = vsel %vm1278_vm2, %v6976_v12, %v1275_v44  ;;  %v10232_v50 = vld [vmem:[#allocation21_spill] sm:$0xff]  ;;  %v10259_v12 = vld [vmem:[#allocation71_spill] sm:$0xff]  ;;  %v10270_v60 = vld [vmem:[#allocation36_spill] sm:$0xff] }
 0x1f8   :  { %1808 = vmatpush.msrb.mxu2 %v6359_v21  ;;  %1770 = vmatpush.msrb.mxu0 %v6379_v49  ;;  %v1283_v21 = vor.u32 1.1754944e-38, %v1282_v17  ;;  %v10233_v49 = vld [vmem:[#allocation39_spill] sm:$0xff]  ;;  %v10269_v20 = vld [vmem:[#allocation41_spill] sm:$0xff]  ;;  %v10271_v31 = vld [vmem:[#allocation90_spill] sm:$0xff] }
 0x1f9   :  { %1789 = vmatpush.msrb.mxu1 %v6368_v40  ;;  %4384 = vtanh.f32 %v7038_v42  ;;  %1830 = vmatpush.msrb.mxu3 %v6389_v57  ;;  %v10236_v57 = vld [vmem:[#allocation23_spill] sm:$0xff]  ;;  %v10273_v17 = vld [vmem:[#allocation45_spill] sm:$0xff] }
 0x1fa   :  { %1809 = vmatpush.msrb.mxu2 %v6371_v48  ;;  %1771 = vmatpush.msrb.mxu0 %v6392_v53  ;;  %v1284_v25 = vsel %vm1281_vm3, %v1283_v21, %v1279_v37  ;;  %v10231_v48 = vld [vmem:[#allocation38_spill] sm:$0xff]  ;;  %v10272_v44 = vld [vmem:[#allocation91_spill] sm:$0xff] }
 0x1fb   :  { %1790 = vmatpush.msrb.mxu1 %v6382_v52  ;;  %1831 = vmatpush.msrb.mxu3 %v6402_v47  ;;  %v10234_v52 = vld [vmem:[#allocation26_spill] sm:$0xff]  ;;  %v10240_v47 = vld [vmem:[#allocation25_spill] sm:$0xff]  ;;  %v10276_v21 = vld [vmem:[#allocation95_spill] sm:$0xff] }
 0x1fc   :  { %1810 = vmatpush.msrb.mxu2 %v6386_v46  ;;  %1772 = vmatpush.msrb.mxu0 %v6406_v0  ;;  %v10235_v46 = vld [vmem:[#allocation40_spill] sm:$0xff]  ;;  %v10237_v53 = vld [vmem:[#allocation42_spill] sm:$0xff] }
 0x1fd   :  { %1791 = vmatpush.msrb.mxu1 %v6395_v59  ;;  %1832 = vmatpush.msrb.mxu3 %v6415_v9  ;;  %v10238_v59 = vld [vmem:[#allocation28_spill] sm:$0xff]  ;;  %v10241_v0 = vld [vmem:[#allocation46_spill] sm:$0xff]  ;;  %v10244_v9 = vld [vmem:[#allocation27_spill] sm:$0xff] }
 0x1fe   :  { %1811 = vmatpush.msrb.mxu2 %v6399_v62  ;;  %1773 = vmatpush.msrb.mxu0 %v6418_v5  ;;  %v10239_v62 = vld [vmem:[#allocation44_spill] sm:$0xff]  ;;  %v10245_v5 = vld [vmem:[#allocation50_spill] sm:$0xff] }
 0x1ff   :  { %1792 = vmatpush.msrb.mxu1 %v6409_v1  ;;  %v4385_v24 = vpop.eup %4384  ;;  %1833 = vmatpush.msrb.mxu3 %v6427_v19  ;;  %v10242_v1 = vld [vmem:[#allocation30_spill] sm:$0xff]  ;;  %v10248_v19 = vld [vmem:[#allocation29_spill] sm:$0xff] }
 0x200   :  { %1812 = vmatpush.msrb.mxu2 %v6412_v3  ;;  %v1290_v40 = vmul.f32 %v4385_v24, %v1284_v25  ;;  %1774 = vmatpush.msrb.mxu0 %v6430_v23  ;;  %v10243_v3 = vld [vmem:[#allocation48_spill] sm:$0xff]  ;;  %v10249_v23 = vld [vmem:[#allocation54_spill] sm:$0xff]  ;;  %v10277_v24 = vld [vmem:[#allocation49_spill] sm:$0xff] }
 0x201   :  { %1793 = vmatpush.msrb.mxu1 %v6421_v14  ;;  %1834 = vmatpush.msrb.mxu3 %v6439_v39  ;;  %v10246_v14 = vld [vmem:[#allocation33_spill] sm:$0xff]  ;;  %v10252_v39 = vld [vmem:[#allocation31_spill] sm:$0xff]  ;;  %v10275_v37 = vld [vmem:[#allocation94_spill] sm:$0xff] }
 0x202   :  { %1813 = vmatpush.msrb.mxu2 %v6424_v54  ;;  %1624 = vmatmul.f32.vlgmr.msra.gmra.mxu0 %v1290_v40  ;;  %v10247_v54 = vld [vmem:[#allocation52_spill] sm:$0xff]  ;;  %v10278_v25 = vld [vmem:[#allocation47_spill] sm:$0xff] }
 0x203   :  { %1794 = vmatpush.msrb.mxu1 %v6433_v7  ;;  %1664 = vmatmul.f32.vlgmr.msra.gmra.mxu2 %v1290_v40  ;;  %v10250_v7 = vld [vmem:[#allocation37_spill] sm:$0xff] }
 0x204   :  { %1644 = vmatmul.f32.vlgmr.msra.gmra.mxu1 %v1290_v40  ;;  %1684 = vmatmul.f32.vlgmr.msra.gmra.mxu3 %v1290_v40  ;;  %v10279_v40 = vld [vmem:[#allocation98_spill] sm:$0xff] }
 0x205   :  { %1814 = vmatpush.msrb.mxu2 %v6436_v8  ;;  %1775 = vmatpush.msrb.mxu0 %v6442_v45  ;;  %v10251_v8 = vld [vmem:[#allocation56_spill] sm:$0xff]  ;;  %v10253_v45 = vld [vmem:[#allocation58_spill] sm:$0xff] }
 0x206   :  { %1795 = vmatpush.msrb.mxu1 %v6445_v35  ;;  %1835 = vmatpush.msrb.mxu3 %v6451_v38  ;;  %v10254_v35 = vld [vmem:[#allocation60_spill] sm:$0xff]  ;;  %v10256_v38 = vld [vmem:[#allocation65_spill] sm:$0xff] }
 0x207   :  { %1815 = vmatpush.msrb.mxu2 %v6448_v15  ;;  %1840 = vmatpush.msra.mxu0 %v6454_v10  ;;  %v10255_v15 = vld [vmem:[#allocation62_spill] sm:$0xff]  ;;  %v10257_v10 = vld [vmem:[#allocation67_spill] sm:$0xff] }
 0x208   :  { %1860 = vmatpush.msra.mxu1 %v6457_v26  ;;  %1900 = vmatpush.msra.mxu3 %v10232_v50  ;;  %v10258_v26 = vld [vmem:[#allocation69_spill] sm:$0xff] }
 0x209   :  { %1880 = vmatpush.msra.mxu2 %v10231_v48  ;;  %1841 = vmatpush.msra.mxu0 %v10233_v49  ;;  %v10280_v48 = vld [vmem:[#allocation99_spill] sm:$0xff]  ;;  %v10281_v50 = vld [vmem:[#allocation53_spill] sm:$0xff] }
 0x20a   :  { %1861 = vmatpush.msra.mxu1 %v10234_v52  ;;  %1901 = vmatpush.msra.mxu3 %v10236_v57  ;;  %v10282_v49 = vld [vmem:[#allocation51_spill] sm:$0xff]  ;;  %v10283_v52 = vld [vmem:[#allocation102_spill] sm:$0xff]  ;;  %v10285_v57 = vld [vmem:[#allocation57_spill] sm:$0xff] }
 0x20b   :  { %1881 = vmatpush.msra.mxu2 %v10235_v46  ;;  %1842 = vmatpush.msra.mxu0 %v10237_v53  ;;  %v10284_v46 = vld [vmem:[#allocation103_spill] sm:$0xff] }
 0x20c   :  { %1862 = vmatpush.msra.mxu1 %v10238_v59  ;;  %1902 = vmatpush.msra.mxu3 %v10240_v47  ;;  %v10286_v53 = vld [vmem:[#allocation55_spill] sm:$0xff]  ;;  %v10287_v59 = vld [vmem:[#allocation106_spill] sm:$0xff]  ;;  %v10289_v47 = vld [vmem:[#allocation61_spill] sm:$0xff] }
 0x20d   :  { %1882 = vmatpush.msra.mxu2 %v10239_v62  ;;  %1843 = vmatpush.msra.mxu0 %v10241_v0  ;;  %v10288_v62 = vld [vmem:[#allocation107_spill] sm:$0xff] }
 0x20e   :  { %1863 = vmatpush.msra.mxu1 %v10242_v1  ;;  %1903 = vmatpush.msra.mxu3 %v10244_v9  ;;  %v10290_v0 = vld [vmem:[#allocation59_spill] sm:$0xff]  ;;  %v10291_v1 = vld [vmem:[#allocation110_spill] sm:$0xff]  ;;  %v1313_v9 = vpop.f32.mrf.mxu0 }
 0x20f   :  { %1883 = vmatpush.msra.mxu2 %v10243_v3  ;;  %1844 = vmatpush.msra.mxu0 %v10245_v5  ;;  %v10292_v3 = vld [vmem:[#allocation111_spill] sm:$0xff]  ;;  %v1333_v5 = vpop.f32.mrf.mxu1 }
 0x210   :  { %1864 = vmatpush.msra.mxu1 %v10246_v14  ;;  %1904 = vmatpush.msra.mxu3 %v10248_v19  ;;  %v10293_v14 = vld [vmem:[#allocation22_spill] sm:$0xff]  ;;  %v10294_v19 = vld [vmem:[#allocation32_spill] sm:$0xff] }
 0x211   :  { %1884 = vmatpush.msra.mxu2 %v10247_v54  ;;  %1845 = vmatpush.msra.mxu0 %v10249_v23  ;;  %v1314_v54 = vadd.f32 %v1313_v9, %v10293_v14  ;;  %v1334_v23 = vadd.f32 %v1333_v5, %v10294_v19  ;;  %v10319_v5 = vld [vmem:[#allocation89_spill] sm:$0xff] }
 0x212   :  { %1865 = vmatpush.msra.mxu1 %v10250_v7  ;;  %1905 = vmatpush.msra.mxu3 %v10252_v39  ;;  %v1373_v7 = vpop.f32.mrf.mxu3 }
 0x213   :  { %1885 = vmatpush.msra.mxu2 %v10251_v8  ;;  %1846 = vmatpush.msra.mxu0 %v10253_v45 }
 0x214   :  { %1866 = vmatpush.msra.mxu1 %v10254_v35  ;;  %1906 = vmatpush.msra.mxu3 %v10256_v38 }
 0x215   :  { %1886 = vmatpush.msra.mxu2 %v10255_v15  ;;  %1847 = vmatpush.msra.mxu0 %v10257_v10  ;;  %v10295_v10 = vld [vmem:[#allocation20_spill] sm:$0xff] }
 0x216   :  { %1867 = vmatpush.msra.mxu1 %v10258_v26  ;;  %1907 = vmatpush.msra.mxu3 %v10260_v6  ;;  %v1374_v26 = vadd.f32 %v1373_v7, %v10295_v10  ;;  %v1353_v6 = vpop.f32.mrf.mxu2  ;;  %v10321_v7 = vld [vmem:[#allocation134_spill] sm:$0xff] }
 0x217   :  { %1887 = vmatpush.msra.mxu2 %v10259_v12  ;;  %1848 = vmatpush.msra.mxu0 %v10261_v56  ;;  %v4231_v12 = vld [vmem:[%s9242_s0 + $0x6] sm:$0x3] }
 0x218   :  { %1868 = vmatpush.msra.mxu1 %v10262_v55  ;;  %1908 = vmatpush.msra.mxu3 %v10264_v61  ;;  %v10296_v55 = vld [vmem:[#allocation64_spill] sm:$0xff] }
 0x219   :  { %1888 = vmatpush.msra.mxu2 %v10263_v4  ;;  %1849 = vmatpush.msra.mxu0 %v10265_v22  ;;  %v10297_v4 = vld [vmem:[#allocation63_spill] sm:$0xff]  ;;  %v10298_v22 = vld [vmem:[#allocation114_spill] sm:$0xff] }
 0x21a   :  { %1869 = vmatpush.msra.mxu1 %v10266_v41  ;;  %1909 = vmatpush.msra.mxu3 %v10268_v18  ;;  %v10299_v41 = vld [vmem:[#allocation115_spill] sm:$0xff]  ;;  %v10301_v18 = vld [vmem:[#allocation66_spill] sm:$0xff] }
 0x21b   :  { %1889 = vmatpush.msra.mxu2 %v10267_v11  ;;  %1850 = vmatpush.msra.mxu0 %v10269_v20  ;;  %v10300_v11 = vld [vmem:[#allocation68_spill] sm:$0xff] }
 0x21c   :  { %1870 = vmatpush.msra.mxu1 %v10270_v60  ;;  %1910 = vmatpush.msra.mxu3 %v10272_v44  ;;  %v10302_v60 = vld [vmem:[#allocation118_spill] sm:$0xff] }
 0x21d   :  { %1890 = vmatpush.msra.mxu2 %v10271_v31  ;;  %1851 = vmatpush.msra.mxu0 %v10273_v17  ;;  %v10303_v31 = vld [vmem:[#allocation119_spill] sm:$0xff]  ;;  %v10304_v17 = vld [vmem:[#allocation70_spill] sm:$0xff] }
 0x21e   :  { %1871 = vmatpush.msra.mxu1 %v10274_v32  ;;  %1911 = vmatpush.msra.mxu3 %v10276_v21  ;;  %v10305_v32 = vld [vmem:[#allocation72_spill] sm:$0xff] }
 0x21f   :  { %1891 = vmatpush.msra.mxu2 %v10275_v37  ;;  %1852 = vmatpush.msra.mxu0 %v10277_v24  ;;  %v10306_v24 = vld [vmem:[#allocation122_spill] sm:$0xff] }
 0x220   :  { %1872 = vmatpush.msra.mxu1 %v10278_v25  ;;  %1912 = vmatpush.msra.mxu3 %v10280_v48  ;;  %v10307_v25 = vld [vmem:[#allocation123_spill] sm:$0xff]  ;;  %v10308_v48 = vld [vmem:[#allocation76_spill] sm:$0xff] }
 0x221   :  { %1892 = vmatpush.msra.mxu2 %v10279_v40  ;;  %1853 = vmatpush.msra.mxu0 %v10281_v50  ;;  %v10309_v50 = vld [vmem:[#allocation77_spill] sm:$0xff] }
 0x222   :  { %1873 = vmatpush.msra.mxu1 %v10282_v49  ;;  %1913 = vmatpush.msra.mxu3 %v10284_v46  ;;  %v10310_v49 = vld [vmem:[#allocation126_spill] sm:$0xff]  ;;  %v10312_v46 = vld [vmem:[#allocation81_spill] sm:$0xff] }
 0x223   :  { %1893 = vmatpush.msra.mxu2 %v10283_v52  ;;  %1854 = vmatpush.msra.mxu0 %v10285_v57  ;;  %v10311_v52 = vld [vmem:[#allocation80_spill] sm:$0xff]  ;;  %v10313_v57 = vld [vmem:[#allocation129_spill] sm:$0xff] }
 0x224   :  { %1874 = vmatpush.msra.mxu1 %v10286_v53  ;;  %1914 = vmatpush.msra.mxu3 %v10288_v62  ;;  %v10314_v53 = vld [vmem:[#allocation34_spill] sm:$0xff]  ;;  %v10315_v62 = vld [vmem:[#allocation84_spill] sm:$0xff] }
 0x225   :  { %1894 = vmatpush.msra.mxu2 %v10287_v59  ;;  %1855 = vmatpush.msra.mxu0 %v10289_v47  ;;  %v1354_v59 = vadd.f32 %v1353_v6, %v10314_v53  ;;  %v10316_v47 = vld [vmem:[#allocation85_spill] sm:$0xff]  ;;  %v10326_v6 = vld [vmem:[#allocation100_spill] sm:$0xff] }
 0x226   :  { %1875 = vmatpush.msra.mxu1 %v10290_v0  ;;  %1915 = vmatpush.msra.mxu3 %v10292_v3  ;;  %v10318_v3 = vld [vmem:[#allocation88_spill] sm:$0xff] }
 0x227   :  { %1895 = vmatpush.msra.mxu2 %v10291_v1  ;;  %4232 = vmatmul.msk.f32.vlgmr.msrb.gmra.mxu0 %vm355_vm0, %v4231_v12  ;;  %v10317_v1 = vld [vmem:[#allocation132_spill] sm:$0xff] }
 0x228   :  { %4233 = vmatmul.msk.f32.vlgmr.msrb.gmra.mxu1 %vm355_vm0, %v4231_v12  ;;  %4234 = vmatmul.msk.f32.vlgmr.msrb.gmra.mxu2 %vm355_vm0, %v4231_v12 }
 0x229   :  { %4235 = vmatmul.msk.f32.vlgmr.msrb.gmra.mxu3 %vm355_vm0, %v4231_v12  ;;  %2000 = vmatpush.msrb.mxu0 %v10296_v55  ;;  %v10325_v12 = vld [vmem:[#allocation97_spill] sm:$0xff] }
 0x22a   :  { %2020 = vmatpush.msrb.mxu1 %v10297_v4  ;;  %2040 = vmatpush.msrb.mxu2 %v10298_v22  ;;  %v10327_v55 = vld [vmem:[#allocation101_spill] sm:$0xff]  ;;  %v10328_v4 = vld [vmem:[#allocation104_spill] sm:$0xff] }
 0x22b   :  { %2060 = vmatpush.msrb.mxu3 %v10299_v41  ;;  %2001 = vmatpush.msrb.mxu0 %v10300_v11 }
 0x22c   :  { %2021 = vmatpush.msrb.mxu1 %v10301_v18  ;;  %2041 = vmatpush.msrb.mxu2 %v10302_v60 }
 0x22d   :  { %2061 = vmatpush.msrb.mxu3 %v10303_v31  ;;  %2002 = vmatpush.msrb.mxu0 %v10304_v17 }
 0x22e   :  { %2022 = vmatpush.msrb.mxu1 %v10305_v32  ;;  %2042 = vmatpush.msrb.mxu2 %v10306_v24 }
 0x22f   :  { %2062 = vmatpush.msrb.mxu3 %v10307_v25  ;;  %2003 = vmatpush.msrb.mxu0 %v10308_v48 }
 0x230   :  { %2023 = vmatpush.msrb.mxu1 %v10309_v50  ;;  %2043 = vmatpush.msrb.mxu2 %v10310_v49 }
 0x231   :  { %2063 = vmatpush.msrb.mxu3 %v10311_v52  ;;  %2004 = vmatpush.msrb.mxu0 %v10312_v46 }
 0x232   :  { %v1393_v8 = vpop.f32.mrf.mxu0  ;;  %v1413_v39 = vpop.f32.mrf.mxu1  ;;  %2024 = vmatpush.msrb.mxu1 %v10313_v57  ;;  %2044 = vmatpush.msrb.mxu2 %v10315_v62 }
 0x233   :  { %v1456_v45 = vadd.f32 %v1393_v8, %v1314_v54  ;;  %v1457_v35 = vadd.f32 %v1413_v39, %v1334_v23  ;;  %2064 = vmatpush.msrb.mxu3 %v10316_v47  ;;  %2005 = vmatpush.msrb.mxu0 %v10317_v1  ;;  %v10320_v54 = vld [vmem:[#allocation133_spill] sm:$0xff]  ;;  %v10322_v8 = vld [vmem:[#allocation92_spill] sm:$0xff] }
 0x234   :  { %2025 = vmatpush.msrb.mxu1 %v10318_v3  ;;  %2045 = vmatpush.msrb.mxu2 %v10319_v5 }
 0x235   :  { %v4220_v15 = vmul.f32 -1.442695, %v1456_v45  ;;  %v4221_v38 = vmul.f32 -1.442695, %v1457_v35  ;;  %2065 = vmatpush.msrb.mxu3 %v10320_v54  ;;  %2006 = vmatpush.msrb.mxu0 %v10321_v7  ;;  %v10323_v35 = vld [vmem:[#allocation93_spill] sm:$0xff] }
 0x236   :  { %2026 = vmatpush.msrb.mxu1 %v10322_v8  ;;  %2046 = vmatpush.msrb.mxu2 %v10323_v35 }
 0x237   :  { %4386 = vpow2.f32 %v4220_v15  ;;  %v10324_v15 = vld [vmem:[#allocation96_spill] sm:$0xff]  ;;  %2007 = vmatpush.msrb.mxu0 %v10325_v12 }
 0x238   :  { %4388 = vpow2.f32 %v4221_v38  ;;  %2066 = vmatpush.msrb.mxu3 %v10324_v15  ;;  %2027 = vmatpush.msrb.mxu1 %v10326_v6  ;;  %v10330_v6 = vld [vmem:[#allocation108_spill] sm:$0xff] }
 0x239   :  { %v1453_v56 = vpop.f32.mrf.mxu3  ;;  %v1433_v0 = vpop.f32.mrf.mxu2  ;;  %2047 = vmatpush.msrb.mxu2 %v10327_v55 }
 0x23a   :  { %v1459_v61 = vadd.f32 %v1453_v56, %v1374_v26  ;;  %v1458_v45 = vadd.f32 %v1433_v0, %v1354_v59  ;;  %2067 = vmatpush.msrb.mxu3 %v10328_v4  ;;  %v10334_v4 = vld [vmem:[#allocation116_spill] sm:$0xff] }
 0x23c   :  { %v4222_v20 = vmul.f32 -1.442695, %v1459_v61 }
 0x23d   :  { %v4387_v44 = vpop.eup %4386 }
 0x23e   :  { %v4389_v37 = vpop.eup %4388  ;;  %v1463_v21 = vadd.f32 1.0, %v4387_v44  ;;  %4390 = vpow2.f32 %v4222_v20 }
 0x23f   :  { %v1482_v40 = vadd.f32 1.0, %v4389_v37 }
 0x240   :  { %4392 = vrcp.f32 %v1463_v21  ;;  %v1475_v41 = vand.u32 2147483648, %v1463_v21  ;;  %v1473_v20 = vand.u32 2147483647, %v1463_v21  ;;  %vm1469_vm6 = vweird.f32 %v1463_v21 }
 0x241   :  { %4394 = vrcp.f32 %v1482_v40  ;;  %v1494_v11 = vand.u32 2147483648, %v1482_v40  ;;  %v1492_v31 = vand.u32 2147483647, %v1482_v40  ;;  %vm1488_vm7 = vweird.f32 %v1482_v40 }
 0x242   :  { %v1476_v32 = vor.u32 1.1754944e-38, %v1475_v41  ;;  %vm1474_vm10 = vcmp.eq.f32.partialorder %v1473_v20, 8.507059e+37  ;;  %v10338_v41 = vld [vmem:[#allocation121_spill] sm:$0xff]  ;;  %v10341_v20 = vld [vmem:[#allocation127_spill] sm:$0xff] }
 0x243   :  { %v1495_v25 = vor.u32 1.1754944e-38, %v1494_v11  ;;  %vm1493_vm11 = vcmp.eq.f32.partialorder %v1492_v31, 8.507059e+37  ;;  %v10339_v11 = vld [vmem:[#allocation124_spill] sm:$0xff] }
 0x244   :  { %v4391_v9 = vpop.eup %4390 }
 0x245   :  { %v1502_v23 = vadd.f32 1.0, %v4391_v9 }
 0x246   :  { %v4393_v39 = vpop.eup %4392 }
 0x247   :  { %v4395_v38 = vpop.eup %4394  ;;  %v1465_v26 = vmul.f32 %v4393_v39, %v1463_v21  ;;  %4396 = vrcp.f32 %v1502_v23  ;;  %vm1470_vm4 = vweird.f32 %v4393_v39  ;;  %v1514_v0 = vand.u32 2147483648, %v1502_v23 }
 0x248   :  { %v1484_v56 = vmul.f32 %v4395_v38, %v1482_v40  ;;  %4398 = vtanh.f32 %v1458_v45  ;;  %vm1489_vm5 = vweird.f32 %v4395_v38  ;;  %vm1471_vm8 = vmor %vm1469_vm6, %vm1470_vm4  ;;  %vm1508_vm13 = vweird.f32 %v1502_v23 }
 0x249   :  { %v1466_v61 = vsub.f32 1.0, %v1465_v26  ;;  %vm1490_vm9 = vmor %vm1488_vm7, %vm1489_vm5  ;;  %v1512_v1 = vand.u32 2147483647, %v1502_v23  ;;  %v1515_v54 = vor.u32 1.1754944e-38, %v1514_v0  ;;  %v10353_v0 = vld [vmem:[#allocation143_spill] sm:$0xff] }
 0x24a   :  { %v1485_v22 = vsub.f32 1.0, %v1484_v56  ;;  %v10333_v56 = vld [vmem:[#allocation113_spill] sm:$0xff] }
 0x24b   :  { %v1467_v18 = vmul.f32 %v4393_v39, %v1466_v61  ;;  %vm1513_vm15 = vcmp.eq.f32.partialorder %v1512_v1, 8.507059e+37  ;;  %v10336_v61 = vld [vmem:[#allocation24_spill] sm:$0xff] }
 0x24c   :  { %v1486_v60 = vmul.f32 %v4395_v38, %v1485_v22  ;;  %v10337_v22 = vld [vmem:[#allocation120_spill] sm:$0xff] }
 0x24d   :  { %v4397_v44 = vpop.eup %4396  ;;  %v1468_v17 = vadd.f32 %v4393_v39, %v1467_v18  ;;  %v10340_v18 = vld [vmem:[#allocation125_spill] sm:$0xff]  ;;  %v10354_v1 = vld [vmem:[#allocation144_spill] sm:$0xff] }
 0x24e   :  { %v1487_v37 = vadd.f32 %v4395_v38, %v1486_v60  ;;  %v1504_v24 = vmul.f32 %v4397_v44, %v1502_v23  ;;  %v4399_v50 = vpop.eup %4398  ;;  %vm1509_vm12 = vweird.f32 %v4397_v44  ;;  %v10342_v60 = vld [vmem:[#allocation128_spill] sm:$0xff] }
 0x24f   :  { %v1472_v48 = vsel %vm1471_vm8, %v4393_v39, %v1468_v17  ;;  %vm1510_vm14 = vmor %vm1508_vm13, %vm1509_vm12  ;;  %v10343_v17 = vld [vmem:[#allocation130_spill] sm:$0xff] }
 0x250   :  { %v1477_v49 = vsel %vm1474_vm10, %v1476_v32, %v1472_v48  ;;  %v1491_v52 = vsel %vm1490_vm9, %v4395_v38, %v1487_v37  ;;  %v1505_v46 = vsub.f32 1.0, %v1504_v24  ;;  %v10329_v38 = vld [vmem:[#allocation105_spill] sm:$0xff]  ;;  %v10344_v32 = vld [vmem:[#allocation131_spill] sm:$0xff] }
 0x251   :  { %v1496_v57 = vsel %vm1493_vm11, %v1495_v25, %v1491_v52  ;;  %v1519_v59 = vmul.f32 %v4399_v50, %v1477_v49  ;;  %v10345_v24 = vld [vmem:[#allocation135_spill] sm:$0xff]  ;;  %v10346_v25 = vld [vmem:[#allocation136_spill] sm:$0xff]  ;;  %v10347_v48 = vld [vmem:[#allocation137_spill] sm:$0xff] }
 0x252   :  { %v1518_v62 = vmul.f32 %v1496_v57, %v6772_v29  ;;  %v1506_v47 = vmul.f32 %v4397_v44, %v1505_v46  ;;  %v10348_v50 = vld [vmem:[#allocation138_spill] sm:$0xff]  ;;  %v10349_v52 = vld [vmem:[#allocation139_spill] sm:$0xff]  ;;  %v10350_v46 = vld [vmem:[#allocation140_spill] sm:$0xff] }
 0x254   :  { %v7183_v21 = vadd.f32 %v1519_v59, %v1518_v62  ;;  %v1507_v40 = vadd.f32 %v4397_v44, %v1506_v47  ;;  %v10351_v59 = vld [vmem:[#allocation141_spill] sm:$0xff]  ;;  %v10352_v62 = vld [vmem:[#allocation142_spill] sm:$0xff] }
 0x256   :  { %4400 = vtanh.f32 %v7183_v21  ;;  %v1511_v5 = vsel %vm1510_vm14, %v4397_v44, %v1507_v40 }
 0x257   :  { %v1516_v8 = vsel %vm1513_vm15, %v1515_v54, %v1511_v5  ;;  %v10356_v5 = vld [vmem:[#allocation146_spill] sm:$0xff]  ;;  %v10357_v54 = vld [vmem:[#allocation147_spill] sm:$0xff] }
 0x25c   :  { %v4401_v7 = vpop.eup %4400 }
 0x25d   :  { %v1522_v39 = vmul.f32 %v4401_v7, %v1516_v8  ;;  %v10358_v7 = vld [vmem:[#allocation148_spill] sm:$0xff]  ;;  %v10359_v8 = vld [vmem:[#allocation149_spill] sm:$0xff] }
 0x25f   :  { %1856 = vmatmul.f32.vlgmr.msra.gmra.mxu0 %v1522_v39  ;;  %1876 = vmatmul.f32.vlgmr.msra.gmra.mxu1 %v1522_v39 }
 0x260   :  { %1896 = vmatmul.f32.vlgmr.msra.gmra.mxu2 %v1522_v39  ;;  %1916 = vmatmul.f32.vlgmr.msra.gmra.mxu3 %v1522_v39  ;;  %v10360_v39 = vld [vmem:[#allocation150_spill] sm:$0xff] }
 0x261   :  { %2072 = vmatpush.msra.mxu0 %v6778_v51  ;;  %2092 = vmatpush.msra.mxu1 %v6781_v2  ;;  %v10331_v51 = vld [vmem:[#allocation109_spill] sm:$0xff]  ;;  %v10332_v2 = vld [vmem:[#allocation112_spill] sm:$0xff] }
 0x262   :  { %2112 = vmatpush.msra.mxu2 %v6786_v63  ;;  %2132 = vmatpush.msra.mxu3 %v6789_v36  ;;  %v10335_v36 = vld [vmem:[#allocation117_spill] sm:$0xff] }
 0x263   :  { %v1545_v3 = vpop.f32.mrf.mxu0  ;;  %v1565_v9 = vpop.f32.mrf.mxu1  ;;  %2073 = vmatpush.msra.mxu0 %v6792_v43  ;;  %2093 = vmatpush.msra.mxu1 %v10329_v38  ;;  %v10364_v38 = vld [vmem:[#allocation153_spill] sm:$0xff] }
 0x264   :  { %v1546_v23 = vadd.f32 %v1545_v3, %v6198_v30  ;;  %v1566_v45 = vadd.f32 %v1565_v9, %v6203_v33  ;;  %2113 = vmatpush.msra.mxu2 %v10330_v6  ;;  %2133 = vmatpush.msra.mxu3 %v10331_v51  ;;  %v10355_v9 = vld [vmem:[#allocation145_spill] sm:$0xff]  ;;  %v10366_v6 = vld [vmem:[#allocation155_spill] sm:$0xff]  ;;  %v10367_v51 = vld [vmem:[#allocation156_spill] sm:$0xff] }
 0x265   :  { %2074 = vmatpush.msra.mxu0 %v10332_v2  ;;  %2094 = vmatpush.msra.mxu1 %v10333_v56  ;;  %v10368_v56 = vld [vmem:[#allocation157_spill] sm:$0xff] }
 0x266   :  { %2114 = vmatpush.msra.mxu2 %v10334_v4  ;;  %2134 = vmatpush.msra.mxu3 %v10335_v36 }
 0x267   :  { %2075 = vmatpush.msra.mxu0 %v10337_v22  ;;  %2095 = vmatpush.msra.mxu1 %v10338_v41  ;;  %v10371_v22 = vld [vmem:[#allocation160_spill] sm:$0xff] }
 0x268   :  { %2115 = vmatpush.msra.mxu2 %v10339_v11  ;;  %2135 = vmatpush.msra.mxu3 %v10340_v18  ;;  %v10372_v18 = vld [vmem:[#allocation161_spill] sm:$0xff] }
 0x269   :  { %2076 = vmatpush.msra.mxu0 %v10341_v20  ;;  %2096 = vmatpush.msra.mxu1 %v10342_v60  ;;  %v10373_v20 = vld [vmem:[#allocation162_spill] sm:$0xff] }
 0x26a   :  { %v1585_v31 = vpop.f32.mrf.mxu2  ;;  %2116 = vmatpush.msra.mxu2 %v10343_v17  ;;  %2136 = vmatpush.msra.mxu3 %v10344_v32  ;;  %v10374_v32 = vld [vmem:[#allocation163_spill] sm:$0xff] }
 0x26b   :  { %v1605_v29 = vpop.f32.mrf.mxu3  ;;  %2077 = vmatpush.msra.mxu0 %v10345_v24  ;;  %2097 = vmatpush.msra.mxu1 %v10346_v25 }
 0x26c   :  { %v1606_v43 = vadd.f32 %v1605_v29, %v10336_v61  ;;  %2117 = vmatpush.msra.mxu2 %v10347_v48  ;;  %2137 = vmatpush.msra.mxu3 %v10348_v50  ;;  %v10361_v29 = vld [vmem:[#allocation35_spill] sm:$0xff]  ;;  %v10376_v50 = vld [vmem:[#allocation165_spill] sm:$0xff] }
 0x26d   :  { %2078 = vmatpush.msra.mxu0 %v10349_v52  ;;  %2098 = vmatpush.msra.mxu1 %v10350_v46 }
 0x26e   :  { %2118 = vmatpush.msra.mxu2 %v10351_v59  ;;  %2138 = vmatpush.msra.mxu3 %v10352_v62  ;;  %v10379_v59 = vld [vmem:[#allocation168_spill] sm:$0xff] }
 0x26f   :  { %2079 = vmatpush.msra.mxu0 %v10353_v0  ;;  %2099 = vmatpush.msra.mxu1 %v10354_v1  ;;  %v10380_v0 = vld [vmem:[#allocation169_spill] sm:$0xff]  ;;  %v10381_v1 = vld [vmem:[#allocation170_spill] sm:$0xff] }
 0x270   :  { %2119 = vmatpush.msra.mxu2 %v10355_v9  ;;  %2139 = vmatpush.msra.mxu3 %v10356_v5 }
 0x271   :  { %2080 = vmatpush.msra.mxu0 %v10357_v54  ;;  %2100 = vmatpush.msra.mxu1 %v10358_v7  ;;  %v10382_v7 = vld [vmem:[#allocation171_spill] sm:$0xff] }
 0x272   :  { %2120 = vmatpush.msra.mxu2 %v10359_v8  ;;  %2140 = vmatpush.msra.mxu3 %v10360_v39  ;;  %v10383_v8 = vld [vmem:[#allocation172_spill] sm:$0xff] }
 0x274   :  { %2121 = vmatpush.msra.mxu2 %v10364_v38 }
 0x276   :  { %2122 = vmatpush.msra.mxu2 %v10368_v56  ;;  %v7311_v56 = vld [vmem:[#allocation6 + $0xd8] sm:$0xff] }
 0x278   :  { %2123 = vmatpush.msra.mxu2 %v10372_v18  ;;  %v7339_v18 = vld [vmem:[#allocation6 + $0x88] sm:$0xff] }
 0x27a   :  { %2124 = vmatpush.msra.mxu2 %v10376_v50  ;;  %v7366_v50 = vld [vmem:[#allocation6 + $0x48] sm:$0xff] }
 0x27c   :  { %2125 = vmatpush.msra.mxu2 %v10380_v0  ;;  %v7387_v0 = vld [vmem:[#allocation6] sm:$0xff] }
 0x27e   :  { %2126 = vmatpush.msra.mxu2 %v7011_v27 }
 0x27f   :  { %v1625_v35 = vpop.f32.mrf.mxu0 }
 0x280   :  { %v1688_v26 = vadd.f32 %v1625_v35, %v1546_v23  ;;  %v1586_v23 = vadd.f32 %v1585_v31, %v10361_v29  ;;  %v10363_v35 = vld [vmem:[#allocation152_spill] sm:$0xff]  ;;  %2127 = vmatpush.msra.mxu2 %v7026_v34 }
 0x281   :  { %v1645_v15 = vpop.f32.mrf.mxu1  ;;  %2101 = vmatpush.msra.mxu1 %v10363_v35 }
 0x282   :  { %v1689_v12 = vadd.f32 %v1645_v15, %v1566_v45  ;;  %v4228_v55 = vmul.f32 -1.442695, %v1688_v26  ;;  %v10362_v45 = vld [vmem:[#allocation151_spill] sm:$0xff]  ;;  %v10365_v26 = vld [vmem:[#allocation154_spill] sm:$0xff] }
 0x283   :  { %2081 = vmatpush.msra.mxu0 %v10362_v45  ;;  %2141 = vmatpush.msra.mxu3 %v10365_v26 }
 0x284   :  { %v4229_v63 = vmul.f32 -1.442695, %v1689_v12  ;;  %4402 = vpow2.f32 %v4228_v55  ;;  %2102 = vmatpush.msra.mxu1 %v10367_v51  ;;  %v10369_v55 = vld [vmem:[#allocation158_spill] sm:$0xff] }
 0x285   :  { %2082 = vmatpush.msra.mxu0 %v10366_v6  ;;  %2142 = vmatpush.msra.mxu3 %v10369_v55  ;;  %v7308_v51 = vld [vmem:[#allocation6 + $0xd0] sm:$0xff] }
 0x286   :  { %4404 = vpow2.f32 %v4229_v63  ;;  %v1665_v15 = vpop.f32.mrf.mxu2  ;;  %v4239_v63 = vld [vmem:[%s9243_s1 + $0x8] sm:$0x3]  ;;  %2103 = vmatpush.msra.mxu1 %v10371_v22  ;;  %v7327_v22 = vld [vmem:[#allocation6 + $0xb8] sm:$0xff] }
 0x287   :  { %v1685_v44 = vpop.f32.mrf.mxu3  ;;  %v1690_v36 = vadd.f32 %v1665_v15, %v1586_v23  ;;  %2143 = vmatpush.msra.mxu3 %v10373_v20  ;;  %4240 = vmatmul.msk.f32.vlgmr.msrb.gmra.mxu0 %vm355_vm0, %v4239_v63  ;;  %v7345_v20 = vld [vmem:[#allocation6 + $0x90] sm:$0xff] }
 0x288   :  { %v1691_v37 = vadd.f32 %v1685_v44, %v1606_v43  ;;  %v10370_v43 = vld [vmem:[#allocation159_spill] sm:$0xff]  ;;  %4241 = vmatmul.msk.f32.vlgmr.msrb.gmra.mxu1 %vm355_vm0, %v4239_v63  ;;  %4242 = vmatmul.msk.f32.vlgmr.msrb.gmra.mxu2 %vm355_vm0, %v4239_v63 }
 0x289   :  { %2083 = vmatpush.msra.mxu0 %v10370_v43  ;;  %4243 = vmatmul.msk.f32.vlgmr.msrb.gmra.mxu3 %vm355_vm0, %v4239_v63  ;;  %v7316_v63 = vld [vmem:[#allocation6 + $0xa0] sm:$0xff]  ;;  %v7324_v43 = vld [vmem:[#allocation6 + $0xb0] sm:$0xff] }
 0x28a   :  { %v4230_v49 = vmul.f32 -1.442695, %v1691_v37  ;;  %v4403_v57 = vpop.eup %4402  ;;  %v10375_v37 = vld [vmem:[#allocation164_spill] sm:$0xff] }
 0x28b   :  { %v7217_v40 = vadd.f32 1.0, %v4403_v57  ;;  %2084 = vmatpush.msra.mxu0 %v10374_v32  ;;  %2104 = vmatpush.msra.mxu1 %v10375_v37  ;;  %v10378_v57 = vld [vmem:[#allocation167_spill] sm:$0xff]  ;;  %v7357_v32 = vld [vmem:[#allocation6 + $0x70] sm:$0xff] }
 0x28c   :  { %v4405_v47 = vpop.eup %4404  ;;  %4406 = vpow2.f32 %v4230_v49  ;;  %v10377_v49 = vld [vmem:[#allocation166_spill] sm:$0xff] }
 0x28d   :  { %v7221_v3 = vadd.f32 1.0, %v4405_v47  ;;  %4408 = vrcp.f32 %v7217_v40  ;;  %v1707_v17 = vand.u32 2147483648, %v7217_v40  ;;  %v1705_v48 = vand.u32 2147483647, %v7217_v40  ;;  %2144 = vmatpush.msra.mxu3 %v10377_v49  ;;  %2085 = vmatpush.msra.mxu0 %v10378_v57  ;;  %v7360_v37 = vld [vmem:[#allocation6 + $0x78] sm:$0xff]  ;;  %v7375_v57 = vld [vmem:[#allocation6 + $0x20] sm:$0xff] }
 0x28e   :  { %2105 = vmatpush.msra.mxu1 %v10379_v59  ;;  %vm1701_vm3 = vweird.f32 %v7217_v40  ;;  %v7378_v59 = vld [vmem:[#allocation6 + $0x28] sm:$0xff] }
 0x28f   :  { %4410 = vrcp.f32 %v7221_v3  ;;  %v1726_v24 = vand.u32 2147483648, %v7221_v3  ;;  %v1724_v46 = vand.u32 2147483647, %v7221_v3  ;;  %2145 = vmatpush.msra.mxu3 %v10381_v1  ;;  %vm1720_vm4 = vweird.f32 %v7221_v3  ;;  %2086 = vmatpush.msra.mxu0 %v10382_v7  ;;  %v7390_v1 = vld [vmem:[#allocation6 + $0x8] sm:$0xff] }
 0x290   :  { %v1708_v9 = vor.u32 1.1754944e-38, %v1707_v17  ;;  %2106 = vmatpush.msra.mxu1 %v10383_v8  ;;  %vm1706_vm7 = vcmp.eq.f32.partialorder %v1705_v48, 8.507059e+37  ;;  %v7354_v17 = vld [vmem:[#allocation6 + $0x68] sm:$0xff]  ;;  %v7363_v48 = vld [vmem:[#allocation6 + $0x40] sm:$0xff]  ;;  %v7405_v8 = vld [vmem:[#allocation11 + $0x1f0] sm:$0xff] }
 0x291   :  { %2146 = vmatpush.msra.mxu3 %v7014_v13  ;;  %vm1725_vm8 = vcmp.eq.f32.partialorder %v1724_v46, 8.507059e+37  ;;  %2087 = vmatpush.msra.mxu0 %v7020_v16  ;;  %v7286_v13 = vld [vmem:[#allocation6 + $0xe0] sm:$0xff]  ;;  %v7292_v16 = vld [vmem:[#allocation6 + $0xf0] sm:$0xff]  ;;  %v7372_v46 = vld [vmem:[#allocation6 + $0x58] sm:$0xff]  ;;  %10386 = vst [vmem:[#allocation38_spill] sm:$0xff] %v7405_v8 }
 0x292   :  { %v4407_v12 = vpop.eup %4406  ;;  %2107 = vmatpush.msra.mxu1 %v7023_v58  ;;  %2272 = vmatpush.msrb.mxu2 %v7292_v16  ;;  %v7295_v58 = vld [vmem:[#allocation6 + $0xf8] sm:$0xff]  ;;  %v7402_v7 = vld [vmem:[#allocation11 + $0x1e8] sm:$0xff] }
 0x293   :  { %v7238_v2 = vadd.f32 1.0, %v4407_v12  ;;  %v4409_v4 = vpop.eup %4408  ;;  %2147 = vmatpush.msra.mxu3 %v7029_v28  ;;  %2232 = vmatpush.msrb.mxu0 %v7286_v13  ;;  %v7289_v12 = vld [vmem:[#allocation6 + $0xe8] sm:$0xff]  ;;  %v7300_v28 = vld [vmem:[#allocation6 + $0xc0] sm:$0xff] }
 0x294   :  { %v1697_v11 = vmul.f32 %v4409_v4, %v7217_v40  ;;  %vm1702_vm1 = vweird.f32 %v4409_v4  ;;  %v1727_v40 = vor.u32 1.1754944e-38, %v1726_v24  ;;  %2252 = vmatpush.msrb.mxu1 %v7289_v12  ;;  %2273 = vmatpush.msrb.mxu2 %v7308_v51 }
 0x295   :  { %v4411_v41 = vpop.eup %4410  ;;  %4412 = vrcp.f32 %v7238_v2  ;;  %vm1703_vm5 = vmor %vm1701_vm3, %vm1702_vm1  ;;  %2292 = vmatpush.msrb.mxu3 %v7295_v58  ;;  %2233 = vmatpush.msrb.mxu0 %v7300_v28  ;;  %v1746_v55 = vand.u32 2147483648, %v7238_v2  ;;  %vm1740_vm10 = vweird.f32 %v7238_v2 }
 0x296   :  { %v1716_v60 = vmul.f32 %v4411_v41, %v7221_v3  ;;  %v1698_v31 = vsub.f32 1.0, %v1697_v11  ;;  %4414 = vtanh.f32 %v1690_v36  ;;  %vm1721_vm2 = vweird.f32 %v4411_v41  ;;  %2274 = vmatpush.msrb.mxu2 %v7324_v43  ;;  %v7336_v11 = vld [vmem:[#allocation6 + $0x80] sm:$0xff] }
 0x297   :  { %vm1722_vm6 = vmor %vm1720_vm4, %vm1721_vm2  ;;  %2293 = vmatpush.msrb.mxu3 %v7311_v56  ;;  %2234 = vmatpush.msrb.mxu0 %v7316_v63  ;;  %v1744_v36 = vand.u32 2147483647, %v7238_v2 }
 0x298   :  { %v1717_v44 = vsub.f32 1.0, %v1716_v60  ;;  %v1699_v25 = vmul.f32 %v4409_v4, %v1698_v31  ;;  %2275 = vmatpush.msrb.mxu2 %v7345_v20  ;;  %v7348_v60 = vld [vmem:[#allocation6 + $0x98] sm:$0xff]  ;;  %v1747_v31 = vor.u32 1.1754944e-38, %v1746_v55  ;;  %v7441_v55 = vld [vmem:[#allocation11 + $0x190] sm:$0xff] }
 0x299   :  { %2294 = vmatpush.msrb.mxu3 %v7327_v22  ;;  %2235 = vmatpush.msrb.mxu0 %v7336_v11  ;;  %vm1745_vm12 = vcmp.eq.f32.partialorder %v1744_v36, 8.507059e+37  ;;  %10398 = vst [vmem:[#allocation48_spill] sm:$0xff] %v7441_v55  ;;  %v7444_v36 = vld [vmem:[#allocation11 + $0x198] sm:$0xff] }
 0x29a   :  { %v1718_v52 = vmul.f32 %v4411_v41, %v1717_v44  ;;  %v1700_v47 = vadd.f32 %v4409_v4, %v1699_v25  ;;  %v7351_v44 = vld [vmem:[#allocation6 + $0x60] sm:$0xff]  ;;  %2276 = vmatpush.msrb.mxu2 %v7357_v32  ;;  %10399 = vst [vmem:[#allocation27_spill] sm:$0xff] %v7444_v36 }
 0x29b   :  { %v7266_v62 = vpop.eup %4412  ;;  %2295 = vmatpush.msrb.mxu3 %v7348_v60  ;;  %2236 = vmatpush.msrb.mxu0 %v7351_v44 }
 0x29c   :  { %v1719_v5 = vadd.f32 %v4411_v41, %v1718_v52  ;;  %v1736_v54 = vmul.f32 %v7266_v62, %v7238_v2  ;;  %v1704_v39 = vsel %vm1703_vm5, %v4409_v4, %v1700_v47  ;;  %v4415_v3 = vpop.eup %4414  ;;  %vm1741_vm9 = vweird.f32 %v7266_v62  ;;  %v7319_v4 = vld [vmem:[#allocation6 + $0xa8] sm:$0xff]  ;;  %v7369_v52 = vld [vmem:[#allocation6 + $0x50] sm:$0xff]  ;;  %v7384_v47 = vld [vmem:[#allocation6 + $0x38] sm:$0xff] }
 0x29d   :  { %v1709_v23 = vsel %vm1706_vm7, %v1708_v9, %v1704_v39  ;;  %vm7332_vm11 = vmor %vm1740_vm10, %vm1741_vm9  ;;  %2296 = vmatpush.msrb.mxu3 %v7360_v37  ;;  %2237 = vmatpush.msrb.mxu0 %v7363_v48  ;;  %v7393_v9 = vld [vmem:[#allocation6 + $0x10] sm:$0xff]  ;;  %v7411_v39 = vld [vmem:[#allocation11 + $0x1c0] sm:$0xff] }
 0x29e   :  { %v1723_v45 = vsel %vm1722_vm6, %v4411_v41, %v1719_v5  ;;  %v1737_v35 = vsub.f32 1.0, %v1736_v54  ;;  %v1751_v38 = vmul.f32 %v4415_v3, %v1709_v23  ;;  %2277 = vmatpush.msrb.mxu2 %v7369_v52  ;;  %v7396_v5 = vld [vmem:[#allocation6 + $0x18] sm:$0xff]  ;;  %v7399_v54 = vld [vmem:[#allocation11 + $0x1e0] sm:$0xff]  ;;  %10388 = vst [vmem:[#allocation39_spill] sm:$0xff] %v7411_v39  ;;  %v7414_v3 = vld [vmem:[#allocation11 + $0x1c8] sm:$0xff] }
 0x29f   :  { %v1728_v15 = vsel %vm1725_vm8, %v1727_v40, %v1723_v45  ;;  %2297 = vmatpush.msrb.mxu3 %v7372_v46  ;;  %2238 = vmatpush.msrb.mxu0 %v7375_v57  ;;  %v7408_v40 = vld [vmem:[#allocation11 + $0x1f8] sm:$0xff]  ;;  %10389 = vst [vmem:[#allocation26_spill] sm:$0xff] %v7414_v3  ;;  %v7417_v23 = vld [vmem:[#allocation11 + $0x1d0] sm:$0xff]  ;;  %v7447_v41 = vld [vmem:[#allocation11 + $0x160] sm:$0xff] }
 0x2a0   :  { %v1750_v26 = vmul.f32 %v1728_v15, %v7038_v42  ;;  %v1738_v27 = vmul.f32 %v7266_v62, %v1737_v35  ;;  %v7303_v42 = vld [vmem:[#allocation6 + $0xc8] sm:$0xff]  ;;  %10387 = vst [vmem:[#allocation21_spill] sm:$0xff] %v7408_v40  ;;  %v7420_v45 = vld [vmem:[#allocation11 + $0x1d8] sm:$0xff]  ;;  %v7423_v35 = vld [vmem:[#allocation11 + $0x1a0] sm:$0xff] }
 0x2a1   :  { %2253 = vmatpush.msrb.mxu1 %v7303_v42  ;;  %2298 = vmatpush.msrb.mxu3 %v7384_v47  ;;  %10390 = vst [vmem:[#allocation40_spill] sm:$0xff] %v7417_v23  ;;  %v7426_v15 = vld [vmem:[#allocation11 + $0x1a8] sm:$0xff] }
 0x2a2   :  { %v7298_v34 = vadd.f32 %v1751_v38, %v1750_v26  ;;  %v1739_v6 = vadd.f32 %v7266_v62, %v1738_v27  ;;  %2239 = vmatpush.msrb.mxu0 %v7387_v0  ;;  %10391 = vst [vmem:[#allocation23_spill] sm:$0xff] %v7420_v45  ;;  %v7429_v38 = vld [vmem:[#allocation11 + $0x1b0] sm:$0xff]  ;;  %v7432_v26 = vld [vmem:[#allocation11 + $0x1b8] sm:$0xff]  ;;  %v7435_v27 = vld [vmem:[#allocation11 + $0x180] sm:$0xff] }
 0x2a3   :  { %2254 = vmatpush.msrb.mxu1 %v7319_v4  ;;  %2299 = vmatpush.msrb.mxu3 %v7396_v5  ;;  %10392 = vst [vmem:[#allocation42_spill] sm:$0xff] %v7423_v35 }
 0x2a4   :  { %4416 = vtanh.f32 %v7298_v34  ;;  %v1743_v2 = vsel %vm7332_vm11, %v7266_v62, %v1739_v6  ;;  %v7381_v62 = vld [vmem:[#allocation6 + $0x30] sm:$0xff]  ;;  %10393 = vst [vmem:[#allocation28_spill] sm:$0xff] %v7426_v15  ;;  %v7438_v6 = vld [vmem:[#allocation11 + $0x188] sm:$0xff] }
 0x2a5   :  { %2255 = vmatpush.msrb.mxu1 %v7339_v18  ;;  %v1748_v25 = vsel %vm1745_vm12, %v1747_v31, %v1743_v2  ;;  %2278 = vmatpush.msrb.mxu2 %v7381_v62  ;;  %10394 = vst [vmem:[#allocation44_spill] sm:$0xff] %v7429_v38  ;;  %v7450_v2 = vld [vmem:[#allocation11 + $0x168] sm:$0xff]  ;;  %v7453_v31 = vld [vmem:[#allocation11 + $0x170] sm:$0xff] }
 0x2a6   :  { %10395 = vst [vmem:[#allocation25_spill] sm:$0xff] %v7432_v26 }
 0x2a7   :  { %2256 = vmatpush.msrb.mxu1 %v7354_v17  ;;  %2279 = vmatpush.msrb.mxu2 %v7393_v9  ;;  %10396 = vst [vmem:[#allocation46_spill] sm:$0xff] %v7435_v27 }
 0x2a8   :  { %10397 = vst [vmem:[#allocation30_spill] sm:$0xff] %v7438_v6 }
 0x2a9   :  { %2257 = vmatpush.msrb.mxu1 %v7366_v50  ;;  %10400 = vst [vmem:[#allocation50_spill] sm:$0xff] %v7447_v41 }
 0x2aa   :  { %v4417_v24 = vpop.eup %4416  ;;  %10401 = vst [vmem:[#allocation33_spill] sm:$0xff] %v7450_v2 }
 0x2ab   :  { %v1754_v49 = vmul.f32 %v4417_v24, %v1748_v25  ;;  %2258 = vmatpush.msrb.mxu1 %v7378_v59  ;;  %10402 = vst [vmem:[#allocation52_spill] sm:$0xff] %v7453_v31  ;;  %v7456_v24 = vld [vmem:[#allocation11 + $0x178] sm:$0xff]  ;;  %v7459_v25 = vld [vmem:[#allocation11 + $0x140] sm:$0xff] }
 0x2ac   :  { %10403 = vst [vmem:[#allocation29_spill] sm:$0xff] %v7456_v24 }
 0x2ad   :  { %2088 = vmatmul.f32.vlgmr.msra.gmra.mxu0 %v1754_v49  ;;  %2108 = vmatmul.f32.vlgmr.msra.gmra.mxu1 %v1754_v49  ;;  %10404 = vst [vmem:[#allocation54_spill] sm:$0xff] %v7459_v25 }
 0x2ae   :  { %2128 = vmatmul.f32.vlgmr.msra.gmra.mxu2 %v1754_v49  ;;  %2148 = vmatmul.f32.vlgmr.msra.gmra.mxu3 %v1754_v49  ;;  %v7462_v49 = vld [vmem:[#allocation11 + $0x148] sm:$0xff] }
 0x2af   :  { %2259 = vmatpush.msrb.mxu1 %v7390_v1  ;;  %2304 = vmatpush.msra.mxu0 %v7399_v54  ;;  %10405 = vst [vmem:[#allocation37_spill] sm:$0xff] %v7462_v49 }
 0x2b0   :  { %2344 = vmatpush.msra.mxu2 %v7405_v8  ;;  %2364 = vmatpush.msra.mxu3 %v7408_v40 }
 0x2b1   :  { %2324 = vmatpush.msra.mxu1 %v7402_v7  ;;  %2305 = vmatpush.msra.mxu0 %v7411_v39 }
 0x2b2   :  { %2345 = vmatpush.msra.mxu2 %v7417_v23  ;;  %2365 = vmatpush.msra.mxu3 %v7420_v45 }
 0x2b3   :  { %2325 = vmatpush.msra.mxu1 %v7414_v3  ;;  %2306 = vmatpush.msra.mxu0 %v7423_v35 }
 0x2b4   :  { %2346 = vmatpush.msra.mxu2 %v7429_v38  ;;  %2366 = vmatpush.msra.mxu3 %v7432_v26 }
 0x2b5   :  { %2326 = vmatpush.msra.mxu1 %v7426_v15  ;;  %2307 = vmatpush.msra.mxu0 %v7435_v27 }
 0x2b6   :  { %2347 = vmatpush.msra.mxu2 %v7441_v55  ;;  %2367 = vmatpush.msra.mxu3 %v7444_v36  ;;  %v1797_v36 = vpop.f32.mrf.mxu1 }
 0x2b7   :  { %2327 = vmatpush.msra.mxu1 %v7438_v6  ;;  %2308 = vmatpush.msra.mxu0 %v7447_v41  ;;  %v7465_v41 = vld [vmem:[#allocation11 + $0x150] sm:$0xff]  ;;  %v1798_v55 = vadd.f32 %v1797_v36, %v10294_v19  ;;  %v1837_v6 = vpop.f32.mrf.mxu3  ;;  %v1817_v36 = vpop.f32.mrf.mxu2 }
 0x2b8   :  { %2348 = vmatpush.msra.mxu2 %v7453_v31  ;;  %2368 = vmatpush.msra.mxu3 %v7456_v24  ;;  %10406 = vst [vmem:[#allocation56_spill] sm:$0xff] %v7465_v41  ;;  %v7471_v31 = vld [vmem:[#allocation11 + $0x120] sm:$0xff]  ;;  %v7474_v24 = vld [vmem:[#allocation11 + $0x128] sm:$0xff]  ;;  %v1838_v35 = vadd.f32 %v1837_v6, %v10295_v10 }
 0x2b9   :  { %2328 = vmatpush.msra.mxu1 %v7450_v2  ;;  %2309 = vmatpush.msra.mxu0 %v7459_v25  ;;  %v7468_v2 = vld [vmem:[#allocation11 + $0x158] sm:$0xff]  ;;  %10408 = vst [vmem:[#allocation58_spill] sm:$0xff] %v7471_v31  ;;  %v7477_v25 = vld [vmem:[#allocation11 + $0x130] sm:$0xff] }
 0x2ba   :  { %2349 = vmatpush.msra.mxu2 %v7465_v41  ;;  %10407 = vst [vmem:[#allocation31_spill] sm:$0xff] %v7468_v2  ;;  %2369 = vmatpush.msra.mxu3 %v7468_v2  ;;  %v7483_v41 = vld [vmem:[#allocation11 + $0x100] sm:$0xff]  ;;  %v7486_v2 = vld [vmem:[#allocation11 + $0x108] sm:$0xff] }
 0x2bb   :  { %2329 = vmatpush.msra.mxu1 %v7462_v49  ;;  %2310 = vmatpush.msra.mxu0 %v7471_v31  ;;  %10409 = vst [vmem:[#allocation60_spill] sm:$0xff] %v7474_v24  ;;  %v7480_v49 = vld [vmem:[#allocation11 + $0x138] sm:$0xff]  ;;  %v7489_v31 = vld [vmem:[#allocation11 + $0x110] sm:$0xff] }
 0x2bc   :  { %10410 = vst [vmem:[#allocation62_spill] sm:$0xff] %v7477_v25  ;;  %2350 = vmatpush.msra.mxu2 %v7477_v25  ;;  %2370 = vmatpush.msra.mxu3 %v7480_v49  ;;  %v7495_v25 = vld [vmem:[#allocation11 + $0xe0] sm:$0xff] }
 0x2bd   :  { %2330 = vmatpush.msra.mxu1 %v7474_v24  ;;  %10411 = vst [vmem:[#allocation65_spill] sm:$0xff] %v7480_v49  ;;  %2311 = vmatpush.msra.mxu0 %v7483_v41  ;;  %v7492_v24 = vld [vmem:[#allocation11 + $0x118] sm:$0xff]  ;;  %v7498_v49 = vld [vmem:[#allocation11 + $0xe8] sm:$0xff] }
 0x2be   :  { %10412 = vst [vmem:[#allocation67_spill] sm:$0xff] %v7483_v41  ;;  %2351 = vmatpush.msra.mxu2 %v7489_v31  ;;  %2371 = vmatpush.msra.mxu3 %v7492_v24  ;;  %v7501_v41 = vld [vmem:[#allocation11 + $0xf0] sm:$0xff] }
 0x2bf   :  { %10413 = vst [vmem:[#allocation69_spill] sm:$0xff] %v7486_v2  ;;  %2331 = vmatpush.msra.mxu1 %v7486_v2  ;;  %2312 = vmatpush.msra.mxu0 %v7495_v25  ;;  %v7504_v2 = vld [vmem:[#allocation11 + $0xf8] sm:$0xff] }
 0x2c0   :  { %10414 = vst [vmem:[#allocation71_spill] sm:$0xff] %v7489_v31  ;;  %2352 = vmatpush.msra.mxu2 %v7501_v41  ;;  %2372 = vmatpush.msra.mxu3 %v7504_v2  ;;  %v7507_v31 = vld [vmem:[#allocation11 + $0xc0] sm:$0xff] }
 0x2c1   :  { %10415 = vst [vmem:[#allocation73_spill] sm:$0xff] %v7492_v24  ;;  %2332 = vmatpush.msra.mxu1 %v7498_v49  ;;  %2313 = vmatpush.msra.mxu0 %v7507_v31  ;;  %v7510_v24 = vld [vmem:[#allocation11 + $0xc8] sm:$0xff] }
 0x2c2   :  { %10416 = vst [vmem:[#allocation74_spill] sm:$0xff] %v7495_v25  ;;  %v7513_v25 = vld [vmem:[#allocation11 + $0xd0] sm:$0xff] }
 0x2c3   :  { %10417 = vst [vmem:[#allocation75_spill] sm:$0xff] %v7498_v49  ;;  %2333 = vmatpush.msra.mxu1 %v7510_v24  ;;  %2353 = vmatpush.msra.mxu2 %v7513_v25  ;;  %v7516_v49 = vld [vmem:[#allocation11 + $0xd8] sm:$0xff] }
 0x2c4   :  { %10418 = vst [vmem:[#allocation78_spill] sm:$0xff] %v7501_v41  ;;  %2373 = vmatpush.msra.mxu3 %v7516_v49  ;;  %v7519_v41 = vld [vmem:[#allocation11 + $0xa0] sm:$0xff] }
 0x2c5   :  { %10419 = vst [vmem:[#allocation79_spill] sm:$0xff] %v7504_v2  ;;  %2314 = vmatpush.msra.mxu0 %v7519_v41  ;;  %v7522_v2 = vld [vmem:[#allocation11 + $0xa8] sm:$0xff] }
 0x2c6   :  { %10420 = vst [vmem:[#allocation82_spill] sm:$0xff] %v7507_v31  ;;  %2334 = vmatpush.msra.mxu1 %v7522_v2  ;;  %v7525_v31 = vld [vmem:[#allocation11 + $0xb0] sm:$0xff] }
 0x2c7   :  { %10421 = vst [vmem:[#allocation83_spill] sm:$0xff] %v7510_v24  ;;  %2354 = vmatpush.msra.mxu2 %v7525_v31  ;;  %v7528_v24 = vld [vmem:[#allocation11 + $0xb8] sm:$0xff] }
 0x2c8   :  { %10422 = vst [vmem:[#allocation86_spill] sm:$0xff] %v7513_v25  ;;  %2374 = vmatpush.msra.mxu3 %v7528_v24  ;;  %v7531_v25 = vld [vmem:[#allocation11 + $0x80] sm:$0xff] }
 0x2c9   :  { %10423 = vst [vmem:[#allocation87_spill] sm:$0xff] %v7516_v49  ;;  %2315 = vmatpush.msra.mxu0 %v7531_v25  ;;  %v7534_v49 = vld [vmem:[#allocation11 + $0x88] sm:$0xff] }
 0x2ca   :  { %10424 = vst [vmem:[#allocation41_spill] sm:$0xff] %v7519_v41  ;;  %2335 = vmatpush.msra.mxu1 %v7534_v49  ;;  %v7537_v41 = vld [vmem:[#allocation11 + $0x90] sm:$0xff] }
 0x2cb   :  { %10425 = vst [vmem:[#allocation36_spill] sm:$0xff] %v7522_v2  ;;  %2355 = vmatpush.msra.mxu2 %v7537_v41  ;;  %v7540_v2 = vld [vmem:[#allocation11 + $0x98] sm:$0xff] }
 0x2cc   :  { %10426 = vst [vmem:[#allocation90_spill] sm:$0xff] %v7525_v31  ;;  %2375 = vmatpush.msra.mxu3 %v7540_v2  ;;  %v7543_v31 = vld [vmem:[#allocation11 + $0x60] sm:$0xff] }
 0x2cd   :  { %10427 = vst [vmem:[#allocation91_spill] sm:$0xff] %v7528_v24  ;;  %2316 = vmatpush.msra.mxu0 %v7543_v31  ;;  %v7546_v24 = vld [vmem:[#allocation11 + $0x68] sm:$0xff] }
 0x2ce   :  { %10428 = vst [vmem:[#allocation45_spill] sm:$0xff] %v7531_v25  ;;  %2336 = vmatpush.msra.mxu1 %v7546_v24  ;;  %v7549_v25 = vld [vmem:[#allocation11 + $0x70] sm:$0xff] }
 0x2cf   :  { %10429 = vst [vmem:[#allocation43_spill] sm:$0xff] %v7534_v49  ;;  %2356 = vmatpush.msra.mxu2 %v7549_v25  ;;  %v7552_v49 = vld [vmem:[#allocation11 + $0x78] sm:$0xff] }
 0x2d0   :  { %10430 = vst [vmem:[#allocation94_spill] sm:$0xff] %v7537_v41  ;;  %2376 = vmatpush.msra.mxu3 %v7552_v49  ;;  %v7555_v41 = vld [vmem:[#allocation11 + $0x40] sm:$0xff] }
 0x2d1   :  { %10431 = vst [vmem:[#allocation95_spill] sm:$0xff] %v7540_v2  ;;  %2317 = vmatpush.msra.mxu0 %v7555_v41  ;;  %v7558_v2 = vld [vmem:[#allocation11 + $0x48] sm:$0xff] }
 0x2d2   :  { %10432 = vst [vmem:[#allocation49_spill] sm:$0xff] %v7543_v31  ;;  %2337 = vmatpush.msra.mxu1 %v7558_v2  ;;  %v7561_v31 = vld [vmem:[#allocation11 + $0x50] sm:$0xff] }
 0x2d3   :  { %10433 = vst [vmem:[#allocation47_spill] sm:$0xff] %v7546_v24  ;;  %2357 = vmatpush.msra.mxu2 %v7561_v31  ;;  %v7564_v24 = vld [vmem:[#allocation11 + $0x58] sm:$0xff] }
 0x2d4   :  { %10434 = vst [vmem:[#allocation98_spill] sm:$0xff] %v7549_v25  ;;  %2377 = vmatpush.msra.mxu3 %v7564_v24  ;;  %v7567_v25 = vld [vmem:[#allocation11 + $0x20] sm:$0xff] }
 0x2d5   :  { %10435 = vst [vmem:[#allocation99_spill] sm:$0xff] %v7552_v49  ;;  %2318 = vmatpush.msra.mxu0 %v7567_v25  ;;  %v7570_v49 = vld [vmem:[#allocation11 + $0x28] sm:$0xff] }
 0x2d6   :  { %10436 = vst [vmem:[#allocation53_spill] sm:$0xff] %v7555_v41  ;;  %2338 = vmatpush.msra.mxu1 %v7570_v49  ;;  %v7573_v41 = vld [vmem:[#allocation11 + $0x30] sm:$0xff] }
 0x2d7   :  { %10437 = vst [vmem:[#allocation51_spill] sm:$0xff] %v7558_v2  ;;  %2358 = vmatpush.msra.mxu2 %v7573_v41  ;;  %v7576_v2 = vld [vmem:[#allocation11 + $0x38] sm:$0xff] }
 0x2d8   :  { %10438 = vst [vmem:[#allocation102_spill] sm:$0xff] %v7561_v31  ;;  %2378 = vmatpush.msra.mxu3 %v7576_v2  ;;  %v7579_v31 = vld [vmem:[#allocation11] sm:$0xff] }
 0x2d9   :  { %10439 = vst [vmem:[#allocation103_spill] sm:$0xff] %v7564_v24  ;;  %2319 = vmatpush.msra.mxu0 %v7579_v31  ;;  %v7582_v24 = vld [vmem:[#allocation11 + $0x8] sm:$0xff] }
 0x2da   :  { %10440 = vst [vmem:[#allocation57_spill] sm:$0xff] %v7567_v25  ;;  %2339 = vmatpush.msra.mxu1 %v7582_v24  ;;  %v7585_v25 = vld [vmem:[#allocation11 + $0x10] sm:$0xff] }
 0x2db   :  { %10441 = vst [vmem:[#allocation55_spill] sm:$0xff] %v7570_v49  ;;  %2359 = vmatpush.msra.mxu2 %v7585_v25  ;;  %v7588_v49 = vld [vmem:[#allocation11 + $0x18] sm:$0xff] }
 0x2dc   :  { %10442 = vst [vmem:[#allocation106_spill] sm:$0xff] %v7573_v41  ;;  %2379 = vmatpush.msra.mxu3 %v7588_v49  ;;  %v1777_v41 = vpop.f32.mrf.mxu0  ;;  %v1877_v27 = vpop.f32.mrf.mxu1 }
 0x2dd   :  { %10443 = vst [vmem:[#allocation107_spill] sm:$0xff] %v7576_v2  ;;  %v1778_v2 = vadd.f32 %v1777_v41, %v10293_v14  ;;  %v1921_v38 = vadd.f32 %v1877_v27, %v1798_v55  ;;  %v7607_v55 = vld [vmem:[#allocation9 + $0xf0] sm:$0xff]  ;;  %v7613_v41 = vld [vmem:[#allocation9 + $0xc0] sm:$0xff] }
 0x2de   :  { %10444 = vst [vmem:[#allocation61_spill] sm:$0xff] %v7579_v31 }
 0x2df   :  { %10445 = vst [vmem:[#allocation59_spill] sm:$0xff] %v7582_v24  ;;  %v4237_v15 = vmul.f32 -1.442695, %v1921_v38  ;;  %v7604_v38 = vld [vmem:[#allocation9 + $0xe8] sm:$0xff] }
 0x2e0   :  { %10446 = vst [vmem:[#allocation110_spill] sm:$0xff] %v7585_v25  ;;  %v4247_v25 = vld [vmem:[%s9242_s0 + $0x8] sm:$0x3] }
 0x2e1   :  { %10447 = vst [vmem:[#allocation111_spill] sm:$0xff] %v7588_v49  ;;  %4248 = vmatmul.msk.f32.vlgmr.msrb.gmra.mxu0 %vm355_vm0, %v4247_v25  ;;  %4249 = vmatmul.msk.f32.vlgmr.msrb.gmra.mxu1 %vm355_vm0, %v4247_v25 }
 0x2e2   :  { %4250 = vmatmul.msk.f32.vlgmr.msrb.gmra.mxu2 %vm355_vm0, %v4247_v25  ;;  %4251 = vmatmul.msk.f32.vlgmr.msrb.gmra.mxu3 %vm355_vm0, %v4247_v25  ;;  %10449 = vst [vmem:[#allocation63_spill] sm:$0xff] %v7604_v38 }
 0x2e3   :  { %v1917_v27 = vpop.f32.mrf.mxu3  ;;  %2484 = vmatpush.msrb.mxu1 %v7604_v38  ;;  %10450 = vst [vmem:[#allocation114_spill] sm:$0xff] %v7607_v55  ;;  %2504 = vmatpush.msrb.mxu2 %v7607_v55  ;;  %v7641_v55 = vld [vmem:[#allocation9 + $0x80] sm:$0xff]  ;;  %v7688_v38 = vld [vmem:[#allocation9 + $0x30] sm:$0xff] }
 0x2e4   :  { %v1857_v31 = vpop.f32.mrf.mxu0  ;;  %v1923_v6 = vadd.f32 %v1917_v27, %v1838_v35  ;;  %10452 = vst [vmem:[#allocation68_spill] sm:$0xff] %v7613_v41  ;;  %v7622_v35 = vld [vmem:[#allocation9 + $0xd8] sm:$0xff]  ;;  %v7625_v27 = vld [vmem:[#allocation9 + $0xa0] sm:$0xff] }
 0x2e5   :  { %v1920_v26 = vadd.f32 %v1857_v31, %v1778_v2  ;;  %v7616_v2 = vld [vmem:[#allocation9 + $0xc8] sm:$0xff]  ;;  %10455 = vst [vmem:[#allocation119_spill] sm:$0xff] %v7622_v35 }
 0x2e6   :  { %10453 = vst [vmem:[#allocation66_spill] sm:$0xff] %v7616_v2  ;;  %2485 = vmatpush.msrb.mxu1 %v7616_v2  ;;  %v4238_v31 = vmul.f32 -1.442695, %v1923_v6  ;;  %v7633_v6 = vld [vmem:[#allocation9 + $0xb0] sm:$0xff] }
 0x2e7   :  { %v4236_v24 = vmul.f32 -1.442695, %v1920_v26  ;;  %v7601_v26 = vld [vmem:[#allocation9 + $0xe0] sm:$0xff]  ;;  %10456 = vst [vmem:[#allocation70_spill] sm:$0xff] %v7625_v27 }
 0x2e8   :  { %10448 = vst [vmem:[#allocation64_spill] sm:$0xff] %v7601_v26  ;;  %2464 = vmatpush.msrb.mxu0 %v7601_v26 }
 0x2e9   :  { %4418 = vpow2.f32 %v4236_v24  ;;  %v7619_v24 = vld [vmem:[#allocation9 + $0xd0] sm:$0xff]  ;;  %10458 = vst [vmem:[#allocation122_spill] sm:$0xff] %v7633_v6 }
 0x2ea   :  { %4420 = vpow2.f32 %v4237_v15  ;;  %v7610_v15 = vld [vmem:[#allocation9 + $0xf8] sm:$0xff]  ;;  %2465 = vmatpush.msrb.mxu0 %v7613_v41  ;;  %10454 = vst [vmem:[#allocation118_spill] sm:$0xff] %v7619_v24  ;;  %2505 = vmatpush.msrb.mxu2 %v7619_v24 }
 0x2eb   :  { %10451 = vst [vmem:[#allocation115_spill] sm:$0xff] %v7610_v15  ;;  %2524 = vmatpush.msrb.mxu3 %v7610_v15  ;;  %v7628_v15 = vld [vmem:[#allocation9 + $0xa8] sm:$0xff]  ;;  %4422 = vpow2.f32 %v4238_v31  ;;  %v7636_v24 = vld [vmem:[#allocation9 + $0xb8] sm:$0xff]  ;;  %v7648_v31 = vld [vmem:[#allocation9 + $0x90] sm:$0xff] }
 0x2ec   :  { %2466 = vmatpush.msrb.mxu0 %v7625_v27  ;;  %10457 = vst [vmem:[#allocation72_spill] sm:$0xff] %v7628_v15  ;;  %2486 = vmatpush.msrb.mxu1 %v7628_v15  ;;  %v7644_v27 = vld [vmem:[#allocation9 + $0x88] sm:$0xff]  ;;  %v7674_v15 = vld [vmem:[#allocation9 + $0x50] sm:$0xff] }
 0x2ed   :  { %2525 = vmatpush.msrb.mxu3 %v7622_v35  ;;  %2506 = vmatpush.msrb.mxu2 %v7633_v6  ;;  %10459 = vst [vmem:[#allocation123_spill] sm:$0xff] %v7636_v24  ;;  %v7668_v6 = vld [vmem:[#allocation9 + $0x40] sm:$0xff] }
 0x2ee   :  { %10460 = vst [vmem:[#allocation76_spill] sm:$0xff] %v7641_v55  ;;  %2467 = vmatpush.msrb.mxu0 %v7641_v55  ;;  %2487 = vmatpush.msrb.mxu1 %v7644_v27  ;;  %v7658_v55 = vld [vmem:[#allocation9 + $0x68] sm:$0xff] }
 0x2ef   :  { %v4419_v25 = vpop.eup %4418  ;;  %2526 = vmatpush.msrb.mxu3 %v7636_v24  ;;  %10461 = vst [vmem:[#allocation77_spill] sm:$0xff] %v7644_v27  ;;  %2507 = vmatpush.msrb.mxu2 %v7648_v31  ;;  %v1818_v27 = vadd.f32 %v1817_v36, %v10314_v53  ;;  %v7662_v24 = vld [vmem:[#allocation9 + $0x70] sm:$0xff]  ;;  %v7677_v36 = vld [vmem:[#allocation9 + $0x58] sm:$0xff] }
 0x2f0   :  { %v4421_v41 = vpop.eup %4420  ;;  %v7631_v2 = vadd.f32 1.0, %v4419_v25  ;;  %10462 = vst [vmem:[#allocation126_spill] sm:$0xff] %v7648_v31  ;;  %v7651_v25 = vld [vmem:[#allocation9 + $0x98] sm:$0xff]  ;;  %2488 = vmatpush.msrb.mxu1 %v7658_v55 }
 0x2f1   :  { %v7639_v35 = vadd.f32 1.0, %v4421_v41  ;;  %10463 = vst [vmem:[#allocation80_spill] sm:$0xff] %v7651_v25  ;;  %2527 = vmatpush.msrb.mxu3 %v7651_v25  ;;  %v7655_v41 = vld [vmem:[#allocation9 + $0x60] sm:$0xff]  ;;  %2508 = vmatpush.msrb.mxu2 %v7662_v24  ;;  %v7665_v31 = vld [vmem:[#allocation9 + $0x78] sm:$0xff]  ;;  %v1897_v25 = vpop.f32.mrf.mxu2 }
 0x2f2   :  { %4424 = vrcp.f32 %v7631_v2  ;;  %10464 = vst [vmem:[#allocation81_spill] sm:$0xff] %v7655_v41  ;;  %2468 = vmatpush.msrb.mxu0 %v7655_v41  ;;  %v7671_v41 = vld [vmem:[#allocation9 + $0x48] sm:$0xff]  ;;  %v1922_v53 = vadd.f32 %v1897_v25, %v1818_v27  ;;  %v7703_v25 = vld [vmem:[#allocation9 + $0x10] sm:$0xff]  ;;  %v1939_v10 = vand.u32 2147483648, %v7631_v2  ;;  %vm1933_vm15 = vweird.f32 %v7631_v2 }
 0x2f3   :  { %4426 = vrcp.f32 %v7639_v35  ;;  %10465 = vst [vmem:[#allocation129_spill] sm:$0xff] %v7658_v55  ;;  %2528 = vmatpush.msrb.mxu3 %v7665_v31  ;;  %2489 = vmatpush.msrb.mxu1 %v7671_v41  ;;  %v4423_v55 = vpop.eup %4422  ;;  %v1956_v49 = vand.u32 2147483647, %v7639_v35  ;;  %vm1952_vm1 = vweird.f32 %v7639_v35 }
 0x2f4   :  { %10466 = vst [vmem:[#allocation84_spill] sm:$0xff] %v7662_v24  ;;  %2469 = vmatpush.msrb.mxu0 %v7668_v6  ;;  %2509 = vmatpush.msrb.mxu2 %v7674_v15  ;;  %v7680_v24 = vadd.f32 1.0, %v4423_v55 }
 0x2f5   :  { %10467 = vst [vmem:[#allocation85_spill] sm:$0xff] %v7665_v31  ;;  %2529 = vmatpush.msrb.mxu3 %v7677_v36  ;;  %v7682_v31 = vld [vmem:[#allocation9 + $0x20] sm:$0xff]  ;;  %vm1957_vm5 = vcmp.eq.f32.partialorder %v1956_v49, 8.507059e+37 }
 0x2f6   :  { %10468 = vst [vmem:[#allocation132_spill] sm:$0xff] %v7668_v6  ;;  %2470 = vmatpush.msrb.mxu0 %v7682_v31  ;;  %v7685_v6 = vld [vmem:[#allocation9 + $0x28] sm:$0xff]  ;;  %2510 = vmatpush.msrb.mxu2 %v7688_v38  ;;  %4428 = vrcp.f32 %v7680_v24  ;;  %vm1972_vm7 = vweird.f32 %v7680_v24 }
 0x2f7   :  { %10469 = vst [vmem:[#allocation88_spill] sm:$0xff] %v7671_v41  ;;  %2490 = vmatpush.msrb.mxu1 %v7685_v6  ;;  %4430 = vtanh.f32 %v1922_v53 }
 0x2f8   :  { %10470 = vst [vmem:[#allocation89_spill] sm:$0xff] %v7674_v15  ;;  %v4425_v41 = vpop.eup %4424  ;;  %v7691_v15 = vld [vmem:[#allocation9 + $0x38] sm:$0xff]  ;;  %2511 = vmatpush.msrb.mxu2 %v7703_v25 }
 0x2f9   :  { %10471 = vst [vmem:[#allocation133_spill] sm:$0xff] %v7677_v36  ;;  %2530 = vmatpush.msrb.mxu3 %v7691_v15  ;;  %v4427_v55 = vpop.eup %4426  ;;  %v1929_v36 = vmul.f32 %v4425_v41, %v7631_v2  ;;  %vm1934_vm13 = vweird.f32 %v4425_v41 }
 0x2fa   :  { %10472 = vst [vmem:[#allocation134_spill] sm:$0xff] %v7682_v31  ;;  %v7696_v31 = vld [vmem:[#allocation9] sm:$0xff]  ;;  %v1948_v27 = vmul.f32 %v4427_v55, %v7639_v35  ;;  %vm1953_vm14 = vweird.f32 %v4427_v55  ;;  %vm1935_vm2 = vmor %vm1933_vm15, %vm1934_vm13 }
 0x2fb   :  { %10473 = vst [vmem:[#allocation92_spill] sm:$0xff] %v7685_v6  ;;  %2471 = vmatpush.msrb.mxu0 %v7696_v31  ;;  %v7699_v6 = vld [vmem:[#allocation9 + $0x8] sm:$0xff]  ;;  %vm1954_vm3 = vmor %vm1952_vm1, %vm1953_vm14 }
 0x2fc   :  { %10474 = vst [vmem:[#allocation93_spill] sm:$0xff] %v7688_v38  ;;  %2491 = vmatpush.msrb.mxu1 %v7699_v6  ;;  %v1930_v38 = vsub.f32 1.0, %v1929_v36  ;;  %v1949_v26 = vsub.f32 1.0, %v1948_v27  ;;  %v1940_v36 = vor.u32 1.1754944e-38, %v1939_v10 }
 0x2fd   :  { %10475 = vst [vmem:[#allocation96_spill] sm:$0xff] %v7691_v15  ;;  %v7706_v15 = vld [vmem:[#allocation9 + $0x18] sm:$0xff] }
 0x2fe   :  { %10476 = vst [vmem:[#allocation97_spill] sm:$0xff] %v7696_v31  ;;  %2531 = vmatpush.msrb.mxu3 %v7706_v15  ;;  %v1958_v31 = vand.u32 2147483648, %v7639_v35  ;;  %v1931_v19 = vmul.f32 %v4425_v41, %v1930_v38  ;;  %v1950_v14 = vmul.f32 %v4427_v55, %v1949_v26 }
 0x2ff   :  { %10477 = vst [vmem:[#allocation100_spill] sm:$0xff] %v7699_v6  ;;  %v1937_v6 = vand.u32 2147483647, %v7631_v2 }
 0x300   :  { %10478 = vst [vmem:[#allocation101_spill] sm:$0xff] %v7703_v25  ;;  %v4429_v25 = vpop.eup %4428  ;;  %v1932_v45 = vadd.f32 %v4425_v41, %v1931_v19  ;;  %v1951_v27 = vadd.f32 %v4427_v55, %v1950_v14  ;;  %v1959_v38 = vor.u32 1.1754944e-38, %v1958_v31  ;;  %v1978_v14 = vand.u32 2147483648, %v7680_v24  ;;  %v7726_v31 = vld [vmem:[#allocation12 + $0x1e8] sm:$0xff] }
 0x301   :  { %10479 = vst [vmem:[#allocation104_spill] sm:$0xff] %v7706_v15  ;;  %v1968_v53 = vmul.f32 %v4429_v25, %v7680_v24  ;;  %vm1938_vm4 = vcmp.eq.f32.partialorder %v1937_v6, 8.507059e+37  ;;  %v4431_v23 = vpop.eup %4430  ;;  %vm1973_vm6 = vweird.f32 %v4429_v25  ;;  %v7723_v6 = vld [vmem:[#allocation12 + $0x1e0] sm:$0xff] }
 0x302   :  { %v1936_v15 = vsel %vm1935_vm2, %v4425_v41, %v1932_v45  ;;  %v1955_v3 = vsel %vm1954_vm3, %v4427_v55, %v1951_v27  ;;  %v1976_v45 = vand.u32 2147483647, %v7680_v24  ;;  %vm1974_vm8 = vmor %vm1972_vm7, %vm1973_vm6  ;;  %v7731_v55 = vld [vmem:[#allocation12 + $0x1f0] sm:$0xff] }
 0x303   :  { %v1941_v26 = vsel %vm1938_vm4, %v1940_v36, %v1936_v15  ;;  %v1969_v39 = vsub.f32 1.0, %v1968_v53  ;;  %v1960_v40 = vsel %vm1957_vm5, %v1959_v38, %v1955_v3  ;;  %v7737_v53 = vld [vmem:[#allocation12 + $0x1c0] sm:$0xff]  ;;  %v7740_v38 = vld [vmem:[#allocation12 + $0x1c8] sm:$0xff] }
 0x304   :  { %v1983_v19 = vmul.f32 %v4431_v23, %v1941_v26  ;;  %v1982_v2 = vmul.f32 %v1960_v40, %v7183_v21  ;;  %v2009_v49 = vpop.f32.mrf.mxu0  ;;  %v1979_v23 = vor.u32 1.1754944e-38, %v1978_v14  ;;  %vm1977_vm9 = vcmp.eq.f32.partialorder %v1976_v45, 8.507059e+37  ;;  %10480 = vst [vmem:[#allocation105_spill] sm:$0xff] %v7740_v38  ;;  %v7749_v14 = vld [vmem:[#allocation12 + $0x1a0] sm:$0xff]  ;;  %v7752_v45 = vld [vmem:[#allocation12 + $0x1a8] sm:$0xff] }
 0x305   :  { %v1970_v8 = vmul.f32 %v4429_v25, %v1969_v39  ;;  %v2029_v15 = vpop.f32.mrf.mxu1  ;;  %v2010_v24 = vadd.f32 %v2009_v49, %v6198_v30  ;;  %10483 = vst [vmem:[#allocation112_spill] sm:$0xff] %v7749_v14 }
 0x306   :  { %v7717_v35 = vadd.f32 %v1983_v19, %v1982_v2  ;;  %v2030_v41 = vadd.f32 %v2029_v15, %v6203_v33  ;;  %v7743_v2 = vld [vmem:[#allocation12 + $0x1d0] sm:$0xff]  ;;  %10484 = vst [vmem:[#allocation113_spill] sm:$0xff] %v7752_v45 }
 0x307   :  { %v1971_v10 = vadd.f32 %v4429_v25, %v1970_v8  ;;  %10481 = vst [vmem:[#allocation108_spill] sm:$0xff] %v7743_v2 }
 0x308   :  { %4432 = vtanh.f32 %v7717_v35 }
 0x309   :  { %v1975_v3 = vsel %vm1974_vm8, %v4429_v25, %v1971_v10  ;;  %v7734_v25 = vld [vmem:[#allocation12 + $0x1f8] sm:$0xff] }
 0x30a   :  { %v1980_v40 = vsel %vm1977_vm9, %v1979_v23, %v1975_v3  ;;  %v7746_v10 = vld [vmem:[#allocation12 + $0x1d8] sm:$0xff]  ;;  %v7755_v3 = vld [vmem:[#allocation12 + $0x1b0] sm:$0xff] }
 0x30b   :  { %10482 = vst [vmem:[#allocation109_spill] sm:$0xff] %v7746_v10  ;;  %v7758_v23 = vld [vmem:[#allocation12 + $0x1b8] sm:$0xff] }
 0x30c   :  { %v2069_v8 = vpop.f32.mrf.mxu3  ;;  %10485 = vst [vmem:[#allocation116_spill] sm:$0xff] %v7755_v3 }
 0x30d   :  { %10486 = vst [vmem:[#allocation117_spill] sm:$0xff] %v7758_v23 }
 0x30e   :  { %v4433_v21 = vpop.eup %4432 }
 0x30f   :  { %v1986_v39 = vmul.f32 %v4433_v21, %v1980_v40  ;;  %v2070_v21 = vadd.f32 %v2069_v8, %v10336_v61  ;;  %v7762_v40 = vld [vmem:[#allocation12 + $0x180] sm:$0xff]  ;;  %v7777_v8 = vld [vmem:[#allocation12 + $0x168] sm:$0xff] }
 0x310   :  { %10487 = vst [vmem:[#allocation120_spill] sm:$0xff] %v7762_v40 }
 0x311   :  { %2320 = vmatmul.f32.vlgmr.msra.gmra.mxu0 %v1986_v39  ;;  %2340 = vmatmul.f32.vlgmr.msra.gmra.mxu1 %v1986_v39  ;;  %10492 = vst [vmem:[#allocation128_spill] sm:$0xff] %v7777_v8 }
 0x312   :  { %2360 = vmatmul.f32.vlgmr.msra.gmra.mxu2 %v1986_v39  ;;  %2380 = vmatmul.f32.vlgmr.msra.gmra.mxu3 %v1986_v39  ;;  %v7765_v39 = vld [vmem:[#allocation12 + $0x188] sm:$0xff] }
 0x313   :  { %2536 = vmatpush.msra.mxu0 %v7723_v6  ;;  %2556 = vmatpush.msra.mxu1 %v7726_v31  ;;  %10488 = vst [vmem:[#allocation121_spill] sm:$0xff] %v7765_v39 }
 0x314   :  { %2576 = vmatpush.msra.mxu2 %v7731_v55  ;;  %2596 = vmatpush.msra.mxu3 %v7734_v25 }
 0x315   :  { %2537 = vmatpush.msra.mxu0 %v7737_v53  ;;  %2557 = vmatpush.msra.mxu1 %v7740_v38  ;;  %v7965_v38 = vld [vmem:[#allocation12] sm:$0xff] }
 0x316   :  { %2577 = vmatpush.msra.mxu2 %v7743_v2  ;;  %2597 = vmatpush.msra.mxu3 %v7746_v10 }
 0x317   :  { %2538 = vmatpush.msra.mxu0 %v7749_v14  ;;  %2558 = vmatpush.msra.mxu1 %v7752_v45  ;;  %v7941_v14 = vld [vmem:[#allocation12 + $0x20] sm:$0xff] }
 0x318   :  { %2578 = vmatpush.msra.mxu2 %v7755_v3  ;;  %2598 = vmatpush.msra.mxu3 %v7758_v23  ;;  %v7915_v3 = vld [vmem:[#allocation12 + $0x40] sm:$0xff]  ;;  %10533 = vst [vmem:[#allocation171_spill] sm:$0xff] %v7941_v14 }
 0x319   :  { %2539 = vmatpush.msra.mxu0 %v7762_v40  ;;  %2559 = vmatpush.msra.mxu1 %v7765_v39  ;;  %v7798_v39 = vld [vmem:[#allocation12 + $0x120] sm:$0xff]  ;;  %10527 = vst [vmem:[#allocation167_spill] sm:$0xff] %v7915_v3 }
 0x31a   :  { %10499 = vst [vmem:[#allocation139_spill] sm:$0xff] %v7798_v39  ;;  %v7872_v40 = vld [vmem:[#allocation12 + $0x80] sm:$0xff] }
 0x31b   :  { %2560 = vmatpush.msra.mxu1 %v7777_v8  ;;  %v7792_v8 = vld [vmem:[#allocation12 + $0x150] sm:$0xff]  ;;  %10519 = vst [vmem:[#allocation159_spill] sm:$0xff] %v7872_v40 }
 0x31c   :  { %10497 = vst [vmem:[#allocation137_spill] sm:$0xff] %v7792_v8 }
 0x32a   :  { %v2089_v36 = vpop.f32.mrf.mxu0  ;;  %v2109_v27 = vpop.f32.mrf.mxu1 }
 0x32b   :  { %v2152_v26 = vadd.f32 %v2089_v36, %v2010_v24  ;;  %v2153_v19 = vadd.f32 %v2109_v27, %v2030_v41  ;;  %v7768_v24 = vld [vmem:[#allocation12 + $0x190] sm:$0xff]  ;;  %v7771_v41 = vld [vmem:[#allocation12 + $0x198] sm:$0xff]  ;;  %v7774_v36 = vld [vmem:[#allocation12 + $0x160] sm:$0xff]  ;;  %v2049_v27 = vpop.f32.mrf.mxu2 }
 0x32c   :  { %10489 = vst [vmem:[#allocation124_spill] sm:$0xff] %v7768_v24  ;;  %2579 = vmatpush.msra.mxu2 %v7768_v24  ;;  %2599 = vmatpush.msra.mxu3 %v7771_v41  ;;  %v7795_v24 = vld [vmem:[#allocation12 + $0x158] sm:$0xff] }
 0x32d   :  { %v4244_v49 = vmul.f32 -1.442695, %v2152_v26  ;;  %v4245_v15 = vmul.f32 -1.442695, %v2153_v19  ;;  %10490 = vst [vmem:[#allocation125_spill] sm:$0xff] %v7771_v41  ;;  %2540 = vmatpush.msra.mxu0 %v7774_v36  ;;  %v7780_v19 = vld [vmem:[#allocation12 + $0x170] sm:$0xff] }
 0x32e   :  { %10491 = vst [vmem:[#allocation127_spill] sm:$0xff] %v7774_v36  ;;  %2580 = vmatpush.msra.mxu2 %v7780_v19  ;;  %v7789_v36 = vld [vmem:[#allocation12 + $0x148] sm:$0xff] }
 0x32f   :  { %4434 = vpow2.f32 %v4244_v49  ;;  %10493 = vst [vmem:[#allocation130_spill] sm:$0xff] %v7780_v19  ;;  %v7783_v49 = vld [vmem:[#allocation12 + $0x178] sm:$0xff]  ;;  %2561 = vmatpush.msra.mxu1 %v7789_v36 }
 0x330   :  { %4436 = vpow2.f32 %v4245_v15  ;;  %10494 = vst [vmem:[#allocation131_spill] sm:$0xff] %v7783_v49  ;;  %2600 = vmatpush.msra.mxu3 %v7783_v49  ;;  %v7786_v15 = vld [vmem:[#allocation12 + $0x140] sm:$0xff]  ;;  %2581 = vmatpush.msra.mxu2 %v7792_v8  ;;  %v7820_v49 = vld [vmem:[#allocation12 + $0x110] sm:$0xff] }
 0x331   :  { %v2149_v26 = vpop.f32.mrf.mxu3  ;;  %10495 = vst [vmem:[#allocation135_spill] sm:$0xff] %v7786_v15  ;;  %2541 = vmatpush.msra.mxu0 %v7786_v15  ;;  %v7804_v15 = vld [vmem:[#allocation12 + $0x130] sm:$0xff] }
 0x332   :  { %v2155_v41 = vadd.f32 %v2149_v26, %v2070_v21  ;;  %10496 = vst [vmem:[#allocation136_spill] sm:$0xff] %v7789_v36  ;;  %2601 = vmatpush.msra.mxu3 %v7795_v24  ;;  %v7801_v21 = vld [vmem:[#allocation12 + $0x128] sm:$0xff]  ;;  %2582 = vmatpush.msra.mxu2 %v7804_v15  ;;  %v7807_v36 = vld [vmem:[#allocation12 + $0x138] sm:$0xff] }
 0x333   :  { %10498 = vst [vmem:[#allocation138_spill] sm:$0xff] %v7795_v24  ;;  %2542 = vmatpush.msra.mxu0 %v7798_v39  ;;  %2562 = vmatpush.msra.mxu1 %v7801_v21  ;;  %v7815_v39 = vld [vmem:[#allocation12 + $0x108] sm:$0xff] }
 0x334   :  { %v4246_v19 = vmul.f32 -1.442695, %v2155_v41  ;;  %10500 = vst [vmem:[#allocation140_spill] sm:$0xff] %v7801_v21  ;;  %2602 = vmatpush.msra.mxu3 %v7807_v36  ;;  %v7812_v41 = vld [vmem:[#allocation12 + $0x100] sm:$0xff]  ;;  %2583 = vmatpush.msra.mxu2 %v7820_v49 }
 0x335   :  { %v4435_v26 = vpop.eup %4434  ;;  %10501 = vst [vmem:[#allocation141_spill] sm:$0xff] %v7804_v15  ;;  %2543 = vmatpush.msra.mxu0 %v7812_v41  ;;  %2563 = vmatpush.msra.mxu1 %v7815_v39  ;;  %v7823_v15 = vld [vmem:[#allocation12 + $0x118] sm:$0xff] }
 0x336   :  { %10502 = vst [vmem:[#allocation142_spill] sm:$0xff] %v7807_v36  ;;  %v4437_v8 = vpop.eup %4436  ;;  %v7810_v24 = vadd.f32 1.0, %v4435_v26  ;;  %4438 = vpow2.f32 %v4246_v19  ;;  %2603 = vmatpush.msra.mxu3 %v7823_v15  ;;  %v7827_v19 = vld [vmem:[#allocation12 + $0xe0] sm:$0xff]  ;;  %v7830_v26 = vld [vmem:[#allocation12 + $0xe8] sm:$0xff] }
 0x337   :  { %10503 = vst [vmem:[#allocation143_spill] sm:$0xff] %v7812_v41  ;;  %v7818_v21 = vadd.f32 1.0, %v4437_v8  ;;  %2544 = vmatpush.msra.mxu0 %v7827_v19  ;;  %2564 = vmatpush.msra.mxu1 %v7830_v26  ;;  %v7834_v8 = vld [vmem:[#allocation12 + $0xf0] sm:$0xff]  ;;  %v7853_v36 = vld [vmem:[#allocation12 + $0xa0] sm:$0xff] }
 0x338   :  { %10504 = vst [vmem:[#allocation144_spill] sm:$0xff] %v7815_v39  ;;  %4440 = vrcp.f32 %v7810_v24  ;;  %2584 = vmatpush.msra.mxu2 %v7834_v8  ;;  %v7841_v39 = vld [vmem:[#allocation12 + $0xc0] sm:$0xff]  ;;  %v7847_v41 = vld [vmem:[#allocation12 + $0xd0] sm:$0xff]  ;;  %v2171_v61 = vand.u32 2147483648, %v7810_v24  ;;  %vm2165_vm12 = vweird.f32 %v7810_v24 }
 0x339   :  { %10505 = vst [vmem:[#allocation145_spill] sm:$0xff] %v7820_v49  ;;  %4442 = vrcp.f32 %v7818_v21  ;;  %v7837_v49 = vld [vmem:[#allocation12 + $0xf8] sm:$0xff]  ;;  %2545 = vmatpush.msra.mxu0 %v7841_v39  ;;  %v2190_v23 = vand.u32 2147483648, %v7818_v21  ;;  %vm2184_vm13 = vweird.f32 %v7818_v21 }
 0x33a   :  { %10506 = vst [vmem:[#allocation146_spill] sm:$0xff] %v7823_v15  ;;  %2604 = vmatpush.msra.mxu3 %v7837_v49  ;;  %v2050_v15 = vadd.f32 %v2049_v27, %v10361_v29  ;;  %2585 = vmatpush.msra.mxu2 %v7847_v41  ;;  %v7856_v27 = vld [vmem:[#allocation12 + $0xa8] sm:$0xff] }
 0x33b   :  { %10507 = vst [vmem:[#allocation147_spill] sm:$0xff] %v7827_v19  ;;  %v7844_v19 = vld [vmem:[#allocation12 + $0xc8] sm:$0xff]  ;;  %2546 = vmatpush.msra.mxu0 %v7853_v36 }
 0x33c   :  { %10508 = vst [vmem:[#allocation148_spill] sm:$0xff] %v7830_v26  ;;  %2565 = vmatpush.msra.mxu1 %v7844_v19  ;;  %v2129_v26 = vpop.f32.mrf.mxu2 }
 0x33d   :  { %10509 = vst [vmem:[#allocation149_spill] sm:$0xff] %v7834_v8  ;;  %v7850_v8 = vld [vmem:[#allocation12 + $0xd8] sm:$0xff]  ;;  %2547 = vmatpush.msra.mxu0 %v7872_v40 }
 0x33e   :  { %10510 = vst [vmem:[#allocation150_spill] sm:$0xff] %v7837_v49  ;;  %2605 = vmatpush.msra.mxu3 %v7850_v8  ;;  %v4439_v49 = vpop.eup %4438  ;;  %2566 = vmatpush.msra.mxu1 %v7856_v27 }
 0x33f   :  { %10511 = vst [vmem:[#allocation151_spill] sm:$0xff] %v7841_v39  ;;  %v7859_v39 = vadd.f32 1.0, %v4439_v49  ;;  %v7870_v29 = vpop.eup %4440  ;;  %v7875_v49 = vld [vmem:[#allocation12 + $0x88] sm:$0xff] }
 0x340   :  { %10512 = vst [vmem:[#allocation152_spill] sm:$0xff] %v7844_v19  ;;  %v7861_v19 = vld [vmem:[#allocation12 + $0xb0] sm:$0xff]  ;;  %2567 = vmatpush.msra.mxu1 %v7875_v49  ;;  %vm2166_vm10 = vweird.f32 %v7870_v29 }
 0x341   :  { %10513 = vst [vmem:[#allocation153_spill] sm:$0xff] %v7847_v41  ;;  %2586 = vmatpush.msra.mxu2 %v7861_v19  ;;  %v7864_v41 = vld [vmem:[#allocation12 + $0xb8] sm:$0xff]  ;;  %4444 = vrcp.f32 %v7859_v39  ;;  %vm7934_vm14 = vmor %vm2165_vm12, %vm2166_vm10  ;;  %vm2204_vm4 = vweird.f32 %v7859_v39 }
 0x342   :  { %10514 = vst [vmem:[#allocation154_spill] sm:$0xff] %v7850_v8  ;;  %2606 = vmatpush.msra.mxu3 %v7864_v41  ;;  %v4255_v8 = vld [vmem:[%s9243_s1 + $0x6] sm:$0x3] }
 0x343   :  { %10515 = vst [vmem:[#allocation155_spill] sm:$0xff] %v7853_v36  ;;  %v2154_v36 = vadd.f32 %v2129_v26, %v2050_v15  ;;  %v7886_v15 = vld [vmem:[#allocation12 + $0x98] sm:$0xff]  ;;  %4256 = vmatmul.msk.f32.vlgmr.msrb.gmra.mxu0 %vm355_vm0, %v4255_v8  ;;  %4257 = vmatmul.msk.f32.vlgmr.msrb.gmra.mxu1 %vm355_vm0, %v4255_v8 }
 0x344   :  { %10516 = vst [vmem:[#allocation156_spill] sm:$0xff] %v7856_v27  ;;  %v7883_v27 = vld [vmem:[#allocation12 + $0x90] sm:$0xff]  ;;  %2607 = vmatpush.msra.mxu3 %v7886_v15  ;;  %4258 = vmatmul.msk.f32.vlgmr.msrb.gmra.mxu2 %vm355_vm0, %v4255_v8 }
 0x345   :  { %10517 = vst [vmem:[#allocation157_spill] sm:$0xff] %v7861_v19  ;;  %v7878_v19 = vpop.eup %4442  ;;  %2587 = vmatpush.msra.mxu2 %v7883_v27  ;;  %4259 = vmatmul.msk.f32.vlgmr.msrb.gmra.mxu3 %vm355_vm0, %v4255_v8  ;;  %4446 = vtanh.f32 %v2154_v36  ;;  %v2169_v8 = vand.u32 2147483647, %v7810_v24  ;;  %v7909_v36 = vld [vmem:[#allocation12 + $0x78] sm:$0xff] }
 0x346   :  { %10518 = vst [vmem:[#allocation158_spill] sm:$0xff] %v7864_v41  ;;  %v2161_v41 = vmul.f32 %v7870_v29, %v7810_v24  ;;  %v2180_v26 = vmul.f32 %v7878_v19, %v7818_v21  ;;  %2608 = vmatpush.msra.mxu3 %v7909_v36  ;;  %vm2185_vm11 = vweird.f32 %v7878_v19 }
 0x347   :  { %10520 = vst [vmem:[#allocation160_spill] sm:$0xff] %v7875_v49  ;;  %v7921_v45 = vpop.eup %4444  ;;  %vm7949_vm15 = vmor %vm2184_vm13, %vm2185_vm11  ;;  %vm2170_vm1 = vcmp.eq.f32.partialorder %v2169_v8, 8.507059e+37 }
 0x348   :  { %10521 = vst [vmem:[#allocation161_spill] sm:$0xff] %v7883_v27  ;;  %v2162_v49 = vsub.f32 1.0, %v2161_v41  ;;  %v2181_v40 = vsub.f32 1.0, %v2180_v26  ;;  %v7896_v27 = vld [vmem:[#allocation12 + $0x60] sm:$0xff]  ;;  %v7906_v26 = vld [vmem:[#allocation12 + $0x70] sm:$0xff]  ;;  %v2200_v24 = vmul.f32 %v7921_v45, %v7859_v39  ;;  %vm2205_vm3 = vweird.f32 %v7921_v45 }
 0x349   :  { %10522 = vst [vmem:[#allocation162_spill] sm:$0xff] %v7886_v15  ;;  %2548 = vmatpush.msra.mxu0 %v7896_v27  ;;  %v7899_v15 = vld [vmem:[#allocation12 + $0x68] sm:$0xff]  ;;  %2588 = vmatpush.msra.mxu2 %v7906_v26  ;;  %vm2206_vm5 = vmor %vm2204_vm4, %vm2205_vm3 }
 0x34a   :  { %10523 = vst [vmem:[#allocation163_spill] sm:$0xff] %v7896_v27  ;;  %2568 = vmatpush.msra.mxu1 %v7899_v15  ;;  %v2163_v41 = vmul.f32 %v7870_v29, %v2162_v49  ;;  %v2182_v27 = vmul.f32 %v7878_v19, %v2181_v40  ;;  %v7918_v49 = vld [vmem:[#allocation12 + $0x48] sm:$0xff]  ;;  %v7928_v40 = vld [vmem:[#allocation12 + $0x58] sm:$0xff] }
 0x34b   :  { %10524 = vst [vmem:[#allocation164_spill] sm:$0xff] %v7899_v15  ;;  %v2188_v15 = vand.u32 2147483647, %v7818_v21  ;;  %2549 = vmatpush.msra.mxu0 %v7915_v3  ;;  %2609 = vmatpush.msra.mxu3 %v7928_v40  ;;  %v2172_v3 = vor.u32 1.1754944e-38, %v2171_v61  ;;  %v2191_v61 = vor.u32 1.1754944e-38, %v2190_v23  ;;  %v2201_v23 = vsub.f32 1.0, %v2200_v24 }
 0x34c   :  { %10525 = vst [vmem:[#allocation165_spill] sm:$0xff] %v7906_v26  ;;  %2569 = vmatpush.msra.mxu1 %v7918_v49  ;;  %v2164_v26 = vadd.f32 %v7870_v29, %v2163_v41  ;;  %v2183_v41 = vadd.f32 %v7878_v19, %v2182_v27  ;;  %v10569_v24 = vld [vmem:[#allocation78_spill] sm:$0xff]  ;;  %v10570_v21 = vld [vmem:[#allocation79_spill] sm:$0xff] }
 0x34d   :  { %10526 = vst [vmem:[#allocation166_spill] sm:$0xff] %v7909_v36  ;;  %v7925_v36 = vld [vmem:[#allocation12 + $0x50] sm:$0xff]  ;;  %2550 = vmatpush.msra.mxu0 %v7941_v14  ;;  %v7959_v14 = vld [vmem:[#allocation12 + $0x38] sm:$0xff]  ;;  %vm2189_vm2 = vcmp.eq.f32.partialorder %v2188_v15, 8.507059e+37  ;;  %v2202_v15 = vmul.f32 %v7921_v45, %v2201_v23 }
 0x34e   :  { %10528 = vst [vmem:[#allocation168_spill] sm:$0xff] %v7918_v49  ;;  %2589 = vmatpush.msra.mxu2 %v7925_v36  ;;  %v2168_v27 = vsel %vm7934_vm14, %v7870_v29, %v2164_v26  ;;  %2610 = vmatpush.msra.mxu3 %v7959_v14  ;;  %v2187_v2 = vsel %vm7949_vm15, %v7878_v19, %v2183_v41  ;;  %v7968_v29 = vld [vmem:[#allocation12 + $0x8] sm:$0xff]  ;;  %v7971_v49 = vld [vmem:[#allocation12 + $0x10] sm:$0xff]  ;;  %v10568_v41 = vld [vmem:[#allocation75_spill] sm:$0xff] }
 0x34f   :  { %10529 = vst [vmem:[#allocation169_spill] sm:$0xff] %v7925_v36  ;;  %v7944_v36 = vld [vmem:[#allocation12 + $0x28] sm:$0xff]  ;;  %v2173_v10 = vsel %vm2170_vm1, %v2172_v3, %v2168_v27  ;;  %2551 = vmatpush.msra.mxu0 %v7965_v38  ;;  %v2192_v8 = vsel %vm2189_vm2, %v2191_v61, %v2187_v2  ;;  %v7974_v3 = vld [vmem:[#allocation12 + $0x18] sm:$0xff] }
 0x350   :  { %10530 = vst [vmem:[#allocation170_spill] sm:$0xff] %v7928_v40  ;;  %2570 = vmatpush.msra.mxu1 %v7944_v36  ;;  %v7956_v40 = vld [vmem:[#allocation12 + $0x30] sm:$0xff]  ;;  %2611 = vmatpush.msra.mxu3 %v7974_v3  ;;  %v2214_v19 = vmul.f32 %v2192_v8, %v7298_v34  ;;  %v10572_v27 = vld [vmem:[#allocation83_spill] sm:$0xff] }
 0x351   :  { %10534 = vst [vmem:[#allocation172_spill] sm:$0xff] %v7944_v36  ;;  %2590 = vmatpush.msra.mxu2 %v7956_v40  ;;  %v4447_v36 = vpop.eup %4446  ;;  %2696 = vmatpush.msrb.mxu0 %v7286_v13  ;;  %v2210_v13 = vand.u32 2147483648, %v7859_v39  ;;  %v10571_v61 = vld [vmem:[#allocation82_spill] sm:$0xff]  ;;  %v10574_v8 = vld [vmem:[#allocation87_spill] sm:$0xff] }
 0x352   :  { %2571 = vmatpush.msra.mxu1 %v7968_v29  ;;  %v2215_v26 = vmul.f32 %v4447_v36, %v2173_v10  ;;  %2756 = vmatpush.msrb.mxu3 %v7295_v58  ;;  %v2203_v10 = vadd.f32 %v7921_v45, %v2202_v15  ;;  %v10567_v36 = vld [vmem:[#allocation74_spill] sm:$0xff] }
 0x353   :  { %2591 = vmatpush.msra.mxu2 %v7971_v49  ;;  %2697 = vmatpush.msrb.mxu0 %v7300_v28  ;;  %v2211_v58 = vor.u32 1.1754944e-38, %v2210_v13  ;;  %v10573_v23 = vld [vmem:[#allocation86_spill] sm:$0xff]  ;;  %v10579_v13 = vld [vmem:[#allocation45_spill] sm:$0xff] }
 0x354   :  { %2716 = vmatpush.msrb.mxu1 %v7289_v12  ;;  %v7983_v2 = vadd.f32 %v2215_v26, %v2214_v19  ;;  %2757 = vmatpush.msrb.mxu3 %v7311_v56  ;;  %v2208_v12 = vand.u32 2147483647, %v7859_v39  ;;  %v10538_v56 = vld [vmem:[#allocation21_spill] sm:$0xff]  ;;  %v10576_v19 = vld [vmem:[#allocation36_spill] sm:$0xff]  ;;  %v10577_v15 = vld [vmem:[#allocation90_spill] sm:$0xff] }
 0x355   :  { %2736 = vmatpush.msrb.mxu2 %v7292_v16  ;;  %2698 = vmatpush.msrb.mxu0 %v7316_v63  ;;  %v2207_v16 = vsel %vm2206_vm5, %v7921_v45, %v2203_v10  ;;  %v10539_v63 = vld [vmem:[#allocation39_spill] sm:$0xff]  ;;  %v10566_v39 = vld [vmem:[#allocation73_spill] sm:$0xff] }
 0x356   :  { %2717 = vmatpush.msrb.mxu1 %v7303_v42  ;;  %4448 = vtanh.f32 %v7983_v2  ;;  %2758 = vmatpush.msrb.mxu3 %v7327_v22  ;;  %vm2209_vm6 = vcmp.eq.f32.partialorder %v2208_v12, 8.507059e+37  ;;  %v10542_v22 = vld [vmem:[#allocation23_spill] sm:$0xff]  ;;  %v10575_v26 = vld [vmem:[#allocation41_spill] sm:$0xff] }
 0x357   :  { %2737 = vmatpush.msrb.mxu2 %v7308_v51  ;;  %2699 = vmatpush.msrb.mxu0 %v7336_v11  ;;  %v2212_v28 = vsel %vm2209_vm6, %v2211_v58, %v2207_v16  ;;  %v10537_v51 = vld [vmem:[#allocation38_spill] sm:$0xff]  ;;  %v10565_v45 = vld [vmem:[#allocation71_spill] sm:$0xff] }
 0x358   :  { %2718 = vmatpush.msrb.mxu1 %v7319_v4  ;;  %2759 = vmatpush.msrb.mxu3 %v7348_v60  ;;  %v10540_v4 = vld [vmem:[#allocation26_spill] sm:$0xff]  ;;  %v10546_v60 = vld [vmem:[#allocation25_spill] sm:$0xff]  ;;  %v10578_v10 = vld [vmem:[#allocation91_spill] sm:$0xff] }
 0x359   :  { %2738 = vmatpush.msrb.mxu2 %v7324_v43  ;;  %2700 = vmatpush.msrb.mxu0 %v7351_v44  ;;  %v10541_v43 = vld [vmem:[#allocation40_spill] sm:$0xff]  ;;  %v10543_v11 = vld [vmem:[#allocation42_spill] sm:$0xff]  ;;  %v10580_v12 = vld [vmem:[#allocation43_spill] sm:$0xff] }
 0x35a   :  { %2719 = vmatpush.msrb.mxu1 %v7339_v18  ;;  %2760 = vmatpush.msrb.mxu3 %v7360_v37  ;;  %v10544_v18 = vld [vmem:[#allocation28_spill] sm:$0xff]  ;;  %v10547_v44 = vld [vmem:[#allocation46_spill] sm:$0xff]  ;;  %v10550_v37 = vld [vmem:[#allocation27_spill] sm:$0xff] }
 0x35b   :  { %2739 = vmatpush.msrb.mxu2 %v7345_v20  ;;  %2701 = vmatpush.msrb.mxu0 %v7363_v48  ;;  %v10545_v20 = vld [vmem:[#allocation44_spill] sm:$0xff]  ;;  %v10551_v48 = vld [vmem:[#allocation50_spill] sm:$0xff]  ;;  %v10582_v58 = vld [vmem:[#allocation95_spill] sm:$0xff] }
 0x35c   :  { %2720 = vmatpush.msrb.mxu1 %v7354_v17  ;;  %v4449_v34 = vpop.eup %4448  ;;  %2761 = vmatpush.msrb.mxu3 %v7372_v46  ;;  %v10548_v17 = vld [vmem:[#allocation30_spill] sm:$0xff]  ;;  %v10554_v46 = vld [vmem:[#allocation29_spill] sm:$0xff] }
 0x35d   :  { %2740 = vmatpush.msrb.mxu2 %v7357_v32  ;;  %v2218_v42 = vmul.f32 %v4449_v34, %v2212_v28  ;;  %2702 = vmatpush.msrb.mxu0 %v7375_v57  ;;  %v10549_v32 = vld [vmem:[#allocation48_spill] sm:$0xff]  ;;  %v10555_v57 = vld [vmem:[#allocation54_spill] sm:$0xff]  ;;  %v10583_v34 = vld [vmem:[#allocation49_spill] sm:$0xff] }
 0x35e   :  { %2721 = vmatpush.msrb.mxu1 %v7366_v50  ;;  %2762 = vmatpush.msrb.mxu3 %v7384_v47  ;;  %v10552_v50 = vld [vmem:[#allocation33_spill] sm:$0xff]  ;;  %v10558_v47 = vld [vmem:[#allocation31_spill] sm:$0xff]  ;;  %v10581_v16 = vld [vmem:[#allocation94_spill] sm:$0xff] }
 0x35f   :  { %2741 = vmatpush.msrb.mxu2 %v7369_v52  ;;  %2552 = vmatmul.f32.vlgmr.msra.gmra.mxu0 %v2218_v42  ;;  %v10553_v52 = vld [vmem:[#allocation52_spill] sm:$0xff]  ;;  %v10584_v28 = vld [vmem:[#allocation47_spill] sm:$0xff] }
 0x360   :  { %2722 = vmatpush.msrb.mxu1 %v7378_v59  ;;  %2592 = vmatmul.f32.vlgmr.msra.gmra.mxu2 %v2218_v42  ;;  %v10556_v59 = vld [vmem:[#allocation37_spill] sm:$0xff] }
 0x361   :  { %2572 = vmatmul.f32.vlgmr.msra.gmra.mxu1 %v2218_v42  ;;  %2612 = vmatmul.f32.vlgmr.msra.gmra.mxu3 %v2218_v42  ;;  %v10585_v42 = vld [vmem:[#allocation98_spill] sm:$0xff] }
 0x362   :  { %2742 = vmatpush.msrb.mxu2 %v7381_v62  ;;  %2703 = vmatpush.msrb.mxu0 %v7387_v0  ;;  %v10557_v62 = vld [vmem:[#allocation56_spill] sm:$0xff]  ;;  %v10559_v0 = vld [vmem:[#allocation58_spill] sm:$0xff] }
 0x363   :  { %2723 = vmatpush.msrb.mxu1 %v7390_v1  ;;  %2763 = vmatpush.msrb.mxu3 %v7396_v5  ;;  %v10560_v1 = vld [vmem:[#allocation60_spill] sm:$0xff]  ;;  %v10562_v5 = vld [vmem:[#allocation65_spill] sm:$0xff] }
 0x364   :  { %2743 = vmatpush.msrb.mxu2 %v7393_v9  ;;  %2768 = vmatpush.msra.mxu0 %v7399_v54  ;;  %v10561_v9 = vld [vmem:[#allocation62_spill] sm:$0xff]  ;;  %v10563_v54 = vld [vmem:[#allocation67_spill] sm:$0xff] }
 0x365   :  { %2788 = vmatpush.msra.mxu1 %v7402_v7  ;;  %2828 = vmatpush.msra.mxu3 %v10538_v56  ;;  %v10564_v7 = vld [vmem:[#allocation69_spill] sm:$0xff] }
 0x366   :  { %2808 = vmatpush.msra.mxu2 %v10537_v51  ;;  %2769 = vmatpush.msra.mxu0 %v10539_v63  ;;  %v10586_v51 = vld [vmem:[#allocation99_spill] sm:$0xff]  ;;  %v10587_v56 = vld [vmem:[#allocation53_spill] sm:$0xff] }
 0x367   :  { %2789 = vmatpush.msra.mxu1 %v10540_v4  ;;  %2829 = vmatpush.msra.mxu3 %v10542_v22  ;;  %v10588_v63 = vld [vmem:[#allocation51_spill] sm:$0xff]  ;;  %v10589_v4 = vld [vmem:[#allocation102_spill] sm:$0xff]  ;;  %v10591_v22 = vld [vmem:[#allocation57_spill] sm:$0xff] }
 0x368   :  { %2809 = vmatpush.msra.mxu2 %v10541_v43  ;;  %2770 = vmatpush.msra.mxu0 %v10543_v11  ;;  %v10590_v43 = vld [vmem:[#allocation103_spill] sm:$0xff] }
 0x369   :  { %2790 = vmatpush.msra.mxu1 %v10544_v18  ;;  %2830 = vmatpush.msra.mxu3 %v10546_v60  ;;  %v10592_v11 = vld [vmem:[#allocation55_spill] sm:$0xff]  ;;  %v10593_v18 = vld [vmem:[#allocation106_spill] sm:$0xff]  ;;  %v10595_v60 = vld [vmem:[#allocation61_spill] sm:$0xff] }
 0x36a   :  { %2810 = vmatpush.msra.mxu2 %v10545_v20  ;;  %2771 = vmatpush.msra.mxu0 %v10547_v44  ;;  %v10594_v20 = vld [vmem:[#allocation107_spill] sm:$0xff] }
 0x36b   :  { %2791 = vmatpush.msra.mxu1 %v10548_v17  ;;  %2831 = vmatpush.msra.mxu3 %v10550_v37  ;;  %v10596_v44 = vld [vmem:[#allocation59_spill] sm:$0xff]  ;;  %v10597_v17 = vld [vmem:[#allocation110_spill] sm:$0xff]  ;;  %v2241_v37 = vpop.f32.mrf.mxu0 }
 0x36c   :  { %2811 = vmatpush.msra.mxu2 %v10549_v32  ;;  %2772 = vmatpush.msra.mxu0 %v10551_v48  ;;  %v10598_v32 = vld [vmem:[#allocation111_spill] sm:$0xff]  ;;  %v2261_v48 = vpop.f32.mrf.mxu1 }
 0x36d   :  { %2792 = vmatpush.msra.mxu1 %v10552_v50  ;;  %2832 = vmatpush.msra.mxu3 %v10554_v46  ;;  %v10599_v50 = vld [vmem:[#allocation22_spill] sm:$0xff]  ;;  %v10600_v46 = vld [vmem:[#allocation32_spill] sm:$0xff] }
 0x36e   :  { %2812 = vmatpush.msra.mxu2 %v10553_v52  ;;  %2773 = vmatpush.msra.mxu0 %v10555_v57  ;;  %v2242_v52 = vadd.f32 %v2241_v37, %v10599_v50  ;;  %v2262_v57 = vadd.f32 %v2261_v48, %v10600_v46  ;;  %v10625_v48 = vld [vmem:[#allocation89_spill] sm:$0xff] }
 0x36f   :  { %2793 = vmatpush.msra.mxu1 %v10556_v59  ;;  %2833 = vmatpush.msra.mxu3 %v10558_v47  ;;  %v2301_v59 = vpop.f32.mrf.mxu3 }
 0x370   :  { %2813 = vmatpush.msra.mxu2 %v10557_v62  ;;  %2774 = vmatpush.msra.mxu0 %v10559_v0 }
 0x371   :  { %2794 = vmatpush.msra.mxu1 %v10560_v1  ;;  %2834 = vmatpush.msra.mxu3 %v10562_v5 }
 0x372   :  { %2814 = vmatpush.msra.mxu2 %v10561_v9  ;;  %2775 = vmatpush.msra.mxu0 %v10563_v54  ;;  %v10601_v54 = vld [vmem:[#allocation20_spill] sm:$0xff] }
 0x373   :  { %2795 = vmatpush.msra.mxu1 %v10564_v7  ;;  %2835 = vmatpush.msra.mxu3 %v10566_v39  ;;  %v2302_v7 = vadd.f32 %v2301_v59, %v10601_v54  ;;  %v2281_v39 = vpop.f32.mrf.mxu2  ;;  %v10627_v59 = vld [vmem:[#allocation134_spill] sm:$0xff] }
 0x374   :  { %2815 = vmatpush.msra.mxu2 %v10565_v45  ;;  %2776 = vmatpush.msra.mxu0 %v10567_v36  ;;  %v4263_v45 = vld [vmem:[%s9242_s0 + $0xa] sm:$0x3] }
 0x375   :  { %2796 = vmatpush.msra.mxu1 %v10568_v41  ;;  %2836 = vmatpush.msra.mxu3 %v10570_v21  ;;  %v10602_v41 = vld [vmem:[#allocation64_spill] sm:$0xff] }
 0x376   :  { %2816 = vmatpush.msra.mxu2 %v10569_v24  ;;  %2777 = vmatpush.msra.mxu0 %v10571_v61  ;;  %v10603_v24 = vld [vmem:[#allocation63_spill] sm:$0xff]  ;;  %v10604_v61 = vld [vmem:[#allocation114_spill] sm:$0xff] }
 0x377   :  { %2797 = vmatpush.msra.mxu1 %v10572_v27  ;;  %2837 = vmatpush.msra.mxu3 %v10574_v8  ;;  %v10605_v27 = vld [vmem:[#allocation115_spill] sm:$0xff]  ;;  %v10607_v8 = vld [vmem:[#allocation66_spill] sm:$0xff] }
 0x378   :  { %2817 = vmatpush.msra.mxu2 %v10573_v23  ;;  %2778 = vmatpush.msra.mxu0 %v10575_v26  ;;  %v10606_v23 = vld [vmem:[#allocation68_spill] sm:$0xff] }
 0x379   :  { %2798 = vmatpush.msra.mxu1 %v10576_v19  ;;  %2838 = vmatpush.msra.mxu3 %v10578_v10  ;;  %v10608_v19 = vld [vmem:[#allocation118_spill] sm:$0xff] }
 0x37a   :  { %2818 = vmatpush.msra.mxu2 %v10577_v15  ;;  %2779 = vmatpush.msra.mxu0 %v10579_v13  ;;  %v10609_v15 = vld [vmem:[#allocation119_spill] sm:$0xff]  ;;  %v10610_v13 = vld [vmem:[#allocation70_spill] sm:$0xff] }
 0x37b   :  { %2799 = vmatpush.msra.mxu1 %v10580_v12  ;;  %2839 = vmatpush.msra.mxu3 %v10582_v58  ;;  %v10611_v12 = vld [vmem:[#allocation72_spill] sm:$0xff] }
 0x37c   :  { %2819 = vmatpush.msra.mxu2 %v10581_v16  ;;  %2780 = vmatpush.msra.mxu0 %v10583_v34  ;;  %v10612_v34 = vld [vmem:[#allocation122_spill] sm:$0xff] }
 0x37d   :  { %2800 = vmatpush.msra.mxu1 %v10584_v28  ;;  %2840 = vmatpush.msra.mxu3 %v10586_v51  ;;  %v10613_v28 = vld [vmem:[#allocation123_spill] sm:$0xff]  ;;  %v10614_v51 = vld [vmem:[#allocation76_spill] sm:$0xff] }
 0x37e   :  { %2820 = vmatpush.msra.mxu2 %v10585_v42  ;;  %2781 = vmatpush.msra.mxu0 %v10587_v56  ;;  %v10615_v56 = vld [vmem:[#allocation77_spill] sm:$0xff] }
 0x37f   :  { %2801 = vmatpush.msra.mxu1 %v10588_v63  ;;  %2841 = vmatpush.msra.mxu3 %v10590_v43  ;;  %v10616_v63 = vld [vmem:[#allocation126_spill] sm:$0xff]  ;;  %v10618_v43 = vld [vmem:[#allocation81_spill] sm:$0xff] }
 0x380   :  { %2821 = vmatpush.msra.mxu2 %v10589_v4  ;;  %2782 = vmatpush.msra.mxu0 %v10591_v22  ;;  %v10617_v4 = vld [vmem:[#allocation80_spill] sm:$0xff]  ;;  %v10619_v22 = vld [vmem:[#allocation129_spill] sm:$0xff] }
 0x381   :  { %2802 = vmatpush.msra.mxu1 %v10592_v11  ;;  %2842 = vmatpush.msra.mxu3 %v10594_v20  ;;  %v10620_v11 = vld [vmem:[#allocation34_spill] sm:$0xff]  ;;  %v10621_v20 = vld [vmem:[#allocation84_spill] sm:$0xff] }
 0x382   :  { %2822 = vmatpush.msra.mxu2 %v10593_v18  ;;  %2783 = vmatpush.msra.mxu0 %v10595_v60  ;;  %v2282_v18 = vadd.f32 %v2281_v39, %v10620_v11  ;;  %v10622_v60 = vld [vmem:[#allocation85_spill] sm:$0xff]  ;;  %v10632_v39 = vld [vmem:[#allocation100_spill] sm:$0xff] }
 0x383   :  { %2803 = vmatpush.msra.mxu1 %v10596_v44  ;;  %2843 = vmatpush.msra.mxu3 %v10598_v32  ;;  %v10624_v32 = vld [vmem:[#allocation88_spill] sm:$0xff] }
 0x384   :  { %2823 = vmatpush.msra.mxu2 %v10597_v17  ;;  %4264 = vmatmul.msk.f32.vlgmr.msrb.gmra.mxu0 %vm355_vm0, %v4263_v45  ;;  %v10623_v17 = vld [vmem:[#allocation132_spill] sm:$0xff] }
 0x385   :  { %4265 = vmatmul.msk.f32.vlgmr.msrb.gmra.mxu1 %vm355_vm0, %v4263_v45  ;;  %4266 = vmatmul.msk.f32.vlgmr.msrb.gmra.mxu2 %vm355_vm0, %v4263_v45 }
 0x386   :  { %4267 = vmatmul.msk.f32.vlgmr.msrb.gmra.mxu3 %vm355_vm0, %v4263_v45  ;;  %2928 = vmatpush.msrb.mxu0 %v10602_v41  ;;  %v10631_v45 = vld [vmem:[#allocation97_spill] sm:$0xff] }
 0x387   :  { %2948 = vmatpush.msrb.mxu1 %v10603_v24  ;;  %2968 = vmatpush.msrb.mxu2 %v10604_v61  ;;  %v10633_v41 = vld [vmem:[#allocation101_spill] sm:$0xff]  ;;  %v10634_v24 = vld [vmem:[#allocation104_spill] sm:$0xff] }
 0x388   :  { %2988 = vmatpush.msrb.mxu3 %v10605_v27  ;;  %2929 = vmatpush.msrb.mxu0 %v10606_v23 }
 0x389   :  { %2949 = vmatpush.msrb.mxu1 %v10607_v8  ;;  %2969 = vmatpush.msrb.mxu2 %v10608_v19 }
 0x38a   :  { %2989 = vmatpush.msrb.mxu3 %v10609_v15  ;;  %2930 = vmatpush.msrb.mxu0 %v10610_v13 }
 0x38b   :  { %2950 = vmatpush.msrb.mxu1 %v10611_v12  ;;  %2970 = vmatpush.msrb.mxu2 %v10612_v34 }
 0x38c   :  { %2990 = vmatpush.msrb.mxu3 %v10613_v28  ;;  %2931 = vmatpush.msrb.mxu0 %v10614_v51 }
 0x38d   :  { %2951 = vmatpush.msrb.mxu1 %v10615_v56  ;;  %2971 = vmatpush.msrb.mxu2 %v10616_v63 }
 0x38e   :  { %v2321_v62 = vpop.f32.mrf.mxu0  ;;  %v2341_v47 = vpop.f32.mrf.mxu1  ;;  %2991 = vmatpush.msrb.mxu3 %v10617_v4  ;;  %2932 = vmatpush.msrb.mxu0 %v10618_v43 }
 0x38f   :  { %v2384_v0 = vadd.f32 %v2321_v62, %v2242_v52  ;;  %v2385_v1 = vadd.f32 %v2341_v47, %v2262_v57  ;;  %2952 = vmatpush.msrb.mxu1 %v10619_v22  ;;  %2972 = vmatpush.msrb.mxu2 %v10621_v20  ;;  %v10626_v52 = vld [vmem:[#allocation133_spill] sm:$0xff]  ;;  %v10628_v62 = vld [vmem:[#allocation92_spill] sm:$0xff] }
 0x390   :  { %2992 = vmatpush.msrb.mxu3 %v10622_v60  ;;  %2933 = vmatpush.msrb.mxu0 %v10623_v17 }
 0x391   :  { %v4252_v9 = vmul.f32 -1.442695, %v2384_v0  ;;  %v4253_v5 = vmul.f32 -1.442695, %v2385_v1  ;;  %2953 = vmatpush.msrb.mxu1 %v10624_v32  ;;  %2973 = vmatpush.msrb.mxu2 %v10625_v48  ;;  %v10629_v1 = vld [vmem:[#allocation93_spill] sm:$0xff] }
 0x392   :  { %2993 = vmatpush.msrb.mxu3 %v10626_v52  ;;  %2934 = vmatpush.msrb.mxu0 %v10627_v59 }
 0x393   :  { %4450 = vpow2.f32 %v4252_v9  ;;  %2954 = vmatpush.msrb.mxu1 %v10628_v62  ;;  %2974 = vmatpush.msrb.mxu2 %v10629_v1  ;;  %v10630_v9 = vld [vmem:[#allocation96_spill] sm:$0xff] }
 0x394   :  { %4452 = vpow2.f32 %v4253_v5  ;;  %2994 = vmatpush.msrb.mxu3 %v10630_v9  ;;  %2935 = vmatpush.msrb.mxu0 %v10631_v45 }
 0x395   :  { %v2381_v36 = vpop.f32.mrf.mxu3  ;;  %v2361_v44 = vpop.f32.mrf.mxu2  ;;  %2955 = vmatpush.msrb.mxu1 %v10632_v39  ;;  %2975 = vmatpush.msrb.mxu2 %v10633_v41  ;;  %v10636_v39 = vld [vmem:[#allocation108_spill] sm:$0xff] }
 0x396   :  { %v2387_v21 = vadd.f32 %v2381_v36, %v2302_v7  ;;  %v2386_v0 = vadd.f32 %v2361_v44, %v2282_v18  ;;  %2995 = vmatpush.msrb.mxu3 %v10634_v24  ;;  %v10640_v24 = vld [vmem:[#allocation116_spill] sm:$0xff] }
 0x398   :  { %v4254_v26 = vmul.f32 -1.442695, %v2387_v21 }
 0x399   :  { %v4451_v10 = vpop.eup %4450 }
 0x39a   :  { %v4453_v16 = vpop.eup %4452  ;;  %v2391_v58 = vadd.f32 1.0, %v4451_v10  ;;  %4454 = vpow2.f32 %v4254_v26 }
 0x39b   :  { %v2410_v42 = vadd.f32 1.0, %v4453_v16 }
 0x39c   :  { %4456 = vrcp.f32 %v2391_v58  ;;  %v2403_v27 = vand.u32 2147483648, %v2391_v58  ;;  %v2401_v26 = vand.u32 2147483647, %v2391_v58  ;;  %vm2397_vm9 = vweird.f32 %v2391_v58 }
 0x39d   :  { %4458 = vrcp.f32 %v2410_v42  ;;  %v2422_v23 = vand.u32 2147483648, %v2410_v42  ;;  %v2420_v15 = vand.u32 2147483647, %v2410_v42  ;;  %vm2416_vm10 = vweird.f32 %v2410_v42 }
 0x39e   :  { %v2404_v12 = vor.u32 1.1754944e-38, %v2403_v27  ;;  %vm2402_vm13 = vcmp.eq.f32.partialorder %v2401_v26, 8.507059e+37  ;;  %v10644_v27 = vld [vmem:[#allocation121_spill] sm:$0xff]  ;;  %v10647_v26 = vld [vmem:[#allocation127_spill] sm:$0xff] }
 0x39f   :  { %v2423_v28 = vor.u32 1.1754944e-38, %v2422_v23  ;;  %vm2421_vm14 = vcmp.eq.f32.partialorder %v2420_v15, 8.507059e+37  ;;  %v10645_v23 = vld [vmem:[#allocation124_spill] sm:$0xff] }
 0x3a0   :  { %v4455_v37 = vpop.eup %4454 }
 0x3a1   :  { %v2430_v57 = vadd.f32 1.0, %v4455_v37 }
 0x3a2   :  { %v4457_v47 = vpop.eup %4456 }
 0x3a3   :  { %v4459_v5 = vpop.eup %4458  ;;  %v2393_v7 = vmul.f32 %v4457_v47, %v2391_v58  ;;  %4460 = vrcp.f32 %v2430_v57  ;;  %vm2398_vm7 = vweird.f32 %v4457_v47  ;;  %v2442_v44 = vand.u32 2147483648, %v2430_v57 }
 0x3a4   :  { %v2412_v36 = vmul.f32 %v4459_v5, %v2410_v42  ;;  %4462 = vtanh.f32 %v2386_v0  ;;  %vm2417_vm8 = vweird.f32 %v4459_v5  ;;  %vm2399_vm11 = vmor %vm2397_vm9, %vm2398_vm7  ;;  %vm2436_vm1 = vweird.f32 %v2430_v57 }
 0x3a5   :  { %v2394_v21 = vsub.f32 1.0, %v2393_v7  ;;  %vm2418_vm12 = vmor %vm2416_vm10, %vm2417_vm8  ;;  %v2440_v17 = vand.u32 2147483647, %v2430_v57  ;;  %v2443_v52 = vor.u32 1.1754944e-38, %v2442_v44  ;;  %v10659_v44 = vld [vmem:[#allocation143_spill] sm:$0xff] }
 0x3a6   :  { %v2413_v61 = vsub.f32 1.0, %v2412_v36  ;;  %v10639_v36 = vld [vmem:[#allocation113_spill] sm:$0xff] }
 0x3a7   :  { %v2395_v8 = vmul.f32 %v4457_v47, %v2394_v21  ;;  %vm2441_vm3 = vcmp.eq.f32.partialorder %v2440_v17, 8.507059e+37  ;;  %v10642_v21 = vld [vmem:[#allocation24_spill] sm:$0xff] }
 0x3a8   :  { %v2414_v19 = vmul.f32 %v4459_v5, %v2413_v61  ;;  %v10643_v61 = vld [vmem:[#allocation120_spill] sm:$0xff] }
 0x3a9   :  { %v4461_v10 = vpop.eup %4460  ;;  %v2396_v13 = vadd.f32 %v4457_v47, %v2395_v8  ;;  %v10646_v8 = vld [vmem:[#allocation125_spill] sm:$0xff]  ;;  %v10660_v17 = vld [vmem:[#allocation144_spill] sm:$0xff] }
 0x3aa   :  { %v2415_v16 = vadd.f32 %v4459_v5, %v2414_v19  ;;  %v2432_v34 = vmul.f32 %v4461_v10, %v2430_v57  ;;  %v4463_v56 = vpop.eup %4462  ;;  %vm2437_vm15 = vweird.f32 %v4461_v10  ;;  %v10648_v19 = vld [vmem:[#allocation128_spill] sm:$0xff] }
 0x3ab   :  { %v2400_v51 = vsel %vm2399_vm11, %v4457_v47, %v2396_v13  ;;  %vm2438_vm2 = vmor %vm2436_vm1, %vm2437_vm15  ;;  %v10649_v13 = vld [vmem:[#allocation130_spill] sm:$0xff] }
 0x3ac   :  { %v2405_v63 = vsel %vm2402_vm13, %v2404_v12, %v2400_v51  ;;  %v2419_v4 = vsel %vm2418_vm12, %v4459_v5, %v2415_v16  ;;  %v2433_v43 = vsub.f32 1.0, %v2432_v34  ;;  %v10635_v5 = vld [vmem:[#allocation105_spill] sm:$0xff]  ;;  %v10650_v12 = vld [vmem:[#allocation131_spill] sm:$0xff] }
 0x3ad   :  { %v2424_v22 = vsel %vm2421_vm14, %v2423_v28, %v2419_v4  ;;  %v2447_v18 = vmul.f32 %v4463_v56, %v2405_v63  ;;  %v10651_v34 = vld [vmem:[#allocation135_spill] sm:$0xff]  ;;  %v10652_v28 = vld [vmem:[#allocation136_spill] sm:$0xff]  ;;  %v10653_v51 = vld [vmem:[#allocation137_spill] sm:$0xff] }
 0x3ae   :  { %v2446_v20 = vmul.f32 %v2424_v22, %v7717_v35  ;;  %v2434_v60 = vmul.f32 %v4461_v10, %v2433_v43  ;;  %v10654_v56 = vld [vmem:[#allocation138_spill] sm:$0xff]  ;;  %v10655_v4 = vld [vmem:[#allocation139_spill] sm:$0xff]  ;;  %v10656_v43 = vld [vmem:[#allocation140_spill] sm:$0xff] }
 0x3b0   :  { %v8128_v58 = vadd.f32 %v2447_v18, %v2446_v20  ;;  %v2435_v42 = vadd.f32 %v4461_v10, %v2434_v60  ;;  %v10657_v18 = vld [vmem:[#allocation141_spill] sm:$0xff]  ;;  %v10658_v20 = vld [vmem:[#allocation142_spill] sm:$0xff] }
 0x3b2   :  { %4464 = vtanh.f32 %v8128_v58  ;;  %v2439_v48 = vsel %vm2438_vm2, %v4461_v10, %v2435_v42 }
 0x3b3   :  { %v2444_v62 = vsel %vm2441_vm3, %v2443_v52, %v2439_v48  ;;  %v10662_v48 = vld [vmem:[#allocation146_spill] sm:$0xff]  ;;  %v10663_v52 = vld [vmem:[#allocation147_spill] sm:$0xff] }
 0x3b8   :  { %v4465_v59 = vpop.eup %4464 }
 0x3b9   :  { %v2450_v47 = vmul.f32 %v4465_v59, %v2444_v62  ;;  %v10664_v59 = vld [vmem:[#allocation148_spill] sm:$0xff]  ;;  %v10665_v62 = vld [vmem:[#allocation149_spill] sm:$0xff] }
 0x3bb   :  { %2784 = vmatmul.f32.vlgmr.msra.gmra.mxu0 %v2450_v47  ;;  %2804 = vmatmul.f32.vlgmr.msra.gmra.mxu1 %v2450_v47 }
 0x3bc   :  { %2824 = vmatmul.f32.vlgmr.msra.gmra.mxu2 %v2450_v47  ;;  %2844 = vmatmul.f32.vlgmr.msra.gmra.mxu3 %v2450_v47  ;;  %v10666_v47 = vld [vmem:[#allocation150_spill] sm:$0xff] }
 0x3bd   :  { %3000 = vmatpush.msra.mxu0 %v7723_v6  ;;  %3020 = vmatpush.msra.mxu1 %v7726_v31  ;;  %v10637_v6 = vld [vmem:[#allocation109_spill] sm:$0xff]  ;;  %v10638_v31 = vld [vmem:[#allocation112_spill] sm:$0xff] }
 0x3be   :  { %3040 = vmatpush.msra.mxu2 %v7731_v55  ;;  %3060 = vmatpush.msra.mxu3 %v7734_v25  ;;  %v10641_v25 = vld [vmem:[#allocation117_spill] sm:$0xff] }
 0x3bf   :  { %3001 = vmatpush.msra.mxu0 %v7737_v53  ;;  %3021 = vmatpush.msra.mxu1 %v10635_v5  ;;  %v10670_v5 = vld [vmem:[#allocation153_spill] sm:$0xff] }
 0x3c0   :  { %v2473_v32 = vpop.f32.mrf.mxu0  ;;  %v2493_v37 = vpop.f32.mrf.mxu1  ;;  %3041 = vmatpush.msra.mxu2 %v10636_v39  ;;  %3061 = vmatpush.msra.mxu3 %v10637_v6  ;;  %v10672_v39 = vld [vmem:[#allocation155_spill] sm:$0xff]  ;;  %v10673_v6 = vld [vmem:[#allocation156_spill] sm:$0xff] }
 0x3c1   :  { %v2474_v57 = vadd.f32 %v2473_v32, %v6198_v30  ;;  %v2494_v0 = vadd.f32 %v2493_v37, %v6203_v33  ;;  %3002 = vmatpush.msra.mxu0 %v10638_v31  ;;  %3022 = vmatpush.msra.mxu1 %v10639_v36  ;;  %v10661_v37 = vld [vmem:[#allocation145_spill] sm:$0xff] }
 0x3c2   :  { %3042 = vmatpush.msra.mxu2 %v10640_v24  ;;  %3062 = vmatpush.msra.mxu3 %v10641_v25  ;;  %v10674_v36 = vld [vmem:[#allocation157_spill] sm:$0xff] }
 0x3c3   :  { %3003 = vmatpush.msra.mxu0 %v10643_v61  ;;  %3023 = vmatpush.msra.mxu1 %v10644_v27  ;;  %v10677_v61 = vld [vmem:[#allocation160_spill] sm:$0xff] }
 0x3c4   :  { %3043 = vmatpush.msra.mxu2 %v10645_v23  ;;  %3063 = vmatpush.msra.mxu3 %v10646_v8  ;;  %v10678_v8 = vld [vmem:[#allocation161_spill] sm:$0xff] }
 0x3c5   :  { %3004 = vmatpush.msra.mxu0 %v10647_v26  ;;  %3024 = vmatpush.msra.mxu1 %v10648_v19  ;;  %v10679_v26 = vld [vmem:[#allocation162_spill] sm:$0xff] }
 0x3c6   :  { %3044 = vmatpush.msra.mxu2 %v10649_v13  ;;  %3064 = vmatpush.msra.mxu3 %v10650_v12  ;;  %v10680_v12 = vld [vmem:[#allocation163_spill] sm:$0xff] }
 0x3c7   :  { %v2513_v15 = vpop.f32.mrf.mxu2  ;;  %3005 = vmatpush.msra.mxu0 %v10651_v34  ;;  %3025 = vmatpush.msra.mxu1 %v10652_v28 }
 0x3c8   :  { %v2533_v35 = vpop.f32.mrf.mxu3  ;;  %3045 = vmatpush.msra.mxu2 %v10653_v51  ;;  %3065 = vmatpush.msra.mxu3 %v10654_v56  ;;  %v10682_v56 = vld [vmem:[#allocation165_spill] sm:$0xff] }
 0x3c9   :  { %v2534_v53 = vadd.f32 %v2533_v35, %v10642_v21  ;;  %3006 = vmatpush.msra.mxu0 %v10655_v4  ;;  %3026 = vmatpush.msra.mxu1 %v10656_v43  ;;  %v10667_v35 = vld [vmem:[#allocation35_spill] sm:$0xff] }
 0x3ca   :  { %3046 = vmatpush.msra.mxu2 %v10657_v18  ;;  %3066 = vmatpush.msra.mxu3 %v10658_v20  ;;  %v10685_v18 = vld [vmem:[#allocation168_spill] sm:$0xff] }
 0x3cb   :  { %3007 = vmatpush.msra.mxu0 %v10659_v44  ;;  %3027 = vmatpush.msra.mxu1 %v10660_v17  ;;  %v10686_v44 = vld [vmem:[#allocation169_spill] sm:$0xff]  ;;  %v10687_v17 = vld [vmem:[#allocation170_spill] sm:$0xff] }
 0x3cc   :  { %3047 = vmatpush.msra.mxu2 %v10661_v37  ;;  %3067 = vmatpush.msra.mxu3 %v10662_v48 }
 0x3cd   :  { %3008 = vmatpush.msra.mxu0 %v10663_v52  ;;  %3028 = vmatpush.msra.mxu1 %v10664_v59  ;;  %v10688_v59 = vld [vmem:[#allocation171_spill] sm:$0xff] }
 0x3ce   :  { %3048 = vmatpush.msra.mxu2 %v10665_v62  ;;  %3068 = vmatpush.msra.mxu3 %v10666_v47  ;;  %v10689_v62 = vld [vmem:[#allocation172_spill] sm:$0xff] }
 0x3d0   :  { %3049 = vmatpush.msra.mxu2 %v10670_v5 }
 0x3d2   :  { %3050 = vmatpush.msra.mxu2 %v10674_v36  ;;  %v8256_v36 = vld [vmem:[#allocation6 + $0xd8] sm:$0xff] }
 0x3d4   :  { %3051 = vmatpush.msra.mxu2 %v10678_v8  ;;  %v8284_v8 = vld [vmem:[#allocation6 + $0x88] sm:$0xff] }
 0x3d6   :  { %3052 = vmatpush.msra.mxu2 %v10682_v56  ;;  %v8311_v56 = vld [vmem:[#allocation6 + $0x48] sm:$0xff] }
 0x3d8   :  { %3053 = vmatpush.msra.mxu2 %v10686_v44  ;;  %v8332_v44 = vld [vmem:[#allocation6] sm:$0xff] }
 0x3da   :  { %3054 = vmatpush.msra.mxu2 %v7956_v40 }
 0x3dc   :  { %v2553_v1 = vpop.f32.mrf.mxu0  ;;  %3055 = vmatpush.msra.mxu2 %v7971_v49 }
 0x3dd   :  { %v2616_v7 = vadd.f32 %v2553_v1, %v2474_v57  ;;  %v2514_v57 = vadd.f32 %v2513_v15, %v10667_v35  ;;  %v10669_v1 = vld [vmem:[#allocation152_spill] sm:$0xff] }
 0x3de   :  { %v2573_v9 = vpop.f32.mrf.mxu1  ;;  %3029 = vmatpush.msra.mxu1 %v10669_v1 }
 0x3df   :  { %v2617_v45 = vadd.f32 %v2573_v9, %v2494_v0  ;;  %v4260_v41 = vmul.f32 -1.442695, %v2616_v7  ;;  %v10668_v0 = vld [vmem:[#allocation151_spill] sm:$0xff]  ;;  %v10671_v7 = vld [vmem:[#allocation154_spill] sm:$0xff] }
 0x3e0   :  { %3009 = vmatpush.msra.mxu0 %v10668_v0  ;;  %3069 = vmatpush.msra.mxu3 %v10671_v7 }
 0x3e1   :  { %v4261_v55 = vmul.f32 -1.442695, %v2617_v45  ;;  %4466 = vpow2.f32 %v4260_v41  ;;  %3030 = vmatpush.msra.mxu1 %v10673_v6  ;;  %v10675_v41 = vld [vmem:[#allocation158_spill] sm:$0xff] }
 0x3e2   :  { %3010 = vmatpush.msra.mxu0 %v10672_v39  ;;  %3070 = vmatpush.msra.mxu3 %v10675_v41  ;;  %v8253_v6 = vld [vmem:[#allocation6 + $0xd0] sm:$0xff] }
 0x3e3   :  { %4468 = vpow2.f32 %v4261_v55  ;;  %v2593_v9 = vpop.f32.mrf.mxu2  ;;  %v4271_v55 = vld [vmem:[%s9243_s1 + $0x4] sm:$0x3]  ;;  %3031 = vmatpush.msra.mxu1 %v10677_v61 }
 0x3e4   :  { %v2613_v10 = vpop.f32.mrf.mxu3  ;;  %v2618_v25 = vadd.f32 %v2593_v9, %v2514_v57  ;;  %3071 = vmatpush.msra.mxu3 %v10679_v26  ;;  %4272 = vmatmul.msk.f32.vlgmr.msrb.gmra.mxu0 %vm355_vm0, %v4271_v55  ;;  %v8272_v61 = vld [vmem:[#allocation6 + $0xb8] sm:$0xff]  ;;  %v8290_v26 = vld [vmem:[#allocation6 + $0x90] sm:$0xff] }
 0x3e5   :  { %v2619_v16 = vadd.f32 %v2613_v10, %v2534_v53  ;;  %v10676_v53 = vld [vmem:[#allocation159_spill] sm:$0xff]  ;;  %4273 = vmatmul.msk.f32.vlgmr.msrb.gmra.mxu1 %vm355_vm0, %v4271_v55  ;;  %4274 = vmatmul.msk.f32.vlgmr.msrb.gmra.mxu2 %vm355_vm0, %v4271_v55 }
 0x3e6   :  { %3011 = vmatpush.msra.mxu0 %v10676_v53  ;;  %4275 = vmatmul.msk.f32.vlgmr.msrb.gmra.mxu3 %vm355_vm0, %v4271_v55  ;;  %v8261_v55 = vld [vmem:[#allocation6 + $0xa0] sm:$0xff]  ;;  %v8269_v53 = vld [vmem:[#allocation6 + $0xb0] sm:$0xff] }
 0x3e7   :  { %v4262_v63 = vmul.f32 -1.442695, %v2619_v16  ;;  %v4467_v22 = vpop.eup %4466  ;;  %v10681_v16 = vld [vmem:[#allocation164_spill] sm:$0xff] }
 0x3e8   :  { %v8162_v42 = vadd.f32 1.0, %v4467_v22  ;;  %3012 = vmatpush.msra.mxu0 %v10680_v12  ;;  %3032 = vmatpush.msra.mxu1 %v10681_v16  ;;  %v10684_v22 = vld [vmem:[#allocation167_spill] sm:$0xff]  ;;  %v8302_v12 = vld [vmem:[#allocation6 + $0x70] sm:$0xff] }
 0x3e9   :  { %v4469_v60 = vpop.eup %4468  ;;  %4470 = vpow2.f32 %v4262_v63  ;;  %v10683_v63 = vld [vmem:[#allocation166_spill] sm:$0xff] }
 0x3ea   :  { %v8166_v32 = vadd.f32 1.0, %v4469_v60  ;;  %4472 = vrcp.f32 %v8162_v42  ;;  %v2635_v13 = vand.u32 2147483648, %v8162_v42  ;;  %v2633_v51 = vand.u32 2147483647, %v8162_v42  ;;  %3072 = vmatpush.msra.mxu3 %v10683_v63  ;;  %3013 = vmatpush.msra.mxu0 %v10684_v22  ;;  %v8305_v16 = vld [vmem:[#allocation6 + $0x78] sm:$0xff]  ;;  %v8320_v22 = vld [vmem:[#allocation6 + $0x20] sm:$0xff] }
 0x3eb   :  { %3033 = vmatpush.msra.mxu1 %v10685_v18  ;;  %vm2629_vm6 = vweird.f32 %v8162_v42  ;;  %v8323_v18 = vld [vmem:[#allocation6 + $0x28] sm:$0xff] }
 0x3ec   :  { %4474 = vrcp.f32 %v8166_v32  ;;  %v2654_v34 = vand.u32 2147483648, %v8166_v32  ;;  %v2652_v43 = vand.u32 2147483647, %v8166_v32  ;;  %3073 = vmatpush.msra.mxu3 %v10687_v17  ;;  %vm2648_vm7 = vweird.f32 %v8166_v32  ;;  %3014 = vmatpush.msra.mxu0 %v10688_v59  ;;  %v8335_v17 = vld [vmem:[#allocation6 + $0x8] sm:$0xff] }
 0x3ed   :  { %v2636_v37 = vor.u32 1.1754944e-38, %v2635_v13  ;;  %3034 = vmatpush.msra.mxu1 %v10689_v62  ;;  %vm2634_vm10 = vcmp.eq.f32.partialorder %v2633_v51, 8.507059e+37  ;;  %v8299_v13 = vld [vmem:[#allocation6 + $0x68] sm:$0xff]  ;;  %v8308_v51 = vld [vmem:[#allocation6 + $0x40] sm:$0xff]  ;;  %v8350_v62 = vld [vmem:[#allocation11 + $0x1f0] sm:$0xff] }
 0x3ee   :  { %3074 = vmatpush.msra.mxu3 %v7959_v14  ;;  %vm2653_vm11 = vcmp.eq.f32.partialorder %v2652_v43, 8.507059e+37  ;;  %3015 = vmatpush.msra.mxu0 %v7965_v38  ;;  %v8231_v14 = vld [vmem:[#allocation6 + $0xe0] sm:$0xff]  ;;  %v8237_v38 = vld [vmem:[#allocation6 + $0xf0] sm:$0xff]  ;;  %v8317_v43 = vld [vmem:[#allocation6 + $0x58] sm:$0xff]  ;;  %10692 = vst [vmem:[#allocation38_spill] sm:$0xff] %v8350_v62 }
 0x3ef   :  { %v4471_v45 = vpop.eup %4470  ;;  %3035 = vmatpush.msra.mxu1 %v7968_v29  ;;  %3200 = vmatpush.msrb.mxu2 %v8237_v38  ;;  %v8240_v29 = vld [vmem:[#allocation6 + $0xf8] sm:$0xff]  ;;  %v8347_v59 = vld [vmem:[#allocation11 + $0x1e8] sm:$0xff] }
 0x3f0   :  { %v8183_v31 = vadd.f32 1.0, %v4471_v45  ;;  %v4473_v24 = vpop.eup %4472  ;;  %3075 = vmatpush.msra.mxu3 %v7974_v3  ;;  %3160 = vmatpush.msrb.mxu0 %v8231_v14  ;;  %v8234_v45 = vld [vmem:[#allocation6 + $0xe8] sm:$0xff]  ;;  %v8245_v3 = vld [vmem:[#allocation6 + $0xc0] sm:$0xff] }
 0x3f1   :  { %v2625_v23 = vmul.f32 %v4473_v24, %v8162_v42  ;;  %vm2630_vm4 = vweird.f32 %v4473_v24  ;;  %v2655_v42 = vor.u32 1.1754944e-38, %v2654_v34  ;;  %3180 = vmatpush.msrb.mxu1 %v8234_v45  ;;  %3201 = vmatpush.msrb.mxu2 %v8253_v6 }
 0x3f2   :  { %v4475_v27 = vpop.eup %4474  ;;  %4476 = vrcp.f32 %v8183_v31  ;;  %vm2631_vm8 = vmor %vm2629_vm6, %vm2630_vm4  ;;  %3220 = vmatpush.msrb.mxu3 %v8240_v29  ;;  %3161 = vmatpush.msrb.mxu0 %v8245_v3  ;;  %v2674_v41 = vand.u32 2147483648, %v8183_v31  ;;  %vm2668_vm13 = vweird.f32 %v8183_v31 }
 0x3f3   :  { %v2644_v19 = vmul.f32 %v4475_v27, %v8166_v32  ;;  %v2626_v15 = vsub.f32 1.0, %v2625_v23  ;;  %4478 = vtanh.f32 %v2618_v25  ;;  %vm2649_vm5 = vweird.f32 %v4475_v27  ;;  %3202 = vmatpush.msrb.mxu2 %v8269_v53  ;;  %v8281_v23 = vld [vmem:[#allocation6 + $0x80] sm:$0xff] }
 0x3f4   :  { %vm2650_vm9 = vmor %vm2648_vm7, %vm2649_vm5  ;;  %3221 = vmatpush.msrb.mxu3 %v8256_v36  ;;  %3162 = vmatpush.msrb.mxu0 %v8261_v55  ;;  %v2672_v25 = vand.u32 2147483647, %v8183_v31 }
 0x3f5   :  { %v2645_v10 = vsub.f32 1.0, %v2644_v19  ;;  %v2627_v28 = vmul.f32 %v4473_v24, %v2626_v15  ;;  %3203 = vmatpush.msrb.mxu2 %v8290_v26  ;;  %v8293_v19 = vld [vmem:[#allocation6 + $0x98] sm:$0xff]  ;;  %v2675_v15 = vor.u32 1.1754944e-38, %v2674_v41  ;;  %v8386_v41 = vld [vmem:[#allocation11 + $0x190] sm:$0xff] }
 0x3f6   :  { %3222 = vmatpush.msrb.mxu3 %v8272_v61  ;;  %3163 = vmatpush.msrb.mxu0 %v8281_v23  ;;  %vm2673_vm15 = vcmp.eq.f32.partialorder %v2672_v25, 8.507059e+37  ;;  %10704 = vst [vmem:[#allocation48_spill] sm:$0xff] %v8386_v41  ;;  %v8389_v25 = vld [vmem:[#allocation11 + $0x198] sm:$0xff] }
 0x3f7   :  { %v2646_v4 = vmul.f32 %v4475_v27, %v2645_v10  ;;  %v2628_v60 = vadd.f32 %v4473_v24, %v2627_v28  ;;  %v8296_v10 = vld [vmem:[#allocation6 + $0x60] sm:$0xff]  ;;  %3204 = vmatpush.msrb.mxu2 %v8302_v12  ;;  %10705 = vst [vmem:[#allocation27_spill] sm:$0xff] %v8389_v25 }
 0x3f8   :  { %v8211_v20 = vpop.eup %4476  ;;  %3223 = vmatpush.msrb.mxu3 %v8293_v19  ;;  %3164 = vmatpush.msrb.mxu0 %v8296_v10 }
 0x3f9   :  { %v2647_v48 = vadd.f32 %v4475_v27, %v2646_v4  ;;  %v2664_v52 = vmul.f32 %v8211_v20, %v8183_v31  ;;  %v2632_v47 = vsel %vm2631_vm8, %v4473_v24, %v2628_v60  ;;  %v4479_v32 = vpop.eup %4478  ;;  %vm2669_vm12 = vweird.f32 %v8211_v20  ;;  %v8264_v24 = vld [vmem:[#allocation6 + $0xa8] sm:$0xff]  ;;  %v8314_v4 = vld [vmem:[#allocation6 + $0x50] sm:$0xff]  ;;  %v8329_v60 = vld [vmem:[#allocation6 + $0x38] sm:$0xff] }
 0x3fa   :  { %v2637_v57 = vsel %vm2634_vm10, %v2636_v37, %v2632_v47  ;;  %vm8277_vm14 = vmor %vm2668_vm13, %vm2669_vm12  ;;  %3224 = vmatpush.msrb.mxu3 %v8305_v16  ;;  %3165 = vmatpush.msrb.mxu0 %v8308_v51  ;;  %v8338_v37 = vld [vmem:[#allocation6 + $0x10] sm:$0xff]  ;;  %v8356_v47 = vld [vmem:[#allocation11 + $0x1c0] sm:$0xff] }
 0x3fb   :  { %v2651_v0 = vsel %vm2650_vm9, %v4475_v27, %v2647_v48  ;;  %v2665_v1 = vsub.f32 1.0, %v2664_v52  ;;  %v2679_v5 = vmul.f32 %v4479_v32, %v2637_v57  ;;  %3205 = vmatpush.msrb.mxu2 %v8314_v4  ;;  %v8341_v48 = vld [vmem:[#allocation6 + $0x18] sm:$0xff]  ;;  %v8344_v52 = vld [vmem:[#allocation11 + $0x1e0] sm:$0xff]  ;;  %10694 = vst [vmem:[#allocation39_spill] sm:$0xff] %v8356_v47  ;;  %v8359_v32 = vld [vmem:[#allocation11 + $0x1c8] sm:$0xff] }
 0x3fc   :  { %v2656_v9 = vsel %vm2653_vm11, %v2655_v42, %v2651_v0  ;;  %3225 = vmatpush.msrb.mxu3 %v8317_v43  ;;  %3166 = vmatpush.msrb.mxu0 %v8320_v22  ;;  %v8353_v42 = vld [vmem:[#allocation11 + $0x1f8] sm:$0xff]  ;;  %10695 = vst [vmem:[#allocation26_spill] sm:$0xff] %v8359_v32  ;;  %v8362_v57 = vld [vmem:[#allocation11 + $0x1d0] sm:$0xff]  ;;  %v8392_v27 = vld [vmem:[#allocation11 + $0x160] sm:$0xff] }
 0x3fd   :  { %v2678_v7 = vmul.f32 %v2656_v9, %v7983_v2  ;;  %v2666_v40 = vmul.f32 %v8211_v20, %v2665_v1  ;;  %v8248_v2 = vld [vmem:[#allocation6 + $0xc8] sm:$0xff]  ;;  %10693 = vst [vmem:[#allocation21_spill] sm:$0xff] %v8353_v42  ;;  %v8365_v0 = vld [vmem:[#allocation11 + $0x1d8] sm:$0xff]  ;;  %v8368_v1 = vld [vmem:[#allocation11 + $0x1a0] sm:$0xff] }
 0x3fe   :  { %3181 = vmatpush.msrb.mxu1 %v8248_v2  ;;  %3226 = vmatpush.msrb.mxu3 %v8329_v60  ;;  %10696 = vst [vmem:[#allocation40_spill] sm:$0xff] %v8362_v57  ;;  %v8371_v9 = vld [vmem:[#allocation11 + $0x1a8] sm:$0xff] }
 0x3ff   :  { %v8243_v49 = vadd.f32 %v2679_v5, %v2678_v7  ;;  %v2667_v39 = vadd.f32 %v8211_v20, %v2666_v40  ;;  %3167 = vmatpush.msrb.mxu0 %v8332_v44  ;;  %10697 = vst [vmem:[#allocation23_spill] sm:$0xff] %v8365_v0  ;;  %v8374_v5 = vld [vmem:[#allocation11 + $0x1b0] sm:$0xff]  ;;  %v8377_v7 = vld [vmem:[#allocation11 + $0x1b8] sm:$0xff]  ;;  %v8380_v40 = vld [vmem:[#allocation11 + $0x180] sm:$0xff] }
 0x400   :  { %3182 = vmatpush.msrb.mxu1 %v8264_v24  ;;  %3227 = vmatpush.msrb.mxu3 %v8341_v48  ;;  %10698 = vst [vmem:[#allocation42_spill] sm:$0xff] %v8368_v1 }
 0x401   :  { %4480 = vtanh.f32 %v8243_v49  ;;  %v2671_v31 = vsel %vm8277_vm14, %v8211_v20, %v2667_v39  ;;  %v8326_v20 = vld [vmem:[#allocation6 + $0x30] sm:$0xff]  ;;  %10699 = vst [vmem:[#allocation28_spill] sm:$0xff] %v8371_v9  ;;  %v8383_v39 = vld [vmem:[#allocation11 + $0x188] sm:$0xff] }
 0x402   :  { %3183 = vmatpush.msrb.mxu1 %v8284_v8  ;;  %v2676_v28 = vsel %vm2673_vm15, %v2675_v15, %v2671_v31  ;;  %3206 = vmatpush.msrb.mxu2 %v8326_v20  ;;  %10700 = vst [vmem:[#allocation44_spill] sm:$0xff] %v8374_v5  ;;  %v8395_v31 = vld [vmem:[#allocation11 + $0x168] sm:$0xff]  ;;  %v8398_v15 = vld [vmem:[#allocation11 + $0x170] sm:$0xff] }
 0x403   :  { %10701 = vst [vmem:[#allocation25_spill] sm:$0xff] %v8377_v7 }
 0x404   :  { %3184 = vmatpush.msrb.mxu1 %v8299_v13  ;;  %3207 = vmatpush.msrb.mxu2 %v8338_v37  ;;  %10702 = vst [vmem:[#allocation46_spill] sm:$0xff] %v8380_v40 }
 0x405   :  { %10703 = vst [vmem:[#allocation30_spill] sm:$0xff] %v8383_v39 }
 0x406   :  { %3185 = vmatpush.msrb.mxu1 %v8311_v56  ;;  %10706 = vst [vmem:[#allocation50_spill] sm:$0xff] %v8392_v27 }
 0x407   :  { %v4481_v34 = vpop.eup %4480  ;;  %10707 = vst [vmem:[#allocation33_spill] sm:$0xff] %v8395_v31 }
 0x408   :  { %v2682_v63 = vmul.f32 %v4481_v34, %v2676_v28  ;;  %3186 = vmatpush.msrb.mxu1 %v8323_v18  ;;  %10708 = vst [vmem:[#allocation52_spill] sm:$0xff] %v8398_v15  ;;  %v8401_v34 = vld [vmem:[#allocation11 + $0x178] sm:$0xff]  ;;  %v8404_v28 = vld [vmem:[#allocation11 + $0x140] sm:$0xff] }
 0x409   :  { %10709 = vst [vmem:[#allocation29_spill] sm:$0xff] %v8401_v34 }
 0x40a   :  { %3016 = vmatmul.f32.vlgmr.msra.gmra.mxu0 %v2682_v63  ;;  %3036 = vmatmul.f32.vlgmr.msra.gmra.mxu1 %v2682_v63  ;;  %10710 = vst [vmem:[#allocation54_spill] sm:$0xff] %v8404_v28 }
 0x40b   :  { %3056 = vmatmul.f32.vlgmr.msra.gmra.mxu2 %v2682_v63  ;;  %3076 = vmatmul.f32.vlgmr.msra.gmra.mxu3 %v2682_v63  ;;  %v8407_v63 = vld [vmem:[#allocation11 + $0x148] sm:$0xff] }
 0x40c   :  { %3187 = vmatpush.msrb.mxu1 %v8335_v17  ;;  %3232 = vmatpush.msra.mxu0 %v8344_v52  ;;  %10711 = vst [vmem:[#allocation37_spill] sm:$0xff] %v8407_v63 }
 0x40d   :  { %3272 = vmatpush.msra.mxu2 %v8350_v62  ;;  %3292 = vmatpush.msra.mxu3 %v8353_v42 }
 0x40e   :  { %3252 = vmatpush.msra.mxu1 %v8347_v59  ;;  %3233 = vmatpush.msra.mxu0 %v8356_v47 }
 0x40f   :  { %3273 = vmatpush.msra.mxu2 %v8362_v57  ;;  %3293 = vmatpush.msra.mxu3 %v8365_v0 }
 0x410   :  { %3253 = vmatpush.msra.mxu1 %v8359_v32  ;;  %3234 = vmatpush.msra.mxu0 %v8368_v1 }
 0x411   :  { %3274 = vmatpush.msra.mxu2 %v8374_v5  ;;  %3294 = vmatpush.msra.mxu3 %v8377_v7 }
 0x412   :  { %3254 = vmatpush.msra.mxu1 %v8371_v9  ;;  %3235 = vmatpush.msra.mxu0 %v8380_v40 }
 0x413   :  { %3275 = vmatpush.msra.mxu2 %v8386_v41  ;;  %3295 = vmatpush.msra.mxu3 %v8389_v25  ;;  %v2725_v25 = vpop.f32.mrf.mxu1 }
 0x414   :  { %3255 = vmatpush.msra.mxu1 %v8383_v39  ;;  %3236 = vmatpush.msra.mxu0 %v8392_v27  ;;  %v8410_v27 = vld [vmem:[#allocation11 + $0x150] sm:$0xff]  ;;  %v2726_v41 = vadd.f32 %v2725_v25, %v10600_v46  ;;  %v2765_v39 = vpop.f32.mrf.mxu3  ;;  %v2745_v25 = vpop.f32.mrf.mxu2 }
 0x415   :  { %3276 = vmatpush.msra.mxu2 %v8398_v15  ;;  %3296 = vmatpush.msra.mxu3 %v8401_v34  ;;  %10712 = vst [vmem:[#allocation56_spill] sm:$0xff] %v8410_v27  ;;  %v8416_v15 = vld [vmem:[#allocation11 + $0x120] sm:$0xff]  ;;  %v8419_v34 = vld [vmem:[#allocation11 + $0x128] sm:$0xff]  ;;  %v2766_v1 = vadd.f32 %v2765_v39, %v10601_v54 }
 0x416   :  { %3256 = vmatpush.msra.mxu1 %v8395_v31  ;;  %3237 = vmatpush.msra.mxu0 %v8404_v28  ;;  %v8413_v31 = vld [vmem:[#allocation11 + $0x158] sm:$0xff]  ;;  %10714 = vst [vmem:[#allocation58_spill] sm:$0xff] %v8416_v15  ;;  %v8422_v28 = vld [vmem:[#allocation11 + $0x130] sm:$0xff] }
 0x417   :  { %3277 = vmatpush.msra.mxu2 %v8410_v27  ;;  %10713 = vst [vmem:[#allocation31_spill] sm:$0xff] %v8413_v31  ;;  %3297 = vmatpush.msra.mxu3 %v8413_v31  ;;  %v8428_v27 = vld [vmem:[#allocation11 + $0x100] sm:$0xff]  ;;  %v8431_v31 = vld [vmem:[#allocation11 + $0x108] sm:$0xff] }
 0x418   :  { %3257 = vmatpush.msra.mxu1 %v8407_v63  ;;  %3238 = vmatpush.msra.mxu0 %v8416_v15  ;;  %10715 = vst [vmem:[#allocation60_spill] sm:$0xff] %v8419_v34  ;;  %v8425_v63 = vld [vmem:[#allocation11 + $0x138] sm:$0xff]  ;;  %v8434_v15 = vld [vmem:[#allocation11 + $0x110] sm:$0xff] }
 0x419   :  { %10716 = vst [vmem:[#allocation62_spill] sm:$0xff] %v8422_v28  ;;  %3278 = vmatpush.msra.mxu2 %v8422_v28  ;;  %3298 = vmatpush.msra.mxu3 %v8425_v63  ;;  %v8440_v28 = vld [vmem:[#allocation11 + $0xe0] sm:$0xff] }
 0x41a   :  { %3258 = vmatpush.msra.mxu1 %v8419_v34  ;;  %10717 = vst [vmem:[#allocation65_spill] sm:$0xff] %v8425_v63  ;;  %3239 = vmatpush.msra.mxu0 %v8428_v27  ;;  %v8437_v34 = vld [vmem:[#allocation11 + $0x118] sm:$0xff]  ;;  %v8443_v63 = vld [vmem:[#allocation11 + $0xe8] sm:$0xff] }
 0x41b   :  { %10718 = vst [vmem:[#allocation67_spill] sm:$0xff] %v8428_v27  ;;  %3279 = vmatpush.msra.mxu2 %v8434_v15  ;;  %3299 = vmatpush.msra.mxu3 %v8437_v34  ;;  %v8446_v27 = vld [vmem:[#allocation11 + $0xf0] sm:$0xff] }
 0x41c   :  { %10719 = vst [vmem:[#allocation69_spill] sm:$0xff] %v8431_v31  ;;  %3259 = vmatpush.msra.mxu1 %v8431_v31  ;;  %3240 = vmatpush.msra.mxu0 %v8440_v28  ;;  %v8449_v31 = vld [vmem:[#allocation11 + $0xf8] sm:$0xff] }
 0x41d   :  { %10720 = vst [vmem:[#allocation71_spill] sm:$0xff] %v8434_v15  ;;  %3280 = vmatpush.msra.mxu2 %v8446_v27  ;;  %3300 = vmatpush.msra.mxu3 %v8449_v31  ;;  %v8452_v15 = vld [vmem:[#allocation11 + $0xc0] sm:$0xff] }
 0x41e   :  { %10721 = vst [vmem:[#allocation73_spill] sm:$0xff] %v8437_v34  ;;  %3260 = vmatpush.msra.mxu1 %v8443_v63  ;;  %3241 = vmatpush.msra.mxu0 %v8452_v15  ;;  %v8455_v34 = vld [vmem:[#allocation11 + $0xc8] sm:$0xff] }
 0x41f   :  { %10722 = vst [vmem:[#allocation74_spill] sm:$0xff] %v8440_v28  ;;  %v8458_v28 = vld [vmem:[#allocation11 + $0xd0] sm:$0xff] }
 0x420   :  { %10723 = vst [vmem:[#allocation75_spill] sm:$0xff] %v8443_v63  ;;  %3261 = vmatpush.msra.mxu1 %v8455_v34  ;;  %3281 = vmatpush.msra.mxu2 %v8458_v28  ;;  %v8461_v63 = vld [vmem:[#allocation11 + $0xd8] sm:$0xff] }
 0x421   :  { %10724 = vst [vmem:[#allocation78_spill] sm:$0xff] %v8446_v27  ;;  %3301 = vmatpush.msra.mxu3 %v8461_v63  ;;  %v8464_v27 = vld [vmem:[#allocation11 + $0xa0] sm:$0xff] }
 0x422   :  { %10725 = vst [vmem:[#allocation79_spill] sm:$0xff] %v8449_v31  ;;  %3242 = vmatpush.msra.mxu0 %v8464_v27  ;;  %v8467_v31 = vld [vmem:[#allocation11 + $0xa8] sm:$0xff] }
 0x423   :  { %10726 = vst [vmem:[#allocation82_spill] sm:$0xff] %v8452_v15  ;;  %3262 = vmatpush.msra.mxu1 %v8467_v31  ;;  %v8470_v15 = vld [vmem:[#allocation11 + $0xb0] sm:$0xff] }
 0x424   :  { %10727 = vst [vmem:[#allocation83_spill] sm:$0xff] %v8455_v34  ;;  %3282 = vmatpush.msra.mxu2 %v8470_v15  ;;  %v8473_v34 = vld [vmem:[#allocation11 + $0xb8] sm:$0xff] }
 0x425   :  { %10728 = vst [vmem:[#allocation86_spill] sm:$0xff] %v8458_v28  ;;  %3302 = vmatpush.msra.mxu3 %v8473_v34  ;;  %v8476_v28 = vld [vmem:[#allocation11 + $0x80] sm:$0xff] }
 0x426   :  { %10729 = vst [vmem:[#allocation87_spill] sm:$0xff] %v8461_v63  ;;  %3243 = vmatpush.msra.mxu0 %v8476_v28  ;;  %v8479_v63 = vld [vmem:[#allocation11 + $0x88] sm:$0xff] }
 0x427   :  { %10730 = vst [vmem:[#allocation41_spill] sm:$0xff] %v8464_v27  ;;  %3263 = vmatpush.msra.mxu1 %v8479_v63  ;;  %v8482_v27 = vld [vmem:[#allocation11 + $0x90] sm:$0xff] }
 0x428   :  { %10731 = vst [vmem:[#allocation36_spill] sm:$0xff] %v8467_v31  ;;  %3283 = vmatpush.msra.mxu2 %v8482_v27  ;;  %v8485_v31 = vld [vmem:[#allocation11 + $0x98] sm:$0xff] }
 0x429   :  { %10732 = vst [vmem:[#allocation90_spill] sm:$0xff] %v8470_v15  ;;  %3303 = vmatpush.msra.mxu3 %v8485_v31  ;;  %v8488_v15 = vld [vmem:[#allocation11 + $0x60] sm:$0xff] }
 0x42a   :  { %10733 = vst [vmem:[#allocation91_spill] sm:$0xff] %v8473_v34  ;;  %3244 = vmatpush.msra.mxu0 %v8488_v15  ;;  %v8491_v34 = vld [vmem:[#allocation11 + $0x68] sm:$0xff] }
 0x42b   :  { %10734 = vst [vmem:[#allocation45_spill] sm:$0xff] %v8476_v28  ;;  %3264 = vmatpush.msra.mxu1 %v8491_v34  ;;  %v8494_v28 = vld [vmem:[#allocation11 + $0x70] sm:$0xff] }
 0x42c   :  { %10735 = vst [vmem:[#allocation43_spill] sm:$0xff] %v8479_v63  ;;  %3284 = vmatpush.msra.mxu2 %v8494_v28  ;;  %v8497_v63 = vld [vmem:[#allocation11 + $0x78] sm:$0xff] }
 0x42d   :  { %10736 = vst [vmem:[#allocation94_spill] sm:$0xff] %v8482_v27  ;;  %3304 = vmatpush.msra.mxu3 %v8497_v63  ;;  %v8500_v27 = vld [vmem:[#allocation11 + $0x40] sm:$0xff] }
 0x42e   :  { %10737 = vst [vmem:[#allocation95_spill] sm:$0xff] %v8485_v31  ;;  %3245 = vmatpush.msra.mxu0 %v8500_v27  ;;  %v8503_v31 = vld [vmem:[#allocation11 + $0x48] sm:$0xff] }
 0x42f   :  { %10738 = vst [vmem:[#allocation49_spill] sm:$0xff] %v8488_v15  ;;  %3265 = vmatpush.msra.mxu1 %v8503_v31  ;;  %v8506_v15 = vld [vmem:[#allocation11 + $0x50] sm:$0xff] }
 0x430   :  { %10739 = vst [vmem:[#allocation47_spill] sm:$0xff] %v8491_v34  ;;  %3285 = vmatpush.msra.mxu2 %v8506_v15  ;;  %v8509_v34 = vld [vmem:[#allocation11 + $0x58] sm:$0xff] }
 0x431   :  { %10740 = vst [vmem:[#allocation98_spill] sm:$0xff] %v8494_v28  ;;  %3305 = vmatpush.msra.mxu3 %v8509_v34  ;;  %v8512_v28 = vld [vmem:[#allocation11 + $0x20] sm:$0xff] }
 0x432   :  { %10741 = vst [vmem:[#allocation99_spill] sm:$0xff] %v8497_v63  ;;  %3246 = vmatpush.msra.mxu0 %v8512_v28  ;;  %v8515_v63 = vld [vmem:[#allocation11 + $0x28] sm:$0xff] }
 0x433   :  { %10742 = vst [vmem:[#allocation53_spill] sm:$0xff] %v8500_v27  ;;  %3266 = vmatpush.msra.mxu1 %v8515_v63  ;;  %v8518_v27 = vld [vmem:[#allocation11 + $0x30] sm:$0xff] }
 0x434   :  { %10743 = vst [vmem:[#allocation51_spill] sm:$0xff] %v8503_v31  ;;  %3286 = vmatpush.msra.mxu2 %v8518_v27  ;;  %v8521_v31 = vld [vmem:[#allocation11 + $0x38] sm:$0xff] }
 0x435   :  { %10744 = vst [vmem:[#allocation102_spill] sm:$0xff] %v8506_v15  ;;  %3306 = vmatpush.msra.mxu3 %v8521_v31  ;;  %v8524_v15 = vld [vmem:[#allocation11] sm:$0xff] }
 0x436   :  { %10745 = vst [vmem:[#allocation103_spill] sm:$0xff] %v8509_v34  ;;  %3247 = vmatpush.msra.mxu0 %v8524_v15  ;;  %v8527_v34 = vld [vmem:[#allocation11 + $0x8] sm:$0xff] }
 0x437   :  { %10746 = vst [vmem:[#allocation57_spill] sm:$0xff] %v8512_v28  ;;  %3267 = vmatpush.msra.mxu1 %v8527_v34  ;;  %v8530_v28 = vld [vmem:[#allocation11 + $0x10] sm:$0xff] }
 0x438   :  { %10747 = vst [vmem:[#allocation55_spill] sm:$0xff] %v8515_v63  ;;  %3287 = vmatpush.msra.mxu2 %v8530_v28  ;;  %v8533_v63 = vld [vmem:[#allocation11 + $0x18] sm:$0xff]  ;;  %v2805_v40 = vpop.f32.mrf.mxu1 }
 0x439   :  { %10748 = vst [vmem:[#allocation106_spill] sm:$0xff] %v8518_v27  ;;  %3307 = vmatpush.msra.mxu3 %v8533_v63  ;;  %v2705_v27 = vpop.f32.mrf.mxu0  ;;  %v2849_v5 = vadd.f32 %v2805_v40, %v2726_v41  ;;  %v8552_v41 = vld [vmem:[#allocation9 + $0xf0] sm:$0xff] }
 0x43a   :  { %10749 = vst [vmem:[#allocation107_spill] sm:$0xff] %v8521_v31  ;;  %v2706_v31 = vadd.f32 %v2705_v27, %v10599_v50  ;;  %v8558_v27 = vld [vmem:[#allocation9 + $0xc0] sm:$0xff] }
 0x43b   :  { %10750 = vst [vmem:[#allocation61_spill] sm:$0xff] %v8524_v15  ;;  %v4269_v9 = vmul.f32 -1.442695, %v2849_v5  ;;  %v8549_v5 = vld [vmem:[#allocation9 + $0xe8] sm:$0xff] }
 0x43c   :  { %10751 = vst [vmem:[#allocation59_spill] sm:$0xff] %v8527_v34 }
 0x43d   :  { %10752 = vst [vmem:[#allocation110_spill] sm:$0xff] %v8530_v28  ;;  %v4279_v28 = vld [vmem:[%s9242_s0 + $0xc] sm:$0x3] }
 0x43e   :  { %10753 = vst [vmem:[#allocation111_spill] sm:$0xff] %v8533_v63  ;;  %4280 = vmatmul.msk.f32.vlgmr.msrb.gmra.mxu0 %vm355_vm0, %v4279_v28  ;;  %4281 = vmatmul.msk.f32.vlgmr.msrb.gmra.mxu1 %vm355_vm0, %v4279_v28 }
 0x43f   :  { %4282 = vmatmul.msk.f32.vlgmr.msrb.gmra.mxu2 %vm355_vm0, %v4279_v28  ;;  %4283 = vmatmul.msk.f32.vlgmr.msrb.gmra.mxu3 %vm355_vm0, %v4279_v28  ;;  %v2845_v40 = vpop.f32.mrf.mxu3  ;;  %10755 = vst [vmem:[#allocation63_spill] sm:$0xff] %v8549_v5 }
 0x440   :  { %3412 = vmatpush.msrb.mxu1 %v8549_v5  ;;  %v2851_v39 = vadd.f32 %v2845_v40, %v2766_v1  ;;  %10756 = vst [vmem:[#allocation114_spill] sm:$0xff] %v8552_v41  ;;  %3432 = vmatpush.msrb.mxu2 %v8552_v41  ;;  %v8567_v1 = vld [vmem:[#allocation9 + $0xd8] sm:$0xff]  ;;  %v8570_v40 = vld [vmem:[#allocation9 + $0xa0] sm:$0xff]  ;;  %v8633_v5 = vld [vmem:[#allocation9 + $0x30] sm:$0xff] }
 0x441   :  { %v2785_v15 = vpop.f32.mrf.mxu0  ;;  %10758 = vst [vmem:[#allocation68_spill] sm:$0xff] %v8558_v27  ;;  %v8586_v41 = vld [vmem:[#allocation9 + $0x80] sm:$0xff] }
 0x442   :  { %v2848_v7 = vadd.f32 %v2785_v15, %v2706_v31  ;;  %v8561_v31 = vld [vmem:[#allocation9 + $0xc8] sm:$0xff]  ;;  %v4270_v15 = vmul.f32 -1.442695, %v2851_v39  ;;  %10761 = vst [vmem:[#allocation119_spill] sm:$0xff] %v8567_v1  ;;  %v8578_v39 = vld [vmem:[#allocation9 + $0xb0] sm:$0xff] }
 0x443   :  { %10759 = vst [vmem:[#allocation66_spill] sm:$0xff] %v8561_v31  ;;  %3413 = vmatpush.msrb.mxu1 %v8561_v31 }
 0x444   :  { %v4268_v34 = vmul.f32 -1.442695, %v2848_v7  ;;  %v8546_v7 = vld [vmem:[#allocation9 + $0xe0] sm:$0xff]  ;;  %10762 = vst [vmem:[#allocation70_spill] sm:$0xff] %v8570_v40 }
 0x445   :  { %10754 = vst [vmem:[#allocation64_spill] sm:$0xff] %v8546_v7  ;;  %3392 = vmatpush.msrb.mxu0 %v8546_v7 }
 0x446   :  { %4482 = vpow2.f32 %v4268_v34  ;;  %v8564_v34 = vld [vmem:[#allocation9 + $0xd0] sm:$0xff]  ;;  %10764 = vst [vmem:[#allocation122_spill] sm:$0xff] %v8578_v39 }
 0x447   :  { %4484 = vpow2.f32 %v4269_v9  ;;  %v8555_v9 = vld [vmem:[#allocation9 + $0xf8] sm:$0xff]  ;;  %3393 = vmatpush.msrb.mxu0 %v8558_v27  ;;  %10760 = vst [vmem:[#allocation118_spill] sm:$0xff] %v8564_v34  ;;  %3433 = vmatpush.msrb.mxu2 %v8564_v34 }
 0x448   :  { %10757 = vst [vmem:[#allocation115_spill] sm:$0xff] %v8555_v9  ;;  %3452 = vmatpush.msrb.mxu3 %v8555_v9  ;;  %v8573_v9 = vld [vmem:[#allocation9 + $0xa8] sm:$0xff]  ;;  %4486 = vpow2.f32 %v4270_v15  ;;  %v8581_v34 = vld [vmem:[#allocation9 + $0xb8] sm:$0xff]  ;;  %v8593_v15 = vld [vmem:[#allocation9 + $0x90] sm:$0xff] }
 0x449   :  { %3394 = vmatpush.msrb.mxu0 %v8570_v40  ;;  %10763 = vst [vmem:[#allocation72_spill] sm:$0xff] %v8573_v9  ;;  %3414 = vmatpush.msrb.mxu1 %v8573_v9  ;;  %v8589_v40 = vld [vmem:[#allocation9 + $0x88] sm:$0xff]  ;;  %v8619_v9 = vld [vmem:[#allocation9 + $0x50] sm:$0xff] }
 0x44a   :  { %3453 = vmatpush.msrb.mxu3 %v8567_v1  ;;  %3434 = vmatpush.msrb.mxu2 %v8578_v39  ;;  %10765 = vst [vmem:[#allocation123_spill] sm:$0xff] %v8581_v34  ;;  %v8613_v39 = vld [vmem:[#allocation9 + $0x40] sm:$0xff] }
 0x44b   :  { %10766 = vst [vmem:[#allocation76_spill] sm:$0xff] %v8586_v41  ;;  %3395 = vmatpush.msrb.mxu0 %v8586_v41  ;;  %3415 = vmatpush.msrb.mxu1 %v8589_v40  ;;  %v8603_v41 = vld [vmem:[#allocation9 + $0x68] sm:$0xff] }
 0x44c   :  { %v4483_v28 = vpop.eup %4482  ;;  %3454 = vmatpush.msrb.mxu3 %v8581_v34  ;;  %10767 = vst [vmem:[#allocation77_spill] sm:$0xff] %v8589_v40  ;;  %3435 = vmatpush.msrb.mxu2 %v8593_v15  ;;  %v2746_v40 = vadd.f32 %v2745_v25, %v10620_v11  ;;  %v8607_v34 = vld [vmem:[#allocation9 + $0x70] sm:$0xff]  ;;  %v8622_v25 = vld [vmem:[#allocation9 + $0x58] sm:$0xff] }
 0x44d   :  { %v4485_v27 = vpop.eup %4484  ;;  %v8576_v31 = vadd.f32 1.0, %v4483_v28  ;;  %10768 = vst [vmem:[#allocation126_spill] sm:$0xff] %v8593_v15  ;;  %v8596_v28 = vld [vmem:[#allocation9 + $0x98] sm:$0xff]  ;;  %3416 = vmatpush.msrb.mxu1 %v8603_v41 }
 0x44e   :  { %v8584_v1 = vadd.f32 1.0, %v4485_v27  ;;  %10769 = vst [vmem:[#allocation80_spill] sm:$0xff] %v8596_v28  ;;  %3455 = vmatpush.msrb.mxu3 %v8596_v28  ;;  %v8600_v27 = vld [vmem:[#allocation9 + $0x60] sm:$0xff]  ;;  %3436 = vmatpush.msrb.mxu2 %v8607_v34  ;;  %v8610_v15 = vld [vmem:[#allocation9 + $0x78] sm:$0xff]  ;;  %v2825_v28 = vpop.f32.mrf.mxu2 }
 0x44f   :  { %4488 = vrcp.f32 %v8576_v31  ;;  %10770 = vst [vmem:[#allocation81_spill] sm:$0xff] %v8600_v27  ;;  %3396 = vmatpush.msrb.mxu0 %v8600_v27  ;;  %v8616_v27 = vld [vmem:[#allocation9 + $0x48] sm:$0xff]  ;;  %v2850_v11 = vadd.f32 %v2825_v28, %v2746_v40  ;;  %v8648_v28 = vld [vmem:[#allocation9 + $0x10] sm:$0xff]  ;;  %v2867_v54 = vand.u32 2147483648, %v8576_v31  ;;  %vm2861_vm3 = vweird.f32 %v8576_v31 }
 0x450   :  { %4490 = vrcp.f32 %v8584_v1  ;;  %10771 = vst [vmem:[#allocation129_spill] sm:$0xff] %v8603_v41  ;;  %3456 = vmatpush.msrb.mxu3 %v8610_v15  ;;  %3417 = vmatpush.msrb.mxu1 %v8616_v27  ;;  %v4487_v41 = vpop.eup %4486  ;;  %v2884_v63 = vand.u32 2147483647, %v8584_v1  ;;  %vm2880_vm4 = vweird.f32 %v8584_v1 }
 0x451   :  { %10772 = vst [vmem:[#allocation84_spill] sm:$0xff] %v8607_v34  ;;  %3397 = vmatpush.msrb.mxu0 %v8613_v39  ;;  %3437 = vmatpush.msrb.mxu2 %v8619_v9  ;;  %v8625_v34 = vadd.f32 1.0, %v4487_v41 }
 0x452   :  { %10773 = vst [vmem:[#allocation85_spill] sm:$0xff] %v8610_v15  ;;  %3457 = vmatpush.msrb.mxu3 %v8622_v25  ;;  %v8627_v15 = vld [vmem:[#allocation9 + $0x20] sm:$0xff]  ;;  %vm2885_vm8 = vcmp.eq.f32.partialorder %v2884_v63, 8.507059e+37 }
 0x453   :  { %10774 = vst [vmem:[#allocation132_spill] sm:$0xff] %v8613_v39  ;;  %3398 = vmatpush.msrb.mxu0 %v8627_v15  ;;  %v8630_v39 = vld [vmem:[#allocation9 + $0x28] sm:$0xff]  ;;  %3438 = vmatpush.msrb.mxu2 %v8633_v5  ;;  %4492 = vrcp.f32 %v8625_v34  ;;  %vm2900_vm10 = vweird.f32 %v8625_v34 }
 0x454   :  { %10775 = vst [vmem:[#allocation88_spill] sm:$0xff] %v8616_v27  ;;  %3418 = vmatpush.msrb.mxu1 %v8630_v39  ;;  %4494 = vtanh.f32 %v2850_v11 }
 0x455   :  { %10776 = vst [vmem:[#allocation89_spill] sm:$0xff] %v8619_v9  ;;  %v4489_v27 = vpop.eup %4488  ;;  %v8636_v9 = vld [vmem:[#allocation9 + $0x38] sm:$0xff]  ;;  %3439 = vmatpush.msrb.mxu2 %v8648_v28 }
 0x456   :  { %10777 = vst [vmem:[#allocation133_spill] sm:$0xff] %v8622_v25  ;;  %3458 = vmatpush.msrb.mxu3 %v8636_v9  ;;  %v4491_v41 = vpop.eup %4490  ;;  %v2857_v25 = vmul.f32 %v4489_v27, %v8576_v31  ;;  %vm2862_vm1 = vweird.f32 %v4489_v27 }
 0x457   :  { %10778 = vst [vmem:[#allocation134_spill] sm:$0xff] %v8627_v15  ;;  %v8641_v15 = vld [vmem:[#allocation9] sm:$0xff]  ;;  %v2876_v40 = vmul.f32 %v4491_v41, %v8584_v1  ;;  %vm2881_vm2 = vweird.f32 %v4491_v41  ;;  %vm2863_vm5 = vmor %vm2861_vm3, %vm2862_vm1 }
 0x458   :  { %10779 = vst [vmem:[#allocation92_spill] sm:$0xff] %v8630_v39  ;;  %3399 = vmatpush.msrb.mxu0 %v8641_v15  ;;  %v8644_v39 = vld [vmem:[#allocation9 + $0x8] sm:$0xff]  ;;  %vm2882_vm6 = vmor %vm2880_vm4, %vm2881_vm2 }
 0x459   :  { %10780 = vst [vmem:[#allocation93_spill] sm:$0xff] %v8633_v5  ;;  %3419 = vmatpush.msrb.mxu1 %v8644_v39  ;;  %v2858_v5 = vsub.f32 1.0, %v2857_v25  ;;  %v2877_v7 = vsub.f32 1.0, %v2876_v40  ;;  %v2868_v25 = vor.u32 1.1754944e-38, %v2867_v54  ;;  %v2906_v54 = vand.u32 2147483648, %v8625_v34 }
 0x45a   :  { %10781 = vst [vmem:[#allocation96_spill] sm:$0xff] %v8636_v9  ;;  %v8651_v9 = vld [vmem:[#allocation9 + $0x18] sm:$0xff] }
 0x45b   :  { %10782 = vst [vmem:[#allocation97_spill] sm:$0xff] %v8641_v15  ;;  %3459 = vmatpush.msrb.mxu3 %v8651_v9  ;;  %v2886_v15 = vand.u32 2147483648, %v8584_v1  ;;  %v2859_v46 = vmul.f32 %v4489_v27, %v2858_v5  ;;  %v2878_v50 = vmul.f32 %v4491_v41, %v2877_v7 }
 0x45c   :  { %10783 = vst [vmem:[#allocation100_spill] sm:$0xff] %v8644_v39  ;;  %v2865_v39 = vand.u32 2147483647, %v8576_v31 }
 0x45d   :  { %10784 = vst [vmem:[#allocation101_spill] sm:$0xff] %v8648_v28  ;;  %v4493_v28 = vpop.eup %4492  ;;  %v2860_v0 = vadd.f32 %v4489_v27, %v2859_v46  ;;  %v2879_v40 = vadd.f32 %v4491_v41, %v2878_v50  ;;  %v2887_v5 = vor.u32 1.1754944e-38, %v2886_v15  ;;  %v8671_v15 = vld [vmem:[#allocation12 + $0x1e8] sm:$0xff] }
 0x45e   :  { %10785 = vst [vmem:[#allocation104_spill] sm:$0xff] %v8651_v9  ;;  %v2896_v11 = vmul.f32 %v4493_v28, %v8625_v34  ;;  %vm2866_vm7 = vcmp.eq.f32.partialorder %v2865_v39, 8.507059e+37  ;;  %v4495_v57 = vpop.eup %4494  ;;  %vm2901_vm9 = vweird.f32 %v4493_v28  ;;  %v8668_v39 = vld [vmem:[#allocation12 + $0x1e0] sm:$0xff] }
 0x45f   :  { %v2864_v9 = vsel %vm2863_vm5, %v4489_v27, %v2860_v0  ;;  %v2883_v32 = vsel %vm2882_vm6, %v4491_v41, %v2879_v40  ;;  %v2904_v0 = vand.u32 2147483647, %v8625_v34  ;;  %vm2902_vm11 = vmor %vm2900_vm10, %vm2901_vm9  ;;  %v8676_v41 = vld [vmem:[#allocation12 + $0x1f0] sm:$0xff] }
 0x460   :  { %v2869_v7 = vsel %vm2866_vm7, %v2868_v25, %v2864_v9  ;;  %v2897_v47 = vsub.f32 1.0, %v2896_v11  ;;  %v2888_v42 = vsel %vm2885_vm8, %v2887_v5, %v2883_v32  ;;  %v8682_v11 = vld [vmem:[#allocation12 + $0x1c0] sm:$0xff]  ;;  %v8685_v5 = vld [vmem:[#allocation12 + $0x1c8] sm:$0xff] }
 0x461   :  { %v2911_v46 = vmul.f32 %v4495_v57, %v2869_v7  ;;  %v2910_v31 = vmul.f32 %v2888_v42, %v8128_v58  ;;  %v2937_v63 = vpop.f32.mrf.mxu0  ;;  %v2907_v57 = vor.u32 1.1754944e-38, %v2906_v54  ;;  %vm2905_vm12 = vcmp.eq.f32.partialorder %v2904_v0, 8.507059e+37  ;;  %10786 = vst [vmem:[#allocation105_spill] sm:$0xff] %v8685_v5  ;;  %v8694_v54 = vld [vmem:[#allocation12 + $0x1a0] sm:$0xff]  ;;  %v8697_v0 = vld [vmem:[#allocation12 + $0x1a8] sm:$0xff] }
 0x462   :  { %v2898_v62 = vmul.f32 %v4493_v28, %v2897_v47  ;;  %v2957_v9 = vpop.f32.mrf.mxu1  ;;  %v2938_v34 = vadd.f32 %v2937_v63, %v6198_v30  ;;  %10789 = vst [vmem:[#allocation112_spill] sm:$0xff] %v8694_v54 }
 0x463   :  { %v8662_v1 = vadd.f32 %v2911_v46, %v2910_v31  ;;  %v2958_v27 = vadd.f32 %v2957_v9, %v6203_v33  ;;  %v8688_v31 = vld [vmem:[#allocation12 + $0x1d0] sm:$0xff]  ;;  %10790 = vst [vmem:[#allocation113_spill] sm:$0xff] %v8697_v0 }
 0x464   :  { %v2899_v50 = vadd.f32 %v4493_v28, %v2898_v62  ;;  %10787 = vst [vmem:[#allocation108_spill] sm:$0xff] %v8688_v31 }
 0x465   :  { %4496 = vtanh.f32 %v8662_v1 }
 0x466   :  { %v2903_v32 = vsel %vm2902_vm11, %v4493_v28, %v2899_v50  ;;  %v8679_v28 = vld [vmem:[#allocation12 + $0x1f8] sm:$0xff] }
 0x467   :  { %v2908_v42 = vsel %vm2905_vm12, %v2907_v57, %v2903_v32  ;;  %v8691_v50 = vld [vmem:[#allocation12 + $0x1d8] sm:$0xff]  ;;  %v8700_v32 = vld [vmem:[#allocation12 + $0x1b0] sm:$0xff] }
 0x468   :  { %10788 = vst [vmem:[#allocation109_spill] sm:$0xff] %v8691_v50  ;;  %v8703_v57 = vld [vmem:[#allocation12 + $0x1b8] sm:$0xff] }
 0x469   :  { %v2997_v62 = vpop.f32.mrf.mxu3  ;;  %10791 = vst [vmem:[#allocation116_spill] sm:$0xff] %v8700_v32 }
 0x46a   :  { %10792 = vst [vmem:[#allocation117_spill] sm:$0xff] %v8703_v57 }
 0x46b   :  { %v4497_v58 = vpop.eup %4496 }
 0x46c   :  { %v2914_v47 = vmul.f32 %v4497_v58, %v2908_v42  ;;  %v2998_v58 = vadd.f32 %v2997_v62, %v10642_v21  ;;  %v8707_v42 = vld [vmem:[#allocation12 + $0x180] sm:$0xff]  ;;  %v8722_v62 = vld [vmem:[#allocation12 + $0x168] sm:$0xff] }
 0x46d   :  { %10793 = vst [vmem:[#allocation120_spill] sm:$0xff] %v8707_v42 }
 0x46e   :  { %3248 = vmatmul.f32.vlgmr.msra.gmra.mxu0 %v2914_v47  ;;  %3268 = vmatmul.f32.vlgmr.msra.gmra.mxu1 %v2914_v47  ;;  %10798 = vst [vmem:[#allocation128_spill] sm:$0xff] %v8722_v62 }
 0x46f   :  { %3288 = vmatmul.f32.vlgmr.msra.gmra.mxu2 %v2914_v47  ;;  %3308 = vmatmul.f32.vlgmr.msra.gmra.mxu3 %v2914_v47  ;;  %v8710_v47 = vld [vmem:[#allocation12 + $0x188] sm:$0xff] }
 0x470   :  { %3464 = vmatpush.msra.mxu0 %v8668_v39  ;;  %3484 = vmatpush.msra.mxu1 %v8671_v15  ;;  %10794 = vst [vmem:[#allocation121_spill] sm:$0xff] %v8710_v47 }
 0x471   :  { %3504 = vmatpush.msra.mxu2 %v8676_v41  ;;  %3524 = vmatpush.msra.mxu3 %v8679_v28 }
 0x472   :  { %3465 = vmatpush.msra.mxu0 %v8682_v11  ;;  %3485 = vmatpush.msra.mxu1 %v8685_v5  ;;  %v8910_v5 = vld [vmem:[#allocation12] sm:$0xff] }
 0x473   :  { %3505 = vmatpush.msra.mxu2 %v8688_v31  ;;  %3525 = vmatpush.msra.mxu3 %v8691_v50 }
 0x474   :  { %3466 = vmatpush.msra.mxu0 %v8694_v54  ;;  %3486 = vmatpush.msra.mxu1 %v8697_v0  ;;  %v8886_v54 = vld [vmem:[#allocation12 + $0x20] sm:$0xff] }
 0x475   :  { %3506 = vmatpush.msra.mxu2 %v8700_v32  ;;  %3526 = vmatpush.msra.mxu3 %v8703_v57  ;;  %v8860_v32 = vld [vmem:[#allocation12 + $0x40] sm:$0xff]  ;;  %10839 = vst [vmem:[#allocation171_spill] sm:$0xff] %v8886_v54 }
 0x476   :  { %3467 = vmatpush.msra.mxu0 %v8707_v42  ;;  %3487 = vmatpush.msra.mxu1 %v8710_v47  ;;  %v8743_v47 = vld [vmem:[#allocation12 + $0x120] sm:$0xff]  ;;  %10833 = vst [vmem:[#allocation167_spill] sm:$0xff] %v8860_v32 }
 0x477   :  { %10805 = vst [vmem:[#allocation139_spill] sm:$0xff] %v8743_v47  ;;  %v8817_v42 = vld [vmem:[#allocation12 + $0x80] sm:$0xff] }
 0x478   :  { %3488 = vmatpush.msra.mxu1 %v8722_v62  ;;  %v8737_v62 = vld [vmem:[#allocation12 + $0x150] sm:$0xff]  ;;  %10825 = vst [vmem:[#allocation159_spill] sm:$0xff] %v8817_v42 }
 0x479   :  { %10803 = vst [vmem:[#allocation137_spill] sm:$0xff] %v8737_v62 }
 0x487   :  { %v3017_v25 = vpop.f32.mrf.mxu0  ;;  %v3037_v40 = vpop.f32.mrf.mxu1 }
 0x488   :  { %v3080_v7 = vadd.f32 %v3017_v25, %v2938_v34  ;;  %v3081_v46 = vadd.f32 %v3037_v40, %v2958_v27  ;;  %v8713_v34 = vld [vmem:[#allocation12 + $0x190] sm:$0xff]  ;;  %v8716_v27 = vld [vmem:[#allocation12 + $0x198] sm:$0xff]  ;;  %v8719_v25 = vld [vmem:[#allocation12 + $0x160] sm:$0xff]  ;;  %v2977_v40 = vpop.f32.mrf.mxu2 }
 0x489   :  { %10795 = vst [vmem:[#allocation124_spill] sm:$0xff] %v8713_v34  ;;  %3507 = vmatpush.msra.mxu2 %v8713_v34  ;;  %3527 = vmatpush.msra.mxu3 %v8716_v27  ;;  %v8740_v34 = vld [vmem:[#allocation12 + $0x158] sm:$0xff] }
 0x48a   :  { %v4276_v63 = vmul.f32 -1.442695, %v3080_v7  ;;  %v4277_v9 = vmul.f32 -1.442695, %v3081_v46  ;;  %10796 = vst [vmem:[#allocation125_spill] sm:$0xff] %v8716_v27  ;;  %3468 = vmatpush.msra.mxu0 %v8719_v25  ;;  %v8725_v46 = vld [vmem:[#allocation12 + $0x170] sm:$0xff] }
 0x48b   :  { %10797 = vst [vmem:[#allocation127_spill] sm:$0xff] %v8719_v25  ;;  %3508 = vmatpush.msra.mxu2 %v8725_v46  ;;  %v8734_v25 = vld [vmem:[#allocation12 + $0x148] sm:$0xff] }
 0x48c   :  { %4498 = vpow2.f32 %v4276_v63  ;;  %10799 = vst [vmem:[#allocation130_spill] sm:$0xff] %v8725_v46  ;;  %v8728_v63 = vld [vmem:[#allocation12 + $0x178] sm:$0xff]  ;;  %3489 = vmatpush.msra.mxu1 %v8734_v25 }
 0x48d   :  { %4500 = vpow2.f32 %v4277_v9  ;;  %10800 = vst [vmem:[#allocation131_spill] sm:$0xff] %v8728_v63  ;;  %3528 = vmatpush.msra.mxu3 %v8728_v63  ;;  %v8731_v9 = vld [vmem:[#allocation12 + $0x140] sm:$0xff]  ;;  %3509 = vmatpush.msra.mxu2 %v8737_v62  ;;  %v8765_v63 = vld [vmem:[#allocation12 + $0x110] sm:$0xff] }
 0x48e   :  { %v3077_v7 = vpop.f32.mrf.mxu3  ;;  %10801 = vst [vmem:[#allocation135_spill] sm:$0xff] %v8731_v9  ;;  %3469 = vmatpush.msra.mxu0 %v8731_v9  ;;  %v8749_v9 = vld [vmem:[#allocation12 + $0x130] sm:$0xff] }
 0x48f   :  { %v3083_v27 = vadd.f32 %v3077_v7, %v2998_v58  ;;  %10802 = vst [vmem:[#allocation136_spill] sm:$0xff] %v8734_v25  ;;  %3529 = vmatpush.msra.mxu3 %v8740_v34  ;;  %v8746_v58 = vld [vmem:[#allocation12 + $0x128] sm:$0xff]  ;;  %3510 = vmatpush.msra.mxu2 %v8749_v9  ;;  %v8752_v25 = vld [vmem:[#allocation12 + $0x138] sm:$0xff] }
 0x490   :  { %10804 = vst [vmem:[#allocation138_spill] sm:$0xff] %v8740_v34  ;;  %3470 = vmatpush.msra.mxu0 %v8743_v47  ;;  %3490 = vmatpush.msra.mxu1 %v8746_v58  ;;  %v8760_v47 = vld [vmem:[#allocation12 + $0x108] sm:$0xff] }
 0x491   :  { %v4278_v46 = vmul.f32 -1.442695, %v3083_v27  ;;  %10806 = vst [vmem:[#allocation140_spill] sm:$0xff] %v8746_v58  ;;  %3530 = vmatpush.msra.mxu3 %v8752_v25  ;;  %v8757_v27 = vld [vmem:[#allocation12 + $0x100] sm:$0xff]  ;;  %3511 = vmatpush.msra.mxu2 %v8765_v63 }
 0x492   :  { %v4499_v7 = vpop.eup %4498  ;;  %10807 = vst [vmem:[#allocation141_spill] sm:$0xff] %v8749_v9  ;;  %3471 = vmatpush.msra.mxu0 %v8757_v27  ;;  %3491 = vmatpush.msra.mxu1 %v8760_v47  ;;  %v8768_v9 = vld [vmem:[#allocation12 + $0x118] sm:$0xff] }
 0x493   :  { %10808 = vst [vmem:[#allocation142_spill] sm:$0xff] %v8752_v25  ;;  %v4501_v62 = vpop.eup %4500  ;;  %v8755_v34 = vadd.f32 1.0, %v4499_v7  ;;  %4502 = vpow2.f32 %v4278_v46  ;;  %3531 = vmatpush.msra.mxu3 %v8768_v9  ;;  %v8772_v46 = vld [vmem:[#allocation12 + $0xe0] sm:$0xff]  ;;  %v8775_v7 = vld [vmem:[#allocation12 + $0xe8] sm:$0xff] }
 0x494   :  { %10809 = vst [vmem:[#allocation143_spill] sm:$0xff] %v8757_v27  ;;  %v8763_v58 = vadd.f32 1.0, %v4501_v62  ;;  %3472 = vmatpush.msra.mxu0 %v8772_v46  ;;  %3492 = vmatpush.msra.mxu1 %v8775_v7  ;;  %v8779_v62 = vld [vmem:[#allocation12 + $0xf0] sm:$0xff]  ;;  %v8798_v25 = vld [vmem:[#allocation12 + $0xa0] sm:$0xff] }
 0x495   :  { %10810 = vst [vmem:[#allocation144_spill] sm:$0xff] %v8760_v47  ;;  %4504 = vrcp.f32 %v8755_v34  ;;  %3512 = vmatpush.msra.mxu2 %v8779_v62  ;;  %v8786_v47 = vld [vmem:[#allocation12 + $0xc0] sm:$0xff]  ;;  %v8792_v27 = vld [vmem:[#allocation12 + $0xd0] sm:$0xff]  ;;  %v3099_v21 = vand.u32 2147483648, %v8755_v34  ;;  %vm3093_vm15 = vweird.f32 %v8755_v34 }
 0x496   :  { %10811 = vst [vmem:[#allocation145_spill] sm:$0xff] %v8765_v63  ;;  %4506 = vrcp.f32 %v8763_v58  ;;  %v8782_v63 = vld [vmem:[#allocation12 + $0xf8] sm:$0xff]  ;;  %3473 = vmatpush.msra.mxu0 %v8786_v47  ;;  %v3118_v57 = vand.u32 2147483648, %v8763_v58  ;;  %vm3112_vm1 = vweird.f32 %v8763_v58 }
 0x497   :  { %10812 = vst [vmem:[#allocation146_spill] sm:$0xff] %v8768_v9  ;;  %3532 = vmatpush.msra.mxu3 %v8782_v63  ;;  %v2978_v9 = vadd.f32 %v2977_v40, %v10667_v35  ;;  %3513 = vmatpush.msra.mxu2 %v8792_v27  ;;  %v8801_v40 = vld [vmem:[#allocation12 + $0xa8] sm:$0xff] }
 0x498   :  { %10813 = vst [vmem:[#allocation147_spill] sm:$0xff] %v8772_v46  ;;  %v8789_v46 = vld [vmem:[#allocation12 + $0xc8] sm:$0xff]  ;;  %3474 = vmatpush.msra.mxu0 %v8798_v25 }
 0x499   :  { %10814 = vst [vmem:[#allocation148_spill] sm:$0xff] %v8775_v7  ;;  %3493 = vmatpush.msra.mxu1 %v8789_v46  ;;  %v3057_v7 = vpop.f32.mrf.mxu2 }
 0x49a   :  { %10815 = vst [vmem:[#allocation149_spill] sm:$0xff] %v8779_v62  ;;  %v8795_v62 = vld [vmem:[#allocation12 + $0xd8] sm:$0xff]  ;;  %3475 = vmatpush.msra.mxu0 %v8817_v42 }
 0x49b   :  { %10816 = vst [vmem:[#allocation150_spill] sm:$0xff] %v8782_v63  ;;  %3533 = vmatpush.msra.mxu3 %v8795_v62  ;;  %v4503_v63 = vpop.eup %4502  ;;  %3494 = vmatpush.msra.mxu1 %v8801_v40 }
 0x49c   :  { %10817 = vst [vmem:[#allocation151_spill] sm:$0xff] %v8786_v47  ;;  %v8804_v47 = vadd.f32 1.0, %v4503_v63  ;;  %v8815_v35 = vpop.eup %4504  ;;  %v8820_v63 = vld [vmem:[#allocation12 + $0x88] sm:$0xff] }
 0x49d   :  { %10818 = vst [vmem:[#allocation152_spill] sm:$0xff] %v8789_v46  ;;  %v8806_v46 = vld [vmem:[#allocation12 + $0xb0] sm:$0xff]  ;;  %3495 = vmatpush.msra.mxu1 %v8820_v63  ;;  %vm3094_vm13 = vweird.f32 %v8815_v35 }
 0x49e   :  { %10819 = vst [vmem:[#allocation153_spill] sm:$0xff] %v8792_v27  ;;  %3514 = vmatpush.msra.mxu2 %v8806_v46  ;;  %v8809_v27 = vld [vmem:[#allocation12 + $0xb8] sm:$0xff]  ;;  %4508 = vrcp.f32 %v8804_v47  ;;  %vm8879_vm2 = vmor %vm3093_vm15, %vm3094_vm13  ;;  %vm3132_vm7 = vweird.f32 %v8804_v47 }
 0x49f   :  { %10820 = vst [vmem:[#allocation154_spill] sm:$0xff] %v8795_v62  ;;  %3534 = vmatpush.msra.mxu3 %v8809_v27  ;;  %v4287_v62 = vld [vmem:[%s9243_s1 + $0x2] sm:$0x3] }
 0x4a0   :  { %10821 = vst [vmem:[#allocation155_spill] sm:$0xff] %v8798_v25  ;;  %v3082_v25 = vadd.f32 %v3057_v7, %v2978_v9  ;;  %v8831_v9 = vld [vmem:[#allocation12 + $0x98] sm:$0xff]  ;;  %4288 = vmatmul.msk.f32.vlgmr.msrb.gmra.mxu0 %vm355_vm0, %v4287_v62  ;;  %4289 = vmatmul.msk.f32.vlgmr.msrb.gmra.mxu1 %vm355_vm0, %v4287_v62 }
 0x4a1   :  { %10822 = vst [vmem:[#allocation156_spill] sm:$0xff] %v8801_v40  ;;  %v8828_v40 = vld [vmem:[#allocation12 + $0x90] sm:$0xff]  ;;  %3535 = vmatpush.msra.mxu3 %v8831_v9  ;;  %4290 = vmatmul.msk.f32.vlgmr.msrb.gmra.mxu2 %vm355_vm0, %v4287_v62 }
 0x4a2   :  { %10823 = vst [vmem:[#allocation157_spill] sm:$0xff] %v8806_v46  ;;  %v8823_v46 = vpop.eup %4506  ;;  %3515 = vmatpush.msra.mxu2 %v8828_v40  ;;  %4291 = vmatmul.msk.f32.vlgmr.msrb.gmra.mxu3 %vm355_vm0, %v4287_v62  ;;  %4510 = vtanh.f32 %v3082_v25  ;;  %v3097_v62 = vand.u32 2147483647, %v8755_v34  ;;  %v8854_v25 = vld [vmem:[#allocation12 + $0x78] sm:$0xff] }
 0x4a3   :  { %10824 = vst [vmem:[#allocation158_spill] sm:$0xff] %v8809_v27  ;;  %v3089_v27 = vmul.f32 %v8815_v35, %v8755_v34  ;;  %v3108_v7 = vmul.f32 %v8823_v46, %v8763_v58  ;;  %3536 = vmatpush.msra.mxu3 %v8854_v25  ;;  %vm3113_vm14 = vweird.f32 %v8823_v46 }
 0x4a4   :  { %10826 = vst [vmem:[#allocation160_spill] sm:$0xff] %v8820_v63  ;;  %v8866_v0 = vpop.eup %4508  ;;  %vm8894_vm3 = vmor %vm3112_vm1, %vm3113_vm14  ;;  %vm3098_vm4 = vcmp.eq.f32.partialorder %v3097_v62, 8.507059e+37 }
 0x4a5   :  { %10827 = vst [vmem:[#allocation161_spill] sm:$0xff] %v8828_v40  ;;  %v3090_v63 = vsub.f32 1.0, %v3089_v27  ;;  %v3109_v42 = vsub.f32 1.0, %v3108_v7  ;;  %v8841_v40 = vld [vmem:[#allocation12 + $0x60] sm:$0xff]  ;;  %v8851_v7 = vld [vmem:[#allocation12 + $0x70] sm:$0xff]  ;;  %v3128_v34 = vmul.f32 %v8866_v0, %v8804_v47  ;;  %vm3133_vm6 = vweird.f32 %v8866_v0 }
 0x4a6   :  { %10828 = vst [vmem:[#allocation162_spill] sm:$0xff] %v8831_v9  ;;  %3476 = vmatpush.msra.mxu0 %v8841_v40  ;;  %v8844_v9 = vld [vmem:[#allocation12 + $0x68] sm:$0xff]  ;;  %3516 = vmatpush.msra.mxu2 %v8851_v7  ;;  %vm3134_vm8 = vmor %vm3132_vm7, %vm3133_vm6 }
 0x4a7   :  { %10829 = vst [vmem:[#allocation163_spill] sm:$0xff] %v8841_v40  ;;  %3496 = vmatpush.msra.mxu1 %v8844_v9  ;;  %v3091_v27 = vmul.f32 %v8815_v35, %v3090_v63  ;;  %v3110_v40 = vmul.f32 %v8823_v46, %v3109_v42  ;;  %v8863_v63 = vld [vmem:[#allocation12 + $0x48] sm:$0xff]  ;;  %v8873_v42 = vld [vmem:[#allocation12 + $0x58] sm:$0xff] }
 0x4a8   :  { %10830 = vst [vmem:[#allocation164_spill] sm:$0xff] %v8844_v9  ;;  %v3116_v9 = vand.u32 2147483647, %v8763_v58  ;;  %3477 = vmatpush.msra.mxu0 %v8860_v32  ;;  %3537 = vmatpush.msra.mxu3 %v8873_v42  ;;  %v3100_v32 = vor.u32 1.1754944e-38, %v3099_v21  ;;  %v3119_v21 = vor.u32 1.1754944e-38, %v3118_v57  ;;  %v3129_v57 = vsub.f32 1.0, %v3128_v34 }
 0x4a9   :  { %10831 = vst [vmem:[#allocation165_spill] sm:$0xff] %v8851_v7  ;;  %3497 = vmatpush.msra.mxu1 %v8863_v63  ;;  %v3092_v7 = vadd.f32 %v8815_v35, %v3091_v27  ;;  %v3111_v27 = vadd.f32 %v8823_v46, %v3110_v40  ;;  %v10875_v34 = vld [vmem:[#allocation78_spill] sm:$0xff]  ;;  %v10876_v58 = vld [vmem:[#allocation79_spill] sm:$0xff] }
 0x4aa   :  { %10832 = vst [vmem:[#allocation166_spill] sm:$0xff] %v8854_v25  ;;  %v8870_v25 = vld [vmem:[#allocation12 + $0x50] sm:$0xff]  ;;  %3478 = vmatpush.msra.mxu0 %v8886_v54  ;;  %v8904_v54 = vld [vmem:[#allocation12 + $0x38] sm:$0xff]  ;;  %vm3117_vm5 = vcmp.eq.f32.partialorder %v3116_v9, 8.507059e+37  ;;  %v3130_v9 = vmul.f32 %v8866_v0, %v3129_v57 }
 0x4ab   :  { %10834 = vst [vmem:[#allocation168_spill] sm:$0xff] %v8863_v63  ;;  %3517 = vmatpush.msra.mxu2 %v8870_v25  ;;  %v3096_v40 = vsel %vm8879_vm2, %v8815_v35, %v3092_v7  ;;  %3538 = vmatpush.msra.mxu3 %v8904_v54  ;;  %v3115_v31 = vsel %vm8894_vm3, %v8823_v46, %v3111_v27  ;;  %v8913_v35 = vld [vmem:[#allocation12 + $0x8] sm:$0xff]  ;;  %v8916_v63 = vld [vmem:[#allocation12 + $0x10] sm:$0xff]  ;;  %v10874_v27 = vld [vmem:[#allocation75_spill] sm:$0xff] }
 0x4ac   :  { %10835 = vst [vmem:[#allocation169_spill] sm:$0xff] %v8870_v25  ;;  %v8889_v25 = vld [vmem:[#allocation12 + $0x28] sm:$0xff]  ;;  %v3101_v50 = vsel %vm3098_vm4, %v3100_v32, %v3096_v40  ;;  %3479 = vmatpush.msra.mxu0 %v8910_v5  ;;  %v3120_v62 = vsel %vm3117_vm5, %v3119_v21, %v3115_v31  ;;  %v8919_v32 = vld [vmem:[#allocation12 + $0x18] sm:$0xff] }
 0x4ad   :  { %10836 = vst [vmem:[#allocation170_spill] sm:$0xff] %v8873_v42  ;;  %3498 = vmatpush.msra.mxu1 %v8889_v25  ;;  %v8901_v42 = vld [vmem:[#allocation12 + $0x30] sm:$0xff]  ;;  %3539 = vmatpush.msra.mxu3 %v8919_v32  ;;  %v3142_v46 = vmul.f32 %v3120_v62, %v8243_v49  ;;  %v3131_v49 = vadd.f32 %v8866_v0, %v3130_v9  ;;  %v10878_v40 = vld [vmem:[#allocation83_spill] sm:$0xff] }
 0x4ae   :  { %10840 = vst [vmem:[#allocation172_spill] sm:$0xff] %v8889_v25  ;;  %3518 = vmatpush.msra.mxu2 %v8901_v42  ;;  %v4511_v25 = vpop.eup %4510  ;;  %3624 = vmatpush.msrb.mxu0 %v8231_v14  ;;  %v3138_v14 = vand.u32 2147483648, %v8804_v47  ;;  %v10877_v21 = vld [vmem:[#allocation82_spill] sm:$0xff]  ;;  %v10880_v62 = vld [vmem:[#allocation87_spill] sm:$0xff] }
 0x4af   :  { %3499 = vmatpush.msra.mxu1 %v8913_v35  ;;  %v3143_v7 = vmul.f32 %v4511_v25, %v3101_v50  ;;  %3684 = vmatpush.msrb.mxu3 %v8240_v29  ;;  %v10870_v50 = vld [vmem:[#allocation69_spill] sm:$0xff]  ;;  %v10873_v25 = vld [vmem:[#allocation74_spill] sm:$0xff] }
 0x4b0   :  { %3519 = vmatpush.msra.mxu2 %v8916_v63  ;;  %3625 = vmatpush.msrb.mxu0 %v8245_v3  ;;  %v3139_v29 = vor.u32 1.1754944e-38, %v3138_v14  ;;  %v10879_v57 = vld [vmem:[#allocation86_spill] sm:$0xff]  ;;  %v10885_v14 = vld [vmem:[#allocation45_spill] sm:$0xff] }
 0x4b1   :  { %3644 = vmatpush.msrb.mxu1 %v8234_v45  ;;  %v8928_v31 = vadd.f32 %v3143_v7, %v3142_v46  ;;  %3685 = vmatpush.msrb.mxu3 %v8256_v36  ;;  %v3136_v45 = vand.u32 2147483647, %v8804_v47  ;;  %v10843_v36 = vld [vmem:[#allocation38_spill] sm:$0xff]  ;;  %v10872_v47 = vld [vmem:[#allocation73_spill] sm:$0xff]  ;;  %v10882_v46 = vld [vmem:[#allocation36_spill] sm:$0xff] }
 0x4b2   :  { %3664 = vmatpush.msrb.mxu2 %v8237_v38  ;;  %3626 = vmatpush.msrb.mxu0 %v8261_v55  ;;  %v3135_v38 = vsel %vm3134_vm8, %v8866_v0, %v3131_v49  ;;  %v10844_v55 = vld [vmem:[#allocation21_spill] sm:$0xff]  ;;  %v10871_v0 = vld [vmem:[#allocation71_spill] sm:$0xff]  ;;  %v10883_v9 = vld [vmem:[#allocation90_spill] sm:$0xff] }
 0x4b3   :  { %3645 = vmatpush.msrb.mxu1 %v8248_v2  ;;  %4512 = vtanh.f32 %v8928_v31  ;;  %3686 = vmatpush.msrb.mxu3 %v8272_v61  ;;  %vm3137_vm9 = vcmp.eq.f32.partialorder %v3136_v45, 8.507059e+37  ;;  %v10847_v61 = vld [vmem:[#allocation40_spill] sm:$0xff]  ;;  %v10881_v7 = vld [vmem:[#allocation41_spill] sm:$0xff]  ;;  %v10884_v49 = vld [vmem:[#allocation91_spill] sm:$0xff] }
 0x4b4   :  { %3665 = vmatpush.msrb.mxu2 %v8253_v6  ;;  %3627 = vmatpush.msrb.mxu0 %v8281_v23  ;;  %v3140_v2 = vsel %vm3137_vm9, %v3139_v29, %v3135_v38  ;;  %v10848_v23 = vld [vmem:[#allocation23_spill] sm:$0xff]  ;;  %v10887_v38 = vld [vmem:[#allocation94_spill] sm:$0xff] }
 0x4b5   :  { %3646 = vmatpush.msrb.mxu1 %v8264_v24  ;;  %3687 = vmatpush.msrb.mxu3 %v8293_v19  ;;  %v10845_v24 = vld [vmem:[#allocation39_spill] sm:$0xff]  ;;  %v10851_v19 = vld [vmem:[#allocation44_spill] sm:$0xff] }
 0x4b6   :  { %3666 = vmatpush.msrb.mxu2 %v8269_v53  ;;  %3628 = vmatpush.msrb.mxu0 %v8296_v10  ;;  %v10846_v53 = vld [vmem:[#allocation26_spill] sm:$0xff]  ;;  %v10852_v10 = vld [vmem:[#allocation25_spill] sm:$0xff]  ;;  %v10886_v45 = vld [vmem:[#allocation43_spill] sm:$0xff] }
 0x4b7   :  { %3647 = vmatpush.msrb.mxu1 %v8284_v8  ;;  %3688 = vmatpush.msrb.mxu3 %v8305_v16  ;;  %v10849_v8 = vld [vmem:[#allocation42_spill] sm:$0xff]  ;;  %v10855_v16 = vld [vmem:[#allocation48_spill] sm:$0xff]  ;;  %v10888_v29 = vld [vmem:[#allocation95_spill] sm:$0xff] }
 0x4b8   :  { %3667 = vmatpush.msrb.mxu2 %v8290_v26  ;;  %3629 = vmatpush.msrb.mxu0 %v8308_v51  ;;  %v10850_v26 = vld [vmem:[#allocation28_spill] sm:$0xff]  ;;  %v10856_v51 = vld [vmem:[#allocation27_spill] sm:$0xff] }
 0x4b9   :  { %3648 = vmatpush.msrb.mxu1 %v8299_v13  ;;  %v4513_v3 = vpop.eup %4512  ;;  %3689 = vmatpush.msrb.mxu3 %v8317_v43  ;;  %v10853_v13 = vld [vmem:[#allocation46_spill] sm:$0xff]  ;;  %v10859_v43 = vld [vmem:[#allocation52_spill] sm:$0xff] }
 0x4ba   :  { %3668 = vmatpush.msrb.mxu2 %v8302_v12  ;;  %v3146_v6 = vmul.f32 %v4513_v3, %v3140_v2  ;;  %3630 = vmatpush.msrb.mxu0 %v8320_v22  ;;  %v10854_v12 = vld [vmem:[#allocation30_spill] sm:$0xff]  ;;  %v10860_v22 = vld [vmem:[#allocation29_spill] sm:$0xff]  ;;  %v10890_v2 = vld [vmem:[#allocation47_spill] sm:$0xff] }
 0x4bb   :  { %3649 = vmatpush.msrb.mxu1 %v8311_v56  ;;  %3690 = vmatpush.msrb.mxu3 %v8329_v60  ;;  %v10857_v56 = vld [vmem:[#allocation50_spill] sm:$0xff]  ;;  %v10863_v60 = vld [vmem:[#allocation56_spill] sm:$0xff]  ;;  %v10889_v3 = vld [vmem:[#allocation49_spill] sm:$0xff] }
 0x4bc   :  { %3669 = vmatpush.msrb.mxu2 %v8314_v4  ;;  %3480 = vmatmul.f32.vlgmr.msra.gmra.mxu0 %v3146_v6  ;;  %v10858_v4 = vld [vmem:[#allocation33_spill] sm:$0xff] }
 0x4bd   :  { %3650 = vmatpush.msrb.mxu1 %v8323_v18  ;;  %3520 = vmatmul.f32.vlgmr.msra.gmra.mxu2 %v3146_v6  ;;  %v10861_v18 = vld [vmem:[#allocation54_spill] sm:$0xff] }
 0x4be   :  { %3500 = vmatmul.f32.vlgmr.msra.gmra.mxu1 %v3146_v6  ;;  %3540 = vmatmul.f32.vlgmr.msra.gmra.mxu3 %v3146_v6  ;;  %v10891_v6 = vld [vmem:[#allocation98_spill] sm:$0xff] }
 0x4bf   :  { %3670 = vmatpush.msrb.mxu2 %v8326_v20  ;;  %3631 = vmatpush.msrb.mxu0 %v8332_v44  ;;  %v10862_v20 = vld [vmem:[#allocation37_spill] sm:$0xff]  ;;  %v10864_v44 = vld [vmem:[#allocation31_spill] sm:$0xff] }
 0x4c0   :  { %3651 = vmatpush.msrb.mxu1 %v8335_v17  ;;  %3691 = vmatpush.msrb.mxu3 %v8341_v48  ;;  %v10865_v17 = vld [vmem:[#allocation58_spill] sm:$0xff] }
 0x4c1   :  { %3671 = vmatpush.msrb.mxu2 %v8338_v37  ;;  %3696 = vmatpush.msra.mxu0 %v8344_v52  ;;  %v10866_v37 = vld [vmem:[#allocation60_spill] sm:$0xff]  ;;  %v10867_v48 = vld [vmem:[#allocation62_spill] sm:$0xff]  ;;  %v10868_v52 = vld [vmem:[#allocation65_spill] sm:$0xff] }
 0x4c2   :  { %3716 = vmatpush.msra.mxu1 %v8347_v59  ;;  %3756 = vmatpush.msra.mxu3 %v10844_v55  ;;  %v10869_v59 = vld [vmem:[#allocation67_spill] sm:$0xff]  ;;  %v10893_v55 = vld [vmem:[#allocation53_spill] sm:$0xff] }
 0x4c3   :  { %3736 = vmatpush.msra.mxu2 %v10843_v36  ;;  %3697 = vmatpush.msra.mxu0 %v10845_v24  ;;  %v10892_v36 = vld [vmem:[#allocation99_spill] sm:$0xff] }
 0x4c4   :  { %3717 = vmatpush.msra.mxu1 %v10846_v53  ;;  %3757 = vmatpush.msra.mxu3 %v10848_v23  ;;  %v10894_v24 = vld [vmem:[#allocation51_spill] sm:$0xff]  ;;  %v10895_v53 = vld [vmem:[#allocation102_spill] sm:$0xff]  ;;  %v10897_v23 = vld [vmem:[#allocation57_spill] sm:$0xff] }
 0x4c5   :  { %3737 = vmatpush.msra.mxu2 %v10847_v61  ;;  %3698 = vmatpush.msra.mxu0 %v10849_v8  ;;  %v10896_v61 = vld [vmem:[#allocation103_spill] sm:$0xff] }
 0x4c6   :  { %3718 = vmatpush.msra.mxu1 %v10850_v26  ;;  %3758 = vmatpush.msra.mxu3 %v10852_v10  ;;  %v10898_v8 = vld [vmem:[#allocation55_spill] sm:$0xff]  ;;  %v10899_v26 = vld [vmem:[#allocation106_spill] sm:$0xff]  ;;  %v10901_v10 = vld [vmem:[#allocation61_spill] sm:$0xff] }
 0x4c7   :  { %3738 = vmatpush.msra.mxu2 %v10851_v19  ;;  %3699 = vmatpush.msra.mxu0 %v10853_v13  ;;  %v10900_v19 = vld [vmem:[#allocation107_spill] sm:$0xff] }
 0x4c8   :  { %3719 = vmatpush.msra.mxu1 %v10854_v12  ;;  %3759 = vmatpush.msra.mxu3 %v10856_v51  ;;  %v10902_v13 = vld [vmem:[#allocation59_spill] sm:$0xff]  ;;  %v10903_v12 = vld [vmem:[#allocation110_spill] sm:$0xff]  ;;  %v3169_v51 = vpop.f32.mrf.mxu0 }
 0x4c9   :  { %3739 = vmatpush.msra.mxu2 %v10855_v16  ;;  %3700 = vmatpush.msra.mxu0 %v10857_v56  ;;  %v10904_v16 = vld [vmem:[#allocation111_spill] sm:$0xff]  ;;  %v3189_v56 = vpop.f32.mrf.mxu1 }
 0x4ca   :  { %3720 = vmatpush.msra.mxu1 %v10858_v4  ;;  %3760 = vmatpush.msra.mxu3 %v10860_v22  ;;  %v10905_v4 = vld [vmem:[#allocation22_spill] sm:$0xff]  ;;  %v10906_v22 = vld [vmem:[#allocation32_spill] sm:$0xff] }
 0x4cb   :  { %3740 = vmatpush.msra.mxu2 %v10859_v43  ;;  %3701 = vmatpush.msra.mxu0 %v10861_v18  ;;  %v3170_v43 = vadd.f32 %v3169_v51, %v10905_v4  ;;  %v3190_v18 = vadd.f32 %v3189_v56, %v10906_v22  ;;  %v10931_v56 = vld [vmem:[#allocation89_spill] sm:$0xff] }
 0x4cc   :  { %3721 = vmatpush.msra.mxu1 %v10862_v20  ;;  %3761 = vmatpush.msra.mxu3 %v10864_v44  ;;  %v3229_v20 = vpop.f32.mrf.mxu3 }
 0x4cd   :  { %3741 = vmatpush.msra.mxu2 %v10863_v60  ;;  %3702 = vmatpush.msra.mxu0 %v10865_v17 }
 0x4ce   :  { %3722 = vmatpush.msra.mxu1 %v10866_v37  ;;  %3762 = vmatpush.msra.mxu3 %v10868_v52 }
 0x4cf   :  { %3742 = vmatpush.msra.mxu2 %v10867_v48  ;;  %3703 = vmatpush.msra.mxu0 %v10869_v59  ;;  %v10907_v59 = vld [vmem:[#allocation20_spill] sm:$0xff] }
 0x4d0   :  { %3723 = vmatpush.msra.mxu1 %v10870_v50  ;;  %3763 = vmatpush.msra.mxu3 %v10872_v47  ;;  %v3230_v50 = vadd.f32 %v3229_v20, %v10907_v59  ;;  %v3209_v47 = vpop.f32.mrf.mxu2  ;;  %v10933_v20 = vld [vmem:[#allocation134_spill] sm:$0xff] }
 0x4d1   :  { %3743 = vmatpush.msra.mxu2 %v10871_v0  ;;  %3704 = vmatpush.msra.mxu0 %v10873_v25  ;;  %v4295_v0 = vld [vmem:[%s9242_s0 + $0xe] sm:$0x3] }
 0x4d2   :  { %3724 = vmatpush.msra.mxu1 %v10874_v27  ;;  %3764 = vmatpush.msra.mxu3 %v10876_v58  ;;  %v10908_v27 = vld [vmem:[#allocation64_spill] sm:$0xff] }
 0x4d3   :  { %3744 = vmatpush.msra.mxu2 %v10875_v34  ;;  %3705 = vmatpush.msra.mxu0 %v10877_v21  ;;  %v10909_v34 = vld [vmem:[#allocation63_spill] sm:$0xff]  ;;  %v10910_v21 = vld [vmem:[#allocation114_spill] sm:$0xff] }
 0x4d4   :  { %3725 = vmatpush.msra.mxu1 %v10878_v40  ;;  %3765 = vmatpush.msra.mxu3 %v10880_v62  ;;  %v10911_v40 = vld [vmem:[#allocation115_spill] sm:$0xff]  ;;  %v10913_v62 = vld [vmem:[#allocation66_spill] sm:$0xff] }
 0x4d5   :  { %3745 = vmatpush.msra.mxu2 %v10879_v57  ;;  %3706 = vmatpush.msra.mxu0 %v10881_v7  ;;  %v10912_v57 = vld [vmem:[#allocation68_spill] sm:$0xff] }
 0x4d6   :  { %3726 = vmatpush.msra.mxu1 %v10882_v46  ;;  %3766 = vmatpush.msra.mxu3 %v10884_v49  ;;  %v10914_v46 = vld [vmem:[#allocation118_spill] sm:$0xff] }
 0x4d7   :  { %3746 = vmatpush.msra.mxu2 %v10883_v9  ;;  %3707 = vmatpush.msra.mxu0 %v10885_v14  ;;  %v10915_v9 = vld [vmem:[#allocation119_spill] sm:$0xff]  ;;  %v10916_v14 = vld [vmem:[#allocation70_spill] sm:$0xff] }
 0x4d8   :  { %3727 = vmatpush.msra.mxu1 %v10886_v45  ;;  %3767 = vmatpush.msra.mxu3 %v10888_v29  ;;  %v10917_v45 = vld [vmem:[#allocation72_spill] sm:$0xff] }
 0x4d9   :  { %3747 = vmatpush.msra.mxu2 %v10887_v38  ;;  %3708 = vmatpush.msra.mxu0 %v10889_v3  ;;  %v10918_v3 = vld [vmem:[#allocation122_spill] sm:$0xff] }
 0x4da   :  { %3728 = vmatpush.msra.mxu1 %v10890_v2  ;;  %3768 = vmatpush.msra.mxu3 %v10892_v36  ;;  %v10919_v2 = vld [vmem:[#allocation123_spill] sm:$0xff]  ;;  %v10920_v36 = vld [vmem:[#allocation76_spill] sm:$0xff] }
 0x4db   :  { %3748 = vmatpush.msra.mxu2 %v10891_v6  ;;  %3709 = vmatpush.msra.mxu0 %v10893_v55  ;;  %v10921_v55 = vld [vmem:[#allocation77_spill] sm:$0xff] }
 0x4dc   :  { %3729 = vmatpush.msra.mxu1 %v10894_v24  ;;  %3769 = vmatpush.msra.mxu3 %v10896_v61  ;;  %v10922_v24 = vld [vmem:[#allocation126_spill] sm:$0xff]  ;;  %v10924_v61 = vld [vmem:[#allocation81_spill] sm:$0xff] }
 0x4dd   :  { %3749 = vmatpush.msra.mxu2 %v10895_v53  ;;  %3710 = vmatpush.msra.mxu0 %v10897_v23  ;;  %v10923_v53 = vld [vmem:[#allocation80_spill] sm:$0xff]  ;;  %v10925_v23 = vld [vmem:[#allocation129_spill] sm:$0xff] }
 0x4de   :  { %3730 = vmatpush.msra.mxu1 %v10898_v8  ;;  %3770 = vmatpush.msra.mxu3 %v10900_v19  ;;  %v10926_v8 = vld [vmem:[#allocation34_spill] sm:$0xff]  ;;  %v10927_v19 = vld [vmem:[#allocation84_spill] sm:$0xff] }
 0x4df   :  { %3750 = vmatpush.msra.mxu2 %v10899_v26  ;;  %3711 = vmatpush.msra.mxu0 %v10901_v10  ;;  %v3210_v26 = vadd.f32 %v3209_v47, %v10926_v8  ;;  %v10928_v10 = vld [vmem:[#allocation85_spill] sm:$0xff]  ;;  %v10938_v47 = vld [vmem:[#allocation100_spill] sm:$0xff] }
 0x4e0   :  { %3731 = vmatpush.msra.mxu1 %v10902_v13  ;;  %3771 = vmatpush.msra.mxu3 %v10904_v16  ;;  %v10930_v16 = vld [vmem:[#allocation88_spill] sm:$0xff] }
 0x4e1   :  { %3751 = vmatpush.msra.mxu2 %v10903_v12  ;;  %4296 = vmatmul.msk.f32.vlgmr.msrb.gmra.mxu0 %vm355_vm0, %v4295_v0  ;;  %v10929_v12 = vld [vmem:[#allocation132_spill] sm:$0xff] }
 0x4e2   :  { %4297 = vmatmul.msk.f32.vlgmr.msrb.gmra.mxu1 %vm355_vm0, %v4295_v0  ;;  %4298 = vmatmul.msk.f32.vlgmr.msrb.gmra.mxu2 %vm355_vm0, %v4295_v0 }
 0x4e3   :  { %4299 = vmatmul.msk.f32.vlgmr.msrb.gmra.mxu3 %vm355_vm0, %v4295_v0  ;;  %3855 = vmatpush.msrb.mxu0 %v10908_v27  ;;  %v10937_v0 = vld [vmem:[#allocation97_spill] sm:$0xff] }
 0x4e4   :  { %3875 = vmatpush.msrb.mxu1 %v10909_v34  ;;  %3895 = vmatpush.msrb.mxu2 %v10910_v21  ;;  %v10939_v27 = vld [vmem:[#allocation101_spill] sm:$0xff]  ;;  %v10940_v34 = vld [vmem:[#allocation104_spill] sm:$0xff] }
 0x4e5   :  { %3915 = vmatpush.msrb.mxu3 %v10911_v40  ;;  %3856 = vmatpush.msrb.mxu0 %v10912_v57 }
 0x4e6   :  { %3876 = vmatpush.msrb.mxu1 %v10913_v62  ;;  %3896 = vmatpush.msrb.mxu2 %v10914_v46 }
 0x4e7   :  { %3916 = vmatpush.msrb.mxu3 %v10915_v9  ;;  %3857 = vmatpush.msrb.mxu0 %v10916_v14 }
 0x4e8   :  { %3877 = vmatpush.msrb.mxu1 %v10917_v45  ;;  %3897 = vmatpush.msrb.mxu2 %v10918_v3 }
 0x4e9   :  { %3917 = vmatpush.msrb.mxu3 %v10919_v2  ;;  %3858 = vmatpush.msrb.mxu0 %v10920_v36 }
 0x4ea   :  { %3878 = vmatpush.msrb.mxu1 %v10921_v55  ;;  %3898 = vmatpush.msrb.mxu2 %v10922_v24 }
 0x4eb   :  { %v3249_v60 = vpop.f32.mrf.mxu0  ;;  %v3269_v44 = vpop.f32.mrf.mxu1  ;;  %3918 = vmatpush.msrb.mxu3 %v10923_v53  ;;  %3859 = vmatpush.msrb.mxu0 %v10924_v61 }
 0x4ec   :  { %v3312_v17 = vadd.f32 %v3249_v60, %v3170_v43  ;;  %v3313_v37 = vadd.f32 %v3269_v44, %v3190_v18  ;;  %3879 = vmatpush.msrb.mxu1 %v10925_v23  ;;  %3899 = vmatpush.msrb.mxu2 %v10927_v19  ;;  %v10932_v43 = vld [vmem:[#allocation133_spill] sm:$0xff]  ;;  %v10934_v60 = vld [vmem:[#allocation92_spill] sm:$0xff] }
 0x4ed   :  { %3919 = vmatpush.msrb.mxu3 %v10928_v10  ;;  %3860 = vmatpush.msrb.mxu0 %v10929_v12 }
 0x4ee   :  { %v4284_v48 = vmul.f32 -1.442695, %v3312_v17  ;;  %v4285_v52 = vmul.f32 -1.442695, %v3313_v37  ;;  %3880 = vmatpush.msrb.mxu1 %v10930_v16  ;;  %3900 = vmatpush.msrb.mxu2 %v10931_v56  ;;  %v10935_v37 = vld [vmem:[#allocation93_spill] sm:$0xff] }
 0x4ef   :  { %3920 = vmatpush.msrb.mxu3 %v10932_v43  ;;  %3861 = vmatpush.msrb.mxu0 %v10933_v20 }
 0x4f0   :  { %4514 = vpow2.f32 %v4284_v48  ;;  %3881 = vmatpush.msrb.mxu1 %v10934_v60  ;;  %3901 = vmatpush.msrb.mxu2 %v10935_v37  ;;  %v10936_v48 = vld [vmem:[#allocation96_spill] sm:$0xff] }
 0x4f1   :  { %4516 = vpow2.f32 %v4285_v52  ;;  %3921 = vmatpush.msrb.mxu3 %v10936_v48  ;;  %3862 = vmatpush.msrb.mxu0 %v10937_v0 }
 0x4f2   :  { %v3309_v25 = vpop.f32.mrf.mxu3  ;;  %v3289_v13 = vpop.f32.mrf.mxu2  ;;  %3882 = vmatpush.msrb.mxu1 %v10938_v47  ;;  %3902 = vmatpush.msrb.mxu2 %v10939_v27  ;;  %v10942_v47 = vld [vmem:[#allocation108_spill] sm:$0xff] }
 0x4f3   :  { %v3315_v58 = vadd.f32 %v3309_v25, %v3230_v50  ;;  %v3314_v17 = vadd.f32 %v3289_v13, %v3210_v26  ;;  %3922 = vmatpush.msrb.mxu3 %v10940_v34  ;;  %v10946_v34 = vld [vmem:[#allocation116_spill] sm:$0xff] }
 0x4f5   :  { %v4286_v7 = vmul.f32 -1.442695, %v3315_v58 }
 0x4f6   :  { %v4515_v49 = vpop.eup %4514 }
 0x4f7   :  { %v4517_v38 = vpop.eup %4516  ;;  %v3319_v29 = vadd.f32 1.0, %v4515_v49  ;;  %4518 = vpow2.f32 %v4286_v7 }
 0x4f8   :  { %v3338_v6 = vadd.f32 1.0, %v4517_v38 }
 0x4f9   :  { %4520 = vrcp.f32 %v3319_v29  ;;  %v3331_v40 = vand.u32 2147483648, %v3319_v29  ;;  %v3329_v7 = vand.u32 2147483647, %v3319_v29  ;;  %vm3325_vm12 = vweird.f32 %v3319_v29 }
 0x4fa   :  { %4522 = vrcp.f32 %v3338_v6  ;;  %v3350_v57 = vand.u32 2147483648, %v3338_v6  ;;  %v3348_v9 = vand.u32 2147483647, %v3338_v6  ;;  %vm3344_vm13 = vweird.f32 %v3338_v6 }
 0x4fb   :  { %v3332_v45 = vor.u32 1.1754944e-38, %v3331_v40  ;;  %vm3330_vm1 = vcmp.eq.f32.partialorder %v3329_v7, 8.507059e+37  ;;  %v10950_v40 = vld [vmem:[#allocation121_spill] sm:$0xff]  ;;  %v10953_v7 = vld [vmem:[#allocation127_spill] sm:$0xff] }
 0x4fc   :  { %v3351_v2 = vor.u32 1.1754944e-38, %v3350_v57  ;;  %vm3349_vm2 = vcmp.eq.f32.partialorder %v3348_v9, 8.507059e+37  ;;  %v10951_v57 = vld [vmem:[#allocation124_spill] sm:$0xff] }
 0x4fd   :  { %v4519_v51 = vpop.eup %4518 }
 0x4fe   :  { %v3358_v18 = vadd.f32 1.0, %v4519_v51 }
 0x4ff   :  { %v4521_v44 = vpop.eup %4520 }
 0x500   :  { %v4523_v52 = vpop.eup %4522  ;;  %v3321_v50 = vmul.f32 %v4521_v44, %v3319_v29  ;;  %4524 = vrcp.f32 %v3358_v18  ;;  %vm3326_vm10 = vweird.f32 %v4521_v44  ;;  %v3370_v13 = vand.u32 2147483648, %v3358_v18 }
 0x501   :  { %v3340_v25 = vmul.f32 %v4523_v52, %v3338_v6  ;;  %4526 = vtanh.f32 %v3314_v17  ;;  %vm3345_vm11 = vweird.f32 %v4523_v52  ;;  %vm3327_vm14 = vmor %vm3325_vm12, %vm3326_vm10  ;;  %vm3364_vm4 = vweird.f32 %v3358_v18 }
 0x502   :  { %v3322_v58 = vsub.f32 1.0, %v3321_v50  ;;  %vm3346_vm15 = vmor %vm3344_vm13, %vm3345_vm11  ;;  %v3368_v12 = vand.u32 2147483647, %v3358_v18  ;;  %v3371_v43 = vor.u32 1.1754944e-38, %v3370_v13  ;;  %v10965_v13 = vld [vmem:[#allocation143_spill] sm:$0xff] }
 0x503   :  { %v3341_v21 = vsub.f32 1.0, %v3340_v25  ;;  %v10945_v25 = vld [vmem:[#allocation113_spill] sm:$0xff] }
 0x504   :  { %v3323_v62 = vmul.f32 %v4521_v44, %v3322_v58  ;;  %vm3369_vm6 = vcmp.eq.f32.partialorder %v3368_v12, 8.507059e+37  ;;  %v10948_v58 = vld [vmem:[#allocation24_spill] sm:$0xff] }
 0x505   :  { %v3342_v46 = vmul.f32 %v4523_v52, %v3341_v21  ;;  %v10949_v21 = vld [vmem:[#allocation120_spill] sm:$0xff] }
 0x506   :  { %v4525_v49 = vpop.eup %4524  ;;  %v3324_v14 = vadd.f32 %v4521_v44, %v3323_v62  ;;  %v10952_v62 = vld [vmem:[#allocation125_spill] sm:$0xff]  ;;  %v10966_v12 = vld [vmem:[#allocation144_spill] sm:$0xff] }
 0x507   :  { %v3343_v38 = vadd.f32 %v4523_v52, %v3342_v46  ;;  %v3360_v3 = vmul.f32 %v4525_v49, %v3358_v18  ;;  %v4527_v55 = vpop.eup %4526  ;;  %vm3365_vm3 = vweird.f32 %v4525_v49  ;;  %v10954_v46 = vld [vmem:[#allocation128_spill] sm:$0xff] }
 0x508   :  { %v3328_v36 = vsel %vm3327_vm14, %v4521_v44, %v3324_v14  ;;  %vm3366_vm5 = vmor %vm3364_vm4, %vm3365_vm3  ;;  %v10955_v14 = vld [vmem:[#allocation130_spill] sm:$0xff] }
 0x509   :  { %v3333_v24 = vsel %vm3330_vm1, %v3332_v45, %v3328_v36  ;;  %v3347_v53 = vsel %vm3346_vm15, %v4523_v52, %v3343_v38  ;;  %v3361_v61 = vsub.f32 1.0, %v3360_v3  ;;  %v10941_v52 = vld [vmem:[#allocation105_spill] sm:$0xff]  ;;  %v10956_v45 = vld [vmem:[#allocation131_spill] sm:$0xff] }
 0x50a   :  { %v3352_v23 = vsel %vm3349_vm2, %v3351_v2, %v3347_v53  ;;  %v3375_v26 = vmul.f32 %v4527_v55, %v3333_v24  ;;  %v10957_v3 = vld [vmem:[#allocation135_spill] sm:$0xff]  ;;  %v10958_v2 = vld [vmem:[#allocation136_spill] sm:$0xff]  ;;  %v10959_v36 = vld [vmem:[#allocation137_spill] sm:$0xff] }
 0x50b   :  { %v3374_v19 = vmul.f32 %v3352_v23, %v8662_v1  ;;  %v3362_v10 = vmul.f32 %v4525_v49, %v3361_v61  ;;  %v10960_v55 = vld [vmem:[#allocation138_spill] sm:$0xff]  ;;  %v10961_v53 = vld [vmem:[#allocation139_spill] sm:$0xff]  ;;  %v10962_v61 = vld [vmem:[#allocation140_spill] sm:$0xff] }
 0x50d   :  { %v9073_v29 = vadd.f32 %v3375_v26, %v3374_v19  ;;  %v3363_v6 = vadd.f32 %v4525_v49, %v3362_v10  ;;  %v10963_v26 = vld [vmem:[#allocation141_spill] sm:$0xff]  ;;  %v10964_v19 = vld [vmem:[#allocation142_spill] sm:$0xff] }
 0x50f   :  { %4528 = vtanh.f32 %v9073_v29  ;;  %v3367_v56 = vsel %vm3366_vm5, %v4525_v49, %v3363_v6 }
 0x510   :  { %v3372_v60 = vsel %vm3369_vm6, %v3371_v43, %v3367_v56  ;;  %v10968_v56 = vld [vmem:[#allocation146_spill] sm:$0xff]  ;;  %v10969_v43 = vld [vmem:[#allocation147_spill] sm:$0xff] }
 0x515   :  { %v4529_v20 = vpop.eup %4528 }
 0x516   :  { %v3378_v44 = vmul.f32 %v4529_v20, %v3372_v60  ;;  %v10970_v20 = vld [vmem:[#allocation148_spill] sm:$0xff]  ;;  %v10971_v60 = vld [vmem:[#allocation149_spill] sm:$0xff] }
 0x518   :  { %3712 = vmatmul.f32.vlgmr.msra.gmra.mxu0 %v3378_v44  ;;  %3732 = vmatmul.f32.vlgmr.msra.gmra.mxu1 %v3378_v44 }
 0x519   :  { %3752 = vmatmul.f32.vlgmr.msra.gmra.mxu2 %v3378_v44  ;;  %3772 = vmatmul.f32.vlgmr.msra.gmra.mxu3 %v3378_v44  ;;  %v10972_v44 = vld [vmem:[#allocation150_spill] sm:$0xff] }
 0x51a   :  { %3927 = vmatpush.msra.mxu0 %v8668_v39  ;;  %3947 = vmatpush.msra.mxu1 %v8671_v15  ;;  %v10943_v39 = vld [vmem:[#allocation109_spill] sm:$0xff]  ;;  %v10944_v15 = vld [vmem:[#allocation112_spill] sm:$0xff] }
 0x51b   :  { %3967 = vmatpush.msra.mxu2 %v8676_v41  ;;  %3987 = vmatpush.msra.mxu3 %v8679_v28  ;;  %v10947_v28 = vld [vmem:[#allocation117_spill] sm:$0xff] }
 0x51c   :  { %3928 = vmatpush.msra.mxu0 %v8682_v11  ;;  %3948 = vmatpush.msra.mxu1 %v10941_v52  ;;  %v10976_v52 = vld [vmem:[#allocation153_spill] sm:$0xff] }
 0x51d   :  { %v3401_v16 = vpop.f32.mrf.mxu0  ;;  %v3421_v51 = vpop.f32.mrf.mxu1  ;;  %3968 = vmatpush.msra.mxu2 %v10942_v47  ;;  %3988 = vmatpush.msra.mxu3 %v10943_v39  ;;  %v10978_v47 = vld [vmem:[#allocation155_spill] sm:$0xff]  ;;  %v10979_v39 = vld [vmem:[#allocation156_spill] sm:$0xff] }
 0x51e   :  { %v3402_v18 = vadd.f32 %v3401_v16, %v6198_v30  ;;  %v3422_v17 = vadd.f32 %v3421_v51, %v6203_v33  ;;  %3929 = vmatpush.msra.mxu0 %v10944_v15  ;;  %3949 = vmatpush.msra.mxu1 %v10945_v25  ;;  %v10967_v51 = vld [vmem:[#allocation145_spill] sm:$0xff] }
 0x51f   :  { %3969 = vmatpush.msra.mxu2 %v10946_v34  ;;  %3989 = vmatpush.msra.mxu3 %v10947_v28  ;;  %v10980_v25 = vld [vmem:[#allocation157_spill] sm:$0xff] }
 0x520   :  { %3930 = vmatpush.msra.mxu0 %v10949_v21  ;;  %3950 = vmatpush.msra.mxu1 %v10950_v40  ;;  %v10983_v21 = vld [vmem:[#allocation160_spill] sm:$0xff] }
 0x521   :  { %3970 = vmatpush.msra.mxu2 %v10951_v57  ;;  %3990 = vmatpush.msra.mxu3 %v10952_v62  ;;  %v10984_v62 = vld [vmem:[#allocation161_spill] sm:$0xff] }
 0x522   :  { %3931 = vmatpush.msra.mxu0 %v10953_v7  ;;  %3951 = vmatpush.msra.mxu1 %v10954_v46  ;;  %v10985_v7 = vld [vmem:[#allocation162_spill] sm:$0xff] }
 0x523   :  { %3971 = vmatpush.msra.mxu2 %v10955_v14  ;;  %3991 = vmatpush.msra.mxu3 %v10956_v45  ;;  %v10986_v45 = vld [vmem:[#allocation163_spill] sm:$0xff] }
 0x524   :  { %v3441_v9 = vpop.f32.mrf.mxu2  ;;  %3932 = vmatpush.msra.mxu0 %v10957_v3  ;;  %3952 = vmatpush.msra.mxu1 %v10958_v2 }
 0x525   :  { %v3461_v1 = vpop.f32.mrf.mxu3  ;;  %3972 = vmatpush.msra.mxu2 %v10959_v36  ;;  %3992 = vmatpush.msra.mxu3 %v10960_v55  ;;  %v10988_v55 = vld [vmem:[#allocation165_spill] sm:$0xff] }
 0x526   :  { %v3462_v11 = vadd.f32 %v3461_v1, %v10948_v58  ;;  %3933 = vmatpush.msra.mxu0 %v10961_v53  ;;  %3953 = vmatpush.msra.mxu1 %v10962_v61  ;;  %v10973_v1 = vld [vmem:[#allocation35_spill] sm:$0xff] }
 0x527   :  { %3973 = vmatpush.msra.mxu2 %v10963_v26  ;;  %3993 = vmatpush.msra.mxu3 %v10964_v19  ;;  %v10991_v26 = vld [vmem:[#allocation168_spill] sm:$0xff] }
 0x528   :  { %3934 = vmatpush.msra.mxu0 %v10965_v13  ;;  %3954 = vmatpush.msra.mxu1 %v10966_v12  ;;  %v10992_v13 = vld [vmem:[#allocation169_spill] sm:$0xff]  ;;  %v10993_v12 = vld [vmem:[#allocation170_spill] sm:$0xff] }
 0x529   :  { %3974 = vmatpush.msra.mxu2 %v10967_v51  ;;  %3994 = vmatpush.msra.mxu3 %v10968_v56 }
 0x52a   :  { %3935 = vmatpush.msra.mxu0 %v10969_v43  ;;  %3955 = vmatpush.msra.mxu1 %v10970_v20  ;;  %v10994_v20 = vld [vmem:[#allocation171_spill] sm:$0xff] }
 0x52b   :  { %3975 = vmatpush.msra.mxu2 %v10971_v60  ;;  %3995 = vmatpush.msra.mxu3 %v10972_v44  ;;  %v10995_v60 = vld [vmem:[#allocation172_spill] sm:$0xff] }
 0x52d   :  { %3976 = vmatpush.msra.mxu2 %v10976_v52 }
 0x52f   :  { %3977 = vmatpush.msra.mxu2 %v10980_v25  ;;  %v4096_v25 = vld [vmem:[%s9250_s8 + $0x78] sm:$0xff] }
 0x531   :  { %3978 = vmatpush.msra.mxu2 %v10984_v62 }
 0x533   :  { %3979 = vmatpush.msra.mxu2 %v10988_v55  ;;  %v4085_v55 = vld [vmem:[%s9250_s8 + $0x20] sm:$0xff] }
 0x535   :  { %3980 = vmatpush.msra.mxu2 %v10992_v13 }
 0x537   :  { %3981 = vmatpush.msra.mxu2 %v8901_v42 }
 0x539   :  { %v3481_v37 = vpop.f32.mrf.mxu0  ;;  %3982 = vmatpush.msra.mxu2 %v8916_v63 }
 0x53a   :  { %v3544_v50 = vadd.f32 %v3481_v37, %v3402_v18  ;;  %v3442_v18 = vadd.f32 %v3441_v9, %v10973_v1  ;;  %v10975_v37 = vld [vmem:[#allocation152_spill] sm:$0xff] }
 0x53b   :  { %v3501_v48 = vpop.f32.mrf.mxu1  ;;  %3956 = vmatpush.msra.mxu1 %v10975_v37 }
 0x53c   :  { %v3545_v0 = vadd.f32 %v3501_v48, %v3422_v17  ;;  %v4292_v27 = vmul.f32 -1.442695, %v3544_v50  ;;  %v10974_v17 = vld [vmem:[#allocation151_spill] sm:$0xff]  ;;  %v10977_v50 = vld [vmem:[#allocation154_spill] sm:$0xff] }
 0x53d   :  { %3936 = vmatpush.msra.mxu0 %v10974_v17  ;;  %3996 = vmatpush.msra.mxu3 %v10977_v50 }
 0x53e   :  { %v4293_v41 = vmul.f32 -1.442695, %v3545_v0  ;;  %4530 = vpow2.f32 %v4292_v27  ;;  %3957 = vmatpush.msra.mxu1 %v10979_v39  ;;  %v10981_v27 = vld [vmem:[#allocation158_spill] sm:$0xff] }
 0x53f   :  { %3937 = vmatpush.msra.mxu0 %v10978_v47  ;;  %3997 = vmatpush.msra.mxu3 %v10981_v27  ;;  %v4094_v27 = vld [vmem:[%s9250_s8 + $0x68] sm:$0xff] }
 0x540   :  { %4532 = vpow2.f32 %v4293_v41  ;;  %v3521_v48 = vpop.f32.mrf.mxu2  ;;  %v3843_v41 = vld [vmem:[%s9243_s1] sm:$0x3]  ;;  %3958 = vmatpush.msra.mxu1 %v10983_v21  ;;  %v4091_v21 = vld [vmem:[%s9250_s8 + $0x50] sm:$0xff] }
 0x541   :  { %v3541_v49 = vpop.f32.mrf.mxu3  ;;  %v3546_v28 = vadd.f32 %v3521_v48, %v3442_v18  ;;  %3998 = vmatpush.msra.mxu3 %v10985_v7  ;;  %4303 = vmatmul.msk.f32.vlgmr.msrb.gmra.mxu0 %vm355_vm0, %v3843_v41 }
 0x542   :  { %v3547_v38 = vadd.f32 %v3541_v49, %v3462_v11  ;;  %v10982_v11 = vld [vmem:[#allocation159_spill] sm:$0xff]  ;;  %4304 = vmatmul.msk.f32.vlgmr.msrb.gmra.mxu1 %vm355_vm0, %v3843_v41  ;;  %4305 = vmatmul.msk.f32.vlgmr.msrb.gmra.mxu2 %vm355_vm0, %v3843_v41 }
 0x543   :  { %3938 = vmatpush.msra.mxu0 %v10982_v11  ;;  %4306 = vmatmul.msk.f32.vlgmr.msrb.gmra.mxu3 %vm355_vm0, %v3843_v41  ;;  %v4092_v11 = vld [vmem:[%s9250_s8 + $0x58] sm:$0xff] }
 0x544   :  { %v4294_v24 = vmul.f32 -1.442695, %v3547_v38  ;;  %v4531_v23 = vpop.eup %4530  ;;  %v10987_v38 = vld [vmem:[#allocation164_spill] sm:$0xff] }
 0x545   :  { %v9107_v6 = vadd.f32 1.0, %v4531_v23  ;;  %3939 = vmatpush.msra.mxu0 %v10986_v45  ;;  %3959 = vmatpush.msra.mxu1 %v10987_v38  ;;  %v10990_v23 = vld [vmem:[#allocation167_spill] sm:$0xff] }
 0x546   :  { %v4533_v10 = vpop.eup %4532  ;;  %4534 = vpow2.f32 %v4294_v24  ;;  %v10989_v24 = vld [vmem:[#allocation166_spill] sm:$0xff] }
 0x547   :  { %v9111_v16 = vadd.f32 1.0, %v4533_v10  ;;  %4536 = vrcp.f32 %v9107_v6  ;;  %v3563_v14 = vand.u32 2147483648, %v9107_v6  ;;  %v3561_v36 = vand.u32 2147483647, %v9107_v6  ;;  %3999 = vmatpush.msra.mxu3 %v10989_v24  ;;  %3940 = vmatpush.msra.mxu0 %v10990_v23  ;;  %v4084_v24 = vld [vmem:[%s9250_s8 + $0x18] sm:$0xff] }
 0x548   :  { %3960 = vmatpush.msra.mxu1 %v10991_v26  ;;  %vm3557_vm8 = vweird.f32 %v9107_v6 }
 0x549   :  { %4538 = vrcp.f32 %v9111_v16  ;;  %v3582_v3 = vand.u32 2147483648, %v9111_v16  ;;  %v3580_v61 = vand.u32 2147483647, %v9111_v16  ;;  %4000 = vmatpush.msra.mxu3 %v10993_v12  ;;  %vm3576_vm9 = vweird.f32 %v9111_v16  ;;  %3941 = vmatpush.msra.mxu0 %v10994_v20 }
 0x54a   :  { %v3564_v51 = vor.u32 1.1754944e-38, %v3563_v14  ;;  %3961 = vmatpush.msra.mxu1 %v10995_v60  ;;  %vm3562_vm12 = vcmp.eq.f32.partialorder %v3561_v36, 8.507059e+37  ;;  %v4088_v14 = vld [vmem:[%s9250_s8 + $0x38] sm:$0xff]  ;;  %v4086_v36 = vld [vmem:[%s9250_s8 + $0x28] sm:$0xff] }
 0x54b   :  { %v3583_v44 = vor.u32 1.1754944e-38, %v3582_v3  ;;  %4001 = vmatpush.msra.mxu3 %v8904_v54  ;;  %vm3581_vm13 = vcmp.eq.f32.partialorder %v3580_v61, 8.507059e+37  ;;  %3942 = vmatpush.msra.mxu0 %v8910_v5 }
 0x54c   :  { %v4535_v0 = vpop.eup %4534  ;;  %3962 = vmatpush.msra.mxu1 %v8913_v35 }
 0x54d   :  { %v9128_v15 = vadd.f32 1.0, %v4535_v0  ;;  %v4537_v34 = vpop.eup %4536  ;;  %4002 = vmatpush.msra.mxu3 %v8919_v32 }
 0x54e   :  { %v3553_v57 = vmul.f32 %v4537_v34, %v9107_v6  ;;  %vm3558_vm7 = vweird.f32 %v4537_v34  ;;  %4133 = vmatpush.msrb.mxu1 %v4096_v25 }
 0x54f   :  { %v4539_v40 = vpop.eup %4538  ;;  %4540 = vrcp.f32 %v9128_v15  ;;  %vm3559_vm10 = vmor %vm3557_vm8, %vm3558_vm7  ;;  %v3602_v47 = vand.u32 2147483648, %v9128_v15  ;;  %vm3596_vm15 = vweird.f32 %v9128_v15  ;;  %v3600_v5 = vand.u32 2147483647, %v9128_v15 }
 0x550   :  { %v3572_v46 = vmul.f32 %v4539_v40, %v9111_v16  ;;  %v3554_v9 = vsub.f32 1.0, %v3553_v57  ;;  %4542 = vtanh.f32 %v3546_v28  ;;  %vm3577_vm0 = vweird.f32 %v4539_v40  ;;  %v4093_v28 = vld [vmem:[%s9250_s8 + $0x60] sm:$0xff] }
 0x551   :  { %vm3578_vm11 = vmor %vm3576_vm9, %vm3577_vm0  ;;  %v3603_v63 = vor.u32 1.1754944e-38, %v3602_v47  ;;  %vm3601_vm2 = vcmp.eq.f32.partialorder %v3600_v5, 8.507059e+37 }
 0x552   :  { %v3573_v49 = vsub.f32 1.0, %v3572_v46  ;;  %v3555_v2 = vmul.f32 %v4537_v34, %v3554_v9  ;;  %v4089_v46 = vld [vmem:[%s9250_s8 + $0x40] sm:$0xff] }
 0x554   :  { %v3574_v53 = vmul.f32 %v4539_v40, %v3573_v49  ;;  %v3556_v10 = vadd.f32 %v4537_v34, %v3555_v2 }
 0x555   :  { %v4541_v19 = vpop.eup %4540 }
 0x556   :  { %v3575_v56 = vadd.f32 %v4539_v40, %v3574_v53  ;;  %v3592_v43 = vmul.f32 %v4541_v19, %v9128_v15  ;;  %v3560_v6 = vsel %vm3559_vm10, %v4537_v34, %v3556_v10  ;;  %v4543_v16 = vpop.eup %4542  ;;  %vm3597_vm14 = vweird.f32 %v4541_v19  ;;  %v4095_v15 = vld [vmem:[%s9250_s8 + $0x70] sm:$0xff] }
 0x557   :  { %v3565_v18 = vsel %vm3562_vm12, %v3564_v51, %v3560_v6  ;;  %vm3598_vm1 = vmor %vm3596_vm15, %vm3597_vm14  ;;  %4134 = vmatpush.msrb.mxu1 %v4095_v15  ;;  %v4081_v51 = vld [vmem:[%s9250_s8] sm:$0xff] }
 0x558   :  { %v3579_v17 = vsel %vm3578_vm11, %v4539_v40, %v3575_v56  ;;  %v3593_v37 = vsub.f32 1.0, %v3592_v43  ;;  %v3607_v52 = vmul.f32 %v4543_v16, %v3565_v18  ;;  %v4090_v40 = vld [vmem:[%s9250_s8 + $0x48] sm:$0xff] }
 0x559   :  { %v3584_v48 = vsel %vm3581_vm13, %v3583_v44, %v3579_v17  ;;  %4135 = vmatpush.msrb.mxu1 %v4094_v27 }
 0x55a   :  { %v3606_v50 = vmul.f32 %v3584_v48, %v8928_v31  ;;  %v3594_v42 = vmul.f32 %v4541_v19, %v3593_v37 }
 0x55b   :  { %4136 = vmatpush.msrb.mxu1 %v4093_v28 }
 0x55c   :  { %v9172_v0 = vadd.f32 %v3607_v52, %v3606_v50  ;;  %v3595_v54 = vadd.f32 %v4541_v19, %v3594_v42 }
 0x55d   :  { %4137 = vmatpush.msrb.mxu1 %v4092_v11 }
 0x55e   :  { %4544 = vtanh.f32 %v9172_v0  ;;  %v3599_v35 = vsel %vm3598_vm1, %v4541_v19, %v3595_v54  ;;  %v3633_v41 = vpop.f32.mrf.mxu0  ;;  %v4082_v19 = vld [vmem:[%s9250_s8 + $0x8] sm:$0xff] }
 0x55f   :  { %v3604_v39 = vsel %vm3601_vm2, %v3603_v63, %v3599_v35  ;;  %v3653_v34 = vpop.f32.mrf.mxu1  ;;  %4138 = vmatpush.msrb.mxu1 %v4091_v21  ;;  %v3634_v57 = vadd.f32 %v3633_v41, %v10905_v4  ;;  %v4087_v4 = vld [vmem:[%s9250_s8 + $0x30] sm:$0xff] }
 0x560   :  { %v3654_v62 = vadd.f32 %v3653_v34, %v10906_v22 }
 0x561   :  { %4139 = vmatpush.msrb.mxu1 %v4090_v40  ;;  %v4112_v40 = vld [vmem:[#allocation14 + $0x78] sm:$0xff] }
 0x562   :  { %4113 = vmatpush.msrb.mxu0 %v4112_v40 }
 0x563   :  { %4140 = vmatpush.msrb.mxu1 %v4089_v46 }
 0x564   :  { %v4545_v32 = vpop.eup %4544 }
 0x565   :  { %v3610_v31 = vmul.f32 %v4545_v32, %v3604_v39  ;;  %4141 = vmatpush.msrb.mxu1 %v4088_v14  ;;  %v3673_v53 = vpop.f32.mrf.mxu2 }
 0x566   :  { %v3693_v7 = vpop.f32.mrf.mxu3  ;;  %v3674_v43 = vadd.f32 %v3673_v53, %v10926_v8 }
 0x567   :  { %3943 = vmatmul.f32.vlgmr.msra.gmra.mxu0 %v3610_v31  ;;  %3963 = vmatmul.f32.vlgmr.msra.gmra.mxu1 %v3610_v31  ;;  %v3694_v2 = vadd.f32 %v3693_v7, %v10907_v59  ;;  %v4083_v59 = vld [vmem:[%s9250_s8 + $0x10] sm:$0xff]  ;;  %v4111_v7 = vld [vmem:[#allocation14 + $0x70] sm:$0xff] }
 0x568   :  { %3983 = vmatmul.f32.vlgmr.msra.gmra.mxu2 %v3610_v31  ;;  %4003 = vmatmul.f32.vlgmr.msra.gmra.mxu3 %v3610_v31 }
 0x569   :  { %4142 = vmatpush.msrb.mxu1 %v4087_v4  ;;  %4114 = vmatpush.msrb.mxu0 %v4111_v7 }
 0x56b   :  { %4143 = vmatpush.msrb.mxu1 %v4086_v36  ;;  %v4107_v36 = vld [vmem:[#allocation14 + $0x50] sm:$0xff] }
 0x56d   :  { %4144 = vmatpush.msrb.mxu1 %v4085_v55 }
 0x56f   :  { %4145 = vmatpush.msrb.mxu1 %v4084_v24 }
 0x571   :  { %4146 = vmatpush.msrb.mxu1 %v4083_v59 }
 0x573   :  { %4147 = vmatpush.msrb.mxu1 %v4082_v19 }
 0x575   :  { %4148 = vmatpush.msrb.mxu1 %v4081_v51  ;;  %v4103_v51 = vld [vmem:[#allocation14 + $0x30] sm:$0xff] }
 0x595   :  { %v3713_v9 = vpop.f32.mrf.mxu0  ;;  %v3733_v49 = vpop.f32.mrf.mxu1 }
 0x596   :  { %v3776_v45 = vadd.f32 %v3713_v9, %v3634_v57  ;;  %v3777_v38 = vadd.f32 %v3733_v49, %v3654_v62  ;;  %v4110_v49 = vld [vmem:[#allocation14 + $0x68] sm:$0xff] }
 0x597   :  { %4115 = vmatpush.msrb.mxu0 %v4110_v49 }
 0x598   :  { %v4300_v22 = vmul.f32 -1.442695, %v3776_v45  ;;  %v4301_v3 = vmul.f32 -1.442695, %v3777_v38  ;;  %v4109_v38 = vld [vmem:[#allocation14 + $0x60] sm:$0xff] }
 0x599   :  { %4116 = vmatpush.msrb.mxu0 %v4109_v38 }
 0x59a   :  { %4546 = vpow2.f32 %v4300_v22 }
 0x59b   :  { %4548 = vpow2.f32 %v4301_v3  ;;  %v4108_v3 = vld [vmem:[#allocation14 + $0x58] sm:$0xff] }
 0x59c   :  { %v3773_v61 = vpop.f32.mrf.mxu3  ;;  %v3753_v20 = vpop.f32.mrf.mxu2  ;;  %4117 = vmatpush.msrb.mxu0 %v4108_v3 }
 0x59d   :  { %v3779_v23 = vadd.f32 %v3773_v61, %v3694_v2  ;;  %v3778_v16 = vadd.f32 %v3753_v20, %v3674_v43  ;;  %v4106_v61 = vld [vmem:[#allocation14 + $0x48] sm:$0xff] }
 0x59e   :  { %4118 = vmatpush.msrb.mxu0 %v4107_v36  ;;  %v4102_v20 = vld [vmem:[#allocation14 + $0x28] sm:$0xff] }
 0x59f   :  { %v4302_v26 = vmul.f32 -1.442695, %v3779_v23  ;;  %v4105_v23 = vld [vmem:[#allocation14 + $0x40] sm:$0xff] }
 0x5a0   :  { %v4547_v10 = vpop.eup %4546  ;;  %4119 = vmatpush.msrb.mxu0 %v4106_v61 }
 0x5a1   :  { %v4549_v13 = vpop.eup %4548  ;;  %v3783_v12 = vadd.f32 1.0, %v4547_v10  ;;  %4550 = vpow2.f32 %v4302_v26  ;;  %v4104_v26 = vld [vmem:[#allocation14 + $0x38] sm:$0xff] }
 0x5a2   :  { %v3802_v56 = vadd.f32 1.0, %v4549_v13  ;;  %4120 = vmatpush.msrb.mxu0 %v4105_v23 }
 0x5a3   :  { %4552 = vrcp.f32 %v3783_v12  ;;  %v3795_v50 = vand.u32 2147483648, %v3783_v12  ;;  %v3793_v47 = vand.u32 2147483647, %v3783_v12  ;;  %vm3789_vm5 = vweird.f32 %v3783_v12 }
 0x5a4   :  { %4554 = vrcp.f32 %v3802_v56  ;;  %v3814_v42 = vand.u32 2147483648, %v3802_v56  ;;  %v3812_v8 = vand.u32 2147483647, %v3802_v56  ;;  %vm3808_vm6 = vweird.f32 %v3802_v56  ;;  %4121 = vmatpush.msrb.mxu0 %v4104_v26 }
 0x5a5   :  { %v3796_v32 = vor.u32 1.1754944e-38, %v3795_v50  ;;  %vm3794_vm8 = vcmp.eq.f32.partialorder %v3793_v47, 8.507059e+37  ;;  %v4097_v50 = vld [vmem:[#allocation14] sm:$0xff] }
 0x5a6   :  { %v3815_v25 = vor.u32 1.1754944e-38, %v3814_v42  ;;  %vm3813_vm9 = vcmp.eq.f32.partialorder %v3812_v8, 8.507059e+37  ;;  %4122 = vmatpush.msrb.mxu0 %v4103_v51 }
 0x5a7   :  { %v4551_v60 = vpop.eup %4550 }
 0x5a8   :  { %v3822_v44 = vadd.f32 1.0, %v4551_v60  ;;  %4123 = vmatpush.msrb.mxu0 %v4102_v20 }
 0x5a9   :  { %v4553_v6 = vpop.eup %4552 }
 0x5aa   :  { %v4555_v18 = vpop.eup %4554  ;;  %v3785_v17 = vmul.f32 %v4553_v6, %v3783_v12  ;;  %4556 = vrcp.f32 %v3822_v44  ;;  %vm3790_vm3 = vweird.f32 %v4553_v6  ;;  %v3834_v14 = vand.u32 2147483648, %v3822_v44 }
 0x5ab   :  { %v3804_v37 = vmul.f32 %v4555_v18, %v3802_v56  ;;  %4558 = vtanh.f32 %v3778_v16  ;;  %vm3809_vm4 = vweird.f32 %v4555_v18  ;;  %vm3791_vm7 = vmor %vm3789_vm5, %vm3790_vm3  ;;  %vm3828_vm11 = vweird.f32 %v3822_v44  ;;  %v4101_v16 = vld [vmem:[#allocation14 + $0x20] sm:$0xff] }
 0x5ac   :  { %v3786_v48 = vsub.f32 1.0, %v3785_v17  ;;  %vm3810_vm0 = vmor %vm3808_vm6, %vm3809_vm4  ;;  %v3832_v45 = vand.u32 2147483647, %v3822_v44  ;;  %v3835_v2 = vor.u32 1.1754944e-38, %v3834_v14  ;;  %4124 = vmatpush.msrb.mxu0 %v4101_v16 }
 0x5ad   :  { %v3805_v52 = vsub.f32 1.0, %v3804_v37 }
 0x5ae   :  { %v3787_v54 = vmul.f32 %v4553_v6, %v3786_v48  ;;  %vm3833_vm13 = vcmp.eq.f32.partialorder %v3832_v45, 8.507059e+37  ;;  %v4098_v48 = vld [vmem:[#allocation14 + $0x8] sm:$0xff] }
 0x5af   :  { %v3806_v5 = vmul.f32 %v4555_v18, %v3805_v52 }
 0x5b0   :  { %v4557_v35 = vpop.eup %4556  ;;  %v3788_v63 = vadd.f32 %v4553_v6, %v3787_v54 }
 0x5b1   :  { %v3807_v39 = vadd.f32 %v4555_v18, %v3806_v5  ;;  %v3824_v31 = vmul.f32 %v4557_v35, %v3822_v44  ;;  %v4559_v27 = vpop.eup %4558  ;;  %vm3829_vm10 = vweird.f32 %v4557_v35 }
 0x5b2   :  { %v3792_v15 = vsel %vm3791_vm7, %v4553_v6, %v3788_v63  ;;  %vm3830_vm12 = vmor %vm3828_vm11, %vm3829_vm10 }
 0x5b3   :  { %v3797_v41 = vsel %vm3794_vm8, %v3796_v32, %v3792_v15  ;;  %v3811_v34 = vsel %vm3810_vm0, %v4555_v18, %v3807_v39  ;;  %v3825_v28 = vsub.f32 1.0, %v3824_v31  ;;  %v4100_v18 = vld [vmem:[#allocation14 + $0x18] sm:$0xff] }
 0x5b4   :  { %v3816_v11 = vsel %vm3813_vm9, %v3815_v25, %v3811_v34  ;;  %v3839_v21 = vmul.f32 %v4559_v27, %v3797_v41  ;;  %4125 = vmatpush.msrb.mxu0 %v4100_v18 }
 0x5b5   :  { %v3838_v57 = vmul.f32 %v3816_v11, %v9073_v29  ;;  %v3826_v62 = vmul.f32 %v4557_v35, %v3825_v28 }
 0x5b7   :  { %v3840_v46 = vadd.f32 %v3839_v21, %v3838_v57  ;;  %v3827_v9 = vadd.f32 %v4557_v35, %v3826_v62 }
 0x5b9   :  { %4560 = vtanh.f32 %v3840_v46  ;;  %4075 = vst [vmem:[#allocation3] sm:$0x3] %v3840_v46  ;;  %v3831_v29 = vsel %vm3830_vm12, %v4557_v35, %v3827_v9 }
 0x5ba   :  { %v3836_v24 = vsel %vm3833_vm13, %v3835_v2, %v3831_v29 }
 0x5be   :  { %v3864_v4 = vpop.f32.mrf.mxu0 }
 0x5bf   :  { %v3884_v22 = vpop.f32.mrf.mxu1  ;;  %v4561_v55 = vpop.eup %4560  ;;  %v3865_v19 = vadd.f32 %v3864_v4, %v6198_v30  ;;  %v4099_v30 = vld [vmem:[#allocation14 + $0x10] sm:$0xff] }
 0x5c0   :  { %v3842_v53 = vmul.f32 %v4561_v55, %v3836_v24  ;;  %v3885_v10 = vadd.f32 %v3884_v22, %v6203_v33  ;;  %4126 = vmatpush.msrb.mxu0 %v4099_v30 }
 0x5c2   :  { %4074 = vst [vmem:[#allocation2] sm:$0x3] %v3842_v53  ;;  %4149 = vmatmul.f32.vlgmr.msrb.gmra.mxu1 %v3842_v53  ;;  %4127 = vmatpush.msrb.mxu0 %v4098_v48 }
 0x5c4   :  { %4128 = vmatpush.msrb.mxu0 %v4097_v50 }
 0x5c5   :  { %v3904_v33 = vpop.f32.mrf.mxu2 }
 0x5c6   :  { %v3924_v59 = vpop.f32.mrf.mxu3  ;;  %v3905_v5 = vadd.f32 %v3904_v33, %v10973_v1 }
 0x5c7   :  { %v3925_v6 = vadd.f32 %v3924_v59, %v10948_v58 }
 0x5e4   :  { %v3944_v13 = vpop.f32.mrf.mxu0  ;;  %v3964_v12 = vpop.f32.mrf.mxu1 }
 0x5e5   :  { %v4007_v56 = vadd.f32 %v3944_v13, %v3865_v19  ;;  %v4008_v43 = vadd.f32 %v3964_v12, %v3885_v10 }
 0x5e7   :  { %v4307_v60 = vmul.f32 -1.442695, %v4007_v56  ;;  %v4308_v44 = vmul.f32 -1.442695, %v4008_v43 }
 0x5e9   :  { %4562 = vpow2.f32 %v4307_v60 }
 0x5ea   :  { %4564 = vpow2.f32 %v4308_v44 }
 0x5eb   :  { %v4004_v17 = vpop.f32.mrf.mxu3  ;;  %v3984_v8 = vpop.f32.mrf.mxu2 }
 0x5ec   :  { %v4010_v37 = vadd.f32 %v4004_v17, %v3925_v6  ;;  %v4009_v39 = vadd.f32 %v3984_v8, %v3905_v5 }
 0x5ee   :  { %v4309_v52 = vmul.f32 -1.442695, %v4010_v37 }
 0x5ef   :  { %v4563_v42 = vpop.eup %4562 }
 0x5f0   :  { %v4565_v54 = vpop.eup %4564  ;;  %v4014_v47 = vadd.f32 1.0, %v4563_v42  ;;  %4566 = vpow2.f32 %v4309_v52 }
 0x5f1   :  { %v4033_v58 = vadd.f32 1.0, %v4565_v54 }
 0x5f2   :  { %4568 = vrcp.f32 %v4014_v47  ;;  %v4026_v34 = vand.u32 2147483648, %v4014_v47  ;;  %v4024_v21 = vand.u32 2147483647, %v4014_v47  ;;  %vm4020_vm1 = vweird.f32 %v4014_v47 }
 0x5f3   :  { %4570 = vrcp.f32 %v4033_v58  ;;  %v4045_v28 = vand.u32 2147483648, %v4033_v58  ;;  %v4043_v1 = vand.u32 2147483647, %v4033_v58  ;;  %vm4039_vm2 = vweird.f32 %v4033_v58 }
 0x5f4   :  { %v4027_v7 = vor.u32 1.1754944e-38, %v4026_v34  ;;  %vm4025_vm5 = vcmp.eq.f32.partialorder %v4024_v21, 8.507059e+37 }
 0x5f5   :  { %v4046_v49 = vor.u32 1.1754944e-38, %v4045_v28  ;;  %vm4044_vm6 = vcmp.eq.f32.partialorder %v4043_v1, 8.507059e+37 }
 0x5f6   :  { %v4567_v35 = vpop.eup %4566 }
 0x5f7   :  { %v4053_v63 = vadd.f32 1.0, %v4567_v35 }
 0x5f8   :  { %v4569_v32 = vpop.eup %4568 }
 0x5f9   :  { %v4571_v31 = vpop.eup %4570  ;;  %v4016_v25 = vmul.f32 %v4569_v32, %v4014_v47  ;;  %4572 = vrcp.f32 %v4053_v63  ;;  %vm4021_vm14 = vweird.f32 %v4569_v32  ;;  %v4065_v53 = vand.u32 2147483648, %v4053_v63 }
 0x5fa   :  { %v4035_v15 = vmul.f32 %v4571_v31, %v4033_v58  ;;  %4574 = vtanh.f32 %v4009_v39  ;;  %vm4040_vm15 = vweird.f32 %v4571_v31  ;;  %vm4022_vm3 = vmor %vm4020_vm1, %vm4021_vm14  ;;  %vm4059_vm0 = vweird.f32 %v4053_v63 }
 0x5fb   :  { %v4017_v27 = vsub.f32 1.0, %v4016_v25  ;;  %vm4041_vm4 = vmor %vm4039_vm2, %vm4040_vm15  ;;  %v4063_v61 = vand.u32 2147483647, %v4053_v63  ;;  %v4066_v59 = vor.u32 1.1754944e-38, %v4065_v53 }
 0x5fc   :  { %v4036_v41 = vsub.f32 1.0, %v4035_v15 }
 0x5fd   :  { %v4018_v11 = vmul.f32 %v4569_v32, %v4017_v27  ;;  %vm4064_vm9 = vcmp.eq.f32.partialorder %v4063_v61, 8.507059e+37 }
 0x5fe   :  { %v4037_v40 = vmul.f32 %v4571_v31, %v4036_v41 }
 0x5ff   :  { %v4573_v57 = vpop.eup %4572  ;;  %v4019_v62 = vadd.f32 %v4569_v32, %v4018_v11 }
 0x600   :  { %v4038_v46 = vadd.f32 %v4571_v31, %v4037_v40  ;;  %v4055_v9 = vmul.f32 %v4573_v57, %v4053_v63  ;;  %v4575_v45 = vpop.eup %4574  ;;  %vm4060_vm7 = vweird.f32 %v4573_v57 }
 0x601   :  { %v4023_v14 = vsel %vm4022_vm3, %v4569_v32, %v4019_v62  ;;  %vm4061_vm8 = vmor %vm4059_vm0, %vm4060_vm7 }
 0x602   :  { %v4028_v38 = vsel %vm4025_vm5, %v4027_v7, %v4023_v14  ;;  %v4042_v4 = vsel %vm4041_vm4, %v4571_v31, %v4038_v46  ;;  %v4056_v22 = vsub.f32 1.0, %v4055_v9 }
 0x603   :  { %v4047_v29 = vsel %vm4044_vm6, %v4046_v49, %v4042_v4  ;;  %v4070_v3 = vmul.f32 %v4575_v45, %v4028_v38 }
 0x604   :  { %v4069_v2 = vmul.f32 %v4047_v29, %v9172_v0  ;;  %v4057_v36 = vmul.f32 %v4573_v57, %v4056_v22  ;;  %v4321_v0 = vld [vmem:[%s9252_s10] ss:$0 sm:$0xff] }
 0x606   :  { %v4071_v55 = vadd.f32 %v4070_v3, %v4069_v2  ;;  %v4058_v24 = vadd.f32 %v4573_v57, %v4057_v36 }
 0x608   :  { %4576 = vtanh.f32 %v4071_v55  ;;  %4077 = vst [vmem:[#allocation5] sm:$0x3] %v4071_v55  ;;  %v4062_v23 = vsel %vm4061_vm8, %v4573_v57, %v4058_v24 }
 0x609   :  { %v4067_v19 = vsel %vm4064_vm9, %v4066_v59, %v4062_v23 }
 0x60e   :  { %v4577_v26 = vpop.eup %4576 }
 0x60f   :  { %v4073_v10 = vmul.f32 %v4577_v26, %v4067_v19 }
 0x611   :  { %4076 = vst [vmem:[#allocation4] sm:$0x3] %v4073_v10  ;;  %4129 = vmatmul.f32.vlgmr.msrb.gmra.mxu0 %v4073_v10 }
 0x63f   :  { %v4150_v13 = vpop.f32.mrf.mxu1 }
 0x68e   :  { %v4130_v12 = vpop.f32.mrf.mxu0 }
 0x68f   :  { %v4151_v51 = vadd.f32 %v4150_v13, %v4130_v12 }
 0x691   :  { %v4157_v56 = vadd.f32 %v4321_v0, %v4151_v51 }
 0x693   :  { %4158 = vst [vmem:[#allocation15] sm:$0x3] %v4157_v56 }
 0x694   :  { %4169 = dma.vmem_to_hbm [thread:$0]  %s4165_s14, 32, %s4167_s7, [#allocation8]  }
 0x695   :  { %5304 = dma.done.wait [#allocation8], 32  }
 0x696   :  { %5305 = vsyncadd [#allocation8], 4294967264 }
 0x697   :  { %4174 = vsyncpa [#allocation7], 1 }
 0x698   :  { %4175 = vsyncpa [#allocation10], 1 }
 0x699   :  { %4176 = vsyncpa [#allocation13], 1 }
 0x69a   :  { %4177 = vsyncpa [#allocation8], 1 }

</bundles_post_ra>
